<compile_context>
chip_gen: v7x
topology: tpu7x:2x2x1
jax: 0.10.0
libtpu: 0.0.40
codegen_flags: <defaults>
</compile_context>

<pallas_src>
import jax
import jax.numpy as jnp
from jax.experimental import pallas as pl
from jax.experimental.pallas import tpu as pltpu


def _lrelu(v):
    # LeakyReLU(0.1) as in the PyTorch module
    return jnp.where(v >= 0, v, 0.1 * v)


def refine_rubik_kernel(
    x_ref,                         # (H, W, C)            VMEM
    s1_ref,                        # (8,)                 SMEM  Rubik#1 scalar 1x1 convs (w1,b1,...,w4,b4)
    wout1_ref, bout1_ref,          # (C, C), (1, C)       Rubik#1 processOutput
    wp1_ref, bp1_ref,              # (9C, C), (1, C)      CA 3x3 conv #1 (im2col-folded)
    wp2_ref, bp2_ref,              # (9C, C), (1, C)      CA 3x3 conv #2 (im2col-folded)
    wd1_ref, bd1_ref,              # (C, Cr), (1, Cr)     CA squeeze
    wd2_ref, bd2_ref,              # (Cr, C), (1, C)      CA excite
    s2_ref,                        # (8,)                 SMEM  Rubik#2 scalars
    wout2_ref, bout2_ref,          # (C, C), (1, C)       Rubik#2 processOutput
    wlast_ref, blast_ref,          # (C, OutPad), (1, OutPad)  final 1x1 conv (zero-padded to 128 lanes)
    o_ref,                         # (H*W, OutPad)        VMEM  lane-dense output slab
    pad_ref,                       # (H+2, W+16, C)       VMEM  scratch (zero halo, aligned interior)
):
    H, W, C = x_ref.shape
    HW = H * W
    WO = 8   # interior start along W (the sublane axis) -> interior stores are 8-sublane aligned

    # Zero the halo buffer; every stage rewrites only the interior so the zero border
    # supplies the zero-fill of all spatial shifts / conv taps.  (Re-done per grid step
    # on purpose: with "parallel" batch semantics each core owns its own scratch.)
    pad_ref[...] = jnp.zeros_like(pad_ref)

    def set_interior(v_flat):
        # Sublane-aligned, lane-full store (W offset 8, full C lanes).
        pad_ref[1:H + 1, WO:WO + W, :] = v_flat.reshape(H, W, C)

    def rubik(v_flat, s_ref, wout_ref, bout_ref):
        # RubikCube_multiply: per-channel spatial shifts + chained scalar 1x1 convs.
        set_interior(v_flat)
        c1 = pad_ref[1:1 + H, WO + 1:WO + 1 + W, 0:1]   # ch0: x[h, w+1]  (zero-fill right edge)
        c2 = pad_ref[1:1 + H, WO - 1:WO - 1 + W, 1:2]   # ch1: x[h, w-1]  (zero-fill left edge)
        c3 = pad_ref[2:2 + H, WO:WO + W, 2:3]           # ch2: x[h+1, w]  (zero-fill bottom)
        c4 = pad_ref[0:0 + H, WO:WO + W, 3:4]           # ch3: x[h-1, w]  (zero-fill top)
        c1p = _lrelu(s_ref[0] * c1 + s_ref[1])
        c2p = _lrelu(s_ref[2] * (c1p * c2) + s_ref[3])
        c3p = _lrelu(s_ref[4] * (c2p * c3) + s_ref[5])
        c4p = _lrelu(s_ref[6] * (c3p * c4) + s_ref[7])
        v3 = v_flat.reshape(H, W, C)
        # Only channels 0..3 are replaced; channels >= 4 pass through unshifted.
        pieces = [c1p, c2p, c3p, c4p]
        if C > 4:
            pieces.append(v3[:, :, 4:])
        cat = jnp.concatenate(pieces, axis=-1)
        out = _lrelu(jnp.dot(cat.reshape(HW, C), wout_ref[...],
                             preferred_element_type=jnp.float32) + bout_ref[...])
        return out + v_flat                      # + residual

    def conv3x3(v_flat, w9_ref, b_ref):
        # im2col fold: one (HW, 9C) @ (9C, C) MXU matmul instead of nine K=C matmuls.
        set_interior(v_flat)
        taps = [pad_ref[ky:ky + H, WO - 1 + kx:WO - 1 + kx + W, :].reshape(HW, C)
                for ky in range(3) for kx in range(3)]
        patch = jnp.concatenate(taps, axis=-1)   # (HW, 9C)
        return jnp.dot(patch, w9_ref[...],
                       preferred_element_type=jnp.float32) + b_ref[...]

    x_flat = x_ref[...].reshape(HW, C)

    # --- conv_in: RubikCube_multiply #1 ---
    out = rubik(x_flat, s1_ref, wout1_ref, bout1_ref)

    # --- process: ChannelAttention ---
    res = jnp.maximum(conv3x3(out, wp1_ref, bp1_ref), 0.0)
    res = conv3x3(res, wp2_ref, bp2_ref)
    y = jnp.mean(res, axis=0, keepdims=True)                          # global avg pool -> (1, C)
    z = jnp.maximum(jnp.dot(y, wd1_ref[...],
                            preferred_element_type=jnp.float32) + bd1_ref[...], 0.0)
    z = jax.nn.sigmoid(jnp.dot(z, wd2_ref[...],
                               preferred_element_type=jnp.float32) + bd2_ref[...])
    out = z * res + out                                               # (1,C) broadcast scale

    # --- conv_last: RubikCube_multiply #2 then (lane-padded) 1x1 conv ---
    out = rubik(out, s2_ref, wout2_ref, bout2_ref)
    o_ref[...] = (jnp.dot(out, wlast_ref[...],
                          preferred_element_type=jnp.float32)
                  + blast_ref[...]).astype(o_ref.dtype)


def refine_rubik_forward(x_nchw, p):
    B, C, H, W = x_nchw.shape
    x = jnp.transpose(x_nchw, (0, 2, 3, 1)).astype(jnp.float32)       # NCHW -> NHWC
    out_c = p["wlast"].shape[-1]
    red_c = p["wd1"].shape[-1]
    out_pad = ((out_c + 127) // 128) * 128                            # lane-dense output width

    # Host-side weight reshuffles (free): fold the 3x3 taps into a single K=9C matmul
    # and zero-pad the final 1x1 so kernel stores are unmasked / lane dense.
    wp1 = p["wp1"].reshape(9 * C, C)
    wp2 = p["wp2"].reshape(9 * C, C)
    wlast = jnp.zeros((C, out_pad), jnp.float32).at[:, :out_c].set(p["wlast"])
    blast = jnp.zeros((1, out_pad), jnp.float32).at[:, :out_c].set(p["blast"])

    def z2(b): return (0, 0)

    grid_spec = pltpu.PrefetchScalarGridSpec(
        num_scalar_prefetch=0,
        grid=(B,),
        in_specs=[
            pl.BlockSpec((None, H, W, C), lambda b: (b, 0, 0, 0)),
            pl.BlockSpec(memory_space=pltpu.MemorySpace.SMEM),             # s1
            pl.BlockSpec((C, C), z2), pl.BlockSpec((1, C), z2),            # wout1, bout1
            pl.BlockSpec((9 * C, C), z2), pl.BlockSpec((1, C), z2),        # wp1 (9C,C), bp1
            pl.BlockSpec((9 * C, C), z2), pl.BlockSpec((1, C), z2),        # wp2 (9C,C), bp2
            pl.BlockSpec((C, red_c), z2), pl.BlockSpec((1, red_c), z2),    # wd1, bd1
            pl.BlockSpec((red_c, C), z2), pl.BlockSpec((1, C), z2),        # wd2, bd2
            pl.BlockSpec(memory_space=pltpu.MemorySpace.SMEM),             # s2
            pl.BlockSpec((C, C), z2), pl.BlockSpec((1, C), z2),            # wout2, bout2
            pl.BlockSpec((C, out_pad), z2), pl.BlockSpec((1, out_pad), z2),  # wlast, blast (padded)
        ],
        out_specs=pl.BlockSpec((None, H * W, out_pad), lambda b: (b, 0, 0)),
        scratch_shapes=[pltpu.VMEM((H + 2, W + 16, C), jnp.float32)],
    )
    fn = pl.pallas_call(
        refine_rubik_kernel,
        out_shape=jax.ShapeDtypeStruct((B, H * W, out_pad), jnp.float32),
        grid_spec=grid_spec,
        # batch images are independent -> "parallel" lets v7x shard the grid across both
        # TensorCores (no-op on single-TC v5e/v6e).
        compiler_params=pltpu.CompilerParams(dimension_semantics=("parallel",)),
    )
    out = fn(x, p["s1"], p["wout1"], p["bout1"],
             wp1, p["bp1"], wp2, p["bp2"],
             p["wd1"], p["bd1"], p["wd2"], p["bd2"],
             p["s2"], p["wout2"], p["bout2"],
             wlast, blast)
    out = out[:, :, :out_c].reshape(B, H, W, out_c)                   # drop lane padding
    return jnp.transpose(out, (0, 3, 1, 2))                           # NHWC -> NCHW


def init_params(key, n_feat, out_channel, reduction=4):
    ks = jax.random.split(key, 16)
    C = n_feat

    def r(k, shape, scale=0.1):
        return (scale * jax.random.normal(k, shape)).astype(jnp.float32)

    return dict(
        s1=r(ks[0], (8,)),
        wout1=r(ks[1], (C, C)), bout1=r(ks[2], (1, C)),
        wp1=r(ks[3], (3, 3, C, C)), bp1=r(ks[4], (1, C)),
        wp2=r(ks[5], (3, 3, C, C)), bp2=r(ks[6], (1, C)),
        wd1=r(ks[7], (C, C // reduction)), bd1=r(ks[8], (1, C // reduction)),
        wd2=r(ks[9], (C // reduction, C)), bd2=r(ks[10], (1, C)),
        s2=r(ks[11], (8,)),
        wout2=r(ks[12], (C, C)), bout2=r(ks[13], (1, C)),
        wlast=r(ks[14], (C, out_channel)), blast=r(ks[15], (1, out_channel)),
    )


def ref_forward(x, p):
    """Pure-JAX NHWC reference with identical parameter layout (for validation)."""
    def lrelu(v): return jnp.where(v >= 0, v, 0.1 * v)

    def shift(v, dy, dx):
        B, H, W, C = v.shape
        vp = jnp.pad(v, ((0, 0), (1, 1), (1, 1), (0, 0)))
        return vp[:, 1 + dy:1 + dy + H, 1 + dx:1 + dx + W, :]

    def rubik(v, s, wout, bout):
        c1 = shift(v, 0, 1)[..., 0:1]
        c2 = shift(v, 0, -1)[..., 1:2]
        c3 = shift(v, 1, 0)[..., 2:3]
        c4 = shift(v, -1, 0)[..., 3:4]
        c1p = lrelu(s[0] * c1 + s[1])
        c2p = lrelu(s[2] * (c1p * c2) + s[3])
        c3p = lrelu(s[4] * (c2p * c3) + s[5])
        c4p = lrelu(s[6] * (c3p * c4) + s[7])
        cat = jnp.concatenate([c1p, c2p, c3p, c4p, v[..., 4:]], axis=-1)
        out = lrelu(jnp.einsum('bhwc,cd->bhwd', cat, wout) + bout[0])
        return out + v

    def conv3x3(v, wk, b):
        acc = 0.0
        for ky in range(3):
            for kx in range(3):
                acc = acc + jnp.einsum('bhwc,cd->bhwd', shift(v, ky - 1, kx - 1), wk[ky, kx])
        return acc + b[0]

    out = rubik(x, p["s1"], p["wout1"], p["bout1"])
    res = conv3x3(out, p["wp1"], p["bp1"])
    res = jnp.maximum(res, 0.0)
    res = conv3x3(res, p["wp2"], p["bp2"])
    y = jnp.mean(res, axis=(1, 2), keepdims=True)
    z = jnp.maximum(jnp.einsum('bijc,cd->bijd', y, p["wd1"]) + p["bd1"][0], 0.0)
    z = jax.nn.sigmoid(jnp.einsum('bijc,cd->bijd', z, p["wd2"]) + p["bd2"][0])
    out = z * res + out
    out = rubik(out, p["s2"], p["wout2"], p["bout2"])
    return jnp.einsum('bhwc,cd->bhwd', out, p["wlast"]) + p["blast"][0]


if __name__ == "__main__":
    key = jax.random.PRNGKey(0)
    k_x, k_p = jax.random.split(key)
    B, C, H, W = 2, 16, 16, 16          # n_feat = 16 (>= 5 channels, divisible by reduction 4)
    out_channel = 8
    x = jax.random.normal(k_x, (B, C, H, W), dtype=jnp.float32)   # PyTorch-style NCHW input
    params = init_params(k_p, C, out_channel, reduction=4)

    out = refine_rubik_forward(x, params)
    out = jax.block_until_ready(out)
    assert out.shape == (B, out_channel, H, W)

    ref = jnp.transpose(ref_forward(jnp.transpose(x, (0, 2, 3, 1)), params), (0, 3, 1, 2))
    if not jnp.allclose(out, ref, rtol=1e-3, atol=1e-3):
        raise AssertionError("Pallas kernel mismatch vs pure-JAX reference")

    print("KERNEL_OK")
</pallas_src>

<mosaic_0001>
module attributes {stable_mosaic.version = 11 : i64} {
  func.func @refine_rubik_kernel(%arg0: i32, %arg1: memref<1x16x16x16xf32, #tpu.memory_space<vmem>>, %arg2: memref<8xf32, #tpu.memory_space<smem>>, %arg3: memref<16x16xf32, #tpu.memory_space<vmem>>, %arg4: memref<1x16xf32, #tpu.memory_space<vmem>>, %arg5: memref<144x16xf32, #tpu.memory_space<vmem>>, %arg6: memref<1x16xf32, #tpu.memory_space<vmem>>, %arg7: memref<144x16xf32, #tpu.memory_space<vmem>>, %arg8: memref<1x16xf32, #tpu.memory_space<vmem>>, %arg9: memref<16x4xf32, #tpu.memory_space<vmem>>, %arg10: memref<1x4xf32, #tpu.memory_space<vmem>>, %arg11: memref<4x16xf32, #tpu.memory_space<vmem>>, %arg12: memref<1x16xf32, #tpu.memory_space<vmem>>, %arg13: memref<8xf32, #tpu.memory_space<smem>>, %arg14: memref<16x16xf32, #tpu.memory_space<vmem>>, %arg15: memref<1x16xf32, #tpu.memory_space<vmem>>, %arg16: memref<16x128xf32, #tpu.memory_space<vmem>>, %arg17: memref<1x128xf32, #tpu.memory_space<vmem>>, %arg18: memref<1x256x128xf32, #tpu.memory_space<vmem>>, %arg19: memref<18x32x16xf32, #tpu.memory_space<vmem>>) attributes {dimension_semantics = [#tpu.dimension_semantics<parallel>], iteration_bounds = array<i64: 2>, scalar_prefetch = 0 : i64, scratch_operands = 1 : i64, tpu.core_type = #tpu.core_type<tc>, window_params = [{transform_indices = @transform_0, window_bounds = array<i64: 1, 16, 16, 16>}, {transform_indices = @transform_1, window_bounds = array<i64: 8>}, {pipeline_mode = #tpu.pipeline_mode<synchronous>, transform_indices = @transform_2, window_bounds = array<i64: 16, 16>}, {pipeline_mode = #tpu.pipeline_mode<synchronous>, transform_indices = @transform_3, window_bounds = array<i64: 1, 16>}, {pipeline_mode = #tpu.pipeline_mode<synchronous>, transform_indices = @transform_4, window_bounds = array<i64: 144, 16>}, {pipeline_mode = #tpu.pipeline_mode<synchronous>, transform_indices = @transform_5, window_bounds = array<i64: 1, 16>}, {pipeline_mode = #tpu.pipeline_mode<synchronous>, transform_indices = @transform_6, window_bounds = array<i64: 144, 16>}, {pipeline_mode = #tpu.pipeline_mode<synchronous>, transform_indices = @transform_7, window_bounds = array<i64: 1, 16>}, {pipeline_mode = #tpu.pipeline_mode<synchronous>, transform_indices = @transform_8, window_bounds = array<i64: 16, 4>}, {pipeline_mode = #tpu.pipeline_mode<synchronous>, transform_indices = @transform_9, window_bounds = array<i64: 1, 4>}, {pipeline_mode = #tpu.pipeline_mode<synchronous>, transform_indices = @transform_10, window_bounds = array<i64: 4, 16>}, {pipeline_mode = #tpu.pipeline_mode<synchronous>, transform_indices = @transform_11, window_bounds = array<i64: 1, 16>}, {transform_indices = @transform_12, window_bounds = array<i64: 8>}, {pipeline_mode = #tpu.pipeline_mode<synchronous>, transform_indices = @transform_13, window_bounds = array<i64: 16, 16>}, {pipeline_mode = #tpu.pipeline_mode<synchronous>, transform_indices = @transform_14, window_bounds = array<i64: 1, 16>}, {pipeline_mode = #tpu.pipeline_mode<synchronous>, transform_indices = @transform_15, window_bounds = array<i64: 16, 128>}, {pipeline_mode = #tpu.pipeline_mode<synchronous>, transform_indices = @transform_16, window_bounds = array<i64: 1, 128>}, {transform_indices = @transform_17, window_bounds = array<i64: 1, 256, 128>}]} {
    %cst = arith.constant 0.000000e+00 : f32
    %0 = vector.broadcast %cst : f32 to vector<18x32x16xf32>
    %c0 = arith.constant 0 : index
    %c0_0 = arith.constant 0 : index
    %c0_1 = arith.constant 0 : index
    %1 = vector.load %arg19[%c0, %c0_0, %c0_1] : memref<18x32x16xf32, #tpu.memory_space<vmem>>, vector<18x32x16xf32>
    tpu.vector_store %arg19[%c0, %c0_0, %c0_1], %0 {strides = array<i32>} : memref<18x32x16xf32, #tpu.memory_space<vmem>>, vector<18x32x16xf32>,
    %c0_2 = arith.constant 0 : index
    %c0_3 = arith.constant 0 : index
    %c0_4 = arith.constant 0 : index
    %c0_5 = arith.constant 0 : index
    %2 = vector.load %arg1[%c0_2, %c0_3, %c0_4, %c0_5] : memref<1x16x16x16xf32, #tpu.memory_space<vmem>>, vector<1x16x16x16xf32>
    %3 = vector.shape_cast %2 : vector<1x16x16x16xf32> to vector<16x16x16xf32>
    %4 = vector.shape_cast %3 : vector<16x16x16xf32> to vector<256x16xf32>
    %5 = vector.shape_cast %4 : vector<256x16xf32> to vector<16x16x16xf32>
    %c1 = arith.constant 1 : index
    %c8 = arith.constant 8 : index
    %c0_6 = arith.constant 0 : index
    %6 = vector.load %arg19[%c1, %c8, %c0_6] : memref<18x32x16xf32, #tpu.memory_space<vmem>>, vector<16x16x16xf32>
    tpu.vector_store %arg19[%c1, %c8, %c0_6], %5 {strides = array<i32>} : memref<18x32x16xf32, #tpu.memory_space<vmem>>, vector<16x16x16xf32>,
    %c1_7 = arith.constant 1 : index
    %c9 = arith.constant 9 : index
    %c0_8 = arith.constant 0 : index
    %7 = vector.load %arg19[%c1_7, %c9, %c0_8] : memref<18x32x16xf32, #tpu.memory_space<vmem>>, vector<16x16x1xf32>
    %c1_9 = arith.constant 1 : index
    %c7 = arith.constant 7 : index
    %c1_10 = arith.constant 1 : index
    %8 = vector.load %arg19[%c1_9, %c7, %c1_10] : memref<18x32x16xf32, #tpu.memory_space<vmem>>, vector<16x16x1xf32>
    %c2 = arith.constant 2 : index
    %c8_11 = arith.constant 8 : index
    %c2_12 = arith.constant 2 : index
    %9 = vector.load %arg19[%c2, %c8_11, %c2_12] : memref<18x32x16xf32, #tpu.memory_space<vmem>>, vector<16x16x1xf32>
    %c0_13 = arith.constant 0 : index
    %c8_14 = arith.constant 8 : index
    %c3 = arith.constant 3 : index
    %10 = vector.load %arg19[%c0_13, %c8_14, %c3] : memref<18x32x16xf32, #tpu.memory_space<vmem>>, vector<16x16x1xf32>
    %c0_15 = arith.constant 0 : index
    %11 = memref.load %arg2[%c0_15] : memref<8xf32, #tpu.memory_space<smem>>
    %12 = vector.broadcast %11 : f32 to vector<16x16x1xf32>
    %13 = arith.mulf %12, %7 : vector<16x16x1xf32>
    %c1_16 = arith.constant 1 : index
    %14 = memref.load %arg2[%c1_16] : memref<8xf32, #tpu.memory_space<smem>>
    %15 = vector.broadcast %14 : f32 to vector<16x16x1xf32>
    %16 = arith.addf %13, %15 : vector<16x16x1xf32>
    %cst_17 = arith.constant 0.000000e+00 : f32
    %17 = vector.broadcast %cst_17 : f32 to vector<16x16x1xf32>
    %18 = arith.cmpf oge, %16, %17 : vector<16x16x1xf32>
    %cst_18 = arith.constant 1.000000e-01 : f32
    %19 = vector.broadcast %cst_18 : f32 to vector<16x16x1xf32>
    %20 = arith.mulf %19, %16 : vector<16x16x1xf32>
    %21 = arith.select %18, %16, %20 : vector<16x16x1xi1>, vector<16x16x1xf32>
    %c2_19 = arith.constant 2 : index
    %22 = memref.load %arg2[%c2_19] : memref<8xf32, #tpu.memory_space<smem>>
    %23 = arith.mulf %21, %8 : vector<16x16x1xf32>
    %24 = vector.broadcast %22 : f32 to vector<16x16x1xf32>
    %25 = arith.mulf %24, %23 : vector<16x16x1xf32>
    %c3_20 = arith.constant 3 : index
    %26 = memref.load %arg2[%c3_20] : memref<8xf32, #tpu.memory_space<smem>>
    %27 = vector.broadcast %26 : f32 to vector<16x16x1xf32>
    %28 = arith.addf %25, %27 : vector<16x16x1xf32>
    %cst_21 = arith.constant 0.000000e+00 : f32
    %29 = vector.broadcast %cst_21 : f32 to vector<16x16x1xf32>
    %30 = arith.cmpf oge, %28, %29 : vector<16x16x1xf32>
    %cst_22 = arith.constant 1.000000e-01 : f32
    %31 = vector.broadcast %cst_22 : f32 to vector<16x16x1xf32>
    %32 = arith.mulf %31, %28 : vector<16x16x1xf32>
    %33 = arith.select %30, %28, %32 : vector<16x16x1xi1>, vector<16x16x1xf32>
    %c4 = arith.constant 4 : index
    %34 = memref.load %arg2[%c4] : memref<8xf32, #tpu.memory_space<smem>>
    %35 = arith.mulf %33, %9 : vector<16x16x1xf32>
    %36 = vector.broadcast %34 : f32 to vector<16x16x1xf32>
    %37 = arith.mulf %36, %35 : vector<16x16x1xf32>
    %c5 = arith.constant 5 : index
    %38 = memref.load %arg2[%c5] : memref<8xf32, #tpu.memory_space<smem>>
    %39 = vector.broadcast %38 : f32 to vector<16x16x1xf32>
    %40 = arith.addf %37, %39 : vector<16x16x1xf32>
    %cst_23 = arith.constant 0.000000e+00 : f32
    %41 = vector.broadcast %cst_23 : f32 to vector<16x16x1xf32>
    %42 = arith.cmpf oge, %40, %41 : vector<16x16x1xf32>
    %cst_24 = arith.constant 1.000000e-01 : f32
    %43 = vector.broadcast %cst_24 : f32 to vector<16x16x1xf32>
    %44 = arith.mulf %43, %40 : vector<16x16x1xf32>
    %45 = arith.select %42, %40, %44 : vector<16x16x1xi1>, vector<16x16x1xf32>
    %c6 = arith.constant 6 : index
    %46 = memref.load %arg2[%c6] : memref<8xf32, #tpu.memory_space<smem>>
    %47 = arith.mulf %45, %10 : vector<16x16x1xf32>
    %48 = vector.broadcast %46 : f32 to vector<16x16x1xf32>
    %49 = arith.mulf %48, %47 : vector<16x16x1xf32>
    %c7_25 = arith.constant 7 : index
    %50 = memref.load %arg2[%c7_25] : memref<8xf32, #tpu.memory_space<smem>>
    %51 = vector.broadcast %50 : f32 to vector<16x16x1xf32>
    %52 = arith.addf %49, %51 : vector<16x16x1xf32>
    %cst_26 = arith.constant 0.000000e+00 : f32
    %53 = vector.broadcast %cst_26 : f32 to vector<16x16x1xf32>
    %54 = arith.cmpf oge, %52, %53 : vector<16x16x1xf32>
    %cst_27 = arith.constant 1.000000e-01 : f32
    %55 = vector.broadcast %cst_27 : f32 to vector<16x16x1xf32>
    %56 = arith.mulf %55, %52 : vector<16x16x1xf32>
    %57 = arith.select %54, %52, %56 : vector<16x16x1xi1>, vector<16x16x1xf32>
    %58 = vector.shape_cast %4 : vector<256x16xf32> to vector<16x16x16xf32>
    %59 = vector.extract_strided_slice %58 {offsets = [0, 0, 4], sizes = [16, 16, 12], strides = [1, 1, 1]} : vector<16x16x16xf32> to vector<16x16x12xf32>
    %60 = tpu.concatenate %21, %33, %45, %57, %59 in 2 : vector<16x16x1xf32>, vector<16x16x1xf32>, vector<16x16x1xf32>, vector<16x16x1xf32>, vector<16x16x12xf32> -> vector<16x16x16xf32>
    %61 = vector.shape_cast %60 : vector<16x16x16xf32> to vector<256x16xf32>
    %c0_28 = arith.constant 0 : index
    %c0_29 = arith.constant 0 : index
    %62 = vector.load %arg3[%c0_28, %c0_29] : memref<16x16xf32, #tpu.memory_space<vmem>>, vector<16x16xf32>
    %cst_30 = arith.constant dense<0.000000e+00> : vector<256x16xf32>
    %63 = tpu.matmul %61, %62, %cst_30 {dimension_numbers = #tpu.dot_dimension_numbers<[1], [0], [0], [1], [0, 0, 1, 1], [], []>} : vector<256x16xf32>, vector<16x16xf32>, vector<256x16xf32> -> vector<256x16xf32>
    %c0_31 = arith.constant 0 : index
    %c0_32 = arith.constant 0 : index
    %64 = vector.load %arg4[%c0_31, %c0_32] : memref<1x16xf32, #tpu.memory_space<vmem>>, vector<1x16xf32>
    %65 = vector.broadcast %64 : vector<1x16xf32> to vector<256x16xf32>
    %66 = arith.addf %63, %65 : vector<256x16xf32>
    %cst_33 = arith.constant 0.000000e+00 : f32
    %67 = vector.broadcast %cst_33 : f32 to vector<256x16xf32>
    %68 = arith.cmpf oge, %66, %67 : vector<256x16xf32>
    %cst_34 = arith.constant 1.000000e-01 : f32
    %69 = vector.broadcast %cst_34 : f32 to vector<256x16xf32>
    %70 = arith.mulf %69, %66 : vector<256x16xf32>
    %71 = arith.select %68, %66, %70 : vector<256x16xi1>, vector<256x16xf32>
    %72 = arith.addf %71, %4 : vector<256x16xf32>
    %73 = vector.shape_cast %72 : vector<256x16xf32> to vector<16x16x16xf32>
    %c1_35 = arith.constant 1 : index
    %c8_36 = arith.constant 8 : index
    %c0_37 = arith.constant 0 : index
    %74 = vector.load %arg19[%c1_35, %c8_36, %c0_37] : memref<18x32x16xf32, #tpu.memory_space<vmem>>, vector<16x16x16xf32>
    tpu.vector_store %arg19[%c1_35, %c8_36, %c0_37], %73 {strides = array<i32>} : memref<18x32x16xf32, #tpu.memory_space<vmem>>, vector<16x16x16xf32>,
    %c0_38 = arith.constant 0 : index
    %c7_39 = arith.constant 7 : index
    %c0_40 = arith.constant 0 : index
    %75 = vector.load %arg19[%c0_38, %c7_39, %c0_40] : memref<18x32x16xf32, #tpu.memory_space<vmem>>, vector<16x16x16xf32>
    %76 = vector.shape_cast %75 : vector<16x16x16xf32> to vector<256x16xf32>
    %c0_41 = arith.constant 0 : index
    %c8_42 = arith.constant 8 : index
    %c0_43 = arith.constant 0 : index
    %77 = vector.load %arg19[%c0_41, %c8_42, %c0_43] : memref<18x32x16xf32, #tpu.memory_space<vmem>>, vector<16x16x16xf32>
    %78 = vector.shape_cast %77 : vector<16x16x16xf32> to vector<256x16xf32>
    %c0_44 = arith.constant 0 : index
    %c9_45 = arith.constant 9 : index
    %c0_46 = arith.constant 0 : index
    %79 = vector.load %arg19[%c0_44, %c9_45, %c0_46] : memref<18x32x16xf32, #tpu.memory_space<vmem>>, vector<16x16x16xf32>
    %80 = vector.shape_cast %79 : vector<16x16x16xf32> to vector<256x16xf32>
    %c1_47 = arith.constant 1 : index
    %c7_48 = arith.constant 7 : index
    %c0_49 = arith.constant 0 : index
    %81 = vector.load %arg19[%c1_47, %c7_48, %c0_49] : memref<18x32x16xf32, #tpu.memory_space<vmem>>, vector<16x16x16xf32>
    %82 = vector.shape_cast %81 : vector<16x16x16xf32> to vector<256x16xf32>
    %c1_50 = arith.constant 1 : index
    %c8_51 = arith.constant 8 : index
    %c0_52 = arith.constant 0 : index
    %83 = vector.load %arg19[%c1_50, %c8_51, %c0_52] : memref<18x32x16xf32, #tpu.memory_space<vmem>>, vector<16x16x16xf32>
    %84 = vector.shape_cast %83 : vector<16x16x16xf32> to vector<256x16xf32>
    %c1_53 = arith.constant 1 : index
    %c9_54 = arith.constant 9 : index
    %c0_55 = arith.constant 0 : index
    %85 = vector.load %arg19[%c1_53, %c9_54, %c0_55] : memref<18x32x16xf32, #tpu.memory_space<vmem>>, vector<16x16x16xf32>
    %86 = vector.shape_cast %85 : vector<16x16x16xf32> to vector<256x16xf32>
    %c2_56 = arith.constant 2 : index
    %c7_57 = arith.constant 7 : index
    %c0_58 = arith.constant 0 : index
    %87 = vector.load %arg19[%c2_56, %c7_57, %c0_58] : memref<18x32x16xf32, #tpu.memory_space<vmem>>, vector<16x16x16xf32>
    %88 = vector.shape_cast %87 : vector<16x16x16xf32> to vector<256x16xf32>
    %c2_59 = arith.constant 2 : index
    %c8_60 = arith.constant 8 : index
    %c0_61 = arith.constant 0 : index
    %89 = vector.load %arg19[%c2_59, %c8_60, %c0_61] : memref<18x32x16xf32, #tpu.memory_space<vmem>>, vector<16x16x16xf32>
    %90 = vector.shape_cast %89 : vector<16x16x16xf32> to vector<256x16xf32>
    %c2_62 = arith.constant 2 : index
    %c9_63 = arith.constant 9 : index
    %c0_64 = arith.constant 0 : index
    %91 = vector.load %arg19[%c2_62, %c9_63, %c0_64] : memref<18x32x16xf32, #tpu.memory_space<vmem>>, vector<16x16x16xf32>
    %92 = vector.shape_cast %91 : vector<16x16x16xf32> to vector<256x16xf32>
    %93 = tpu.concatenate %76, %78, %80, %82, %84, %86, %88, %90, %92 in 1 : vector<256x16xf32>, vector<256x16xf32>, vector<256x16xf32>, vector<256x16xf32>, vector<256x16xf32>, vector<256x16xf32>, vector<256x16xf32>, vector<256x16xf32>, vector<256x16xf32> -> vector<256x144xf32>
    %c0_65 = arith.constant 0 : index
    %c0_66 = arith.constant 0 : index
    %94 = vector.load %arg5[%c0_65, %c0_66] : memref<144x16xf32, #tpu.memory_space<vmem>>, vector<144x16xf32>
    %cst_67 = arith.constant dense<0.000000e+00> : vector<256x16xf32>
    %95 = tpu.matmul %93, %94, %cst_67 {dimension_numbers = #tpu.dot_dimension_numbers<[1], [0], [0], [1], [0, 0, 1, 1], [], []>} : vector<256x144xf32>, vector<144x16xf32>, vector<256x16xf32> -> vector<256x16xf32>
    %c0_68 = arith.constant 0 : index
    %c0_69 = arith.constant 0 : index
    %96 = vector.load %arg6[%c0_68, %c0_69] : memref<1x16xf32, #tpu.memory_space<vmem>>, vector<1x16xf32>
    %97 = vector.broadcast %96 : vector<1x16xf32> to vector<256x16xf32>
    %98 = arith.addf %95, %97 : vector<256x16xf32>
    %cst_70 = arith.constant 0.000000e+00 : f32
    %99 = vector.broadcast %cst_70 : f32 to vector<256x16xf32>
    %100 = arith.maximumf %98, %99 : vector<256x16xf32>
    %101 = vector.shape_cast %100 : vector<256x16xf32> to vector<16x16x16xf32>
    %c1_71 = arith.constant 1 : index
    %c8_72 = arith.constant 8 : index
    %c0_73 = arith.constant 0 : index
    %102 = vector.load %arg19[%c1_71, %c8_72, %c0_73] : memref<18x32x16xf32, #tpu.memory_space<vmem>>, vector<16x16x16xf32>
    tpu.vector_store %arg19[%c1_71, %c8_72, %c0_73], %101 {strides = array<i32>} : memref<18x32x16xf32, #tpu.memory_space<vmem>>, vector<16x16x16xf32>,
    %c0_74 = arith.constant 0 : index
    %c7_75 = arith.constant 7 : index
    %c0_76 = arith.constant 0 : index
    %103 = vector.load %arg19[%c0_74, %c7_75, %c0_76] : memref<18x32x16xf32, #tpu.memory_space<vmem>>, vector<16x16x16xf32>
    %104 = vector.shape_cast %103 : vector<16x16x16xf32> to vector<256x16xf32>
    %c0_77 = arith.constant 0 : index
    %c8_78 = arith.constant 8 : index
    %c0_79 = arith.constant 0 : index
    %105 = vector.load %arg19[%c0_77, %c8_78, %c0_79] : memref<18x32x16xf32, #tpu.memory_space<vmem>>, vector<16x16x16xf32>
    %106 = vector.shape_cast %105 : vector<16x16x16xf32> to vector<256x16xf32>
    %c0_80 = arith.constant 0 : index
    %c9_81 = arith.constant 9 : index
    %c0_82 = arith.constant 0 : index
    %107 = vector.load %arg19[%c0_80, %c9_81, %c0_82] : memref<18x32x16xf32, #tpu.memory_space<vmem>>, vector<16x16x16xf32>
    %108 = vector.shape_cast %107 : vector<16x16x16xf32> to vector<256x16xf32>
    %c1_83 = arith.constant 1 : index
    %c7_84 = arith.constant 7 : index
    %c0_85 = arith.constant 0 : index
    %109 = vector.load %arg19[%c1_83, %c7_84, %c0_85] : memref<18x32x16xf32, #tpu.memory_space<vmem>>, vector<16x16x16xf32>
    %110 = vector.shape_cast %109 : vector<16x16x16xf32> to vector<256x16xf32>
    %c1_86 = arith.constant 1 : index
    %c8_87 = arith.constant 8 : index
    %c0_88 = arith.constant 0 : index
    %111 = vector.load %arg19[%c1_86, %c8_87, %c0_88] : memref<18x32x16xf32, #tpu.memory_space<vmem>>, vector<16x16x16xf32>
    %112 = vector.shape_cast %111 : vector<16x16x16xf32> to vector<256x16xf32>
    %c1_89 = arith.constant 1 : index
    %c9_90 = arith.constant 9 : index
    %c0_91 = arith.constant 0 : index
    %113 = vector.load %arg19[%c1_89, %c9_90, %c0_91] : memref<18x32x16xf32, #tpu.memory_space<vmem>>, vector<16x16x16xf32>
    %114 = vector.shape_cast %113 : vector<16x16x16xf32> to vector<256x16xf32>
    %c2_92 = arith.constant 2 : index
    %c7_93 = arith.constant 7 : index
    %c0_94 = arith.constant 0 : index
    %115 = vector.load %arg19[%c2_92, %c7_93, %c0_94] : memref<18x32x16xf32, #tpu.memory_space<vmem>>, vector<16x16x16xf32>
    %116 = vector.shape_cast %115 : vector<16x16x16xf32> to vector<256x16xf32>
    %c2_95 = arith.constant 2 : index
    %c8_96 = arith.constant 8 : index
    %c0_97 = arith.constant 0 : index
    %117 = vector.load %arg19[%c2_95, %c8_96, %c0_97] : memref<18x32x16xf32, #tpu.memory_space<vmem>>, vector<16x16x16xf32>
    %118 = vector.shape_cast %117 : vector<16x16x16xf32> to vector<256x16xf32>
    %c2_98 = arith.constant 2 : index
    %c9_99 = arith.constant 9 : index
    %c0_100 = arith.constant 0 : index
    %119 = vector.load %arg19[%c2_98, %c9_99, %c0_100] : memref<18x32x16xf32, #tpu.memory_space<vmem>>, vector<16x16x16xf32>
    %120 = vector.shape_cast %119 : vector<16x16x16xf32> to vector<256x16xf32>
    %121 = tpu.concatenate %104, %106, %108, %110, %112, %114, %116, %118, %120 in 1 : vector<256x16xf32>, vector<256x16xf32>, vector<256x16xf32>, vector<256x16xf32>, vector<256x16xf32>, vector<256x16xf32>, vector<256x16xf32>, vector<256x16xf32>, vector<256x16xf32> -> vector<256x144xf32>
    %c0_101 = arith.constant 0 : index
    %c0_102 = arith.constant 0 : index
    %122 = vector.load %arg7[%c0_101, %c0_102] : memref<144x16xf32, #tpu.memory_space<vmem>>, vector<144x16xf32>
    %cst_103 = arith.constant dense<0.000000e+00> : vector<256x16xf32>
    %123 = tpu.matmul %121, %122, %cst_103 {dimension_numbers = #tpu.dot_dimension_numbers<[1], [0], [0], [1], [0, 0, 1, 1], [], []>} : vector<256x144xf32>, vector<144x16xf32>, vector<256x16xf32> -> vector<256x16xf32>
    %c0_104 = arith.constant 0 : index
    %c0_105 = arith.constant 0 : index
    %124 = vector.load %arg8[%c0_104, %c0_105] : memref<1x16xf32, #tpu.memory_space<vmem>>, vector<1x16xf32>
    %125 = vector.broadcast %124 : vector<1x16xf32> to vector<256x16xf32>
    %126 = arith.addf %123, %125 : vector<256x16xf32>
    %cst_106 = arith.constant dense<0.000000e+00> : vector<16xf32>
    %127 = vector.multi_reduction <add>, %126, %cst_106 [0] : vector<256x16xf32> to vector<16xf32>
    %128 = vector.shape_cast %127 : vector<16xf32> to vector<1x16xf32>
    %cst_107 = arith.constant 2.560000e+02 : f32
    %129 = vector.broadcast %cst_107 : f32 to vector<1x16xf32>
    %130 = arith.divf %128, %129 : vector<1x16xf32>
    %c0_108 = arith.constant 0 : index
    %c0_109 = arith.constant 0 : index
    %131 = vector.load %arg9[%c0_108, %c0_109] : memref<16x4xf32, #tpu.memory_space<vmem>>, vector<16x4xf32>
    %cst_110 = arith.constant dense<0.000000e+00> : vector<1x4xf32>
    %132 = tpu.matmul %130, %131, %cst_110 {dimension_numbers = #tpu.dot_dimension_numbers<[1], [0], [0], [1], [0, 0, 1, 1], [], []>} : vector<1x16xf32>, vector<16x4xf32>, vector<1x4xf32> -> vector<1x4xf32>
    %c0_111 = arith.constant 0 : index
    %c0_112 = arith.constant 0 : index
    %133 = vector.load %arg10[%c0_111, %c0_112] : memref<1x4xf32, #tpu.memory_space<vmem>>, vector<1x4xf32>
    %134 = arith.addf %132, %133 : vector<1x4xf32>
    %cst_113 = arith.constant 0.000000e+00 : f32
    %135 = vector.broadcast %cst_113 : f32 to vector<1x4xf32>
    %136 = arith.maximumf %134, %135 : vector<1x4xf32>
    %c0_114 = arith.constant 0 : index
    %c0_115 = arith.constant 0 : index
    %137 = vector.load %arg11[%c0_114, %c0_115] : memref<4x16xf32, #tpu.memory_space<vmem>>, vector<4x16xf32>
    %cst_116 = arith.constant dense<0.000000e+00> : vector<1x16xf32>
    %138 = tpu.matmul %136, %137, %cst_116 {dimension_numbers = #tpu.dot_dimension_numbers<[1], [0], [0], [1], [0, 0, 1, 1], [], []>} : vector<1x4xf32>, vector<4x16xf32>, vector<1x16xf32> -> vector<1x16xf32>
    %c0_117 = arith.constant 0 : index
    %c0_118 = arith.constant 0 : index
    %139 = vector.load %arg12[%c0_117, %c0_118] : memref<1x16xf32, #tpu.memory_space<vmem>>, vector<1x16xf32>
    %140 = arith.addf %138, %139 : vector<1x16xf32>
    %141 = arith.negf %140 : vector<1x16xf32>
    %142 = math.exp %141 : vector<1x16xf32>
    %cst_119 = arith.constant 1.000000e+00 : f32
    %143 = vector.broadcast %cst_119 : f32 to vector<1x16xf32>
    %144 = arith.addf %143, %142 : vector<1x16xf32>
    %145 = arith.divf %143, %144 : vector<1x16xf32>
    %146 = vector.broadcast %145 : vector<1x16xf32> to vector<256x16xf32>
    %147 = arith.mulf %146, %126 : vector<256x16xf32>
    %148 = arith.addf %147, %72 : vector<256x16xf32>
    %149 = vector.shape_cast %148 : vector<256x16xf32> to vector<16x16x16xf32>
    %c1_120 = arith.constant 1 : index
    %c8_121 = arith.constant 8 : index
    %c0_122 = arith.constant 0 : index
    %150 = vector.load %arg19[%c1_120, %c8_121, %c0_122] : memref<18x32x16xf32, #tpu.memory_space<vmem>>, vector<16x16x16xf32>
    tpu.vector_store %arg19[%c1_120, %c8_121, %c0_122], %149 {strides = array<i32>} : memref<18x32x16xf32, #tpu.memory_space<vmem>>, vector<16x16x16xf32>,
    %c1_123 = arith.constant 1 : index
    %c9_124 = arith.constant 9 : index
    %c0_125 = arith.constant 0 : index
    %151 = vector.load %arg19[%c1_123, %c9_124, %c0_125] : memref<18x32x16xf32, #tpu.memory_space<vmem>>, vector<16x16x1xf32>
    %c1_126 = arith.constant 1 : index
    %c7_127 = arith.constant 7 : index
    %c1_128 = arith.constant 1 : index
    %152 = vector.load %arg19[%c1_126, %c7_127, %c1_128] : memref<18x32x16xf32, #tpu.memory_space<vmem>>, vector<16x16x1xf32>
    %c2_129 = arith.constant 2 : index
    %c8_130 = arith.constant 8 : index
    %c2_131 = arith.constant 2 : index
    %153 = vector.load %arg19[%c2_129, %c8_130, %c2_131] : memref<18x32x16xf32, #tpu.memory_space<vmem>>, vector<16x16x1xf32>
    %c0_132 = arith.constant 0 : index
    %c8_133 = arith.constant 8 : index
    %c3_134 = arith.constant 3 : index
    %154 = vector.load %arg19[%c0_132, %c8_133, %c3_134] : memref<18x32x16xf32, #tpu.memory_space<vmem>>, vector<16x16x1xf32>
    %c0_135 = arith.constant 0 : index
    %155 = memref.load %arg13[%c0_135] : memref<8xf32, #tpu.memory_space<smem>>
    %156 = vector.broadcast %155 : f32 to vector<16x16x1xf32>
    %157 = arith.mulf %156, %151 : vector<16x16x1xf32>
    %c1_136 = arith.constant 1 : index
    %158 = memref.load %arg13[%c1_136] : memref<8xf32, #tpu.memory_space<smem>>
    %159 = vector.broadcast %158 : f32 to vector<16x16x1xf32>
    %160 = arith.addf %157, %159 : vector<16x16x1xf32>
    %cst_137 = arith.constant 0.000000e+00 : f32
    %161 = vector.broadcast %cst_137 : f32 to vector<16x16x1xf32>
    %162 = arith.cmpf oge, %160, %161 : vector<16x16x1xf32>
    %cst_138 = arith.constant 1.000000e-01 : f32
    %163 = vector.broadcast %cst_138 : f32 to vector<16x16x1xf32>
    %164 = arith.mulf %163, %160 : vector<16x16x1xf32>
    %165 = arith.select %162, %160, %164 : vector<16x16x1xi1>, vector<16x16x1xf32>
    %c2_139 = arith.constant 2 : index
    %166 = memref.load %arg13[%c2_139] : memref<8xf32, #tpu.memory_space<smem>>
    %167 = arith.mulf %165, %152 : vector<16x16x1xf32>
    %168 = vector.broadcast %166 : f32 to vector<16x16x1xf32>
    %169 = arith.mulf %168, %167 : vector<16x16x1xf32>
    %c3_140 = arith.constant 3 : index
    %170 = memref.load %arg13[%c3_140] : memref<8xf32, #tpu.memory_space<smem>>
    %171 = vector.broadcast %170 : f32 to vector<16x16x1xf32>
    %172 = arith.addf %169, %171 : vector<16x16x1xf32>
    %cst_141 = arith.constant 0.000000e+00 : f32
    %173 = vector.broadcast %cst_141 : f32 to vector<16x16x1xf32>
    %174 = arith.cmpf oge, %172, %173 : vector<16x16x1xf32>
    %cst_142 = arith.constant 1.000000e-01 : f32
    %175 = vector.broadcast %cst_142 : f32 to vector<16x16x1xf32>
    %176 = arith.mulf %175, %172 : vector<16x16x1xf32>
    %177 = arith.select %174, %172, %176 : vector<16x16x1xi1>, vector<16x16x1xf32>
    %c4_143 = arith.constant 4 : index
    %178 = memref.load %arg13[%c4_143] : memref<8xf32, #tpu.memory_space<smem>>
    %179 = arith.mulf %177, %153 : vector<16x16x1xf32>
    %180 = vector.broadcast %178 : f32 to vector<16x16x1xf32>
    %181 = arith.mulf %180, %179 : vector<16x16x1xf32>
    %c5_144 = arith.constant 5 : index
    %182 = memref.load %arg13[%c5_144] : memref<8xf32, #tpu.memory_space<smem>>
    %183 = vector.broadcast %182 : f32 to vector<16x16x1xf32>
    %184 = arith.addf %181, %183 : vector<16x16x1xf32>
    %cst_145 = arith.constant 0.000000e+00 : f32
    %185 = vector.broadcast %cst_145 : f32 to vector<16x16x1xf32>
    %186 = arith.cmpf oge, %184, %185 : vector<16x16x1xf32>
    %cst_146 = arith.constant 1.000000e-01 : f32
    %187 = vector.broadcast %cst_146 : f32 to vector<16x16x1xf32>
    %188 = arith.mulf %187, %184 : vector<16x16x1xf32>
    %189 = arith.select %186, %184, %188 : vector<16x16x1xi1>, vector<16x16x1xf32>
    %c6_147 = arith.constant 6 : index
    %190 = memref.load %arg13[%c6_147] : memref<8xf32, #tpu.memory_space<smem>>
    %191 = arith.mulf %189, %154 : vector<16x16x1xf32>
    %192 = vector.broadcast %190 : f32 to vector<16x16x1xf32>
    %193 = arith.mulf %192, %191 : vector<16x16x1xf32>
    %c7_148 = arith.constant 7 : index
    %194 = memref.load %arg13[%c7_148] : memref<8xf32, #tpu.memory_space<smem>>
    %195 = vector.broadcast %194 : f32 to vector<16x16x1xf32>
    %196 = arith.addf %193, %195 : vector<16x16x1xf32>
    %cst_149 = arith.constant 0.000000e+00 : f32
    %197 = vector.broadcast %cst_149 : f32 to vector<16x16x1xf32>
    %198 = arith.cmpf oge, %196, %197 : vector<16x16x1xf32>
    %cst_150 = arith.constant 1.000000e-01 : f32
    %199 = vector.broadcast %cst_150 : f32 to vector<16x16x1xf32>
    %200 = arith.mulf %199, %196 : vector<16x16x1xf32>
    %201 = arith.select %198, %196, %200 : vector<16x16x1xi1>, vector<16x16x1xf32>
    %202 = vector.shape_cast %148 : vector<256x16xf32> to vector<16x16x16xf32>
    %203 = vector.extract_strided_slice %202 {offsets = [0, 0, 4], sizes = [16, 16, 12], strides = [1, 1, 1]} : vector<16x16x16xf32> to vector<16x16x12xf32>
    %204 = tpu.concatenate %165, %177, %189, %201, %203 in 2 : vector<16x16x1xf32>, vector<16x16x1xf32>, vector<16x16x1xf32>, vector<16x16x1xf32>, vector<16x16x12xf32> -> vector<16x16x16xf32>
    %205 = vector.shape_cast %204 : vector<16x16x16xf32> to vector<256x16xf32>
    %c0_151 = arith.constant 0 : index
    %c0_152 = arith.constant 0 : index
    %206 = vector.load %arg14[%c0_151, %c0_152] : memref<16x16xf32, #tpu.memory_space<vmem>>, vector<16x16xf32>
    %cst_153 = arith.constant dense<0.000000e+00> : vector<256x16xf32>
    %207 = tpu.matmul %205, %206, %cst_153 {dimension_numbers = #tpu.dot_dimension_numbers<[1], [0], [0], [1], [0, 0, 1, 1], [], []>} : vector<256x16xf32>, vector<16x16xf32>, vector<256x16xf32> -> vector<256x16xf32>
    %c0_154 = arith.constant 0 : index
    %c0_155 = arith.constant 0 : index
    %208 = vector.load %arg15[%c0_154, %c0_155] : memref<1x16xf32, #tpu.memory_space<vmem>>, vector<1x16xf32>
    %209 = vector.broadcast %208 : vector<1x16xf32> to vector<256x16xf32>
    %210 = arith.addf %207, %209 : vector<256x16xf32>
    %cst_156 = arith.constant 0.000000e+00 : f32
    %211 = vector.broadcast %cst_156 : f32 to vector<256x16xf32>
    %212 = arith.cmpf oge, %210, %211 : vector<256x16xf32>
    %cst_157 = arith.constant 1.000000e-01 : f32
    %213 = vector.broadcast %cst_157 : f32 to vector<256x16xf32>
    %214 = arith.mulf %213, %210 : vector<256x16xf32>
    %215 = arith.select %212, %210, %214 : vector<256x16xi1>, vector<256x16xf32>
    %216 = arith.addf %215, %148 : vector<256x16xf32>
    %c0_158 = arith.constant 0 : index
    %c0_159 = arith.constant 0 : index
    %217 = vector.load %arg16[%c0_158, %c0_159] : memref<16x128xf32, #tpu.memory_space<vmem>>, vector<16x128xf32>
    %cst_160 = arith.constant dense<0.000000e+00> : vector<256x128xf32>
    %218 = tpu.matmul %216, %217, %cst_160 {dimension_numbers = #tpu.dot_dimension_numbers<[1], [0], [0], [1], [0, 0, 1, 1], [], []>} : vector<256x16xf32>, vector<16x128xf32>, vector<256x128xf32> -> vector<256x128xf32>
    %c0_161 = arith.constant 0 : index
    %c0_162 = arith.constant 0 : index
    %219 = vector.load %arg17[%c0_161, %c0_162] : memref<1x128xf32, #tpu.memory_space<vmem>>, vector<1x128xf32>
    %220 = vector.broadcast %219 : vector<1x128xf32> to vector<256x128xf32>
    %221 = arith.addf %218, %220 : vector<256x128xf32>
    %c0_163 = arith.constant 0 : index
    %c0_164 = arith.constant 0 : index
    %c0_165 = arith.constant 0 : index
    %222 = vector.load %arg18[%c0_163, %c0_164, %c0_165] : memref<1x256x128xf32, #tpu.memory_space<vmem>>, vector<1x256x128xf32>
    %223 = vector.shape_cast %222 : vector<1x256x128xf32> to vector<256x128xf32>
    %224 = vector.shape_cast %221 : vector<256x128xf32> to vector<1x256x128xf32>
    tpu.vector_store %arg18[%c0_163, %c0_164, %c0_165], %224 {strides = array<i32>} : memref<1x256x128xf32, #tpu.memory_space<vmem>>, vector<1x256x128xf32>,
    return
  }
  func.func @transform_0(%arg0: i32) -> (i32, i32, i32, i32) {
    %c0_i32 = arith.constant 0 : i32
    %c0_i32_0 = arith.constant 0 : i32
    %c0_i32_1 = arith.constant 0 : i32
    %c0_i32_2 = arith.constant 0 : i32
    return %arg0, %c0_i32, %c0_i32_0, %c0_i32_1 : i32, i32, i32, i32
  }
  func.func @transform_1(%arg0: i32) -> i32 {
    %c0_i32 = arith.constant 0 : i32
    %c0_i32_0 = arith.constant 0 : i32
    return %c0_i32 : i32
  }
  func.func @transform_2(%arg0: i32) -> (i32, i32) {
    %c0_i32 = arith.constant 0 : i32
    %c0_i32_0 = arith.constant 0 : i32
    %c0_i32_1 = arith.constant 0 : i32
    return %c0_i32, %c0_i32_0 : i32, i32
  }
  func.func @transform_3(%arg0: i32) -> (i32, i32) {
    %c0_i32 = arith.constant 0 : i32
    %c0_i32_0 = arith.constant 0 : i32
    %c0_i32_1 = arith.constant 0 : i32
    return %c0_i32, %c0_i32_0 : i32, i32
  }
  func.func @transform_4(%arg0: i32) -> (i32, i32) {
    %c0_i32 = arith.constant 0 : i32
    %c0_i32_0 = arith.constant 0 : i32
    %c0_i32_1 = arith.constant 0 : i32
    return %c0_i32, %c0_i32_0 : i32, i32
  }
  func.func @transform_5(%arg0: i32) -> (i32, i32) {
    %c0_i32 = arith.constant 0 : i32
    %c0_i32_0 = arith.constant 0 : i32
    %c0_i32_1 = arith.constant 0 : i32
    return %c0_i32, %c0_i32_0 : i32, i32
  }
  func.func @transform_6(%arg0: i32) -> (i32, i32) {
    %c0_i32 = arith.constant 0 : i32
    %c0_i32_0 = arith.constant 0 : i32
    %c0_i32_1 = arith.constant 0 : i32
    return %c0_i32, %c0_i32_0 : i32, i32
  }
  func.func @transform_7(%arg0: i32) -> (i32, i32) {
    %c0_i32 = arith.constant 0 : i32
    %c0_i32_0 = arith.constant 0 : i32
    %c0_i32_1 = arith.constant 0 : i32
    return %c0_i32, %c0_i32_0 : i32, i32
  }
  func.func @transform_8(%arg0: i32) -> (i32, i32) {
    %c0_i32 = arith.constant 0 : i32
    %c0_i32_0 = arith.constant 0 : i32
    %c0_i32_1 = arith.constant 0 : i32
    return %c0_i32, %c0_i32_0 : i32, i32
  }
  func.func @transform_9(%arg0: i32) -> (i32, i32) {
    %c0_i32 = arith.constant 0 : i32
    %c0_i32_0 = arith.constant 0 : i32
    %c0_i32_1 = arith.constant 0 : i32
    return %c0_i32, %c0_i32_0 : i32, i32
  }
  func.func @transform_10(%arg0: i32) -> (i32, i32) {
    %c0_i32 = arith.constant 0 : i32
    %c0_i32_0 = arith.constant 0 : i32
    %c0_i32_1 = arith.constant 0 : i32
    return %c0_i32, %c0_i32_0 : i32, i32
  }
  func.func @transform_11(%arg0: i32) -> (i32, i32) {
    %c0_i32 = arith.constant 0 : i32
    %c0_i32_0 = arith.constant 0 : i32
    %c0_i32_1 = arith.constant 0 : i32
    return %c0_i32, %c0_i32_0 : i32, i32
  }
  func.func @transform_12(%arg0: i32) -> i32 {
    %c0_i32 = arith.constant 0 : i32
    %c0_i32_0 = arith.constant 0 : i32
    return %c0_i32 : i32
  }
  func.func @transform_13(%arg0: i32) -> (i32, i32) {
    %c0_i32 = arith.constant 0 : i32
    %c0_i32_0 = arith.constant 0 : i32
    %c0_i32_1 = arith.constant 0 : i32
    return %c0_i32, %c0_i32_0 : i32, i32
  }
  func.func @transform_14(%arg0: i32) -> (i32, i32) {
    %c0_i32 = arith.constant 0 : i32
    %c0_i32_0 = arith.constant 0 : i32
    %c0_i32_1 = arith.constant 0 : i32
    return %c0_i32, %c0_i32_0 : i32, i32
  }
  func.func @transform_15(%arg0: i32) -> (i32, i32) {
    %c0_i32 = arith.constant 0 : i32
    %c0_i32_0 = arith.constant 0 : i32
    %c0_i32_1 = arith.constant 0 : i32
    return %c0_i32, %c0_i32_0 : i32, i32
  }
  func.func @transform_16(%arg0: i32) -> (i32, i32) {
    %c0_i32 = arith.constant 0 : i32
    %c0_i32_0 = arith.constant 0 : i32
    %c0_i32_1 = arith.constant 0 : i32
    return %c0_i32, %c0_i32_0 : i32, i32
  }
  func.func @transform_17(%arg0: i32) -> (i32, i32, i32) {
    %c0_i32 = arith.constant 0 : i32
    %c0_i32_0 = arith.constant 0 : i32
    %c0_i32_1 = arith.constant 0 : i32
    return %arg0, %c0_i32, %c0_i32_0 : i32, i32, i32
  }
}

</mosaic_0001>

<bundles_post_ra>
// kernel: tpu_custom_call.1
= control target key start
LH: loop header
LB: loop body
LE: loop exit
PB: predicated region body
PF: predicated region fallthrough
CT: control target
= control target key end

     0   :  { %s17191_s0 = inlined_call_operand.hbm [shape: f32[2,16,16,16], index: 0, kind: input, shape index: {}]   ;;  %s17192_s1 = inlined_call_operand.vmem [shape: f32[8], index: 1, kind: input, shape index: {}]   ;;  %s17193_s2 = inlined_call_operand.vmem [shape: f32[16,16], index: 2, kind: input, shape index: {}]   ;;  %s17194_s3 = inlined_call_operand.vmem [shape: f32[1,16], index: 3, kind: input, shape index: {}]   ;;  %s17195_s4 = inlined_call_operand.vmem [shape: f32[144,16], index: 4, kind: input, shape index: {}]   ;;  %s17196_s5 = inlined_call_operand.vmem [shape: f32[1,16], index: 5, kind: input, shape index: {}]   ;;  %s17197_s6 = inlined_call_operand.vmem [shape: f32[144,16], index: 6, kind: input, shape index: {}]   ;;  %s17198_s7 = inlined_call_operand.vmem [shape: f32[1,16], index: 7, kind: input, shape index: {}]   ;;  %s17199_s8 = inlined_call_operand.vmem [shape: f32[16,4], index: 8, kind: input, shape index: {}]   ;;  %s17200_s9 = inlined_call_operand.vmem [shape: f32[1,4], index: 9, kind: input, shape index: {}]   ;;  %s17201_s10 = inlined_call_operand.vmem [shape: f32[4,16], index: 10, kind: input, shape index: {}]   ;;  %s17202_s11 = inlined_call_operand.vmem [shape: f32[1,16], index: 11, kind: input, shape index: {}]   ;;  %s17203_s12 = inlined_call_operand.vmem [shape: f32[8], index: 12, kind: input, shape index: {}]   ;;  %s17204_s13 = inlined_call_operand.vmem [shape: f32[16,16], index: 13, kind: input, shape index: {}]   ;;  %s17205_s14 = inlined_call_operand.vmem [shape: f32[1,16], index: 14, kind: input, shape index: {}]   ;;  %s17206_s15 = inlined_call_operand.vmem [shape: f32[16,128], index: 15, kind: input, shape index: {}]   ;;  %s17207_s16 = inlined_call_operand.vmem [shape: f32[1,128], index: 16, kind: input, shape index: {}]   ;;  %s17208_s17 = inlined_call_operand.hbm [shape: f32[2,256,128], index: 17, kind: output, shape index: {}]  }
   0x1   :  { %17442 = sst [smem:[#allocation116_spill]] %s17191_s0 }
   0x2   :  { %17443 = sst [smem:[#allocation117_spill]] %s17192_s1 }
   0x3   :  { %17444 = sst [smem:[#allocation118_spill]] %s17203_s12 }
   0x4   :  { %17445 = sst [smem:[#allocation119_spill]] %s17205_s14 }
   0x5   :  { %17446 = sst [smem:[#allocation120_spill]] %s17206_s15 }
   0x6   :  { %17447 = sst [smem:[#allocation121_spill]] %s17207_s16 }
   0x7   :  { %17448 = sst [smem:[#allocation122_spill]] %s17208_s17 }
   0x8   :  { %22 = vsyncpa [#allocation4], 0 }
   0x9   :  { %24 = vsyncpa [#allocation4 + $0x1], 0 }
   0xa   :  { %25 = vsyncpa [#allocation6], 0 }
   0xb   :  { %26 = vsyncpa [#allocation9], 0 }
   0xc   :  { %27 = vsyncpa [#allocation5], 0 }
   0xd   :  { %29 = vsyncpa [#allocation5 + $0x1], 0  ;;  %s11622_s24 = smov 0   ;;  %s11624_s25 = smov 0  }
   0xe   :  { %s11626_s26 = smov 0   ;;  %s11628_s27 = smov 0  }
   0xf LB: > { %17449 = sst [smem:[#allocation15_spill]] %s11494_s24  ;;  %s11643_s28 = sadd.s32 4294967295, %s11506_s27   ;;  %s11506_s27 = sphi %s11628_s27, %s17872_s27   ;;  %s11502_s26 = sphi %s11626_s26, %s17874_s26   ;;  %s11498_s25 = sphi %s11624_s25, %s17876_s25   ;;  %s11494_s24 = sphi %s11622_s24, %s17875_s24  }
  0x10   : > { %17450 = sst [smem:[#allocation16_spill]] %s11502_s26  ;;  %s9619_s29 = sadd.s32 4294967294, %s11506_s27  }
  0x11   : > { %s11647_s0 = sadd.s32 1, %s11506_s27   ;;  %s42_s30 = sadd.s32 1, %s11502_s26 }
  0x12   : > { %17451 = sst [smem:[#allocation17_spill]] %s11647_s0  ;;  %s39_s18 = ssub.s32 %s11506_s27, %s11647_s0 }
  0x13   : > { %p49_p0 = scmp.ne.s32.totalorder %s11502_s26, %s11498_s25  ;;  %p40_p1 = scmp.eq.s32.totalorder %s39_s18, 0 }
  0x14   : > { %p50_p2 = scmp.eq.s32.totalorder %s11506_s27, 0  ;;  %p55_p3 = scmp.ne.s32.totalorder %s11498_s25, %s11494_s24 }
  0x15   : > { %p17215_p4 = scmp.eq.s32.totalorder %s11643_s28, 0  ;;  %p415_p7 = scmp.eq.s32.totalorder %s11643_s28, 1 }
  0x16   : > { %s11659_s19 = scalar_select %p40_p1, %s11502_s26, %s42_s30  }
  0x17   : > { %p11661_p5 = por %p50_p2, %p49_p0  ;;  %p11667_p6 = por %p17215_p4, %p55_p3 }
  0x18   : > { %17452 = sst [smem:[#allocation18_spill]] %s11659_s19  ;;  %p421_p8 = scmp.eq.s32.totalorder %s9619_s29, 1 }
  0x19   : > { %s17454_s20 = scalar_select %p11667_p6, 1, 0 }
  0x1a   : > { %p9620_p9 = scmp.ge.s32.totalorder %s11506_s27, 1  ;;  %p428_p10 = scmp.lt.s32.totalorder %s11506_s27, 3 }
  0x1b   : > { %p11674_p11 = por %p415_p7, %p49_p0  ;;  %p11678_p12 = por %p421_p8, %p55_p3 }
  0x1c   : > { %p11682_p13 = pnand %p9620_p9, %p428_p10  ;;  %s17460_s19 = sld [smem:[#allocation117_spill]] }
  0x1d   : > { %s17455_s21 = scalar_select %p11674_p11, 1, 0 }
  0x1e   : > { %s17457_s22 = scalar_select %p11678_p12, 1, 0 }
  0x1f   : > { %17456 = sst [smem:[#allocation19_spill]] %s17455_s21  ;;  %p10180_p1 = pneg %p11682_p13 }
  0x20   : > { %17458 = sst [smem:[#allocation20_spill]] %s17457_s22  ;;  %p10197_p2 = scmp.lt.s32.totalorder %s11506_s27, 2 }
  0x21   : > { %s17459_s23 = scalar_select %p11682_p13, 1, 0 }
  0x22   : > { %s441_s0 = sshll.u32 %s17460_s19, 4  ;;  %p11695_p7 = pnand %p10180_p1, %p17215_p4  ;;  %s442_s0 = int_to_ptr.vmem [resolvable:$true] %s441_s0 }
  0x23   : > { %s17462_s12 = sld [smem:[#allocation118_spill]]  ;;  %p11704_p3 = pnand %p10197_p2, %p11661_p5 }
  0x24   : > { %s11372_s19 = scalar_lea.vmem %s442_s0, 16  ;;  %p11374_p9 = pneg %p11695_p7 }
  0x25   : > { %s17463_s30 = scalar_select %p11704_p3, 1, 0 }
  0x26   : > { %p11373_p8 = scmp.ne.s32.totalorder %s442_s0, %s11372_s19  ;;  %p11380_p0 = scmp.lt.s32.totalorder %s442_s0, %s442_s0 }
  0x27   : > { %p11381_p4 = scmp.lt.s32.totalorder %s11372_s19, %s11372_s19 }
  0x28   : > { %p11375_p10 = pnand %p11374_p9, %p11373_p8 }
  0x29   : > { %s482_s17 = sshll.u32 %s17462_s12, 4  ;;  %p11382_p12 = por %p11381_p4, %p11380_p0  ;;  %s483_s17 = int_to_ptr.vmem [resolvable:$true] %s482_s17 }
  0x2a   : > { %p11376_p1 = pneg %p11375_p10 }
  0x2c   : > { %p11383_p11 = pnand %p11382_p12, %p11376_p1 }
  0x2e   : > { %11386 = shalt.err (!%p11383_p11)
}
  0x2f   : > { %s11508_s24 = smov [#allocation7]   ;;  %s505_s1 = sand.u32 1, %s11502_s26  }
  0x30   : > { %10183 = dma.vmem_to_smem (!%p11695_p7), %s442_s0, 16, %s11508_s24, [#allocation6]  }
  0x31   : > { %s11387_s22 = scalar_lea.vmem %s483_s17, 16  ;;  %p11395_p8 = scmp.lt.s32.totalorder %s483_s17, %s483_s17 }
  0x32   : > { %p11388_p5 = scmp.ne.s32.totalorder %s483_s17, %s11387_s22  ;;  %p11396_p10 = scmp.lt.s32.totalorder %s11387_s22, %s11387_s22 }
  0x34   : > { %p11390_p2 = pnand %p11388_p5, %p11374_p9  ;;  %p11397_p13 = por %p11396_p10, %p11395_p8 }
  0x36   : > { %p11391_p6 = pneg %p11390_p2 }
  0x38   : > { %p11398_p3 = pnand %p11397_p13, %p11391_p6 }
  0x3a   : > { %11401 = shalt.err (!%p11398_p3)
}
  0x3b   : > { %s11509_s18 = smov [#allocation8]   ;;  %s9624_s0 = sshll.u32 %s505_s1, 8 }
  0x3c   : > { %10186 = dma.vmem_to_smem (!%p11695_p7), %s483_s17, 16, %s11509_s18, [#allocation9]  }
  0x3d   : > { %s9820_s19 = sshll.u32 %s11506_s27, 12  ;;  %s17464_s26 = sld [smem:[#allocation116_spill]] }
  0x3e   : > { %s509_s22 = scalar_lea.vmem [#allocation3], %s9624_s0  ;;  %s11729_s29 = scalar_lea.sflag [#allocation4], %s505_s1 }
  0x3f   : > { %s516_s14 = sshll.u32 %s509_s22, 4  ;;  %p17466_p6 = scmp.ne.s32.totalorder %s17463_s30, 0  ;;  %s11727_s14 = int_to_ptr.vmem [resolvable:$true] %s516_s14 }
  0x41   : > { %p11404_p11 = pneg %p17466_p6 }
  0x43   : > { %s17465_s21 = smov %s17464_s26  ;;  %s11725_s16 = scalar_lea.hbm %s17464_s26, %s9820_s19 }
  0x44   : > { %s11402_s15 = scalar_lea.hbm %s11725_s16, 4096  ;;  %s11407_s26 = scalar_lea.hbm %s17465_s21, 8192 }
  0x45   : > { %p11403_p4 = scmp.ne.s32.totalorder %s11725_s16, %s11402_s15  ;;  %p11408_p0 = scmp.lt.u32.totalorder %s11725_s16, %s17465_s21 }
  0x46   : > { %p11409_p7 = scmp.lt.u32.totalorder %s11407_s26, %s11402_s15  ;;  %p11411_p9 = scmp.lt.u32.totalorder %s11402_s15, %s11725_s16 }
  0x47   : > { %p11405_p12 = pnand %p11404_p11, %p11403_p4 }
  0x48   : > { %p11410_p3 = por %p11409_p7, %p11408_p0 }
  0x49   : > { %p11406_p13 = pneg %p11405_p12 }
  0x4a   : > { %p11412_p1 = por %p11411_p9, %p11410_p3 }
  0x4c   : > { %p11413_p5 = pnand %p11412_p1, %p11406_p13 }
  0x4e   : > { %11416 = shalt.err (!%p11413_p5)
}
  0x4f   : > { %s11417_s1 = scalar_lea.vmem %s11727_s14, 4096  ;;  %s11510_s0 = smov [#allocation3]  }
  0x50   : > { %p11418_p2 = scmp.ne.s32.totalorder %s11727_s14, %s11417_s1  ;;  %s11422_s24 = sshll.u32 %s11510_s0, 4  ;;  %s11423_s24 = int_to_ptr.vmem [resolvable:$false] %s11422_s24 }
  0x51   : > { %s11424_s22 = scalar_lea.vmem %s11423_s24, 8192  ;;  %p11425_p4 = scmp.lt.s32.totalorder %s11727_s14, %s11423_s24 }
  0x52   : > { %p11420_p8 = pnand %p11418_p2, %p11404_p11  ;;  %p11426_p12 = scmp.lt.s32.totalorder %s11424_s22, %s11417_s1 }
  0x54   : > { %p11421_p10 = pneg %p11420_p8  ;;  %p11427_p0 = por %p11426_p12, %p11425_p4 }
  0x56   : > { %p11428_p7 = pnand %p11427_p0, %p11421_p10 }
  0x58   : > { %11431 = shalt.err (!%p11428_p7)
}
  0x59   : > { %s11511_s15 = smov 128   ;;  %s11512_s12 = smov 8  }
  0x5a   : > { %10190 = dma.hbm_to_vmem [thread:$0]  (!%p17466_p6), %s11725_s16, 4096, %s11727_s14, %s11729_s29, %s11511_s15, %s11511_s15, %s11512_s12  }
  0x5b   : > { %p17467_p11 = scmp.ne.s32.totalorder %s17459_s23, 0 }
  0x5d   : > { %528 = sbr.rel (%p17467_p11) target bundleno = 3227 (0xc9b), region = 88 }
  0x64   : > { %s11760_s17 = sand.u32 1, %s11498_s25   ;;  %p17468_p13 = scmp.ne.s32.totalorder %s17454_s20, 0 }
  0x65   : > { %s17302_s26 = sshll.u32 %s11760_s17, 8  ;;  %s531_s18 = scalar_lea.sflag [#allocation4], %s11760_s17 }
  0x66   : > { %s11766_s19 = scalar_lea.vmem [#allocation3], %s17302_s26 }
  0x67   : > { %11477 = dma.done.wait (%p17468_p13), %s531_s18, 4096  }
  0x68   : > { %11479 = vsyncadd (%p17468_p13), %s531_s18, 4294963200  ;;  %p17469_p6 = scmp.eq.s32.totalorder %s11643_s28, 0 }
  0x6a   : > { %11481 = dma.done.wait (%p17469_p6), [#allocation6], 16   ;;  %p17470_p3 = pmov %p17469_p6 }
  0x6c   : > { %11483 = vsyncadd (%p17470_p3), [#allocation6], 4294967280  ;;  %p17471_p9 = pmov %p17470_p3 }
  0x6d   : > { %p17472_p1 = pmov %p17470_p3 }
  0x6e   : > { %11485 = dma.done.wait (%p17471_p9), [#allocation9], 16  }
  0x6f   : > { %11487 = vsyncadd (%p17472_p1), [#allocation9], 4294967280 }
  0x70   : > { %547 = sfence }
  0x71   : > { %vm594_vm0 = vcmask 130048   ;;  %v11781_v0 = vld [vmem:[%s11766_s19 + $0x10] sm:$0xff]  ;;  %v11784_v1 = vld [vmem:[%s11766_s19] sm:$0xff]  ;;  %v11787_v2 = vld [vmem:[%s11766_s19 + $0x18] sm:$0xff]  ;;  %v17224_v3 = vmov 0.0   ;;  %s17338_s14 = smov 127  }
  0x72   : > { %17473 = vst [vmem:[#allocation21_spill] sm:$0xff] %v11781_v0  ;;  %17474 = vst [vmem:[#allocation22_spill] sm:$0xff] %v11787_v2  ;;  %v11934_v4 = vld [vmem:[%s11766_s19 + $0x8] sm:$0xff]  ;;  %v11937_v5 = vld [vmem:[%s11766_s19 + $0x20] sm:$0xff]  ;;  %s17340_s16 = smov 126   ;;  %s17342_s20 = smov 125  }
  0x73   : > { %603 = vst.msk [vmem:[#allocation2 + $0x40] sm:$0xff] %vm594_vm0, %v17224_v3  ;;  %604 = vst.msk [vmem:[#allocation2 + $0x48] sm:$0xff] %vm594_vm0, %v17224_v3  ;;  %v11940_v6 = vld [vmem:[%s11766_s19 + $0x28] sm:$0xff]  ;;  %v11955_v7 = vld [vmem:[%s11766_s19 + $0x30] sm:$0xff]  ;;  %s861_s23 = sld [smem:[#allocation7]]  ;;  %s9632_s30 = sld [smem:[#allocation7 + $0x1]] }
  0x74   : > { %595 = vst.msk [vmem:[#allocation2] sm:$0xff] %vm594_vm0, %v17224_v3  ;;  %596 = vst.msk [vmem:[#allocation2 + $0x8] sm:$0xff] %vm594_vm0, %v17224_v3  ;;  %v11958_v8 = vld [vmem:[%s11766_s19 + $0x38] sm:$0xff]  ;;  %v11961_v9 = vld [vmem:[%s11766_s19 + $0x40] sm:$0xff]  ;;  %s9633_s29 = sld [smem:[#allocation7 + $0x2]]  ;;  %s9634_s1 = sld [smem:[#allocation7 + $0x3]] }
  0x75   : > { %597 = vst.msk [vmem:[#allocation2 + $0x10] sm:$0xff] %vm594_vm0, %v17224_v3  ;;  %598 = vst.msk [vmem:[#allocation2 + $0x18] sm:$0xff] %vm594_vm0, %v17224_v3  ;;  %v11968_v10 = vld [vmem:[%s11766_s19 + $0x48] sm:$0xff]  ;;  %v11973_v11 = vld [vmem:[%s11766_s19 + $0x50] sm:$0xff]  ;;  %s12185_s0 = sld [smem:[#allocation7 + $0x4]]  ;;  %s12202_s24 = sld [smem:[#allocation7 + $0x5]] }
  0x76   : > { %599 = vst.msk [vmem:[#allocation2 + $0x20] sm:$0xff] %vm594_vm0, %v17224_v3  ;;  %600 = vst.msk [vmem:[#allocation2 + $0x28] sm:$0xff] %vm594_vm0, %v17224_v3  ;;  %v11976_v12 = vld [vmem:[%s11766_s19 + $0x58] sm:$0xff]  ;;  %v11985_v13 = vld [vmem:[%s11766_s19 + $0x60] sm:$0xff]  ;;  %s12235_s22 = sld [smem:[#allocation7 + $0x6]]  ;;  %s17336_s15 = smov 1  }
  0x77   : > { %601 = vst.msk [vmem:[#allocation2 + $0x30] sm:$0xff] %vm594_vm0, %v17224_v3  ;;  %602 = vst.msk [vmem:[#allocation2 + $0x38] sm:$0xff] %vm594_vm0, %v17224_v3  ;;  %v11988_v14 = vld [vmem:[%s11766_s19 + $0x68] sm:$0xff]  ;;  %v11991_v15 = vld [vmem:[%s11766_s19 + $0x70] sm:$0xff]  ;;  %s12241_s12 = sld [smem:[#allocation7 + $0x7]]  ;;  %s11522_s18 = smov 64  }
  0x78   : > { %605 = vst.msk [vmem:[#allocation2 + $0x50] sm:$0xff] %vm594_vm0, %v17224_v3  ;;  %606 = vst.msk [vmem:[#allocation2 + $0x58] sm:$0xff] %vm594_vm0, %v17224_v3  ;;  %v11998_v16 = vld [vmem:[%s11766_s19 + $0x78] sm:$0xff]  ;;  %v12003_v17 = vld [vmem:[%s11766_s19 + $0x80] sm:$0xff]  ;;  %s11527_s26 = smov 96  }
  0x79   : > { %607 = vst.msk [vmem:[#allocation2 + $0x60] sm:$0xff] %vm594_vm0, %v17224_v3  ;;  %608 = vst.msk [vmem:[#allocation2 + $0x68] sm:$0xff] %vm594_vm0, %v17224_v3  ;;  %v12006_v18 = vld [vmem:[%s11766_s19 + $0x88] sm:$0xff]  ;;  %v12015_v19 = vld [vmem:[%s11766_s19 + $0x90] sm:$0xff] }
  0x7a   : > { %609 = vst.msk [vmem:[#allocation2 + $0x70] sm:$0xff] %vm594_vm0, %v17224_v3  ;;  %610 = vst.msk [vmem:[#allocation2 + $0x78] sm:$0xff] %vm594_vm0, %v17224_v3  ;;  %v12018_v20 = vld [vmem:[%s11766_s19 + $0x98] sm:$0xff]  ;;  %v12021_v21 = vld [vmem:[%s11766_s19 + $0xa0] sm:$0xff] }
  0x7b   : > { %611 = vst.msk [vmem:[#allocation2 + $0x80] sm:$0xff] %vm594_vm0, %v17224_v3  ;;  %612 = vst.msk [vmem:[#allocation2 + $0x88] sm:$0xff] %vm594_vm0, %v17224_v3  ;;  %v12028_v22 = vld [vmem:[%s11766_s19 + $0xa8] sm:$0xff]  ;;  %v12033_v23 = vld [vmem:[%s11766_s19 + $0xb0] sm:$0xff] }
  0x7c   : > { %613 = vst.msk [vmem:[#allocation2 + $0x90] sm:$0xff] %vm594_vm0, %v17224_v3  ;;  %614 = vst.msk [vmem:[#allocation2 + $0x98] sm:$0xff] %vm594_vm0, %v17224_v3  ;;  %v12036_v24 = vld [vmem:[%s11766_s19 + $0xb8] sm:$0xff]  ;;  %v830_v35 = vld [vmem:[#allocation2 + $0x10] sm:$0xff] }
  0x7d   : > { %615 = vst.msk [vmem:[#allocation2 + $0xa0] sm:$0xff] %vm594_vm0, %v17224_v3  ;;  %616 = vst.msk [vmem:[#allocation2 + $0xa8] sm:$0xff] %vm594_vm0, %v17224_v3  ;;  %v829_v36 = vld [vmem:[#allocation2 + $0x8] sm:$0xff]  ;;  %v12059_v39 = vld [vmem:[%s11766_s19 + $0xc0] sm:$0xff] }
  0x7e   : > { %617 = vst.msk [vmem:[#allocation2 + $0xb0] sm:$0xff] %vm594_vm0, %v17224_v3  ;;  %618 = vst.msk [vmem:[#allocation2 + $0xb8] sm:$0xff] %vm594_vm0, %v17224_v3  ;;  %v12062_v40 = vld [vmem:[%s11766_s19 + $0xc8] sm:$0xff]  ;;  %v12081_v51 = vld [vmem:[%s11766_s19 + $0xd0] sm:$0xff] }
  0x7f   : > { %619 = vst.msk [vmem:[#allocation2 + $0xc0] sm:$0xff] %vm594_vm0, %v17224_v3  ;;  %620 = vst.msk [vmem:[#allocation2 + $0xc8] sm:$0xff] %vm594_vm0, %v17224_v3  ;;  %v12084_v52 = vld [vmem:[%s11766_s19 + $0xd8] sm:$0xff]  ;;  %v12103_v61 = vld [vmem:[%s11766_s19 + $0xe0] sm:$0xff] }
  0x80   : > { %621 = vst.msk [vmem:[#allocation2 + $0xd0] sm:$0xff] %vm594_vm0, %v17224_v3  ;;  %622 = vst.msk [vmem:[#allocation2 + $0xd8] sm:$0xff] %vm594_vm0, %v17224_v3  ;;  %v12106_v62 = vld [vmem:[%s11766_s19 + $0xe8] sm:$0xff] }
  0x81   : > { %623 = vst.msk [vmem:[#allocation2 + $0xe0] sm:$0xff] %vm594_vm0, %v17224_v3  ;;  %624 = vst.msk [vmem:[#allocation2 + $0xe8] sm:$0xff] %vm594_vm0, %v17224_v3 }
  0x82   : > { %625 = vst.msk [vmem:[#allocation2 + $0xf0] sm:$0xff] %vm594_vm0, %v17224_v3  ;;  %626 = vst.msk [vmem:[#allocation2 + $0xf8] sm:$0xff] %vm594_vm0, %v17224_v3 }
  0x83   : > { %627 = vst.msk [vmem:[#allocation2 + $0x100] sm:$0xff] %vm594_vm0, %v17224_v3  ;;  %628 = vst.msk [vmem:[#allocation2 + $0x108] sm:$0xff] %vm594_vm0, %v17224_v3 }
  0x84   : > { %629 = vst.msk [vmem:[#allocation2 + $0x110] sm:$0xff] %vm594_vm0, %v17224_v3  ;;  %630 = vst.msk [vmem:[#allocation2 + $0x118] sm:$0xff] %vm594_vm0, %v17224_v3 }
  0x85   : > { %631 = vst.msk [vmem:[#allocation2 + $0x120] sm:$0xff] %vm594_vm0, %v17224_v3  ;;  %632 = vst.msk [vmem:[#allocation2 + $0x128] sm:$0xff] %vm594_vm0, %v17224_v3 }
  0x86   : > { %633 = vst.msk [vmem:[#allocation2 + $0x130] sm:$0xff] %vm594_vm0, %v17224_v3  ;;  %634 = vst.msk [vmem:[#allocation2 + $0x138] sm:$0xff] %vm594_vm0, %v17224_v3 }
  0x87   : > { %635 = vst.msk [vmem:[#allocation2 + $0x140] sm:$0xff] %vm594_vm0, %v17224_v3  ;;  %636 = vst.msk [vmem:[#allocation2 + $0x148] sm:$0xff] %vm594_vm0, %v17224_v3 }
  0x88   : > { %637 = vst.msk [vmem:[#allocation2 + $0x150] sm:$0xff] %vm594_vm0, %v17224_v3  ;;  %638 = vst.msk [vmem:[#allocation2 + $0x158] sm:$0xff] %vm594_vm0, %v17224_v3 }
  0x89   : > { %639 = vst.msk [vmem:[#allocation2 + $0x160] sm:$0xff] %vm594_vm0, %v17224_v3  ;;  %640 = vst.msk [vmem:[#allocation2 + $0x168] sm:$0xff] %vm594_vm0, %v17224_v3 }
  0x8a   : > { %641 = vst.msk [vmem:[#allocation2 + $0x170] sm:$0xff] %vm594_vm0, %v17224_v3  ;;  %642 = vst.msk [vmem:[#allocation2 + $0x178] sm:$0xff] %vm594_vm0, %v17224_v3 }
  0x8b   : > { %643 = vst.msk [vmem:[#allocation2 + $0x180] sm:$0xff] %vm594_vm0, %v17224_v3  ;;  %644 = vst.msk [vmem:[#allocation2 + $0x188] sm:$0xff] %vm594_vm0, %v17224_v3 }
  0x8c   : > { %645 = vst.msk [vmem:[#allocation2 + $0x190] sm:$0xff] %vm594_vm0, %v17224_v3  ;;  %646 = vst.msk [vmem:[#allocation2 + $0x198] sm:$0xff] %vm594_vm0, %v17224_v3 }
  0x8d   : > { %647 = vst.msk [vmem:[#allocation2 + $0x1a0] sm:$0xff] %vm594_vm0, %v17224_v3  ;;  %648 = vst.msk [vmem:[#allocation2 + $0x1a8] sm:$0xff] %vm594_vm0, %v17224_v3 }
  0x8e   : > { %649 = vst.msk [vmem:[#allocation2 + $0x1b0] sm:$0xff] %vm594_vm0, %v17224_v3  ;;  %650 = vst.msk [vmem:[#allocation2 + $0x1b8] sm:$0xff] %vm594_vm0, %v17224_v3 }
  0x8f   : > { %651 = vst.msk [vmem:[#allocation2 + $0x1c0] sm:$0xff] %vm594_vm0, %v17224_v3  ;;  %652 = vst.msk [vmem:[#allocation2 + $0x1c8] sm:$0xff] %vm594_vm0, %v17224_v3 }
  0x90   : > { %653 = vst.msk [vmem:[#allocation2 + $0x1d0] sm:$0xff] %vm594_vm0, %v17224_v3  ;;  %654 = vst.msk [vmem:[#allocation2 + $0x1d8] sm:$0xff] %vm594_vm0, %v17224_v3 }
  0x91   : > { %655 = vst.msk [vmem:[#allocation2 + $0x1e0] sm:$0xff] %vm594_vm0, %v17224_v3  ;;  %656 = vst.msk [vmem:[#allocation2 + $0x1e8] sm:$0xff] %vm594_vm0, %v17224_v3 }
  0x92   : > { %657 = vst.msk [vmem:[#allocation2 + $0x1f0] sm:$0xff] %vm594_vm0, %v17224_v3  ;;  %658 = vst.msk [vmem:[#allocation2 + $0x1f8] sm:$0xff] %vm594_vm0, %v17224_v3 }
  0x93   : > { %659 = vst.msk [vmem:[#allocation2 + $0x200] sm:$0xff] %vm594_vm0, %v17224_v3  ;;  %660 = vst.msk [vmem:[#allocation2 + $0x208] sm:$0xff] %vm594_vm0, %v17224_v3 }
  0x94   : > { %661 = vst.msk [vmem:[#allocation2 + $0x210] sm:$0xff] %vm594_vm0, %v17224_v3  ;;  %662 = vst.msk [vmem:[#allocation2 + $0x218] sm:$0xff] %vm594_vm0, %v17224_v3 }
  0x95   : > { %663 = vst.msk [vmem:[#allocation2 + $0x220] sm:$0xff] %vm594_vm0, %v17224_v3  ;;  %664 = vst.msk [vmem:[#allocation2 + $0x228] sm:$0xff] %vm594_vm0, %v17224_v3 }
  0x96   : > { %665 = vst.msk [vmem:[#allocation2 + $0x230] sm:$0xff] %vm594_vm0, %v17224_v3  ;;  %666 = vst.msk [vmem:[#allocation2 + $0x238] sm:$0xff] %vm594_vm0, %v17224_v3 }
  0x97   : > { %17475 = vst [vmem:[#allocation23_spill] sm:$0xff] %v11937_v5  ;;  %17476 = vst [vmem:[#allocation24_spill] sm:$0xff] %v11940_v6 }
  0x98   : > { %702 = vst.msk [vmem:[#allocation2 + $0x48] sm:$0xff] %vm594_vm0, %v11781_v0  ;;  %700 = vst.msk [vmem:[#allocation2 + $0x28] sm:$0xff] %vm594_vm0, %v11784_v1 }
  0x99   : > { %703 = vst.msk [vmem:[#allocation2 + $0x50] sm:$0xff] %vm594_vm0, %v11787_v2  ;;  %701 = vst.msk [vmem:[#allocation2 + $0x30] sm:$0xff] %vm594_vm0, %v11934_v4 }
  0x9a   : > { %704 = vst.msk [vmem:[#allocation2 + $0x68] sm:$0xff] %vm594_vm0, %v11937_v5  ;;  %705 = vst.msk [vmem:[#allocation2 + $0x70] sm:$0xff] %vm594_vm0, %v11940_v6 }
  0x9b   : > { %17477 = vst [vmem:[#allocation25_spill] sm:$0xff] %v11955_v7  ;;  %17478 = vst [vmem:[#allocation26_spill] sm:$0xff] %v11958_v8 }
  0x9c   : > { %17479 = vst [vmem:[#allocation27_spill] sm:$0xff] %v11961_v9  ;;  %706 = vst.msk [vmem:[#allocation2 + $0x88] sm:$0xff] %vm594_vm0, %v11955_v7 }
  0x9d   : > { %707 = vst.msk [vmem:[#allocation2 + $0x90] sm:$0xff] %vm594_vm0, %v11958_v8  ;;  %17480 = vst [vmem:[#allocation28_spill] sm:$0xff] %v11968_v10 }
  0x9e   : > { %708 = vst.msk [vmem:[#allocation2 + $0xa8] sm:$0xff] %vm594_vm0, %v11961_v9  ;;  %17481 = vst [vmem:[#allocation29_spill] sm:$0xff] %v11973_v11 }
  0x9f   : > { %17482 = vst [vmem:[#allocation30_spill] sm:$0xff] %v11976_v12  ;;  %709 = vst.msk [vmem:[#allocation2 + $0xb0] sm:$0xff] %vm594_vm0, %v11968_v10  ;;  %v766_v25 = vld [vmem:[#allocation2 + $0x47] sm:$0xff] }
  0xa0   : > { %710 = vst.msk [vmem:[#allocation2 + $0xc8] sm:$0xff] %vm594_vm0, %v11973_v11  ;;  %711 = vst.msk [vmem:[#allocation2 + $0xd0] sm:$0xff] %vm594_vm0, %v11976_v12  ;;  %v764_v26 = vld [vmem:[#allocation2 + $0x27] sm:$0xff]  ;;  %1062 = vrot.lane.b32.xlu1 %v766_v25, %s17338_s14  ;;  %v767_v27 = vld [vmem:[#allocation2 + $0x4f] sm:$0xff] }
  0xa1   : > { %17483 = vst [vmem:[#allocation31_spill] sm:$0xff] %v11985_v13  ;;  %17484 = vst [vmem:[#allocation32_spill] sm:$0xff] %v11988_v14  ;;  %1058 = vrot.lane.b32.xlu0 %v764_v26, %s17338_s14  ;;  %v765_v28 = vld [vmem:[#allocation2 + $0x2f] sm:$0xff]  ;;  %v768_v32 = vld [vmem:[#allocation2 + $0x67] sm:$0xff] }
  0xa2   : > { %17485 = vst [vmem:[#allocation33_spill] sm:$0xff] %v11991_v15  ;;  %712 = vst.msk [vmem:[#allocation2 + $0xe8] sm:$0xff] %vm594_vm0, %v11985_v13  ;;  %v798_v29 = vld [vmem:[#allocation2 + $0x50] sm:$0xff]  ;;  %v797_v30 = vld [vmem:[#allocation2 + $0x48] sm:$0xff] }
  0xa3   : > { %713 = vst.msk [vmem:[#allocation2 + $0xf0] sm:$0xff] %vm594_vm0, %v11988_v14  ;;  %17486 = vst [vmem:[#allocation34_spill] sm:$0xff] %v11998_v16  ;;  %v769_v31 = vld [vmem:[#allocation2 + $0x6f] sm:$0xff]  ;;  %v770_v38 = vld [vmem:[#allocation2 + $0x87] sm:$0xff] }
  0xa4   : > { %714 = vst.msk [vmem:[#allocation2 + $0x108] sm:$0xff] %vm594_vm0, %v11991_v15  ;;  %17487 = vst [vmem:[#allocation35_spill] sm:$0xff] %v12003_v17  ;;  %1064 = vrot.lane.b32.xlu1 %v767_v27, %s17338_s14  ;;  %v800_v33 = vld [vmem:[#allocation2 + $0x70] sm:$0xff]  ;;  %v799_v34 = vld [vmem:[#allocation2 + $0x68] sm:$0xff] }
  0xa5   : > { %17488 = vst [vmem:[#allocation36_spill] sm:$0xff] %v12006_v18  ;;  %715 = vst.msk [vmem:[#allocation2 + $0x110] sm:$0xff] %vm594_vm0, %v11998_v16  ;;  %1060 = vrot.lane.b32.xlu0 %v765_v28, %s17338_s14  ;;  %v771_v37 = vld [vmem:[#allocation2 + $0x8f] sm:$0xff]  ;;  %v772_v46 = vld [vmem:[#allocation2 + $0xa7] sm:$0xff] }
  0xa6   : > { %716 = vst.msk [vmem:[#allocation2 + $0x128] sm:$0xff] %vm594_vm0, %v12003_v17  ;;  %717 = vst.msk [vmem:[#allocation2 + $0x130] sm:$0xff] %vm594_vm0, %v12006_v18  ;;  %v802_v41 = vld [vmem:[#allocation2 + $0x90] sm:$0xff]  ;;  %v801_v42 = vld [vmem:[#allocation2 + $0x88] sm:$0xff] }
  0xa7   : > { %17489 = vst [vmem:[#allocation37_spill] sm:$0xff] %v12015_v19  ;;  %17490 = vst [vmem:[#allocation38_spill] sm:$0xff] %v12018_v20  ;;  %v832_v43 = vld [vmem:[#allocation2 + $0x30] sm:$0xff]  ;;  %v831_v44 = vld [vmem:[#allocation2 + $0x28] sm:$0xff] }
  0xa8   : > { %17491 = vst [vmem:[#allocation39_spill] sm:$0xff] %v12021_v21  ;;  %718 = vst.msk [vmem:[#allocation2 + $0x148] sm:$0xff] %vm594_vm0, %v12015_v19  ;;  %1384 = vrot.lane.b32.xlu1 %v798_v29, %s17340_s16  ;;  %v773_v45 = vld [vmem:[#allocation2 + $0xaf] sm:$0xff]  ;;  %v774_v50 = vld [vmem:[#allocation2 + $0xc7] sm:$0xff] }
  0xa9   : > { %719 = vst.msk [vmem:[#allocation2 + $0x150] sm:$0xff] %vm594_vm0, %v12018_v20  ;;  %17492 = vst [vmem:[#allocation40_spill] sm:$0xff] %v12028_v22  ;;  %1382 = vrot.lane.b32.xlu0 %v797_v30, %s17340_s16  ;;  %v804_v47 = vld [vmem:[#allocation2 + $0xb0] sm:$0xff]  ;;  %v803_v48 = vld [vmem:[#allocation2 + $0xa8] sm:$0xff] }
  0xaa   : > { %720 = vst.msk [vmem:[#allocation2 + $0x168] sm:$0xff] %vm594_vm0, %v12021_v21  ;;  %17493 = vst [vmem:[#allocation41_spill] sm:$0xff] %v12033_v23  ;;  %v775_v49 = vld [vmem:[#allocation2 + $0xcf] sm:$0xff]  ;;  %v776_v56 = vld [vmem:[#allocation2 + $0xe7] sm:$0xff] }
  0xab   : > { %17494 = vst [vmem:[#allocation42_spill] sm:$0xff] %v12036_v24  ;;  %721 = vst.msk [vmem:[#allocation2 + $0x170] sm:$0xff] %vm594_vm0, %v12028_v22  ;;  %v806_v53 = vld [vmem:[#allocation2 + $0xd0] sm:$0xff]  ;;  %v805_v54 = vld [vmem:[#allocation2 + $0xc8] sm:$0xff] }
  0xac   : > { %722 = vst.msk [vmem:[#allocation2 + $0x188] sm:$0xff] %vm594_vm0, %v12033_v23  ;;  %723 = vst.msk [vmem:[#allocation2 + $0x190] sm:$0xff] %vm594_vm0, %v12036_v24  ;;  %1068 = vrot.lane.b32.xlu1 %v769_v31, %s17338_s14  ;;  %v777_v55 = vld [vmem:[#allocation2 + $0xef] sm:$0xff]  ;;  %v778_v60 = vld [vmem:[#allocation2 + $0x107] sm:$0xff]  ;;  %v12266_v24 = vstv %s12241_s12  ;;  %s17671_s12 = smov 127  }
  0xad   : > { %1066 = vrot.lane.b32.xlu0 %v768_v32, %s17338_s14  ;;  %17495 = vst [vmem:[#allocation43_spill] sm:$0xff] %v12059_v39  ;;  %17496 = vst [vmem:[#allocation44_spill] sm:$0xff] %v12062_v40  ;;  %v808_v57 = vld [vmem:[#allocation2 + $0xf0] sm:$0xff]  ;;  %v807_v58 = vld [vmem:[#allocation2 + $0xe8] sm:$0xff] }
  0xae   : > { %724 = vst.msk [vmem:[#allocation2 + $0x1a8] sm:$0xff] %vm594_vm0, %v12059_v39  ;;  %725 = vst.msk [vmem:[#allocation2 + $0x1b0] sm:$0xff] %vm594_vm0, %v12062_v40  ;;  %v779_v59 = vld [vmem:[#allocation2 + $0x10f] sm:$0xff]  ;;  %v780_v27 = vld [vmem:[#allocation2 + $0x127] sm:$0xff] }
  0xaf   : > { %17497 = vst [vmem:[#allocation45_spill] sm:$0xff] %v12081_v51  ;;  %17498 = vst [vmem:[#allocation46_spill] sm:$0xff] %v12084_v52  ;;  %v12108_v63 = vld [vmem:[#allocation2 + $0x110] sm:$0xff]  ;;  %v12110_v25 = vld [vmem:[#allocation2 + $0x108] sm:$0xff] }
  0xb0   : > { %1388 = vrot.lane.b32.xlu1 %v800_v33, %s17340_s16  ;;  %726 = vst.msk [vmem:[#allocation2 + $0x1c8] sm:$0xff] %vm594_vm0, %v12081_v51  ;;  %727 = vst.msk [vmem:[#allocation2 + $0x1d0] sm:$0xff] %vm594_vm0, %v12084_v52  ;;  %v781_v26 = vld [vmem:[#allocation2 + $0x12f] sm:$0xff]  ;;  %v782_v31 = vld [vmem:[#allocation2 + $0x147] sm:$0xff] }
  0xb1   : > { %1386 = vrot.lane.b32.xlu0 %v799_v34, %s17340_s16  ;;  %17499 = vst [vmem:[#allocation47_spill] sm:$0xff] %v12103_v61  ;;  %17500 = vst [vmem:[#allocation48_spill] sm:$0xff] %v12106_v62  ;;  %v12124_v28 = vld [vmem:[#allocation2 + $0x130] sm:$0xff] }
  0xb2   : > { %728 = vst.msk [vmem:[#allocation2 + $0x1e8] sm:$0xff] %vm594_vm0, %v12103_v61  ;;  %729 = vst.msk [vmem:[#allocation2 + $0x1f0] sm:$0xff] %vm594_vm0, %v12106_v62  ;;  %v12136_v32 = vld [vmem:[#allocation2 + $0x150] sm:$0xff] }
  0xb3   : > { %v741_v16 = vld [vmem:[#allocation2 + $0xb1] sm:$0xff] }
  0xb4   : > { %1708 = vrot.lane.b32.xlu1 %v830_v35, %s17342_s20  ;;  %v12144_v35 = vld [vmem:[#allocation2 + $0x148] sm:$0xff]  ;;  %v743_v9 = vld [vmem:[#allocation2 + $0xd1] sm:$0xff] }
  0xb5   : > { %1706 = vrot.lane.b32.xlu0 %v829_v36, %s17342_s20  ;;  %v734_v36 = vld [vmem:[#allocation2 + $0x49] sm:$0xff]  ;;  %v747_v5 = vld [vmem:[#allocation2 + $0x111] sm:$0xff] }
  0xb7   : > { %v790_v11 = vld [vmem:[#allocation2 + $0x1c7] sm:$0xff] }
  0xb8   : > { %1072 = vrot.lane.b32.xlu1 %v771_v37, %s17338_s14  ;;  %v12146_v37 = vstv %s861_s23  ;;  %s11524_s23 = smov 80  }
  0xb9   : > { %1070 = vrot.lane.b32.xlu0 %v770_v38, %s17338_s14  ;;  %v732_v38 = vld [vmem:[#allocation2 + $0x29] sm:$0xff] }
  0xbc   : > { %1392 = vrot.lane.b32.xlu1 %v802_v41, %s17340_s16 }
  0xbd   : > { %1390 = vrot.lane.b32.xlu0 %v801_v42, %s17340_s16 }
  0xc0   : > { %1712 = vrot.lane.b32.xlu1 %v832_v43, %s17342_s20  ;;  %v735_v43 = vld [vmem:[#allocation2 + $0x51] sm:$0xff] }
  0xc1   : > { %1710 = vrot.lane.b32.xlu0 %v831_v44, %s17342_s20  ;;  %v12158_v44 = vstv %s9632_s30  ;;  %s11526_s30 = smov 112  }
  0xc4   : > { %1076 = vrot.lane.b32.xlu1 %v773_v45, %s17338_s14  ;;  %v733_v45 = vld [vmem:[#allocation2 + $0x31] sm:$0xff] }
  0xc5   : > { %1074 = vrot.lane.b32.xlu0 %v772_v46, %s17338_s14  ;;  %v866_v46 = vmul.f32 %v12146_v37, %v735_v43 }
  0xc8   : > { %1396 = vrot.lane.b32.xlu1 %v804_v47, %s17340_s16 }
  0xc9   : > { %1394 = vrot.lane.b32.xlu0 %v803_v48, %s17340_s16 }
  0xcc   : > { %1716 = vrot.lane.b32.xlu1 %v798_v29, %s17342_s20  ;;  %v12126_v29 = vld [vmem:[#allocation2 + $0x128] sm:$0xff] }
  0xcd   : > { %1714 = vrot.lane.b32.xlu0 %v797_v30, %s17342_s20  ;;  %v783_v30 = vld [vmem:[#allocation2 + $0x14f] sm:$0xff] }
  0xd0   : > { %1080 = vrot.lane.b32.xlu1 %v775_v49, %s17338_s14  ;;  %v864_v49 = vmul.f32 %v12146_v37, %v733_v45 }
  0xd1   : > { %1078 = vrot.lane.b32.xlu0 %v774_v50, %s17338_s14  ;;  %v785_v50 = vld [vmem:[#allocation2 + $0x16f] sm:$0xff] }
  0xd4   : > { %1400 = vrot.lane.b32.xlu1 %v806_v53, %s17340_s16 }
  0xd5   : > { %1398 = vrot.lane.b32.xlu0 %v805_v54, %s17340_s16 }
  0xd8   : > { %1720 = vrot.lane.b32.xlu1 %v800_v33, %s17342_s20  ;;  %v12139_v33 = vld [vmem:[%s11766_s19 + $0xf0] sm:$0xff] }
  0xd9   : > { %1718 = vrot.lane.b32.xlu0 %v799_v34, %s17342_s20  ;;  %17501 = vst [vmem:[#allocation49_spill] sm:$0xff] %v12139_v33  ;;  %v12142_v34 = vld [vmem:[%s11766_s19 + $0xf8] sm:$0xff]  ;;  %730 = vst.msk [vmem:[#allocation2 + $0x208] sm:$0xff] %vm594_vm0, %v12139_v33  ;;  %s11523_s19 = smov 48  }
  0xda   : > { %17502 = vst [vmem:[#allocation50_spill] sm:$0xff] %v12142_v34  ;;  %731 = vst.msk [vmem:[#allocation2 + $0x210] sm:$0xff] %vm594_vm0, %v12142_v34 }
  0xdc   : > { %1084 = vrot.lane.b32.xlu1 %v777_v55, %s17338_s14 }
  0xdd   : > { %1082 = vrot.lane.b32.xlu0 %v776_v56, %s17338_s14  ;;  %v900_v56 = vadd.f32 %v12158_v44, %v866_v46 }
  0xdf   : > { %vm932_vm3 = vcmp.ge.f32.partialorder %v900_v56, 0.0 }
  0xe0   : > { %1404 = vrot.lane.b32.xlu1 %v808_v57, %s17340_s16 }
  0xe1   : > { %1402 = vrot.lane.b32.xlu0 %v807_v58, %s17340_s16 }
  0xe4   : > { %1724 = vrot.lane.b32.xlu1 %v802_v41, %s17342_s20  ;;  %v865_v41 = vmul.f32 %v12146_v37, %v734_v36  ;;  %v964_v36 = vmul.f32 0.1, %v900_v56 }
  0xe5   : > { %1722 = vrot.lane.b32.xlu0 %v801_v42, %s17342_s20  ;;  %v863_v42 = vmul.f32 %v12146_v37, %v732_v38 }
  0xe8   : > { %1088 = vrot.lane.b32.xlu1 %v779_v59, %s17338_s14  ;;  %v12170_v59 = vld [vmem:[#allocation2 + $0x170] sm:$0xff] }
  0xe9   : > { %1086 = vrot.lane.b32.xlu0 %v778_v60, %s17338_s14  ;;  %v12172_v60 = vld [vmem:[#allocation2 + $0x168] sm:$0xff] }
  0xec   : > { %1408 = vrot.lane.b32.xlu1 %v12108_v63, %s17340_s16 }
  0xed   : > { %1406 = vrot.lane.b32.xlu0 %v12110_v25, %s17340_s16 }
  0xf0   : > { %1728 = vrot.lane.b32.xlu1 %v804_v47, %s17342_s20  ;;  %v899_v47 = vadd.f32 %v12158_v44, %v865_v41  ;;  %v12183_v41 = vstv %s9633_s29  ;;  %s17305_s29 = smov 2  }
  0xf1   : > { %1726 = vrot.lane.b32.xlu0 %v803_v48, %s17342_s20  ;;  %v897_v48 = vadd.f32 %v12158_v44, %v863_v42 }
  0xf2   : > { %vm931_vm1 = vcmp.ge.f32.partialorder %v899_v47, 0.0 }
  0xf3   : > { %v961_v55 = vmul.f32 0.1, %v897_v48  ;;  %vm929_vm2 = vcmp.ge.f32.partialorder %v897_v48, 0.0 }
  0xf4   : > { %1092 = vrot.lane.b32.xlu1 %v781_v26, %s17338_s14 }
  0xf5   : > { %1090 = vrot.lane.b32.xlu0 %v780_v27, %s17338_s14  ;;  %v736_v27 = vld [vmem:[#allocation2 + $0x69] sm:$0xff] }
  0xf6   : > { %v867_v45 = vmul.f32 %v12146_v37, %v736_v27 }
  0xf8   : > { %1412 = vrot.lane.b32.xlu1 %v12124_v28, %s17340_s16 }
  0xf9   : > { %1410 = vrot.lane.b32.xlu0 %v12126_v29, %s17340_s16 }
  0xfc   : > { %1732 = vrot.lane.b32.xlu1 %v806_v53, %s17342_s20  ;;  %v784_v53 = vld [vmem:[#allocation2 + $0x167] sm:$0xff] }
  0xfd   : > { %1730 = vrot.lane.b32.xlu0 %v805_v54, %s17342_s20  ;;  %v963_v54 = vmul.f32 0.1, %v899_v47 }
 0x100   : > { %1096 = vrot.lane.b32.xlu1 %v783_v30, %s17338_s14  ;;  %v12179_v30 = vsel %vm931_vm1, %v899_v47, %v963_v54  ;;  %v12190_v47 = vstv %s9634_s1  ;;  %s17303_s1 = smov 3  }
 0x101   : > { %1094 = vrot.lane.b32.xlu0 %v782_v31, %s17338_s14  ;;  %v12181_v31 = vsel %vm929_vm2, %v897_v48, %v961_v55  ;;  %v12196_v48 = vsel %vm932_vm3, %v900_v56, %v964_v36  ;;  %v786_v55 = vld [vmem:[#allocation2 + $0x187] sm:$0xff] }
 0x104   : > { %1416 = vrot.lane.b32.xlu1 %v12136_v32, %s17340_s16 }
 0x105   : > { %1414 = vrot.lane.b32.xlu0 %v12144_v35, %s17340_s16 }
 0x108   : > { %1736 = vrot.lane.b32.xlu1 %v808_v57, %s17342_s20  ;;  %v898_v57 = vadd.f32 %v12158_v44, %v864_v49 }
 0x109   : > { %1734 = vrot.lane.b32.xlu0 %v807_v58, %s17342_s20  ;;  %v737_v58 = vld [vmem:[#allocation2 + $0x71] sm:$0xff] }
 0x10a   : > { %v868_v26 = vmul.f32 %v12146_v37, %v737_v58  ;;  %v962_v38 = vmul.f32 0.1, %v898_v57  ;;  %vm930_vm4 = vcmp.ge.f32.partialorder %v898_v57, 0.0  ;;  %v787_v58 = vld [vmem:[#allocation2 + $0x18f] sm:$0xff] }
 0x10c   : > { %1100 = vrot.lane.b32.xlu1 %v785_v50, %s17338_s14  ;;  %v12198_v50 = vsel %vm930_vm4, %v898_v57, %v962_v38 }
 0x10d   : > { %1098 = vrot.lane.b32.xlu0 %v784_v53, %s17338_s14  ;;  %v902_v53 = vadd.f32 %v12158_v44, %v868_v26 }
 0x10f   : > { %v966_v26 = vmul.f32 0.1, %v902_v53  ;;  %vm934_vm6 = vcmp.ge.f32.partialorder %v902_v53, 0.0 }
 0x110   : > { %1420 = vrot.lane.b32.xlu1 %v12170_v59, %s17340_s16 }
 0x111   : > { %1418 = vrot.lane.b32.xlu0 %v12172_v60, %s17340_s16  ;;  %v12230_v62 = vsel %vm934_vm6, %v902_v53, %v966_v26 }
 0x112   : > { %v1063_v42 = vpop.permute.xlu1 %1062  ;;  %17503 = vst [vmem:[#allocation51_spill] sm:$0xff] %v12230_v62 }
 0x113   : > { %v1059_v43 = vpop.permute.xlu0 %1058  ;;  %v1156_v46 = vmul.f32 %v1063_v42, %v12179_v30 }
 0x114   : > { %v1154_v49 = vmul.f32 %v1059_v43, %v12181_v31  ;;  %1740 = vrot.lane.b32.xlu1 %v12108_v63, %s17342_s20  ;;  %v901_v43 = vadd.f32 %v12158_v44, %v867_v45  ;;  %v12215_v45 = vld [vmem:[#allocation2 + $0x190] sm:$0xff] }
 0x115   : > { %1738 = vrot.lane.b32.xlu0 %v12110_v25, %s17342_s20  ;;  %v1189_v27 = vmul.f32 %v12183_v41, %v1156_v46 }
 0x116   : > { %v1187_v54 = vmul.f32 %v12183_v41, %v1154_v49  ;;  %v1065_v42 = vpop.permute.xlu1 %1064  ;;  %v12213_v49 = vld [vmem:[#allocation2 + $0x188] sm:$0xff]  ;;  %vm933_vm7 = vcmp.ge.f32.partialorder %v901_v43, 0.0 }
 0x117   : > { %v1061_v63 = vpop.permute.xlu0 %1060  ;;  %v1157_v56 = vmul.f32 %v1065_v42, %v12196_v48  ;;  %v12219_v42 = vstv %s12185_s0  ;;  %s11520_s0 = smov 32  }
 0x118   : > { %v1221_v25 = vadd.f32 %v12190_v47, %v1187_v54  ;;  %v1155_v57 = vmul.f32 %v1061_v63, %v12198_v50  ;;  %1102 = vrot.lane.b32.xlu1 %v786_v55, %s17338_s14  ;;  %v1223_v54 = vadd.f32 %v12190_v47, %v1189_v27  ;;  %v12228_v27 = vstv %s12202_s24  ;;  %s11521_s24 = smov 16  }
 0x119   : > { %1104 = vrot.lane.b32.xlu0 %v787_v58, %s17338_s14  ;;  %v1190_v36 = vmul.f32 %v12183_v41, %v1157_v56  ;;  %v965_v58 = vmul.f32 0.1, %v901_v43 }
 0x11a   : > { %v1188_v38 = vmul.f32 %v12183_v41, %v1155_v57  ;;  %vm1253_vm5 = vcmp.ge.f32.partialorder %v1221_v25, 0.0  ;;  %v1285_v46 = vmul.f32 0.1, %v1221_v25  ;;  %v1385_v63 = vpop.permute.xlu1 %1384  ;;  %vm1255_vm10 = vcmp.ge.f32.partialorder %v1223_v54, 0.0 }
 0x11b   : > { %v1383_v55 = vpop.permute.xlu0 %1382  ;;  %v1224_v3 = vadd.f32 %v12190_v47, %v1190_v36  ;;  %v12233_v51 = vsel %vm933_vm7, %v901_v43, %v965_v58 }
 0x11c   : > { %v1222_v56 = vadd.f32 %v12190_v47, %v1188_v38  ;;  %v1317_v57 = vsel %vm1253_vm5, %v1221_v25, %v1285_v46  ;;  %1422 = vrot.lane.b32.xlu1 %v12213_v49, %s17340_s16  ;;  %17504 = vst [vmem:[#allocation52_spill] sm:$0xff] %v12233_v51  ;;  %v1287_v46 = vmul.f32 0.1, %v1223_v54 }
 0x11d   : > { %v1478_v34 = vmul.f32 %v1383_v55, %v1317_v57  ;;  %1424 = vrot.lane.b32.xlu0 %v12215_v45, %s17340_s16  ;;  %v1288_v38 = vmul.f32 0.1, %v1224_v3  ;;  %vm1256_vm9 = vcmp.ge.f32.partialorder %v1224_v3, 0.0 }
 0x11e   : > { %vm1254_vm8 = vcmp.ge.f32.partialorder %v1222_v56, 0.0  ;;  %v1286_v33 = vmul.f32 0.1, %v1222_v56  ;;  %v1069_v36 = vpop.permute.xlu1 %1068  ;;  %v1319_v58 = vsel %vm1255_vm10, %v1223_v54, %v1287_v46  ;;  %v12261_v46 = vstv %s12235_s22 }
 0x11f   : > { %v1511_v61 = vmul.f32 %v12219_v42, %v1478_v34  ;;  %v1067_v25 = vpop.permute.xlu0 %1066  ;;  %v1159_v34 = vmul.f32 %v1069_v36, %v12230_v62  ;;  %v739_v36 = vld [vmem:[#allocation2 + $0x91] sm:$0xff] }
 0x120   : > { %v1318_v55 = vsel %vm1254_vm8, %v1222_v56, %v1286_v33  ;;  %1742 = vrot.lane.b32.xlu1 %v12126_v29, %s17342_s20  ;;  %v1158_v53 = vmul.f32 %v1067_v25, %v12233_v51  ;;  %v1320_v33 = vsel %vm1256_vm9, %v1224_v3, %v1288_v38  ;;  %v2513_v25 = vld [vmem:[%s17193_s2] sm:$0xff]  ;;  %v870_v23 = vmul.f32 %v12146_v37, %v739_v36 }
 0x121   : > { %v1479_v52 = vmul.f32 %v1385_v63, %v1318_v55  ;;  %v1545_v40 = vadd.f32 %v12228_v27, %v1511_v61  ;;  %2029 = vrot.lane.b32.xlu0 %v1317_v57, %s17336_s15  ;;  %v1192_v57 = vmul.f32 %v12183_v41, %v1159_v34 }
 0x122   : > { %v1389_v26 = vpop.permute.xlu1 %1388 }
 0x123   : > { %v1512_v43 = vmul.f32 %v12219_v42, %v1479_v52  ;;  %v1387_v63 = vpop.permute.xlu0 %1386  ;;  %v1609_v56 = vmul.f32 0.1, %v1545_v40  ;;  %v1481_v61 = vmul.f32 %v1389_v26, %v1320_v33  ;;  %vm1577_vm11 = vcmp.ge.f32.partialorder %v1545_v40, 0.0 }
 0x124   : > { %v1480_v39 = vmul.f32 %v1387_v63, %v1319_v58  ;;  %1744 = vrot.lane.b32.xlu1 %v12124_v28, %s17342_s20  ;;  %v1191_v52 = vmul.f32 %v12183_v41, %v1158_v53  ;;  %v2514_v28 = vld [vmem:[%s17193_s2 + $0x8] sm:$0xff]  ;;  %v1226_v21 = vadd.f32 %v12190_v47, %v1192_v57 }
 0x125   : > { %v1546_v29 = vadd.f32 %v12228_v27, %v1512_v43  ;;  %2031 = vrot.lane.b32.xlu0 %v1318_v55, %s17336_s15  ;;  %v1514_v3 = vmul.f32 %v12219_v42, %v1481_v61  ;;  %v1641_v34 = vsel %vm1577_vm11, %v1545_v40, %v1609_v56  ;;  %v738_v63 = vld [vmem:[#allocation2 + $0x89] sm:$0xff]  ;;  %v10097_v22 = vpack.c.bf16 %v2514_v28, %v2513_v25 }
 0x126   : > { %v1513_v54 = vmul.f32 %v12219_v42, %v1480_v39  ;;  %v1709_v55 = vpop.permute.xlu1 %1708  ;;  %v1225_v40 = vadd.f32 %v12190_v47, %v1191_v52  ;;  %v904_v52 = vadd.f32 %v12158_v44, %v870_v23  ;;  %v1290_v25 = vmul.f32 0.1, %v1226_v21 }
 0x127   : > { %vm1578_vm12 = vcmp.ge.f32.partialorder %v1546_v29, 0.0  ;;  %v1610_v38 = vmul.f32 0.1, %v1546_v29  ;;  %v1707_v53 = vpop.permute.xlu0 %1706  ;;  %v1548_v43 = vadd.f32 %v12228_v27, %v1514_v3  ;;  %10098 = vmatprep.subr.bf16.mxu0 %v10097_v22  ;;  %10166 = vmatprep.subr.bf16.mxu1 %v10097_v22  ;;  %vm1258_vm15 = vcmp.ge.f32.partialorder %v1226_v21, 0.0 }
 0x128   : > { %v1547_v39 = vadd.f32 %v12228_v27, %v1513_v54  ;;  %v1802_v26 = vmul.f32 %v1707_v53, %v1641_v34  ;;  %2035 = vrot.lane.b32.xlu1 %v1320_v33, %s17336_s15  ;;  %v869_v53 = vmul.f32 %v12146_v37, %v738_v63  ;;  %10100 = vmatpush3.bf16.msra.mxu0 %v10097_v22  ;;  %v1289_v28 = vmul.f32 0.1, %v1225_v40 }
 0x129   : > { %v1642_v61 = vsel %vm1578_vm12, %v1546_v29, %v1610_v38  ;;  %2033 = vrot.lane.b32.xlu0 %v1319_v58, %s17336_s15  ;;  %v1612_v38 = vmul.f32 0.1, %v1548_v43  ;;  %vm1580_vm13 = vcmp.ge.f32.partialorder %v1548_v43, 0.0  ;;  %10167 = vmatpush3.bf16.msra.mxu1 %v10097_v22  ;;  %vm1257_vm1 = vcmp.ge.f32.partialorder %v1225_v40, 0.0 }
 0x12a   : > { %v1803_v56 = vmul.f32 %v1709_v55, %v1642_v61  ;;  %v1835_v3 = vmul.f32 %v12261_v46, %v1802_v26  ;;  %v1073_v54 = vpop.permute.xlu1 %1072  ;;  %v1611_v36 = vmul.f32 0.1, %v1547_v39  ;;  %vm1579_vm14 = vcmp.ge.f32.partialorder %v1547_v39, 0.0 }
 0x12b   : > { %v1071_v29 = vpop.permute.xlu0 %1070  ;;  %v903_v55 = vadd.f32 %v12158_v44, %v869_v53  ;;  %vm936_vm4 = vcmp.ge.f32.partialorder %v904_v52, 0.0  ;;  %v968_v23 = vmul.f32 0.1, %v904_v52  ;;  %v12286_v22 = vsel %vm1257_vm1, %v1225_v40, %v1289_v28 }
 0x12c   : > { %v1836_v33 = vmul.f32 %v12261_v46, %v1803_v56  ;;  %v1869_v58 = vadd.f32 %v12266_v24, %v1835_v3  ;;  %2157 = vrot.lane.b32.xlu1 %v1641_v34, %s17305_s29  ;;  %v1644_v56 = vsel %vm1580_vm13, %v1548_v43, %v1612_v38  ;;  %v1643_v3 = vsel %vm1579_vm14, %v1547_v39, %v1611_v36 }
 0x12d   : > { %2159 = vrot.lane.b32.xlu0 %v1642_v61, %s17305_s29  ;;  %vm935_vm5 = vcmp.ge.f32.partialorder %v903_v55, 0.0  ;;  %v967_v53 = vmul.f32 0.1, %v903_v55 }
 0x12e   : > { %v1870_v57 = vadd.f32 %v12266_v24, %v1836_v33  ;;  %v1393_v26 = vpop.permute.xlu1 %1392  ;;  %v1933_v34 = vmul.f32 0.1, %v1869_v58  ;;  %vm1901_vm3 = vcmp.ge.f32.partialorder %v1869_v58, 0.0  ;;  %v12284_v33 = vsel %vm1258_vm15, %v1226_v21, %v1290_v25 }
 0x12f   : > { %v1391_v63 = vpop.permute.xlu0 %1390  ;;  %v1483_v20 = vmul.f32 %v1393_v26, %v12284_v33  ;;  %v12295_v25 = vsel %vm936_vm4, %v904_v52, %v968_v23  ;;  %v12298_v28 = vsel %vm935_vm5, %v903_v55, %v967_v53 }
 0x130   : > { %2163 = vrot.lane.b32.xlu1 %v1644_v56, %s17305_s29  ;;  %vm1902_vm2 = vcmp.ge.f32.partialorder %v1870_v57, 0.0  ;;  %v1934_v61 = vmul.f32 0.1, %v1870_v57  ;;  %v1482_v43 = vmul.f32 %v1391_v63, %v12286_v22  ;;  %v1965_v17 = vsel %vm1901_vm3, %v1869_v58, %v1933_v34  ;;  %17505 = vst [vmem:[#allocation53_spill] sm:$0xff] %v12295_v25  ;;  %17506 = vst [vmem:[#allocation54_spill] sm:$0xff] %v12298_v28 }
 0x131   : > { %2161 = vrot.lane.b32.xlu0 %v1643_v3, %s17305_s29  ;;  %v1516_v58 = vmul.f32 %v12219_v42, %v1483_v20  ;;  %v1161_v52 = vmul.f32 %v1073_v54, %v12295_v25 }
 0x132   : > { %v1713_v39 = vpop.permute.xlu1 %1712  ;;  %v1966_v18 = vsel %vm1902_vm2, %v1870_v57, %v1934_v61 }
 0x133   : > { %v1711_v38 = vpop.permute.xlu0 %1710  ;;  %v1805_v36 = vmul.f32 %v1713_v39, %v1644_v56  ;;  %v1160_v56 = vmul.f32 %v1071_v29, %v12298_v28  ;;  %v1550_v61 = vadd.f32 %v12228_v27, %v1516_v58  ;;  %v740_v58 = vld [vmem:[#allocation2 + $0xa9] sm:$0xff] }
 0x134   : > { %v1804_v19 = vmul.f32 %v1711_v38, %v1643_v3  ;;  %2285 = vrot.lane.b32.xlu1 %v1965_v17, %s17303_s1  ;;  %v789_v38 = vld [vmem:[#allocation2 + $0x1af] sm:$0xff] }
 0x135   : > { %2287 = vrot.lane.b32.xlu0 %v1966_v18, %s17303_s1  ;;  %v1838_v21 = vmul.f32 %v12261_v46, %v1805_v36  ;;  %v1515_v18 = vmul.f32 %v12219_v42, %v1482_v43  ;;  %v1194_v43 = vmul.f32 %v12183_v41, %v1161_v52  ;;  %v1193_v54 = vmul.f32 %v12183_v41, %v1160_v56  ;;  %v788_v36 = vld [vmem:[#allocation2 + $0x1a7] sm:$0xff]  ;;  %v12324_v52 = vld [vmem:[#allocation2 + $0x1b0] sm:$0xff] }
 0x136   : > { %v1837_v40 = vmul.f32 %v12261_v46, %v1804_v19  ;;  %v12300_v26 = vpop.permute.xlu1 %1076  ;;  %vm1582_vm8 = vcmp.ge.f32.partialorder %v1550_v61, 0.0  ;;  %v12326_v56 = vld [vmem:[#allocation2 + $0x1a8] sm:$0xff] }
 0x137   : > { %v12302_v63 = vpop.permute.xlu0 %1074  ;;  %v1872_v17 = vadd.f32 %v12266_v24, %v1838_v21  ;;  %v1549_v20 = vadd.f32 %v12228_v27, %v1515_v18  ;;  %v1614_v21 = vmul.f32 0.1, %v1550_v61  ;;  %v1228_v18 = vadd.f32 %v12190_v47, %v1194_v43 }
 0x138   : > { %v1871_v57 = vadd.f32 %v12266_v24, %v1837_v40 }
 0x139   : > { %vm1904_vm6 = vcmp.ge.f32.partialorder %v1872_v17, 0.0  ;;  %v1936_v19 = vmul.f32 0.1, %v1872_v17  ;;  %v1613_v40 = vmul.f32 0.1, %v1549_v20  ;;  %vm1581_vm9 = vcmp.ge.f32.partialorder %v1549_v20, 0.0 }
 0x13a   : > { %v1397_v55 = vpop.permute.xlu1 %1396  ;;  %vm1903_vm7 = vcmp.ge.f32.partialorder %v1871_v57, 0.0  ;;  %v1935_v34 = vmul.f32 0.1, %v1871_v57  ;;  %v1292_v43 = vmul.f32 0.1, %v1228_v18  ;;  %vm1260_vm10 = vcmp.ge.f32.partialorder %v1228_v18, 0.0 }
 0x13b   : > { %v1395_v3 = vpop.permute.xlu0 %1394  ;;  %v1968_v23 = vsel %vm1904_vm6, %v1872_v17, %v1936_v19  ;;  %v1227_v17 = vadd.f32 %v12190_v47, %v1193_v54 }
 0x13c   : > { %v1967_v53 = vsel %vm1903_vm7, %v1871_v57, %v1935_v34  ;;  %2291 = vrot.lane.b32.xlu1 %v1968_v23, %s17303_s1  ;;  %v872_v34 = vmul.f32 %v12146_v37, %v741_v16  ;;  %v871_v23 = vmul.f32 %v12146_v37, %v740_v58 }
 0x13d   : > { %2289 = vrot.lane.b32.xlu0 %v1967_v53, %s17303_s1  ;;  %v1646_v53 = vsel %vm1582_vm8, %v1550_v61, %v1614_v21  ;;  %v1291_v54 = vmul.f32 0.1, %v1227_v17  ;;  %vm1259_vm11 = vcmp.ge.f32.partialorder %v1227_v17, 0.0 }
 0x13e   : > { %v1717_v39 = vpop.permute.xlu1 %1716  ;;  %v906_v16 = vadd.f32 %v12158_v44, %v872_v34  ;;  %v905_v58 = vadd.f32 %v12158_v44, %v871_v23 }
 0x13f   : > { %v1715_v29 = vpop.permute.xlu0 %1714  ;;  %v1807_v15 = vmul.f32 %v1717_v39, %v1646_v53  ;;  %v12346_v39 = vsel %vm1260_vm10, %v1228_v18, %v1292_v43 }
 0x140   : > { %1108 = vrot.lane.b32.xlu1 %v789_v38, %s17338_s14  ;;  %v1645_v38 = vsel %vm1581_vm9, %v1549_v20, %v1613_v40  ;;  %v970_v34 = vmul.f32 0.1, %v906_v16  ;;  %v969_v23 = vmul.f32 0.1, %v905_v58  ;;  %v1485_v12 = vmul.f32 %v1397_v55, %v12346_v39 }
 0x141   : > { %1106 = vrot.lane.b32.xlu0 %v788_v36, %s17338_s14  ;;  %v1806_v36 = vmul.f32 %v1715_v29, %v1645_v38  ;;  %v1840_v61 = vmul.f32 %v12261_v46, %v1807_v15  ;;  %v12348_v29 = vsel %vm1259_vm11, %v1227_v17, %v1291_v54  ;;  %vm938_vm12 = vcmp.ge.f32.partialorder %v906_v16, 0.0 }
 0x142   : > { %v12320_v57 = vpop.permute.xlu1 %1080  ;;  %v1484_v15 = vmul.f32 %v1395_v3, %v12348_v29  ;;  %vm937_vm13 = vcmp.ge.f32.partialorder %v905_v58, 0.0  ;;  %v12362_v17 = vsel %vm938_vm12, %v906_v16, %v970_v34  ;;  %v1518_v3 = vmul.f32 %v12219_v42, %v1485_v12 }
 0x143   : > { %v12322_v19 = vpop.permute.xlu0 %1078  ;;  %v1839_v20 = vmul.f32 %v12261_v46, %v1806_v36  ;;  %v1874_v36 = vadd.f32 %v12266_v24, %v1840_v61  ;;  %17507 = vst [vmem:[#allocation55_spill] sm:$0xff] %v12362_v17  ;;  %v12364_v55 = vsel %vm937_vm13, %v905_v58, %v969_v23 }
 0x144   : > { %1428 = vrot.lane.b32.xlu1 %v12324_v52, %s17340_s16  ;;  %17508 = vst [vmem:[#allocation56_spill] sm:$0xff] %v12364_v55  ;;  %v1517_v43 = vmul.f32 %v12219_v42, %v1484_v15  ;;  %v1552_v12 = vadd.f32 %v12228_v27, %v1518_v3  ;;  %v791_v15 = vld [vmem:[#allocation2 + $0x1cf] sm:$0xff] }
 0x145   : > { %1426 = vrot.lane.b32.xlu0 %v12326_v56, %s17340_s16  ;;  %v1938_v54 = vmul.f32 0.1, %v1874_v36  ;;  %vm1906_vm14 = vcmp.ge.f32.partialorder %v1874_v36, 0.0 }
 0x146   : > { %v12334_v14 = vpop.permute.xlu1 %1400  ;;  %v1616_v10 = vmul.f32 0.1, %v1552_v12  ;;  %vm1584_vm1 = vcmp.ge.f32.partialorder %v1552_v12, 0.0 }
 0x147   : > { %v12336_v13 = vpop.permute.xlu0 %1398  ;;  %v1970_v34 = vsel %vm1906_vm14, %v1874_v36, %v1938_v54 }
 0x148   : > { %1748 = vrot.lane.b32.xlu1 %v12136_v32, %s17342_s20  ;;  %v1873_v32 = vadd.f32 %v12266_v24, %v1839_v20  ;;  %v1551_v20 = vadd.f32 %v12228_v27, %v1517_v43  ;;  %v742_v43 = vld [vmem:[#allocation2 + $0xc9] sm:$0xff] }
 0x149   : > { %1746 = vrot.lane.b32.xlu0 %v12144_v35, %s17342_s20 }
 0x14a   : > { %v1721_v21 = vpop.permute.xlu1 %1720  ;;  %v1937_v61 = vmul.f32 0.1, %v1873_v32  ;;  %vm1905_vm15 = vcmp.ge.f32.partialorder %v1873_v32, 0.0  ;;  %v1615_v3 = vmul.f32 0.1, %v1551_v20  ;;  %vm1583_vm2 = vcmp.ge.f32.partialorder %v1551_v20, 0.0 }
 0x14b   : > { %v1719_v40 = vpop.permute.xlu0 %1718 }
 0x14c   : > { %2039 = vrot.lane.b32.xlu1 %v12284_v33, %s17336_s15  ;;  %v1163_v33 = vmul.f32 %v12300_v26, %v12362_v17 }
 0x14d   : > { %2037 = vrot.lane.b32.xlu0 %v12286_v22, %s17336_s15  ;;  %v1162_v22 = vmul.f32 %v12302_v63, %v12364_v55  ;;  %v1648_v55 = vsel %vm1584_vm1, %v1552_v12, %v1616_v10 }
 0x14e   : > { %v12358_v35 = vpop.permute.xlu1 %1084  ;;  %v1809_v17 = vmul.f32 %v1721_v21, %v1648_v55 }
 0x14f   : > { %v12360_v18 = vpop.permute.xlu0 %1082  ;;  %v1195_v26 = vmul.f32 %v12183_v41, %v1162_v22  ;;  %v12398_v22 = vld [vmem:[#allocation2 + $0x1c8] sm:$0xff] }
 0x150   : > { %2167 = vrot.lane.b32.xlu1 %v1646_v53, %s17305_s29  ;;  %v1969_v53 = vsel %vm1905_vm15, %v1873_v32, %v1937_v61  ;;  %v1842_v10 = vmul.f32 %v12261_v46, %v1809_v17 }
 0x151   : > { %2165 = vrot.lane.b32.xlu0 %v1645_v38, %s17305_s29  ;;  %v1196_v38 = vmul.f32 %v12183_v41, %v1163_v33  ;;  %v1229_v32 = vadd.f32 %v12190_v47, %v1195_v26  ;;  %v12396_v33 = vld [vmem:[#allocation2 + $0x1d0] sm:$0xff] }
 0x152   : > { %v12374_v16 = vpop.permute.xlu1 %1404 }
 0x153   : > { %v12376_v58 = vpop.permute.xlu0 %1402  ;;  %v1230_v36 = vadd.f32 %v12190_v47, %v1196_v38  ;;  %v1293_v26 = vmul.f32 0.1, %v1229_v32  ;;  %vm1261_vm4 = vcmp.ge.f32.partialorder %v1229_v32, 0.0 }
 0x154   : > { %2295 = vrot.lane.b32.xlu1 %v1970_v34, %s17303_s1  ;;  %v874_v34 = vmul.f32 %v12146_v37, %v743_v9 }
 0x155   : > { %2293 = vrot.lane.b32.xlu0 %v1969_v53, %s17303_s1  ;;  %v873_v53 = vmul.f32 %v12146_v37, %v742_v43  ;;  %v1294_v38 = vmul.f32 0.1, %v1230_v36  ;;  %vm1262_vm3 = vcmp.ge.f32.partialorder %v1230_v36, 0.0  ;;  %v12420_v12 = vsel %vm1261_vm4, %v1229_v32, %v1293_v26 }
 0x156   : > { %v12384_v23 = vpop.permute.xlu1 %1724  ;;  %v908_v9 = vadd.f32 %v12158_v44, %v874_v34 }
 0x157   : > { %v12386_v63 = vpop.permute.xlu0 %1722  ;;  %v907_v43 = vadd.f32 %v12158_v44, %v873_v53 }
 0x158   : > { %1112 = vrot.lane.b32.xlu1 %v791_v15, %s17338_s14  ;;  %v1647_v15 = vsel %vm1583_vm2, %v1551_v20, %v1615_v3  ;;  %v972_v34 = vmul.f32 0.1, %v908_v9  ;;  %vm940_vm5 = vcmp.ge.f32.partialorder %v908_v9, 0.0 }
 0x159   : > { %1110 = vrot.lane.b32.xlu0 %v790_v11, %s17338_s14  ;;  %v1808_v11 = vmul.f32 %v1719_v40, %v1647_v15  ;;  %v12418_v40 = vsel %vm1262_vm3, %v1230_v36, %v1294_v38  ;;  %v971_v53 = vmul.f32 0.1, %v907_v43  ;;  %vm939_vm6 = vcmp.ge.f32.partialorder %v907_v43, 0.0 }
 0x15a   : > { %v12392_v54 = vpop.permute.xlu1 %1088  ;;  %v1487_v17 = vmul.f32 %v12334_v14, %v12418_v40  ;;  %v12440_v14 = vsel %vm940_vm5, %v908_v9, %v972_v34  ;;  %v745_v9 = vld [vmem:[#allocation2 + $0xf1] sm:$0xff] }
 0x15b   : > { %v12394_v61 = vpop.permute.xlu0 %1086  ;;  %v1841_v21 = vmul.f32 %v12261_v46, %v1808_v11  ;;  %v1486_v11 = vmul.f32 %v12336_v13, %v12420_v12  ;;  %17509 = vst [vmem:[#allocation57_spill] sm:$0xff] %v12440_v14  ;;  %v12442_v38 = vsel %vm939_vm6, %v907_v43, %v971_v53  ;;  %v744_v43 = vld [vmem:[#allocation2 + $0xe9] sm:$0xff]  ;;  %v876_v28 = vmul.f32 %v12146_v37, %v745_v9 }
 0x15c   : > { %1432 = vrot.lane.b32.xlu1 %v12396_v33, %s17340_s16  ;;  %17510 = vst [vmem:[#allocation58_spill] sm:$0xff] %v12442_v38  ;;  %v1520_v13 = vmul.f32 %v12219_v42, %v1487_v17  ;;  %v875_v25 = vmul.f32 %v12146_v37, %v744_v43 }
 0x15d   : > { %1430 = vrot.lane.b32.xlu0 %v12398_v22, %s17340_s16  ;;  %v1519_v26 = vmul.f32 %v12219_v42, %v1486_v11 }
 0x15e   : > { %v12406_v8 = vpop.permute.xlu1 %1408  ;;  %v1554_v17 = vadd.f32 %v12228_v27, %v1520_v13  ;;  %v793_v13 = vld [vmem:[#allocation2 + $0x1ef] sm:$0xff] }
 0x15f   : > { %v12408_v7 = vpop.permute.xlu0 %1406 }
 0x160   : > { %1752 = vrot.lane.b32.xlu1 %v12170_v59, %s17342_s20  ;;  %v1876_v59 = vadd.f32 %v12266_v24, %v1842_v10  ;;  %vm1586_vm9 = vcmp.ge.f32.partialorder %v1554_v17, 0.0 }
 0x161   : > { %1750 = vrot.lane.b32.xlu0 %v12172_v60, %s17342_s20  ;;  %v1875_v60 = vadd.f32 %v12266_v24, %v1841_v21 }
 0x162   : > { %v12422_v20 = vpop.permute.xlu1 %1728  ;;  %v1940_v10 = vmul.f32 0.1, %v1876_v59  ;;  %vm1908_vm7 = vcmp.ge.f32.partialorder %v1876_v59, 0.0 }
 0x163   : > { %v12424_v3 = vpop.permute.xlu0 %1726  ;;  %v1939_v21 = vmul.f32 0.1, %v1875_v60  ;;  %vm1907_vm8 = vcmp.ge.f32.partialorder %v1875_v60, 0.0 }
 0x164   : > { %2043 = vrot.lane.b32.xlu1 %v12346_v39, %s17336_s15  ;;  %v1165_v39 = vmul.f32 %v12320_v57, %v12440_v14  ;;  %v1972_v11 = vsel %vm1908_vm7, %v1876_v59, %v1940_v10  ;;  %v1618_v59 = vmul.f32 0.1, %v1554_v17  ;;  %v910_v10 = vadd.f32 %v12158_v44, %v876_v28 }
 0x165   : > { %2041 = vrot.lane.b32.xlu0 %v12348_v29, %s17336_s15  ;;  %v1164_v29 = vmul.f32 %v12322_v19, %v12442_v38 }
 0x166   : > { %v12436_v36 = vpop.permute.xlu1 %1092  ;;  %v1198_v57 = vmul.f32 %v12183_v41, %v1165_v39  ;;  %v1650_v6 = vsel %vm1586_vm9, %v1554_v17, %v1618_v59  ;;  %vm942_vm12 = vcmp.ge.f32.partialorder %v910_v10, 0.0 }
 0x167   : > { %v12438_v32 = vpop.permute.xlu0 %1090  ;;  %v1197_v19 = vmul.f32 %v12183_v41, %v1164_v29 }
 0x168   : > { %2171 = vrot.lane.b32.xlu1 %v1648_v55, %s17305_s29  ;;  %v1553_v55 = vadd.f32 %v12228_v27, %v1519_v26  ;;  %v792_v26 = vld [vmem:[#allocation2 + $0x1e7] sm:$0xff]  ;;  %v1232_v39 = vadd.f32 %v12190_v47, %v1198_v57 }
 0x169   : > { %2169 = vrot.lane.b32.xlu0 %v1647_v15, %s17305_s29  ;;  %v1971_v15 = vsel %vm1907_vm8, %v1875_v60, %v1939_v21  ;;  %v909_v21 = vadd.f32 %v12158_v44, %v875_v25  ;;  %v1231_v29 = vadd.f32 %v12190_v47, %v1197_v19  ;;  %v1811_v25 = vmul.f32 %v12384_v23, %v1650_v6 }
 0x16a   : > { %v12452_v34 = vpop.permute.xlu1 %1412  ;;  %v1617_v60 = vmul.f32 0.1, %v1553_v55  ;;  %vm1585_vm10 = vcmp.ge.f32.partialorder %v1553_v55, 0.0  ;;  %v1296_v57 = vmul.f32 0.1, %v1232_v39  ;;  %vm1264_vm13 = vcmp.ge.f32.partialorder %v1232_v39, 0.0 }
 0x16b   : > { %v12454_v53 = vpop.permute.xlu0 %1410  ;;  %v973_v51 = vmul.f32 0.1, %v909_v21  ;;  %vm941_vm11 = vcmp.ge.f32.partialorder %v909_v21, 0.0  ;;  %v1295_v19 = vmul.f32 0.1, %v1231_v29  ;;  %vm1263_vm14 = vcmp.ge.f32.partialorder %v1231_v29, 0.0 }
 0x16c   : > { %2299 = vrot.lane.b32.xlu1 %v1972_v11, %s17303_s1  ;;  %v12478_v11 = vld [vmem:[#allocation2 + $0x1f0] sm:$0xff]  ;;  %v1649_v28 = vsel %vm1585_vm10, %v1553_v55, %v1617_v60  ;;  %v878_v23 = vmul.f32 %v12146_v37, %v747_v5  ;;  %v1844_v55 = vmul.f32 %v12261_v46, %v1811_v25 }
 0x16d   : > { %2297 = vrot.lane.b32.xlu0 %v1971_v15, %s17303_s1  ;;  %17511 = vst [vmem:[#allocation59_spill] sm:$0xff] %v12478_v11  ;;  %v12480_v15 = vld [vmem:[#allocation2 + $0x1e8] sm:$0xff]  ;;  %v12495_v60 = vsel %vm941_vm11, %v909_v21, %v973_v51  ;;  %v12505_v2 = vsel %vm1263_vm14, %v1231_v29, %v1295_v19  ;;  %v749_v19 = vld [vmem:[#allocation2 + $0x131] sm:$0xff] }
 0x16e   : > { %v12464_v38 = vpop.permute.xlu1 %1732  ;;  %17512 = vst [vmem:[#allocation60_spill] sm:$0xff] %v12480_v15  ;;  %17513 = vst [vmem:[#allocation61_spill] sm:$0xff] %v12495_v60  ;;  %v1166_v29 = vmul.f32 %v12360_v18, %v12495_v60 }
 0x16f   : > { %v12466_v14 = vpop.permute.xlu0 %1730 }
 0x170   : > { %1116 = vrot.lane.b32.xlu1 %v793_v13, %s17338_s14  ;;  %v1810_v13 = vmul.f32 %v12386_v63, %v1649_v28  ;;  %v746_v63 = vld [vmem:[#allocation2 + $0x109] sm:$0xff] }
 0x171   : > { %1114 = vrot.lane.b32.xlu0 %v792_v26, %s17338_s14  ;;  %v974_v26 = vmul.f32 0.1, %v910_v10  ;;  %v877_v5 = vmul.f32 %v12146_v37, %v746_v63 }
 0x172   : > { %v12474_v9 = vpop.permute.xlu1 %1096  ;;  %v1843_v59 = vmul.f32 %v12261_v46, %v1810_v13  ;;  %v748_v13 = vld [vmem:[#allocation2 + $0x129] sm:$0xff] }
 0x173   : > { %v12476_v43 = vpop.permute.xlu0 %1094 }
 0x174   : > { %1436 = vrot.lane.b32.xlu1 %v12478_v11, %s17340_s16  ;;  %v12503_v11 = vsel %vm1264_vm13, %v1232_v39, %v1296_v57  ;;  %v1877_v21 = vadd.f32 %v12266_v24, %v1843_v59 }
 0x175   : > { %1434 = vrot.lane.b32.xlu0 %v12480_v15, %s17340_s16  ;;  %v12501_v15 = vsel %vm942_vm12, %v910_v10, %v974_v26  ;;  %v1489_v51 = vmul.f32 %v12374_v16, %v12503_v11  ;;  %v1878_v10 = vadd.f32 %v12266_v24, %v1844_v55  ;;  %v911_v16 = vadd.f32 %v12158_v44, %v877_v5 }
 0x176   : > { %v12488_v62 = vpop.permute.xlu1 %1416  ;;  %17514 = vst [vmem:[#allocation62_spill] sm:$0xff] %v12501_v15  ;;  %v1167_v39 = vmul.f32 %v12358_v35, %v12501_v15  ;;  %vm1909_vm2 = vcmp.ge.f32.partialorder %v1877_v21, 0.0  ;;  %v880_v5 = vmul.f32 %v12146_v37, %v749_v19 }
 0x177   : > { %v12490_v17 = vpop.permute.xlu0 %1414  ;;  %v1522_v57 = vmul.f32 %v12219_v42, %v1489_v51  ;;  %v1942_v63 = vmul.f32 0.1, %v1878_v10  ;;  %vm1910_vm1 = vcmp.ge.f32.partialorder %v1878_v10, 0.0  ;;  %v975_v59 = vmul.f32 0.1, %v911_v16 }
 0x178   : > { %1756 = vrot.lane.b32.xlu1 %v12215_v45, %s17342_s20  ;;  %v1488_v45 = vmul.f32 %v12376_v58, %v12505_v2  ;;  %v1200_v55 = vmul.f32 %v12183_v41, %v1167_v39  ;;  %vm943_vm3 = vcmp.ge.f32.partialorder %v911_v16, 0.0 }
 0x179   : > { %1754 = vrot.lane.b32.xlu0 %v12213_v49, %s17342_s20  ;;  %v912_v49 = vadd.f32 %v12158_v44, %v878_v23  ;;  %v879_v23 = vmul.f32 %v12146_v37, %v748_v13  ;;  %v1556_v13 = vadd.f32 %v12228_v27, %v1522_v57  ;;  %v914_v57 = vadd.f32 %v12158_v44, %v880_v5  ;;  %v750_v5 = vld [vmem:[#allocation2 + $0x149] sm:$0xff] }
 0x17a   : > { %v12508_v0 = vpop.permute.xlu1 %1736  ;;  %v1521_v35 = vmul.f32 %v12219_v42, %v1488_v45  ;;  %v1234_v15 = vadd.f32 %v12190_v47, %v1200_v55 }
 0x17b   : > { %v12510_v25 = vpop.permute.xlu0 %1734  ;;  %vm944_vm15 = vcmp.ge.f32.partialorder %v912_v49, 0.0  ;;  %v976_v18 = vmul.f32 0.1, %v912_v49  ;;  %vm1588_vm4 = vcmp.ge.f32.partialorder %v1556_v13, 0.0  ;;  %vm946_vm8 = vcmp.ge.f32.partialorder %v914_v57, 0.0 }
 0x17c   : > { %17515 = vst [vmem:[#allocation63_spill] sm:$0xff] %v12510_v25  ;;  %2047 = vrot.lane.b32.xlu1 %v12418_v40, %s17336_s15  ;;  %v1941_v40 = vmul.f32 0.1, %v1877_v21  ;;  %v1555_v60 = vadd.f32 %v12228_v27, %v1521_v35  ;;  %v1298_v55 = vmul.f32 0.1, %v1234_v15  ;;  %vm1266_vm6 = vcmp.ge.f32.partialorder %v1234_v15, 0.0 }
 0x17d   : > { %2045 = vrot.lane.b32.xlu0 %v12420_v12, %s17336_s15  ;;  %v1199_v12 = vmul.f32 %v12183_v41, %v1166_v29  ;;  %v12547_v39 = vsel %vm944_vm15, %v912_v49, %v976_v18  ;;  %v795_v18 = vld [vmem:[#allocation2 + $0x20f] sm:$0xff]  ;;  %v881_v25 = vmul.f32 %v12146_v37, %v750_v5 }
 0x17e   : > { %v12528_v58 = vpop.permute.xlu1 %1100  ;;  %17518 = vst [vmem:[#allocation66_spill] sm:$0xff] %v12547_v39  ;;  %v1973_v29 = vsel %vm1909_vm2, %v1877_v21, %v1941_v40  ;;  %v1620_v21 = vmul.f32 0.1, %v1556_v13  ;;  %vm1587_vm5 = vcmp.ge.f32.partialorder %v1555_v60, 0.0 }
 0x17f   : > { %v12530_v26 = vpop.permute.xlu0 %1098  ;;  %v1233_v19 = vadd.f32 %v12190_v47, %v1199_v12 }
 0x180   : > { %2175 = vrot.lane.b32.xlu1 %v1650_v6, %s17305_s29  ;;  %v913_v6 = vadd.f32 %v12158_v44, %v879_v23  ;;  %v794_v23 = vld [vmem:[#allocation2 + $0x207] sm:$0xff] }
 0x181   : > { %2173 = vrot.lane.b32.xlu0 %v1649_v28, %s17305_s29  ;;  %v1974_v28 = vsel %vm1910_vm1, %v1878_v10, %v1942_v63  ;;  %v1169_v10 = vmul.f32 %v12392_v54, %v12547_v39  ;;  %v1619_v63 = vmul.f32 0.1, %v1555_v60  ;;  %v1297_v12 = vmul.f32 0.1, %v1233_v19  ;;  %v825_v39 = vld [vmem:[#allocation2 + $0x208] sm:$0xff] }
 0x182   : > { %v12540_v51 = vpop.permute.xlu1 %1420  ;;  %v977_v40 = vmul.f32 0.1, %v913_v6  ;;  %vm1265_vm7 = vcmp.ge.f32.partialorder %v1233_v19, 0.0  ;;  %vm945_vm9 = vcmp.ge.f32.partialorder %v913_v6, 0.0 }
 0x183   : > { %17516 = vst [vmem:[#allocation64_spill] sm:$0xff] %v12540_v51  ;;  %v12542_v45 = vpop.permute.xlu0 %1418  ;;  %v12554_v51 = vsel %vm943_vm3, %v911_v16, %v975_v59  ;;  %v751_v59 = vld [vmem:[#allocation2 + $0x151] sm:$0xff] }
 0x184   : > { %17517 = vst [vmem:[#allocation65_spill] sm:$0xff] %v12542_v45  ;;  %2303 = vrot.lane.b32.xlu1 %v1974_v28, %s17303_s1  ;;  %17519 = vst [vmem:[#allocation67_spill] sm:$0xff] %v12554_v51  ;;  %v1168_v16 = vmul.f32 %v12394_v61, %v12554_v51  ;;  %v1652_v61 = vsel %vm1588_vm4, %v1556_v13, %v1620_v21  ;;  %v1651_v51 = vsel %vm1587_vm5, %v1555_v60, %v1619_v63 }
 0x185   : > { %2301 = vrot.lane.b32.xlu0 %v1973_v29, %s17303_s1  ;;  %v826_v29 = vld [vmem:[#allocation2 + $0x210] sm:$0xff]  ;;  %v882_v45 = vmul.f32 %v12146_v37, %v751_v59 }
 0x186   : > { %v12557_v35 = vpop.permute.xlu1 %1740 }
 0x187   : > { %17520 = vst [vmem:[#allocation68_spill] sm:$0xff] %v12557_v35  ;;  %v12559_v49 = vpop.permute.xlu0 %1738  ;;  %v978_v35 = vmul.f32 0.1, %v914_v57 }
 0x188   : > { %17521 = vst [vmem:[#allocation69_spill] sm:$0xff] %v12559_v49  ;;  %1120 = vrot.lane.b32.xlu1 %v795_v18, %s17338_s14  ;;  %v1202_v49 = vmul.f32 %v12183_v41, %v1169_v10  ;;  %v1813_v18 = vmul.f32 %v12422_v20, %v1652_v61  ;;  %v12583_v10 = vsel %vm1265_vm7, %v1233_v19, %v1297_v12  ;;  %vm2381_vm7 = vcmask 7168  }
 0x189   : > { %1118 = vrot.lane.b32.xlu0 %v794_v23, %s17338_s14  ;;  %v1812_v23 = vmul.f32 %v12424_v3, %v1651_v51  ;;  %v1490_v3 = vmul.f32 %v12408_v7, %v12583_v10  ;;  %v12597_v19 = vsel %vm946_vm8, %v914_v57, %v978_v35  ;;  %v915_v7 = vadd.f32 %v12158_v44, %v881_v25  ;;  %s16344_s14 = sld [smem:[#allocation8 + $0x7]] }
 0x18a   : > { %v12567_v54 = vpop.permute.xlu1 %1102  ;;  %17524 = vst [vmem:[#allocation72_spill] sm:$0xff] %v12597_v19  ;;  %v1846_v21 = vmul.f32 %v12261_v46, %v1813_v18  ;;  %vm2414_vm8 = vcmask 15360  }
 0x18b   : > { %17522 = vst [vmem:[#allocation70_spill] sm:$0xff] %v12567_v54  ;;  %v12569_v28 = vpop.permute.xlu0 %1104  ;;  %v1201_v54 = vmul.f32 %v12183_v41, %v1168_v16  ;;  %v1845_v63 = vmul.f32 %v12261_v46, %v1812_v23  ;;  %v916_v16 = vadd.f32 %v12158_v44, %v882_v45  ;;  %v1523_v35 = vmul.f32 %v12219_v42, %v1490_v3 }
 0x18c   : > { %17523 = vst [vmem:[#allocation71_spill] sm:$0xff] %v12569_v28  ;;  %v12580_v28 = vsel %vm1266_vm6, %v1234_v15, %v1298_v55  ;;  %1440 = vrot.lane.b32.xlu1 %v826_v29, %s17340_s16  ;;  %v1236_v15 = vadd.f32 %v12190_v47, %v1202_v49  ;;  %v752_v55 = vld [vmem:[#allocation2 + $0x169] sm:$0xff]  ;;  %v753_v49 = vld [vmem:[#allocation2 + $0x171] sm:$0xff]  ;;  %vm947_vm13 = vcmp.ge.f32.partialorder %v915_v7, 0.0 }
 0x18d   : > { %1438 = vrot.lane.b32.xlu0 %v825_v39, %s17340_s16  ;;  %v1491_v20 = vmul.f32 %v12406_v8, %v12580_v28  ;;  %v12601_v39 = vsel %vm945_vm9, %v913_v6, %v977_v40  ;;  %v1235_v8 = vadd.f32 %v12190_v47, %v1201_v54  ;;  %v1171_v6 = vmul.f32 %v12436_v36, %v12597_v19 }
 0x18e   : > { %v12591_v60 = vpop.permute.xlu1 %1422  ;;  %17525 = vst [vmem:[#allocation73_spill] sm:$0xff] %v12601_v39  ;;  %v1170_v25 = vmul.f32 %v12438_v32, %v12601_v39  ;;  %v1300_v12 = vmul.f32 0.1, %v1236_v15  ;;  %vm1268_vm10 = vcmp.ge.f32.partialorder %v1236_v15, 0.0  ;;  %v883_v59 = vmul.f32 %v12146_v37, %v752_v55 }
 0x18f   : > { %v12593_v13 = vpop.permute.xlu0 %1424  ;;  %v1524_v57 = vmul.f32 %v12219_v42, %v1491_v20  ;;  %v1299_v5 = vmul.f32 0.1, %v1235_v8  ;;  %vm948_vm11 = vcmp.ge.f32.partialorder %v916_v16, 0.0  ;;  %v979_v54 = vmul.f32 0.1, %v915_v7 }
 0x190   : > { %1760 = vrot.lane.b32.xlu1 %v12324_v52, %s17342_s20  ;;  %v1880_v52 = vadd.f32 %v12266_v24, %v1846_v21  ;;  %v884_v36 = vmul.f32 %v12146_v37, %v753_v49  ;;  %v1557_v29 = vadd.f32 %v12228_v27, %v1523_v35  ;;  %v1204_v18 = vmul.f32 %v12183_v41, %v1171_v6 }
 0x191   : > { %1758 = vrot.lane.b32.xlu0 %v12326_v56, %s17342_s20  ;;  %v1879_v56 = vadd.f32 %v12266_v24, %v1845_v63  ;;  %v1558_v32 = vadd.f32 %v12228_v27, %v1524_v57  ;;  %vm1267_vm12 = vcmp.ge.f32.partialorder %v1235_v8, 0.0  ;;  %v1203_v3 = vmul.f32 %v12183_v41, %v1170_v25 }
 0x192   : > { %v12614_v40 = vpop.permute.xlu1 %1742  ;;  %v12636_v21 = vsel %vm1268_vm10, %v1236_v15, %v1300_v12  ;;  %v980_v63 = vmul.f32 0.1, %v916_v16  ;;  %v1944_v55 = vmul.f32 0.1, %v1880_v52  ;;  %v12641_v35 = vsel %vm1267_vm12, %v1235_v8, %v1299_v5  ;;  %v754_v12 = vld [vmem:[#allocation2 + $0x189] sm:$0xff] }
 0x193   : > { %v12616_v45 = vpop.permute.xlu0 %2029  ;;  %v1943_v57 = vmul.f32 0.1, %v1879_v56  ;;  %v12644_v6 = vadd.f32 %v12158_v44, %v884_v36  ;;  %vm1912_vm14 = vcmp.ge.f32.partialorder %v1880_v52, 0.0  ;;  %vm1911_vm15 = vcmp.ge.f32.partialorder %v1879_v56, 0.0 }
 0x194   : > { %2051 = vrot.lane.b32.xlu1 %v12503_v11, %s17336_s15  ;;  %v917_v11 = vadd.f32 %v12158_v44, %v883_v59  ;;  %v1238_v15 = vadd.f32 %v12190_v47, %v1204_v18  ;;  %v1622_v49 = vmul.f32 0.1, %v1558_v32  ;;  %v1621_v25 = vmul.f32 0.1, %v1557_v29  ;;  %v755_v59 = vld [vmem:[#allocation2 + $0x191] sm:$0xff] }
 0x195   : > { %2049 = vrot.lane.b32.xlu0 %v12505_v2, %s17336_s15  ;;  %v1493_v2 = vmul.f32 %v12452_v34, %v12636_v21  ;;  %v1492_v34 = vmul.f32 %v12454_v53, %v12641_v35  ;;  %v1237_v36 = vadd.f32 %v12190_v47, %v1203_v3  ;;  %vm1590_vm1 = vcmp.ge.f32.partialorder %v1558_v32, 0.0 }
 0x196   : > { %v12631_v23 = vpop.permute.xlu1 %1744  ;;  %vm1589_vm2 = vcmp.ge.f32.partialorder %v1557_v29, 0.0  ;;  %v12661_v18 = vsel %vm948_vm11, %v916_v16, %v980_v63  ;;  %v1976_v53 = vsel %vm1912_vm14, %v1880_v52, %v1944_v55  ;;  %v1975_v39 = vsel %vm1911_vm15, %v1879_v56, %v1943_v57  ;;  %v828_v63 = vld [vmem:[#allocation2 + $0x230] sm:$0xff] }
 0x197   : > { %17526 = vst [vmem:[#allocation74_spill] sm:$0xff] %v12631_v23  ;;  %v12633_v20 = vpop.permute.xlu0 %2031  ;;  %vm949_vm3 = vcmp.ge.f32.partialorder %v917_v11, 0.0  ;;  %v981_v19 = vmul.f32 0.1, %v917_v11  ;;  %v885_v23 = vmul.f32 %v12146_v37, %v754_v12  ;;  %v886_v3 = vmul.f32 %v12146_v37, %v755_v59 }
 0x198   : > { %2179 = vrot.lane.b32.xlu1 %v1652_v61, %s17305_s29  ;;  %v1526_v61 = vmul.f32 %v12219_v42, %v1493_v2  ;;  %v12672_v16 = vsel %vm1589_vm2, %v1557_v29, %v1621_v25  ;;  %vm1270_vm4 = vcmp.ge.f32.partialorder %v1238_v15, 0.0  ;;  %vm950_vm5 = vcmp.ge.f32.partialorder %v12644_v6, 0.0  ;;  %v827_v2 = vld [vmem:[#allocation2 + $0x228] sm:$0xff] }
 0x199   : > { %2177 = vrot.lane.b32.xlu0 %v1651_v51, %s17305_s29  ;;  %v12657_v51 = vsel %vm947_vm13, %v915_v7, %v979_v54  ;;  %v1525_v7 = vmul.f32 %v12219_v42, %v1492_v34  ;;  %v12670_v54 = vsel %vm1590_vm1, %v1558_v32, %v1622_v49  ;;  %v1302_v57 = vmul.f32 0.1, %v1238_v15 }
 0x19a   : > { %v12651_v8 = vpop.permute.xlu1 %2035  ;;  %v1815_v55 = vmul.f32 %v12464_v38, %v12670_v54  ;;  %vm1269_vm6 = vcmp.ge.f32.partialorder %v1237_v36, 0.0  ;;  %v1301_v12 = vmul.f32 0.1, %v1237_v36  ;;  %v1814_v32 = vmul.f32 %v12466_v14, %v12672_v16 }
 0x19b   : > { %v12653_v5 = vpop.permute.xlu0 %2033  ;;  %v1173_v29 = vmul.f32 %v12474_v9, %v12661_v18  ;;  %v1172_v34 = vmul.f32 %v12476_v43, %v12657_v51  ;;  %v982_v49 = vmul.f32 0.1, %v12644_v6  ;;  %v12686_v25 = vsel %vm949_vm3, %v917_v11, %v981_v19 }
 0x19c   : > { %2307 = vrot.lane.b32.xlu1 %v1976_v53, %s17303_s1  ;;  %v12689_v38 = vadd.f32 %v12158_v44, %v885_v23  ;;  %v12692_v59 = vadd.f32 %v12158_v44, %v886_v3  ;;  %v1559_v14 = vadd.f32 %v12228_v27, %v1525_v7  ;;  %vm2447_vm9 = vcmask 23552  }
 0x19d   : > { %2305 = vrot.lane.b32.xlu0 %v1975_v39, %s17303_s1  ;;  %v1560_v39 = vadd.f32 %v12228_v27, %v1526_v61  ;;  %v1848_v19 = vmul.f32 %v12261_v46, %v1815_v55  ;;  %v12703_v23 = vsel %vm1270_vm4, %v1238_v15, %v1302_v57  ;;  %v12706_v11 = vsel %vm1269_vm6, %v1237_v36, %v1301_v12 }
 0x19e   : > { %v2158_v52 = vpop.permute.xlu1 %2157  ;;  %vm2480_vm10 = vcmask 31744   ;;  %v1847_v61 = vmul.f32 %v12261_v46, %v1814_v32  ;;  %v1206_v53 = vmul.f32 %v12183_v41, %v1173_v29  ;;  %v1205_v3 = vmul.f32 %v12183_v41, %v1172_v34 }
 0x19f   : > { %v2160_v56 = vpop.permute.xlu0 %2159  ;;  %vm1592_vm11 = vcmp.ge.f32.partialorder %v1560_v39, 0.0  ;;  %v1495_v7 = vmul.f32 %v12488_v62, %v12703_v23  ;;  %v2382_v15 = vsel %vm2381_vm7, %v12181_v31, %v12616_v45  ;;  %v2383_v36 = vsel %vm2381_vm7, %v12198_v50, %v12633_v20  ;;  %v757_v20 = vld [vmem:[#allocation2 + $0x1b1] sm:$0xff] }
 0x1a0   : > { %1444 = vrot.lane.b32.xlu1 %v828_v63, %s17340_s16  ;;  %v1624_v63 = vmul.f32 0.1, %v1560_v39  ;;  %vm1591_vm12 = vcmp.ge.f32.partialorder %v1559_v14, 0.0  ;;  %v2415_v55 = vsel %vm2414_vm8, %v2382_v15, %v2158_v52  ;;  %v2416_v62 = vsel %vm2414_vm8, %v2383_v36, %v2160_v56 }
 0x1a1   : > { %1442 = vrot.lane.b32.xlu0 %v827_v2, %s17340_s16  ;;  %v1623_v2 = vmul.f32 0.1, %v1559_v14  ;;  %v1882_v31 = vadd.f32 %v12266_v24, %v1848_v19  ;;  %v1494_v45 = vmul.f32 %v12490_v17, %v12706_v11  ;;  %v1240_v32 = vadd.f32 %v12190_v47, %v1206_v53  ;;  %s17611_s16 = smov 126  }
 0x1a2   : > { %v12697_v9 = vpop.permute.xlu1 %2163  ;;  %v1239_v29 = vadd.f32 %v12190_v47, %v1205_v3  ;;  %v1528_v34 = vmul.f32 %v12219_v42, %v1495_v7  ;;  %v12741_v17 = vsel %vm950_vm5, %v12644_v6, %v982_v49  ;;  %v12748_v19 = vsel %vm1592_vm11, %v1560_v39, %v1624_v63 }
 0x1a3   : > { %v12699_v43 = vpop.permute.xlu0 %2161  ;;  %v984_v53 = vmul.f32 0.1, %v12692_v59  ;;  %v888_v3 = vmul.f32 %v12146_v37, %v757_v20  ;;  %v1527_v6 = vmul.f32 %v12219_v42, %v1494_v45  ;;  %v12758_v49 = vsel %vm1591_vm12, %v1559_v14, %v1623_v2  ;;  %v17529_v45 = vld [vmem:[#allocation22_spill] sm:$0xff] }
 0x1a4   : > { %1764 = vrot.lane.b32.xlu1 %v12396_v33, %s17342_s20  ;;  %vm951_vm13 = vcmp.ge.f32.partialorder %v12689_v38, 0.0  ;;  %vm1914_vm14 = vcmp.ge.f32.partialorder %v1882_v31, 0.0  ;;  %vm1272_vm15 = vcmp.ge.f32.partialorder %v1240_v32, 0.0  ;;  %v1562_v7 = vadd.f32 %v12228_v27, %v1528_v34 }
 0x1a5   : > { %1762 = vrot.lane.b32.xlu0 %v12398_v22, %s17342_s20  ;;  %v1881_v22 = vadd.f32 %v12266_v24, %v1847_v61  ;;  %v12751_v61 = vmul.f32 0.1, %v12689_v38  ;;  %v1174_v63 = vmul.f32 %v12530_v26, %v12686_v25  ;;  %vm1271_vm2 = vcmp.ge.f32.partialorder %v1239_v29, 0.0 }
 0x1a6   : > { %v2286_v57 = vpop.permute.xlu1 %2285  ;;  %v1303_v15 = vmul.f32 0.1, %v1239_v29  ;;  %v1817_v14 = vmul.f32 %v12508_v0, %v12748_v19  ;;  %v1175_v36 = vmul.f32 %v12528_v58, %v12741_v17  ;;  %v2385_v2 = vsel %vm2381_vm7, %v12196_v48, %v12651_v8 }
 0x1a7   : > { %v2288_v12 = vpop.permute.xlu0 %2287  ;;  %v2448_v50 = vsel %vm2447_vm9, %v2415_v55, %v2286_v57  ;;  %vm1913_vm1 = vcmp.ge.f32.partialorder %v1881_v22, 0.0  ;;  %v1945_v39 = vmul.f32 0.1, %v1881_v22  ;;  %v2384_v26 = vsel %vm2381_vm7, %v12179_v30, %v12653_v5 }
 0x1a8   : > { %v2449_v33 = vsel %vm2447_vm9, %v2416_v62, %v2288_v12  ;;  %v2481_v52 = vsel %vm2480_vm10, %v2448_v50, %v11784_v1  ;;  %2055 = vrot.lane.b32.xlu1 %v12580_v28, %s17336_s15  ;;  %v1946_v28 = vmul.f32 0.1, %v1882_v31  ;;  %v1561_v55 = vadd.f32 %v12228_v27, %v1527_v6 }
 0x1a9   : > { %v2482_v56 = vsel %vm2480_vm10, %v2449_v33, %v11934_v4  ;;  %2053 = vrot.lane.b32.xlu0 %v12583_v10, %s17336_s15  ;;  %9933 = vmatprep.mubr.msk.f32.mxu0 %vm594_vm0, %v2481_v52  ;;  %v1304_v10 = vmul.f32 0.1, %v1240_v32  ;;  %v2417_v0 = vsel %vm2414_vm8, %v2384_v26, %v12699_v43  ;;  %v1977_v30 = vsel %vm1913_vm1, %v1881_v22, %v1945_v39  ;;  %v17533_v26 = vld [vmem:[#allocation60_spill] sm:$0xff] }
 0x1aa   : > { %9934 = vmatmul.mubr.msk.f32.vlgmr.msra.gmra.mrb[0].mxu0 %vm594_vm0, %v2482_v56  ;;  %v1978_v8 = vsel %vm1914_vm14, %v1882_v31, %v1946_v28  ;;  %v1207_v5 = vmul.f32 %v12183_v41, %v1174_v63  ;;  %vm952_vm3 = vcmp.ge.f32.partialorder %v12692_v59, 0.0  ;;  %v1850_v33 = vmul.f32 %v12261_v46, %v1817_v14  ;;  %v17530_v56 = vld [vmem:[#allocation65_spill] sm:$0xff]  ;;  %v756_v63 = vld [vmem:[#allocation2 + $0x1a9] sm:$0xff] }
 0x1ab   : > { %v1208_v31 = vmul.f32 %v12183_v41, %v1175_v36  ;;  %v12801_v20 = vsel %vm1272_vm15, %v1240_v32, %v1304_v10  ;;  %v12804_v22 = vsel %vm1271_vm2, %v1239_v29, %v1303_v15  ;;  %v1626_v6 = vmul.f32 0.1, %v1562_v7  ;;  %v17531_v32 = vld [vmem:[#allocation64_spill] sm:$0xff] }
 0x1ac   : > { %2183 = vrot.lane.b32.xlu1 %v12670_v54, %s17305_s29  ;;  %v17527_v54 = vld [vmem:[#allocation63_spill] sm:$0xff]  ;;  %v1496_v34 = vmul.f32 %v17530_v56, %v12804_v22  ;;  %v1625_v28 = vmul.f32 0.1, %v1561_v55  ;;  %v1497_v29 = vmul.f32 %v17531_v32, %v12801_v20  ;;  %vm1594_vm4 = vcmp.ge.f32.partialorder %v1562_v7, 0.0 }
 0x1ad   : > { %2181 = vrot.lane.b32.xlu0 %v12672_v16, %s17305_s29  ;;  %v1816_v62 = vmul.f32 %v17527_v54, %v12758_v49  ;;  %v2418_v16 = vsel %vm2414_vm8, %v2385_v2, %v12697_v9  ;;  %v17528_v9 = vld [vmem:[#allocation21_spill] sm:$0xff]  ;;  %vm1593_vm5 = vcmp.ge.f32.partialorder %v1561_v55, 0.0  ;;  %v1241_v10 = vadd.f32 %v12190_v47, %v1207_v5  ;;  %v17532_v2 = vld [vmem:[#allocation59_spill] sm:$0xff]  ;;  %v17536_v5 = vld [vmem:[#allocation70_spill] sm:$0xff] }
 0x1ae   : > { %v2292_v58 = vpop.permute.xlu1 %2291  ;;  %v12821_v15 = vsel %vm952_vm3, %v12692_v59, %v984_v53  ;;  %v12824_v36 = vadd.f32 %v12158_v44, %v888_v3  ;;  %v1884_v54 = vadd.f32 %v12266_v24, %v1850_v33  ;;  %v887_v59 = vmul.f32 %v12146_v37, %v756_v63 }
 0x1af   : > { %v2290_v57 = vpop.permute.xlu0 %2289  ;;  %v2451_v12 = vsel %vm2447_vm9, %v2418_v16, %v2292_v58  ;;  %v1849_v52 = vmul.f32 %v12261_v46, %v1816_v62  ;;  %v1242_v62 = vadd.f32 %v12190_v47, %v1208_v31  ;;  %v12836_v16 = vsel %vm951_vm13, %v12689_v38, %v12751_v61  ;;  %v17535_v61 = vld [vmem:[#allocation69_spill] sm:$0xff] }
 0x1b0   : > { %v2450_v48 = vsel %vm2447_vm9, %v2417_v0, %v2290_v57  ;;  %2311 = vrot.lane.b32.xlu1 %v1978_v8, %s17303_s1  ;;  %v2484_v50 = vsel %vm2480_vm10, %v2451_v12, %v17529_v45  ;;  %v1529_v3 = vmul.f32 %v12219_v42, %v1496_v34  ;;  %v12841_v0 = vsel %vm1594_vm4, %v1562_v7, %v1626_v6  ;;  %v17534_v8 = vld [vmem:[#allocation68_spill] sm:$0xff]  ;;  %v17537_v7 = vld [vmem:[#allocation71_spill] sm:$0xff] }
 0x1b1   : > { %2309 = vrot.lane.b32.xlu0 %v1977_v30, %s17303_s1  ;;  %v2483_v43 = vsel %vm2480_vm10, %v2450_v48, %v17528_v9  ;;  %v1883_v53 = vadd.f32 %v12266_v24, %v1849_v52  ;;  %v12843_v58 = vsel %vm1593_vm5, %v1561_v55, %v1625_v28  ;;  %v1530_v48 = vmul.f32 %v12219_v42, %v1497_v29 }
 0x1b2   : > { %9936 = vmatprep.mubr.msk.f32.mxu0 %vm594_vm0, %v2483_v43  ;;  %v12810_v39 = vpop.permute.xlu1 %1108  ;;  %v1819_v38 = vmul.f32 %v17534_v8, %v12841_v0  ;;  %v1818_v30 = vmul.f32 %v17535_v61, %v12843_v58  ;;  %v1176_v43 = vmul.f32 %v17536_v5, %v12836_v16  ;;  %v1305_v55 = vmul.f32 0.1, %v1241_v10 }
 0x1b3   : > { %9937 = vmatmul.mubr.msk.f32.gmra.mrb[2].mxu0 %vm594_vm0, %v2484_v50  ;;  %v12813_v14 = vpop.permute.xlu0 %1106  ;;  %v1177_v50 = vmul.f32 %v17537_v7, %v12821_v15  ;;  %vm954_vm6 = vcmp.ge.f32.partialorder %v12824_v36, 0.0  ;;  %vm1273_vm11 = vcmp.ge.f32.partialorder %v1241_v10, 0.0  ;;  %v1306_v33 = vmul.f32 0.1, %v1242_v62 }
 0x1b4   : > { %1768 = vrot.lane.b32.xlu1 %v17532_v2, %s17342_s20  ;;  %v921_v31 = vadd.f32 %v12158_v44, %v887_v59  ;;  %vm1916_vm12 = vcmp.ge.f32.partialorder %v1884_v54, 0.0  ;;  %v1563_v52 = vadd.f32 %v12228_v27, %v1529_v3  ;;  %vm1274_vm13 = vcmp.ge.f32.partialorder %v1242_v62, 0.0 }
 0x1b5   : > { %1766 = vrot.lane.b32.xlu0 %v17533_v26, %s17342_s20  ;;  %v1948_v6 = vmul.f32 0.1, %v1884_v54  ;;  %v1947_v28 = vmul.f32 0.1, %v1883_v53  ;;  %v1564_v63 = vadd.f32 %v12228_v27, %v1530_v48  ;;  %vm1915_vm14 = vcmp.ge.f32.partialorder %v1883_v53, 0.0  ;;  %s17865_s20 = sld [smem:[#allocation19_spill]] }
 0x1b6   : > { %v12845_v57 = vpop.permute.xlu1 %1428  ;;  %v1209_v32 = vmul.f32 %v12183_v41, %v1176_v43  ;;  %v1210_v29 = vmul.f32 %v12183_v41, %v1177_v50  ;;  %v12875_v2 = vsel %vm1273_vm11, %v1241_v10, %v1305_v55  ;;  %v986_v26 = vmul.f32 0.1, %v12824_v36 }
 0x1b7   : > { %v12847_v12 = vpop.permute.xlu0 %1426  ;;  %v1498_v59 = vmul.f32 %v12591_v60, %v12875_v2  ;;  %v12885_v3 = vsel %vm1274_vm13, %v1242_v62, %v1306_v33  ;;  %vm953_vm15 = vcmp.ge.f32.partialorder %v921_v31, 0.0  ;;  %v985_v48 = vmul.f32 0.1, %v921_v31 }
 0x1b8   : > { %2059 = vrot.lane.b32.xlu1 %v12636_v21, %s17336_s15  ;;  %v1852_v21 = vmul.f32 %v12261_v46, %v1819_v38  ;;  %v1499_v10 = vmul.f32 %v12593_v13, %v12885_v3  ;;  %v1627_v8 = vmul.f32 0.1, %v1563_v52  ;;  %vm1595_vm1 = vcmp.ge.f32.partialorder %v1563_v52, 0.0 }
 0x1b9   : > { %2057 = vrot.lane.b32.xlu0 %v12641_v35, %s17336_s15  ;;  %v1851_v35 = vmul.f32 %v12261_v46, %v1818_v30  ;;  %v1980_v30 = vsel %vm1916_vm12, %v1884_v54, %v1948_v6  ;;  %v1628_v60 = vmul.f32 0.1, %v1564_v63  ;;  %v1243_v62 = vadd.f32 %v12190_v47, %v1209_v32  ;;  %v17539_v32 = vld [vmem:[#allocation52_spill] sm:$0xff] }
 0x1ba   : > { %v12865_v56 = vpop.permute.xlu1 %1748  ;;  %v1244_v43 = vadd.f32 %v12190_v47, %v1210_v29  ;;  %vm1596_vm2 = vcmp.ge.f32.partialorder %v1564_v63, 0.0  ;;  %v1531_v13 = vmul.f32 %v12219_v42, %v1498_v59  ;;  %v1532_v54 = vmul.f32 %v12219_v42, %v1499_v10 }
 0x1bb   : > { %v12867_v34 = vpop.permute.xlu0 %1746  ;;  %v1885_v5 = vadd.f32 %v12266_v24, %v1851_v35  ;;  %v12904_v7 = vsel %vm954_vm6, %v12824_v36, %v986_v26  ;;  %v12907_v50 = vsel %vm953_vm15, %v921_v31, %v985_v48  ;;  %v12909_v6 = vsel %vm1596_vm2, %v1564_v63, %v1628_v60  ;;  %v17538_v35 = vld [vmem:[#allocation51_spill] sm:$0xff]  ;;  %p17867_p2 = scmp.ne.s32.totalorder %s17865_s20, 0 }
 0x1bc   : > { %2187 = vrot.lane.b32.xlu1 %v12748_v19, %s17305_s29  ;;  %v1979_v19 = vsel %vm1915_vm14, %v1883_v53, %v1947_v28  ;;  %v12899_v53 = vsel %vm1595_vm1, %v1563_v52, %v1627_v8  ;;  %vm1276_vm5 = vcmp.ge.f32.partialorder %v1244_v43, 0.0  ;;  %vm1275_vm11 = vcmp.ge.f32.partialorder %v1243_v62, 0.0  ;;  %v17540_v8 = vld [vmem:[#allocation74_spill] sm:$0xff] }
 0x1bd   : > { %2185 = vrot.lane.b32.xlu0 %v12758_v49, %s17305_s29  ;;  %v1886_v49 = vadd.f32 %v12266_v24, %v1852_v21  ;;  %vm1917_vm4 = vcmp.ge.f32.partialorder %v1885_v5, 0.0  ;;  %v1308_v21 = vmul.f32 0.1, %v1244_v43  ;;  %v1949_v36 = vmul.f32 0.1, %v1885_v5 }
 0x1be   : > { %v2040_v38 = vpop.permute.xlu1 %2039  ;;  %v1565_v31 = vadd.f32 %v12228_v27, %v1531_v13  ;;  %v1307_v52 = vmul.f32 0.1, %v1243_v62  ;;  %v1566_v26 = vadd.f32 %v12228_v27, %v1532_v54  ;;  %v1820_v59 = vmul.f32 %v12614_v40, %v12899_v53  ;;  %v17541_v40 = vld [vmem:[#allocation23_spill] sm:$0xff]  ;;  %v17542_v54 = vld [vmem:[#allocation24_spill] sm:$0xff] }
 0x1bf   : > { %v2038_v61 = vpop.permute.xlu0 %2037  ;;  %vm1918_vm3 = vcmp.ge.f32.partialorder %v1886_v49, 0.0  ;;  %v1950_v28 = vmul.f32 0.1, %v1886_v49  ;;  %v2387_v63 = vsel %vm2381_vm7, %v17538_v35, %v2040_v38  ;;  %v1179_v38 = vmul.f32 %v12810_v39, %v12904_v7 }
 0x1c0   : > { %2315 = vrot.lane.b32.xlu1 %v1980_v30, %s17303_s1  ;;  %v2386_v29 = vsel %vm2381_vm7, %v17539_v32, %v2038_v61  ;;  %v1821_v30 = vmul.f32 %v17540_v8, %v12909_v6  ;;  %v1178_v60 = vmul.f32 %v12813_v14, %v12907_v50  ;;  %v1853_v14 = vmul.f32 %v12261_v46, %v1820_v59 }
 0x1c1   : > { %2313 = vrot.lane.b32.xlu0 %v1979_v19, %s17303_s1  ;;  %v1982_v39 = vsel %vm1918_vm3, %v1886_v49, %v1950_v28  ;;  %v12946_v35 = vsel %vm1276_vm5, %v1244_v43, %v1308_v21  ;;  %vm1598_vm6 = vcmp.ge.f32.partialorder %v1566_v26, 0.0  ;;  %v1212_v49 = vmul.f32 %v12183_v41, %v1179_v38 }
 0x1c2   : > { %v2168_v55 = vpop.permute.xlu1 %2167  ;;  %v1854_v32 = vmul.f32 %v12261_v46, %v1821_v30  ;;  %v1629_v28 = vmul.f32 0.1, %v1565_v31  ;;  %v1211_v43 = vmul.f32 %v12183_v41, %v1178_v60  ;;  %vm1597_vm12 = vcmp.ge.f32.partialorder %v1565_v31, 0.0 }
 0x1c3   : > { %v2166_v33 = vpop.permute.xlu0 %2165 }
 0x1c4   : > { %2063 = vrot.lane.b32.xlu1 %v12703_v23, %s17336_s15  ;;  %v2420_v23 = vsel %vm2414_vm8, %v2387_v63, %v2168_v55  ;;  %v2419_v48 = vsel %vm2414_vm8, %v2386_v29, %v2166_v33  ;;  %v1981_v33 = vsel %vm1917_vm4, %v1885_v5, %v1949_v36  ;;  %v1630_v5 = vmul.f32 0.1, %v1566_v26  ;;  %v759_v36 = vld [vmem:[#allocation2 + $0x1d1] sm:$0xff]  ;;  %v758_v29 = vld [vmem:[#allocation2 + $0x1c9] sm:$0xff] }
 0x1c5   : > { %2061 = vrot.lane.b32.xlu0 %v12706_v11, %s17336_s15  ;;  %v890_v59 = vmul.f32 %v12146_v37, %v759_v36  ;;  %v1245_v30 = vadd.f32 %v12190_v47, %v1211_v43 }
 0x1c6   : > { %v2296_v11 = vpop.permute.xlu1 %2295  ;;  %v12971_v8 = vsel %vm1598_vm6, %v1566_v26, %v1630_v5 }
 0x1c7   : > { %v2294_v10 = vpop.permute.xlu0 %2293  ;;  %v2453_v19 = vsel %vm2447_vm9, %v2420_v23, %v2296_v11  ;;  %v889_v23 = vmul.f32 %v12146_v37, %v758_v29  ;;  %vm1277_vm1 = vcmp.ge.f32.partialorder %v1245_v30, 0.0 }
 0x1c8   : > { %v2452_v61 = vsel %vm2447_vm9, %v2419_v48, %v2294_v10  ;;  %2191 = vrot.lane.b32.xlu1 %v12841_v0, %s17305_s29  ;;  %v2486_v55 = vsel %vm2480_vm10, %v2453_v19, %v17542_v54  ;;  %v12949_v0 = vsel %vm1275_vm11, %v1243_v62, %v1307_v52  ;;  %v1501_v62 = vmul.f32 %v12845_v57, %v12946_v35 }
 0x1c9   : > { %2189 = vrot.lane.b32.xlu0 %v12843_v58, %s17305_s29  ;;  %v2485_v13 = vsel %vm2480_vm10, %v2452_v61, %v17541_v40  ;;  %v1500_v21 = vmul.f32 %v12847_v12, %v12949_v0  ;;  %v1887_v52 = vadd.f32 %v12266_v24, %v1853_v14  ;;  %v1888_v10 = vadd.f32 %v12266_v24, %v1854_v32 }
 0x1ca   : > { %9939 = vmatprep.mubr.msk.f32.mxu0 %vm594_vm0, %v2485_v13  ;;  %v12951_v58 = vpop.permute.xlu1 %1112  ;;  %v1246_v57 = vadd.f32 %v12190_v47, %v1212_v49  ;;  %v12973_v12 = vsel %vm1597_vm12, %v1565_v31, %v1629_v28  ;;  %v1534_v38 = vmul.f32 %v12219_v42, %v1501_v62  ;;  %v1823_v61 = vmul.f32 %v12865_v56, %v12971_v8 }
 0x1cb   : > { %9940 = vmatmul.mubr.msk.f32.gmra.mrb[4].mxu0 %vm594_vm0, %v2486_v55  ;;  %v12954_v63 = vpop.permute.xlu0 %1110  ;;  %v1533_v19 = vmul.f32 %v12219_v42, %v1500_v21  ;;  %v1822_v26 = vmul.f32 %v12867_v34, %v12973_v12  ;;  %v924_v31 = vadd.f32 %v12158_v44, %v890_v59  ;;  %v923_v60 = vadd.f32 %v12158_v44, %v889_v23 }
 0x1cc   : > { %2319 = vrot.lane.b32.xlu1 %v1982_v39, %s17303_s1  ;;  %vm1920_vm13 = vcmp.ge.f32.partialorder %v1888_v10, 0.0  ;;  %v1952_v39 = vmul.f32 0.1, %v1888_v10  ;;  %vm1919_vm14 = vcmp.ge.f32.partialorder %v1887_v52, 0.0  ;;  %v1310_v14 = vmul.f32 0.1, %v1246_v57 }
 0x1cd   : > { %2317 = vrot.lane.b32.xlu0 %v1981_v33, %s17303_s1  ;;  %v1951_v33 = vmul.f32 0.1, %v1887_v52  ;;  %v1309_v32 = vmul.f32 0.1, %v1245_v30  ;;  %v1856_v56 = vmul.f32 %v12261_v46, %v1823_v61  ;;  %v1855_v34 = vmul.f32 %v12261_v46, %v1822_v26 }
 0x1ce   : > { %v1433_v48 = vpop.permute.xlu1 %1432  ;;  %vm1278_vm15 = vcmp.ge.f32.partialorder %v1246_v57, 0.0  ;;  %vm956_vm2 = vcmp.ge.f32.partialorder %v924_v31, 0.0  ;;  %v988_v49 = vmul.f32 0.1, %v924_v31  ;;  %vm955_vm3 = vcmp.ge.f32.partialorder %v923_v60, 0.0 }
 0x1cf   : > { %v1431_v11 = vpop.permute.xlu0 %1430  ;;  %v987_v36 = vmul.f32 0.1, %v923_v60  ;;  %v1984_v29 = vsel %vm1920_vm13, %v1888_v10, %v1952_v39  ;;  %v1983_v43 = vsel %vm1919_vm14, %v1887_v52, %v1951_v33  ;;  %v13000_v62 = vsel %vm1277_vm1, %v1245_v30, %v1309_v32  ;;  %v17544_v39 = vld [vmem:[#allocation54_spill] sm:$0xff] }
 0x1d0   : > { %2067 = vrot.lane.b32.xlu1 %v12801_v20, %s17336_s15  ;;  %v1568_v20 = vadd.f32 %v12228_v27, %v1534_v38  ;;  %v1890_v59 = vadd.f32 %v12266_v24, %v1856_v56  ;;  %v1889_v23 = vadd.f32 %v12266_v24, %v1855_v34  ;;  %v1502_v52 = vmul.f32 %v1431_v11, %v13000_v62  ;;  %v761_v34 = vld [vmem:[#allocation2 + $0x1f1] sm:$0xff] }
 0x1d1   : > { %2065 = vrot.lane.b32.xlu0 %v12804_v22, %s17336_s15  ;;  %v1567_v22 = vadd.f32 %v12228_v27, %v1533_v19  ;;  %v13009_v30 = vsel %vm956_vm2, %v924_v31, %v988_v49  ;;  %v13012_v19 = vsel %vm955_vm3, %v923_v60, %v987_v36  ;;  %v760_v36 = vld [vmem:[#allocation2 + $0x1e9] sm:$0xff] }
 0x1d2   : > { %v1753_v13 = vpop.permute.xlu1 %1752  ;;  %vm1600_vm4 = vcmp.ge.f32.partialorder %v1568_v20, 0.0  ;;  %v1954_v33 = vmul.f32 0.1, %v1890_v59  ;;  %vm1922_vm11 = vcmp.ge.f32.partialorder %v1890_v59, 0.0  ;;  %vm1921_vm6 = vcmp.ge.f32.partialorder %v1889_v23, 0.0 }
 0x1d3   : > { %v1751_v55 = vpop.permute.xlu0 %1750  ;;  %v1631_v21 = vmul.f32 0.1, %v1567_v22  ;;  %vm1599_vm5 = vcmp.ge.f32.partialorder %v1567_v22, 0.0 }
 0x1d4   : > { %2195 = vrot.lane.b32.xlu1 %v12909_v6, %s17305_s29  ;;  %v12998_v6 = vsel %vm1278_vm15, %v1246_v57, %v1310_v14  ;;  %v1953_v14 = vmul.f32 0.1, %v1889_v23 }
 0x1d5   : > { %2193 = vrot.lane.b32.xlu0 %v12899_v53, %s17305_s29  ;;  %v1632_v53 = vmul.f32 0.1, %v1568_v20  ;;  %v1503_v10 = vmul.f32 %v1433_v48, %v12998_v6  ;;  %v13016_v26 = vsel %vm1599_vm5, %v1567_v22, %v1631_v21  ;;  %v17543_v48 = vld [vmem:[#allocation53_spill] sm:$0xff] }
 0x1d6   : > { %v2044_v5 = vpop.permute.xlu1 %2043  ;;  %v1824_v49 = vmul.f32 %v1751_v55, %v13016_v26  ;;  %v1180_v55 = vmul.f32 %v12954_v63, %v13012_v19  ;;  %v1985_v63 = vsel %vm1921_vm6, %v1889_v23, %v1953_v14 }
 0x1d7   : > { %v2042_v28 = vpop.permute.xlu0 %2041  ;;  %v13014_v61 = vsel %vm1600_vm4, %v1568_v20, %v1632_v53  ;;  %v2389_v11 = vsel %vm2381_vm7, %v17543_v48, %v2044_v5  ;;  %v1536_v60 = vmul.f32 %v12219_v42, %v1503_v10  ;;  %v1535_v20 = vmul.f32 %v12219_v42, %v1502_v52  ;;  %v17546_v53 = vld [vmem:[#allocation26_spill] sm:$0xff] }
 0x1d8   : > { %2323 = vrot.lane.b32.xlu1 %v1984_v29, %s17303_s1  ;;  %v2388_v31 = vsel %vm2381_vm7, %v17544_v39, %v2042_v28  ;;  %v17545_v29 = vld [vmem:[#allocation25_spill] sm:$0xff] }
 0x1d9   : > { %2321 = vrot.lane.b32.xlu0 %v1983_v43, %s17303_s1  ;;  %v1569_v10 = vadd.f32 %v12228_v27, %v1535_v20 }
 0x1da   : > { %v2172_v57 = vpop.permute.xlu1 %2171 }
 0x1db   : > { %v2170_v38 = vpop.permute.xlu0 %2169  ;;  %v2422_v22 = vsel %vm2414_vm8, %v2389_v11, %v2172_v57  ;;  %v891_v57 = vmul.f32 %v12146_v37, %v760_v36  ;;  %v1986_v11 = vsel %vm1922_vm11, %v1890_v59, %v1954_v33  ;;  %vm1601_vm13 = vcmp.ge.f32.partialorder %v1569_v10, 0.0 }
 0x1dc   : > { %2071 = vrot.lane.b32.xlu1 %v12885_v3, %s17336_s15  ;;  %v2421_v32 = vsel %vm2414_vm8, %v2388_v31, %v2170_v38  ;;  %v1213_v31 = vmul.f32 %v12183_v41, %v1180_v55 }
 0x1dd   : > { %2069 = vrot.lane.b32.xlu0 %v12875_v2, %s17336_s15  ;;  %v1825_v2 = vmul.f32 %v1753_v13, %v13014_v61  ;;  %v1181_v13 = vmul.f32 %v12951_v58, %v13009_v30  ;;  %v1857_v58 = vmul.f32 %v12261_v46, %v1824_v49  ;;  %v925_v20 = vadd.f32 %v12158_v44, %v891_v57 }
 0x1de   : > { %v2300_v3 = vpop.permute.xlu1 %2299  ;;  %v1247_v33 = vadd.f32 %v12190_v47, %v1213_v31 }
 0x1df   : > { %v2298_v56 = vpop.permute.xlu0 %2297  ;;  %v2455_v5 = vsel %vm2447_vm9, %v2422_v22, %v2300_v3  ;;  %v1858_v48 = vmul.f32 %v12261_v46, %v1825_v2  ;;  %v1214_v39 = vmul.f32 %v12183_v41, %v1181_v13  ;;  %v1891_v59 = vadd.f32 %v12266_v24, %v1857_v58 }
 0x1e0   : > { %v2454_v28 = vsel %vm2447_vm9, %v2421_v32, %v2298_v56  ;;  %2199 = vrot.lane.b32.xlu1 %v12971_v8, %s17305_s29  ;;  %v2488_v21 = vsel %vm2480_vm10, %v2455_v5, %v17546_v53  ;;  %v1570_v8 = vadd.f32 %v12228_v27, %v1536_v60  ;;  %v1633_v56 = vmul.f32 0.1, %v1569_v10 }
 0x1e1   : > { %2197 = vrot.lane.b32.xlu0 %v12973_v12, %s17305_s29  ;;  %v2487_v43 = vsel %vm2480_vm10, %v2454_v28, %v17545_v29  ;;  %v892_v12 = vmul.f32 %v12146_v37, %v761_v34  ;;  %v1892_v34 = vadd.f32 %v12266_v24, %v1858_v48  ;;  %v1248_v23 = vadd.f32 %v12190_v47, %v1214_v39 }
 0x1e2   : > { %9942 = vmatprep.mubr.msk.f32.mxu0 %vm594_vm0, %v2487_v43  ;;  %v1117_v52 = vpop.permute.xlu1 %1116  ;;  %v1634_v3 = vmul.f32 0.1, %v1570_v8  ;;  %vm1602_vm12 = vcmp.ge.f32.partialorder %v1570_v8, 0.0  ;;  %vm957_vm15 = vcmp.ge.f32.partialorder %v925_v20, 0.0  ;;  %v989_v2 = vmul.f32 0.1, %v925_v20 }
 0x1e3   : > { %9943 = vmatmul.mubr.msk.f32.gmra.mrb[6].mxu0 %vm594_vm0, %v2488_v21  ;;  %v1115_v38 = vpop.permute.xlu0 %1114  ;;  %v926_v60 = vadd.f32 %v12158_v44, %v892_v12  ;;  %v1665_v28 = vsel %vm1601_vm13, %v1569_v10, %v1633_v56  ;;  %v1956_v13 = vmul.f32 0.1, %v1892_v34  ;;  %v1955_v55 = vmul.f32 0.1, %v1891_v59  ;;  %v763_v12 = vld [vmem:[#allocation2 + $0x211] sm:$0xff] }
 0x1e4   : > { %2327 = vrot.lane.b32.xlu1 %v1986_v11, %s17303_s1  ;;  %v1666_v49 = vsel %vm1602_vm12, %v1570_v8, %v1634_v3  ;;  %vm1924_vm1 = vcmp.ge.f32.partialorder %v1892_v34, 0.0  ;;  %vm1923_vm2 = vcmp.ge.f32.partialorder %v1891_v59, 0.0  ;;  %v13076_v10 = vsel %vm957_vm15, %v925_v20, %v989_v2  ;;  %v762_v3 = vld [vmem:[#allocation2 + $0x209] sm:$0xff] }
 0x1e5   : > { %2325 = vrot.lane.b32.xlu0 %v1985_v63, %s17303_s1  ;;  %vm958_vm14 = vcmp.ge.f32.partialorder %v926_v60, 0.0  ;;  %v990_v14 = vmul.f32 0.1, %v926_v60  ;;  %vm1280_vm3 = vcmp.ge.f32.partialorder %v1248_v23, 0.0  ;;  %vm1279_vm4 = vcmp.ge.f32.partialorder %v1247_v33, 0.0 }
 0x1e6   : > { %v1437_v22 = vpop.permute.xlu1 %1436  ;;  %v1987_v11 = vsel %vm1923_vm2, %v1891_v59, %v1955_v55  ;;  %v894_v63 = vmul.f32 %v12146_v37, %v763_v12  ;;  %v1182_v31 = vmul.f32 %v1115_v38, %v13076_v10  ;;  %v893_v38 = vmul.f32 %v12146_v37, %v762_v3 }
 0x1e7   : > { %v1435_v32 = vpop.permute.xlu0 %1434  ;;  %v13073_v8 = vsel %vm958_vm14, %v926_v60, %v990_v14 }
 0x1e8   : > { %2075 = vrot.lane.b32.xlu1 %v12946_v35, %s17336_s15  ;;  %v1312_v35 = vmul.f32 0.1, %v1248_v23  ;;  %v1183_v39 = vmul.f32 %v1117_v52, %v13073_v8  ;;  %v928_v52 = vadd.f32 %v12158_v44, %v894_v63  ;;  %v927_v63 = vadd.f32 %v12158_v44, %v893_v38 }
 0x1e9   : > { %2073 = vrot.lane.b32.xlu0 %v12949_v0, %s17336_s15  ;;  %v1311_v0 = vmul.f32 0.1, %v1247_v33 }
 0x1ea   : > { %v1757_v5 = vpop.permute.xlu1 %1756  ;;  %v1344_v60 = vsel %vm1280_vm3, %v1248_v23, %v1312_v35  ;;  %v1216_v23 = vmul.f32 %v12183_v41, %v1183_v39  ;;  %vm960_vm6 = vcmp.ge.f32.partialorder %v928_v52, 0.0  ;;  %vm959_vm12 = vcmp.ge.f32.partialorder %v927_v63, 0.0 }
 0x1eb   : > { %v1755_v36 = vpop.permute.xlu0 %1754  ;;  %v1827_v43 = vmul.f32 %v1757_v5, %v1666_v49  ;;  %v1343_v20 = vsel %vm1279_vm4, %v1247_v33, %v1311_v0  ;;  %v1505_v56 = vmul.f32 %v1437_v22, %v1344_v60  ;;  %v1215_v22 = vmul.f32 %v12183_v41, %v1182_v31 }
 0x1ec   : > { %v1826_v21 = vmul.f32 %v1755_v36, %v1665_v28  ;;  %2203 = vrot.lane.b32.xlu1 %v13014_v61, %s17305_s29  ;;  %v1504_v14 = vmul.f32 %v1435_v32, %v1343_v20  ;;  %v17547_v32 = vld [vmem:[#allocation55_spill] sm:$0xff]  ;;  %v17548_v36 = vld [vmem:[#allocation56_spill] sm:$0xff]  ;;  %v991_v44 = vmul.f32 0.1, %v927_v63 }
 0x1ed   : > { %2201 = vrot.lane.b32.xlu0 %v13016_v26, %s17305_s29  ;;  %v1860_v61 = vmul.f32 %v12261_v46, %v1827_v43  ;;  %v1988_v26 = vsel %vm1924_vm1, %v1892_v34, %v1956_v13  ;;  %v1249_v39 = vadd.f32 %v12190_v47, %v1215_v22 }
 0x1ee   : > { %v2048_v57 = vpop.permute.xlu1 %2047  ;;  %v1859_v58 = vmul.f32 %v12261_v46, %v1826_v21  ;;  %v1538_v21 = vmul.f32 %v12219_v42, %v1505_v56 }
 0x1ef   : > { %v2046_v48 = vpop.permute.xlu0 %2045  ;;  %v1894_v34 = vadd.f32 %v12266_v24, %v1860_v61  ;;  %v2391_v33 = vsel %vm2381_vm7, %v17547_v32, %v2048_v57  ;;  %v17549_v57 = vld [vmem:[#allocation27_spill] sm:$0xff]  ;;  %vm1281_vm14 = vcmp.ge.f32.partialorder %v1249_v39, 0.0 }
 0x1f0   : > { %2331 = vrot.lane.b32.xlu1 %v1988_v26, %s17303_s1  ;;  %v1893_v59 = vadd.f32 %v12266_v24, %v1859_v58  ;;  %v2390_v43 = vsel %vm2381_vm7, %v17548_v36, %v2046_v48  ;;  %v17550_v58 = vld [vmem:[#allocation28_spill] sm:$0xff] }
 0x1f1   : > { %2329 = vrot.lane.b32.xlu0 %v1987_v11, %s17303_s1  ;;  %v1958_v12 = vmul.f32 0.1, %v1894_v34  ;;  %vm1926_vm5 = vcmp.ge.f32.partialorder %v1894_v34, 0.0  ;;  %v1250_v11 = vadd.f32 %v12190_v47, %v1216_v23  ;;  %v1313_v23 = vmul.f32 0.1, %v1249_v39 }
 0x1f2   : > { %v2176_v2 = vpop.permute.xlu1 %2175  ;;  %v1957_v61 = vmul.f32 0.1, %v1893_v59  ;;  %vm1925_vm11 = vcmp.ge.f32.partialorder %v1893_v59, 0.0 }
 0x1f3   : > { %v2174_v5 = vpop.permute.xlu0 %2173  ;;  %v1990_v56 = vsel %vm1926_vm5, %v1894_v34, %v1958_v12  ;;  %vm1282_vm13 = vcmp.ge.f32.partialorder %v1250_v11, 0.0 }
 0x1f4   : > { %2079 = vrot.lane.b32.xlu1 %v12998_v6, %s17336_s15  ;;  %v1537_v6 = vmul.f32 %v12219_v42, %v1504_v14  ;;  %v2423_v13 = vsel %vm2414_vm8, %v2390_v43, %v2174_v5  ;;  %v1989_v14 = vsel %vm1925_vm11, %v1893_v59, %v1957_v61  ;;  %v1314_v5 = vmul.f32 0.1, %v1250_v11 }
 0x1f5   : > { %2077 = vrot.lane.b32.xlu0 %v13000_v62, %s17336_s15  ;;  %v2424_v62 = vsel %vm2414_vm8, %v2391_v33, %v2176_v2  ;;  %v992_v2 = vmul.f32 0.1, %v928_v52  ;;  %v13124_v59 = vsel %vm959_vm12, %v927_v63, %v991_v44  ;;  %v1345_v43 = vsel %vm1281_vm14, %v1249_v39, %v1313_v23 }
 0x1f6   : > { %v2304_v55 = vpop.permute.xlu1 %2303  ;;  %v1346_v36 = vsel %vm1282_vm13, %v1250_v11, %v1314_v5 }
 0x1f7   : > { %v2302_v37 = vpop.permute.xlu0 %2301  ;;  %v2457_v35 = vsel %vm2447_vm9, %v2424_v62, %v2304_v55  ;;  %v13122_v34 = vsel %vm960_vm6, %v928_v52, %v992_v2 }
 0x1f8   : > { %v2456_v0 = vsel %vm2447_vm9, %v2423_v13, %v2302_v37  ;;  %2207 = vrot.lane.b32.xlu1 %v1666_v49, %s17305_s29  ;;  %v2490_v26 = vsel %vm2480_vm10, %v2457_v35, %v17550_v58  ;;  %v1572_v49 = vadd.f32 %v12228_v27, %v1538_v21 }
 0x1f9   : > { %2205 = vrot.lane.b32.xlu0 %v1665_v28, %s17305_s29  ;;  %v2489_v48 = vsel %vm2480_vm10, %v2456_v0, %v17549_v57  ;;  %v1571_v28 = vadd.f32 %v12228_v27, %v1537_v6 }
 0x1fa   : > { %9945 = vmatprep.mubr.msk.f32.mxu0 %vm594_vm0, %v2489_v48  ;;  %v1121_v31 = vpop.permute.xlu1 %1120  ;;  %v1636_v32 = vmul.f32 0.1, %v1572_v49  ;;  %vm1604_vm15 = vcmp.ge.f32.partialorder %v1572_v49, 0.0 }
 0x1fb   : > { %9946 = vmatmul.mubr.msk.f32.gmra.mrb[8].mxu0 %vm594_vm0, %v2490_v26  ;;  %v1119_v3 = vpop.permute.xlu0 %1118  ;;  %v1635_v33 = vmul.f32 0.1, %v1571_v28  ;;  %vm1603_vm1 = vcmp.ge.f32.partialorder %v1571_v28, 0.0  ;;  %v1185_v12 = vmul.f32 %v1121_v31, %v13122_v34 }
 0x1fc   : > { %2335 = vrot.lane.b32.xlu1 %v1990_v56, %s17303_s1  ;;  %v1668_v21 = vsel %vm1604_vm15, %v1572_v49, %v1636_v32 }
 0x1fd   : > { %2333 = vrot.lane.b32.xlu0 %v1989_v14, %s17303_s1  ;;  %v1667_v62 = vsel %vm1603_vm1, %v1571_v28, %v1635_v33  ;;  %v1218_v49 = vmul.f32 %v12183_v41, %v1185_v12  ;;  %v17552_v33 = vld [vmem:[#allocation58_spill] sm:$0xff] }
 0x1fe   : > { %v1441_v38 = vpop.permute.xlu1 %1440 }
 0x1ff   : > { %v1439_v22 = vpop.permute.xlu0 %1438  ;;  %v1507_v55 = vmul.f32 %v1441_v38, %v1346_v36  ;;  %v1252_v23 = vadd.f32 %v12190_v47, %v1218_v49 }
 0x200   : > { %2083 = vrot.lane.b32.xlu1 %v1344_v60, %s17336_s15  ;;  %v1506_v37 = vmul.f32 %v1439_v22, %v1345_v43  ;;  %v1184_v60 = vmul.f32 %v1119_v3, %v13124_v59  ;;  %v17551_v22 = vld [vmem:[#allocation57_spill] sm:$0xff] }
 0x201   : > { %2081 = vrot.lane.b32.xlu0 %v1343_v20, %s17336_s15  ;;  %v1540_v26 = vmul.f32 %v12219_v42, %v1507_v55  ;;  %vm1284_vm11 = vcmp.ge.f32.partialorder %v1252_v23, 0.0 }
 0x202   : > { %v1761_v6 = vpop.permute.xlu1 %1760  ;;  %v1539_v11 = vmul.f32 %v12219_v42, %v1506_v37  ;;  %v1217_v28 = vmul.f32 %v12183_v41, %v1184_v60 }
 0x203   : > { %v1759_v13 = vpop.permute.xlu0 %1758  ;;  %v1829_v35 = vmul.f32 %v1761_v6, %v1668_v21  ;;  %v1574_v2 = vadd.f32 %v12228_v27, %v1540_v26 }
 0x204   : > { %v1828_v0 = vmul.f32 %v1759_v13, %v1667_v62  ;;  %2211 = vrot.lane.b32.xlu1 %v1668_v21, %s17305_s29  ;;  %v1573_v44 = vadd.f32 %v12228_v27, %v1539_v11  ;;  %v1251_v41 = vadd.f32 %v12190_v47, %v1217_v28  ;;  %v17553_v47 = vld [vmem:[#allocation29_spill] sm:$0xff] }
 0x205   : > { %2209 = vrot.lane.b32.xlu0 %v1667_v62, %s17305_s29  ;;  %v1862_v20 = vmul.f32 %v12261_v46, %v1829_v35  ;;  %vm1606_vm4 = vcmp.ge.f32.partialorder %v1574_v2, 0.0 }
 0x206   : > { %v1861_v52 = vmul.f32 %v12261_v46, %v1828_v0  ;;  %v2052_v61 = vpop.permute.xlu1 %2051  ;;  %v1638_v0 = vmul.f32 0.1, %v1574_v2  ;;  %v1637_v12 = vmul.f32 0.1, %v1573_v44  ;;  %vm1605_vm5 = vcmp.ge.f32.partialorder %v1573_v44, 0.0 }
 0x207   : > { %v2050_v48 = vpop.permute.xlu0 %2049  ;;  %v1896_v63 = vadd.f32 %v12266_v24, %v1862_v20  ;;  %v2393_v32 = vsel %vm2381_vm7, %v17551_v22, %v2052_v61  ;;  %v17554_v20 = vld [vmem:[#allocation30_spill] sm:$0xff]  ;;  %v1316_v61 = vmul.f32 0.1, %v1252_v23  ;;  %vm1283_vm6 = vcmp.ge.f32.partialorder %v1251_v41, 0.0 }
 0x208   : > { %v1895_v39 = vadd.f32 %v12266_v24, %v1861_v52  ;;  %v2392_v21 = vsel %vm2381_vm7, %v17552_v33, %v2050_v48  ;;  %v1315_v48 = vmul.f32 0.1, %v1251_v41  ;;  %v1670_v11 = vsel %vm1606_vm4, %v1574_v2, %v1638_v0 }
 0x209   : > { %vm1928_vm2 = vcmp.ge.f32.partialorder %v1896_v63, 0.0  ;;  %v1960_v31 = vmul.f32 0.1, %v1896_v63 }
 0x20a   : > { %vm1927_vm3 = vcmp.ge.f32.partialorder %v1895_v39, 0.0  ;;  %v1959_v3 = vmul.f32 0.1, %v1895_v39  ;;  %v2180_v56 = vpop.permute.xlu1 %2179 }
 0x20b   : > { %v2178_v14 = vpop.permute.xlu0 %2177  ;;  %v1992_v5 = vsel %vm1928_vm2, %v1896_v63, %v1960_v31  ;;  %v2426_v6 = vsel %vm2414_vm8, %v2393_v32, %v2180_v56  ;;  %v1348_v63 = vsel %vm1284_vm11, %v1252_v23, %v1316_v61 }
 0x20c   : > { %v1991_v38 = vsel %vm1927_vm3, %v1895_v39, %v1959_v3  ;;  %2339 = vrot.lane.b32.xlu1 %v1992_v5, %s17303_s1  ;;  %v2425_v62 = vsel %vm2414_vm8, %v2392_v21, %v2178_v14  ;;  %v1347_v39 = vsel %vm1283_vm6, %v1251_v41, %v1315_v48 }
 0x20d   : > { %2337 = vrot.lane.b32.xlu0 %v1991_v38, %s17303_s1 }
 0x20e   : > { %v2308_v13 = vpop.permute.xlu1 %2307 }
 0x20f   : > { %v2306_v55 = vpop.permute.xlu0 %2305  ;;  %v2459_v37 = vsel %vm2447_vm9, %v2426_v6, %v2308_v13 }
 0x210   : > { %v2458_v35 = vsel %vm2447_vm9, %v2425_v62, %v2306_v55  ;;  %2087 = vrot.lane.b32.xlu1 %v1346_v36, %s17336_s15  ;;  %v2492_v52 = vsel %vm2480_vm10, %v2459_v37, %v17554_v20 }
 0x211   : > { %2085 = vrot.lane.b32.xlu0 %v1345_v43, %s17336_s15  ;;  %v2491_v60 = vsel %vm2480_vm10, %v2458_v35, %v17553_v47  ;;  %v1669_v43 = vsel %vm1605_vm5, %v1573_v44, %v1637_v12  ;;  %v17556_v12 = vld [vmem:[#allocation61_spill] sm:$0xff] }
 0x212   : > { %9948 = vmatprep.mubr.msk.f32.mxu0 %vm594_vm0, %v2491_v60  ;;  %v1445_v26 = vpop.permute.xlu1 %1444 }
 0x213   : > { %9949 = vmatmul.mubr.msk.f32.gmra.mrb[10].mxu0 %vm594_vm0, %v2492_v52  ;;  %v1443_v36 = vpop.permute.xlu0 %1442  ;;  %v1509_v49 = vmul.f32 %v1445_v26, %v1348_v63 }
 0x214   : > { %2215 = vrot.lane.b32.xlu1 %v1670_v11, %s17305_s29  ;;  %v1508_v28 = vmul.f32 %v1443_v36, %v1347_v39 }
 0x215   : > { %2213 = vrot.lane.b32.xlu0 %v1669_v43, %s17305_s29  ;;  %v1542_v22 = vmul.f32 %v12219_v42, %v1509_v49  ;;  %v17557_v49 = vld [vmem:[#allocation31_spill] sm:$0xff] }
 0x216   : > { %v1765_v31 = vpop.permute.xlu1 %1764  ;;  %v1541_v2 = vmul.f32 %v12219_v42, %v1508_v28  ;;  %v17555_v42 = vld [vmem:[#allocation62_spill] sm:$0xff] }
 0x217   : > { %v1763_v3 = vpop.permute.xlu0 %1762  ;;  %v1831_v56 = vmul.f32 %v1765_v31, %v1670_v11  ;;  %v1576_v6 = vadd.f32 %v12228_v27, %v1542_v22  ;;  %v17558_v31 = vld [vmem:[#allocation32_spill] sm:$0xff] }
 0x218   : > { %v1830_v14 = vmul.f32 %v1763_v3, %v1669_v43  ;;  %v1575_v62 = vadd.f32 %v12228_v27, %v1541_v2 }
 0x219   : > { %v1864_v5 = vmul.f32 %v12261_v46, %v1831_v56  ;;  %v1640_v26 = vmul.f32 0.1, %v1576_v6  ;;  %vm1608_vm14 = vcmp.ge.f32.partialorder %v1576_v6, 0.0 }
 0x21a   : > { %v1863_v38 = vmul.f32 %v12261_v46, %v1830_v14  ;;  %v2056_v44 = vpop.permute.xlu1 %2055  ;;  %v1639_v36 = vmul.f32 0.1, %v1575_v62  ;;  %vm1607_vm15 = vcmp.ge.f32.partialorder %v1575_v62, 0.0 }
 0x21b   : > { %v2054_v32 = vpop.permute.xlu0 %2053  ;;  %v1898_v33 = vadd.f32 %v12266_v24, %v1864_v5  ;;  %v2395_v0 = vsel %vm2381_vm7, %v17555_v42, %v2056_v44  ;;  %v1672_v56 = vsel %vm1608_vm14, %v1576_v6, %v1640_v26  ;;  %v3035_v6 = vld [vmem:[#allocation2 + $0x8] sm:$0xff] }
 0x21c   : > { %v1897_v23 = vadd.f32 %v12266_v24, %v1863_v38  ;;  %v2394_v60 = vsel %vm2381_vm7, %v17556_v12, %v2054_v32  ;;  %v1671_v5 = vsel %vm1607_vm15, %v1575_v62, %v1639_v36  ;;  %v3036_v62 = vld [vmem:[#allocation2 + $0x10] sm:$0xff] }
 0x21d   : > { %vm1930_vm12 = vcmp.ge.f32.partialorder %v1898_v33, 0.0  ;;  %v1962_v41 = vmul.f32 0.1, %v1898_v33  ;;  %v10255_v12 = vpack.i.bf16 %v3036_v62, %v3035_v6 }
 0x21e   : > { %vm1929_vm13 = vcmp.ge.f32.partialorder %v1897_v23, 0.0  ;;  %v1961_v21 = vmul.f32 0.1, %v1897_v23  ;;  %v2184_v13 = vpop.permute.xlu1 %2183 }
 0x21f   : > { %v2182_v55 = vpop.permute.xlu0 %2181  ;;  %v1994_v37 = vsel %vm1930_vm12, %v1898_v33, %v1962_v41  ;;  %v2428_v52 = vsel %vm2414_vm8, %v2395_v0, %v2184_v13  ;;  %v3067_v41 = vld [vmem:[#allocation2 + $0x9] sm:$0xff] }
 0x220   : > { %v1993_v35 = vsel %vm1929_vm13, %v1897_v23, %v1961_v21  ;;  %2343 = vrot.lane.b32.xlu1 %v1994_v37, %s17303_s1  ;;  %v2427_v61 = vsel %vm2414_vm8, %v2394_v60, %v2182_v55  ;;  %v3068_v21 = vld [vmem:[#allocation2 + $0x11] sm:$0xff]  ;;  %v17559_v60 = vld [vmem:[#allocation66_spill] sm:$0xff] }
 0x221   : > { %2341 = vrot.lane.b32.xlu0 %v1993_v35, %s17303_s1 }
 0x222   : > { %v2312_v48 = vpop.permute.xlu1 %2311 }
 0x223   : > { %v2310_v27 = vpop.permute.xlu0 %2309  ;;  %v2461_v11 = vsel %vm2447_vm9, %v2428_v52, %v2312_v48  ;;  %v17560_v52 = vld [vmem:[#allocation67_spill] sm:$0xff] }
 0x224   : > { %v2460_v43 = vsel %vm2447_vm9, %v2427_v61, %v2310_v27  ;;  %2091 = vrot.lane.b32.xlu1 %v1348_v63, %s17336_s15  ;;  %v2494_v3 = vsel %vm2480_vm10, %v2461_v11, %v17558_v31 }
 0x225   : > { %2089 = vrot.lane.b32.xlu0 %v1347_v39, %s17336_s15  ;;  %v2493_v28 = vsel %vm2480_vm10, %v2460_v43, %v17557_v49  ;;  %s17610_s15 = smov 125  }
 0x226   : > { %9951 = vmatprep.mubr.msk.f32.mxu0 %vm594_vm0, %v2493_v28  ;;  %v1769_v14 = vpop.permute.xlu1 %1768  ;;  %v17561_v28 = vld [vmem:[#allocation33_spill] sm:$0xff] }
 0x227   : > { %9952 = vmatmul.mubr.msk.f32.gmra.mrb[12].mxu0 %vm594_vm0, %v2494_v3  ;;  %v1767_v38 = vpop.permute.xlu0 %1766  ;;  %v1833_v22 = vmul.f32 %v1769_v14, %v1672_v56 }
 0x228   : > { %v1832_v2 = vmul.f32 %v1767_v38, %v1671_v5  ;;  %2219 = vrot.lane.b32.xlu1 %v1672_v56, %s17305_s29  ;;  %v17562_v56 = vld [vmem:[#allocation34_spill] sm:$0xff] }
 0x229   : > { %2217 = vrot.lane.b32.xlu0 %v1671_v5, %s17305_s29  ;;  %v1866_v63 = vmul.f32 %v12261_v46, %v1833_v22  ;;  %s17742_s29 = smov 2  }
 0x22a   : > { %v1865_v39 = vmul.f32 %v12261_v46, %v1832_v2  ;;  %v2060_v44 = vpop.permute.xlu1 %2059  ;;  %v10260_v46 = vpack.i.bf16 %v3068_v21, %v3067_v41 }
 0x22b   : > { %v2058_v32 = vpop.permute.xlu0 %2057  ;;  %v1900_v33 = vadd.f32 %v12266_v24, %v1866_v63  ;;  %v17563_v63 = vld [vmem:[#allocation72_spill] sm:$0xff] }
 0x22c   : > { %v1899_v23 = vadd.f32 %v12266_v24, %v1865_v39  ;;  %v2397_v24 = vsel %vm2381_vm7, %v17559_v60, %v2060_v44  ;;  %v2396_v61 = vsel %vm2381_vm7, %v17560_v52, %v2058_v32  ;;  %v17564_v44 = vld [vmem:[#allocation73_spill] sm:$0xff] }
 0x22d   : > { %vm1932_vm1 = vcmp.ge.f32.partialorder %v1900_v33, 0.0  ;;  %v1964_v13 = vmul.f32 0.1, %v1900_v33 }
 0x22e   : > { %vm1931_vm2 = vcmp.ge.f32.partialorder %v1899_v23, 0.0  ;;  %v1963_v55 = vmul.f32 0.1, %v1899_v23  ;;  %v2188_v37 = vpop.permute.xlu1 %2187 }
 0x22f   : > { %v2186_v35 = vpop.permute.xlu0 %2185  ;;  %v1996_v42 = vsel %vm1932_vm1, %v1900_v33, %v1964_v13  ;;  %v2430_v48 = vsel %vm2414_vm8, %v2397_v24, %v2188_v37  ;;  %v17565_v13 = vld [vmem:[#allocation35_spill] sm:$0xff]  ;;  %v17566_v37 = vld [vmem:[#allocation36_spill] sm:$0xff] }
 0x230   : > { %v1995_v0 = vsel %vm1931_vm2, %v1899_v23, %v1963_v55  ;;  %2347 = vrot.lane.b32.xlu1 %v1996_v42, %s17303_s1  ;;  %v2429_v27 = vsel %vm2414_vm8, %v2396_v61, %v2186_v35 }
 0x231   : > { %2345 = vrot.lane.b32.xlu0 %v1995_v0, %s17303_s1  ;;  %s16320_s1 = sld [smem:[#allocation8 + $0x6]] }
 0x232   : > { %v2316_v26 = vpop.permute.xlu1 %2315 }
 0x233   : > { %v2314_v36 = vpop.permute.xlu0 %2313  ;;  %v2463_v11 = vsel %vm2447_vm9, %v2430_v48, %v2316_v26 }
 0x234   : > { %v2462_v43 = vsel %vm2447_vm9, %v2429_v27, %v2314_v36  ;;  %v2496_v14 = vsel %vm2480_vm10, %v2463_v11, %v17562_v56  ;;  %10261 = vrot.lane.b32.xlu1 %v10260_v46, %s11520_s0  ;;  %v17567_v11 = vld [vmem:[#allocation37_spill] sm:$0xff] }
 0x235   : > { %v2495_v3 = vsel %vm2480_vm10, %v2462_v43, %v17561_v28  ;;  %10256 = vrot.lane.b32.xlu0 %v10255_v12, %s11521_s24 }
 0x236   : > { %9954 = vmatprep.mubr.msk.f32.mxu0 %vm594_vm0, %v2495_v3  ;;  %v2064_v5 = vpop.permute.xlu1 %2063  ;;  %v17568_v3 = vld [vmem:[#allocation38_spill] sm:$0xff] }
 0x237   : > { %9955 = vmatmul.mubr.msk.f32.gmra.mrb[14].mxu0 %vm594_vm0, %v2496_v14  ;;  %v2062_v38 = vpop.permute.xlu0 %2061  ;;  %v2399_v39 = vsel %vm2381_vm7, %v17563_v63, %v2064_v5 }
 0x238   : > { %v2398_v32 = vsel %vm2381_vm7, %v17564_v44, %v2062_v38 }
 0x23a   : > { %v2192_v22 = vpop.permute.xlu1 %2191 }
 0x23b   : > { %v2190_v2 = vpop.permute.xlu0 %2189  ;;  %v2432_v33 = vsel %vm2414_vm8, %v2399_v39, %v2192_v22 }
 0x23c   : > { %v2431_v23 = vsel %vm2414_vm8, %v2398_v32, %v2190_v2 }
 0x23e   : > { %v2320_v41 = vpop.permute.xlu1 %2319 }
 0x23f   : > { %v2318_v21 = vpop.permute.xlu0 %2317  ;;  %v2465_v6 = vsel %vm2447_vm9, %v2432_v33, %v2320_v41  ;;  %v17569_v41 = vld [vmem:[#allocation39_spill] sm:$0xff] }
 0x240   : > { %v2464_v62 = vsel %vm2447_vm9, %v2431_v23, %v2318_v21  ;;  %v2498_v35 = vsel %vm2480_vm10, %v2465_v6, %v17566_v37  ;;  %v17570_v6 = vld [vmem:[#allocation40_spill] sm:$0xff] }
 0x241   : > { %v2497_v55 = vsel %vm2480_vm10, %v2464_v62, %v17565_v13 }
 0x242   : > { %9957 = vmatprep.mubr.msk.f32.mxu0 %vm594_vm0, %v2497_v55  ;;  %v2068_v42 = vpop.permute.xlu1 %2067 }
 0x243   : > { %9958 = vmatmul.mubr.msk.f32.gmra.mrb[16].mxu0 %vm594_vm0, %v2498_v35  ;;  %v2066_v0 = vpop.permute.xlu0 %2065  ;;  %v2401_v60 = vsel %vm2381_vm7, %v12661_v18, %v2068_v42 }
 0x244   : > { %v2400_v24 = vsel %vm2381_vm7, %v12657_v51, %v2066_v0 }
 0x246   : > { %v2196_v46 = vpop.permute.xlu1 %2195 }
 0x247   : > { %v2194_v12 = vpop.permute.xlu0 %2193  ;;  %v2434_v52 = vsel %vm2414_vm8, %v2401_v60, %v2196_v46 }
 0x248   : > { %v2433_v61 = vsel %vm2414_vm8, %v2400_v24, %v2194_v12 }
 0x24a   : > { %v2324_v48 = vpop.permute.xlu1 %2323 }
 0x24b   : > { %v2322_v27 = vpop.permute.xlu0 %2321  ;;  %v2467_v26 = vsel %vm2447_vm9, %v2434_v52, %v2324_v48  ;;  %v17571_v48 = vld [vmem:[#allocation41_spill] sm:$0xff] }
 0x24c   : > { %v2466_v36 = vsel %vm2447_vm9, %v2433_v61, %v2322_v27  ;;  %v2500_v14 = vsel %vm2480_vm10, %v2467_v26, %v17568_v3  ;;  %v17572_v26 = vld [vmem:[#allocation42_spill] sm:$0xff] }
 0x24d   : > { %v2499_v43 = vsel %vm2480_vm10, %v2466_v36, %v17567_v11 }
 0x24e   : > { %9960 = vmatprep.mubr.msk.f32.mxu1 %vm594_vm0, %v2499_v43  ;;  %v2072_v18 = vpop.permute.xlu1 %2071 }
 0x24f   : > { %9961 = vmatmul.mubr.msk.f32.vlgmr.msra.gmra.mrb[0].mxu1 %vm594_vm0, %v2500_v14  ;;  %v2070_v51 = vpop.permute.xlu0 %2069  ;;  %v2403_v22 = vsel %vm2381_vm7, %v12741_v17, %v2072_v18 }
 0x250   : > { %v2402_v2 = vsel %vm2381_vm7, %v12686_v25, %v2070_v51 }
 0x252   : > { %v2200_v5 = vpop.permute.xlu1 %2199 }
 0x253   : > { %v2198_v38 = vpop.permute.xlu0 %2197  ;;  %v2436_v63 = vsel %vm2414_vm8, %v2403_v22, %v2200_v5 }
 0x254   : > { %v2435_v39 = vsel %vm2414_vm8, %v2402_v2, %v2198_v38 }
 0x256   : > { %v2328_v44 = vpop.permute.xlu1 %2327 }
 0x257   : > { %v2326_v32 = vpop.permute.xlu0 %2325  ;;  %v2469_v33 = vsel %vm2447_vm9, %v2436_v63, %v2328_v44  ;;  %v17573_v44 = vld [vmem:[#allocation43_spill] sm:$0xff] }
 0x258   : > { %v2468_v23 = vsel %vm2447_vm9, %v2435_v39, %v2326_v32  ;;  %v2502_v62 = vsel %vm2480_vm10, %v2469_v33, %v17570_v6  ;;  %v17574_v33 = vld [vmem:[#allocation44_spill] sm:$0xff] }
 0x259   : > { %v2501_v21 = vsel %vm2480_vm10, %v2468_v23, %v17569_v41 }
 0x25a   : > { %9963 = vmatprep.mubr.msk.f32.mxu1 %vm594_vm0, %v2501_v21  ;;  %v2076_v17 = vpop.permute.xlu1 %2075 }
 0x25b   : > { %9964 = vmatmul.mubr.msk.f32.gmra.mrb[2].mxu1 %vm594_vm0, %v2502_v62  ;;  %v2074_v25 = vpop.permute.xlu0 %2073  ;;  %v2405_v42 = vsel %vm2381_vm7, %v12821_v15, %v2076_v17  ;;  %v13285_v17 = vld [vmem:[%s17194_s3] ss:$0 sm:$0xff] }
 0x25c   : > { %v2404_v0 = vsel %vm2381_vm7, %v12836_v16, %v2074_v25 }
 0x25e   : > { %v2204_v55 = vpop.permute.xlu1 %2203 }
 0x25f   : > { %v2202_v35 = vpop.permute.xlu0 %2201  ;;  %v2438_v46 = vsel %vm2414_vm8, %v2405_v42, %v2204_v55 }
 0x260   : > { %v2437_v12 = vsel %vm2414_vm8, %v2404_v0, %v2202_v35 }
 0x262   : > { %v2332_v60 = vpop.permute.xlu1 %2331 }
 0x263   : > { %v2330_v24 = vpop.permute.xlu0 %2329  ;;  %v2471_v52 = vsel %vm2447_vm9, %v2438_v46, %v2332_v60 }
 0x264   : > { %v2470_v61 = vsel %vm2447_vm9, %v2437_v12, %v2330_v24  ;;  %v2504_v36 = vsel %vm2480_vm10, %v2471_v52, %v17572_v26 }
 0x265   : > { %v2503_v27 = vsel %vm2480_vm10, %v2470_v61, %v17571_v48 }
 0x266   : > { %9966 = vmatprep.mubr.msk.f32.mxu1 %vm594_vm0, %v2503_v27  ;;  %v2080_v15 = vpop.permute.xlu1 %2079 }
 0x267   : > { %9967 = vmatmul.mubr.msk.f32.gmra.mrb[4].mxu1 %vm594_vm0, %v2504_v36  ;;  %v2078_v16 = vpop.permute.xlu0 %2077  ;;  %v2407_v18 = vsel %vm2381_vm7, %v12904_v7, %v2080_v15  ;;  %v17575_v36 = vld [vmem:[#allocation46_spill] sm:$0xff] }
 0x268   : > { %v2406_v51 = vsel %vm2381_vm7, %v12907_v50, %v2078_v16  ;;  %v17576_v16 = vld [vmem:[#allocation45_spill] sm:$0xff] }
 0x26a   : > { %v2208_v43 = vpop.permute.xlu1 %2207 }
 0x26b   : > { %v2206_v14 = vpop.permute.xlu0 %2205  ;;  %v2440_v5 = vsel %vm2414_vm8, %v2407_v18, %v2208_v43 }
 0x26c   : > { %v2439_v38 = vsel %vm2414_vm8, %v2406_v51, %v2206_v14 }
 0x26e   : > { %v2336_v22 = vpop.permute.xlu1 %2335 }
 0x26f   : > { %v2334_v2 = vpop.permute.xlu0 %2333  ;;  %v2473_v63 = vsel %vm2447_vm9, %v2440_v5, %v2336_v22 }
 0x270   : > { %v2472_v39 = vsel %vm2447_vm9, %v2439_v38, %v2334_v2  ;;  %v2506_v23 = vsel %vm2480_vm10, %v2473_v63, %v17574_v33 }
 0x271   : > { %v2505_v32 = vsel %vm2480_vm10, %v2472_v39, %v17573_v44 }
 0x272   : > { %9969 = vmatprep.mubr.msk.f32.mxu1 %vm594_vm0, %v2505_v32  ;;  %v2084_v7 = vpop.permute.xlu1 %2083 }
 0x273   : > { %9970 = vmatmul.mubr.msk.f32.gmra.mrb[6].mxu1 %vm594_vm0, %v2506_v23  ;;  %v2082_v50 = vpop.permute.xlu0 %2081  ;;  %v2409_v25 = vsel %vm2381_vm7, %v13009_v30, %v2084_v7 }
 0x274   : > { %v2408_v35 = vsel %vm2381_vm7, %v13012_v19, %v2082_v50 }
 0x276   : > { %v2212_v21 = vpop.permute.xlu1 %2211 }
 0x277   : > { %v2210_v62 = vpop.permute.xlu0 %2209  ;;  %v2442_v42 = vsel %vm2414_vm8, %v2409_v25, %v2212_v21 }
 0x278   : > { %v2441_v60 = vsel %vm2414_vm8, %v2408_v35, %v2210_v62 }
 0x27d   : > { %v9935_v55 = vpop.f32.mrb[0].mxu0 }
 0x27e   : > { %v2690_v0 = vadd.f32 %v9935_v55, %v13285_v17  ;;  %v2340_v46 = vpop.permute.xlu1 %2339  ;;  %v2684_v12 = vpop.f32.mrb[1].mxu0 }
 0x27f   : > { %v2475_v24 = vsel %vm2447_vm9, %v2442_v42, %v2340_v46  ;;  %v2685_v52 = vadd.f32 %v13285_v17, %v2684_v12  ;;  %v2338_v61 = vpop.permute.xlu0 %2337 }
 0x280   : > { %vm2844_vm3 = vcmp.ge.f32.partialorder %v2690_v0, 0.0  ;;  %v2876_v27 = vmul.f32 0.1, %v2690_v0  ;;  %v2474_v30 = vsel %vm2447_vm9, %v2441_v60, %v2338_v61  ;;  %v2508_v19 = vsel %vm2480_vm10, %v2475_v24, %v17575_v36 }
 0x281   : > { %vm2843_vm4 = vcmp.ge.f32.partialorder %v2685_v52, 0.0  ;;  %v2875_v15 = vmul.f32 0.1, %v2685_v52  ;;  %v2507_v43 = vsel %vm2480_vm10, %v2474_v30, %v17576_v16 }
 0x282   : > { %v2908_v14 = vsel %vm2844_vm3, %v2690_v0, %v2876_v27  ;;  %9972 = vmatprep.mubr.msk.f32.mxu1 %vm594_vm0, %v2507_v43 }
 0x283   : > { %v13303_v18 = vadd.f32 %v2908_v14, %v11934_v4  ;;  %v2907_v51 = vsel %vm2843_vm4, %v2685_v52, %v2875_v15  ;;  %9973 = vmatmul.mubr.msk.f32.gmra.mrb[8].mxu1 %vm594_vm0, %v2508_v19  ;;  %v2088_v4 = vpop.permute.xlu1 %2087  ;;  %v2086_v39 = vpop.permute.xlu0 %2085 }
 0x284   : > { %v13307_v5 = vadd.f32 %v2907_v51, %v11784_v1  ;;  %v2410_v24 = vsel %vm2381_vm7, %v13076_v10, %v2086_v39  ;;  %v17578_v10 = vld [vmem:[#allocation48_spill] sm:$0xff] }
 0x285   : > { %2972 = vst.msk [vmem:[#allocation2 + $0x30] sm:$0xff] %vm594_vm0, %v13303_v18 }
 0x286   : > { %v9938_v38 = vpop.f32.mrb[2].mxu0  ;;  %2971 = vst.msk [vmem:[#allocation2 + $0x28] sm:$0xff] %vm594_vm0, %v13307_v5 }
 0x287   : > { %v2700_v22 = vadd.f32 %v9938_v38, %v13285_v17  ;;  %v2694_v2 = vpop.f32.mrb[3].mxu0  ;;  %v2216_v42 = vpop.permute.xlu1 %2215 }
 0x288   : > { %v2695_v63 = vadd.f32 %v13285_v17, %v2694_v2  ;;  %v2214_v0 = vpop.permute.xlu0 %2213 }
 0x289   : > { %vm2846_vm5 = vcmp.ge.f32.partialorder %v2700_v22, 0.0  ;;  %v2878_v32 = vmul.f32 0.1, %v2700_v22  ;;  %v2443_v61 = vsel %vm2414_vm8, %v2410_v24, %v2214_v0 }
 0x28a   : > { %vm2845_vm11 = vcmp.ge.f32.partialorder %v2695_v63, 0.0  ;;  %v2877_v23 = vmul.f32 0.1, %v2695_v63 }
 0x28b   : > { %v2910_v1 = vsel %vm2846_vm5, %v2700_v22, %v2878_v32 }
 0x28c   : > { %v13316_v7 = vadd.f32 %v2910_v1, %v17529_v45  ;;  %v2909_v50 = vsel %vm2845_vm11, %v2695_v63, %v2877_v23  ;;  %v3132_v62 = vld [vmem:[#allocation2 + $0x30] sm:$0xff] }
 0x28d   : > { %v13319_v21 = vadd.f32 %v2909_v50, %v17528_v9  ;;  %v3131_v25 = vld [vmem:[#allocation2 + $0x28] sm:$0xff]  ;;  %v3164_v60 = vld [vmem:[#allocation2 + $0x31] sm:$0xff]  ;;  %v2411_v9 = vsel %vm2381_vm7, %v13073_v8, %v2088_v4 }
 0x28e   : > { %2974 = vst.msk [vmem:[#allocation2 + $0x50] sm:$0xff] %vm594_vm0, %v13316_v7  ;;  %v3099_v55 = vld [vmem:[#allocation2 + $0x27] sm:$0xff]  ;;  %v3100_v35 = vld [vmem:[#allocation2 + $0x2f] sm:$0xff]  ;;  %v10270_v46 = vpack.i.bf16 %v3132_v62, %v3131_v25  ;;  %v2444_v52 = vsel %vm2414_vm8, %v2411_v9, %v2216_v42 }
 0x28f   : > { %2973 = vst.msk [vmem:[#allocation2 + $0x48] sm:$0xff] %vm594_vm0, %v13319_v21  ;;  %v10265_v12 = vpack.i.bf16 %v3100_v35, %v3099_v55  ;;  %v3163_v45 = vld [vmem:[#allocation2 + $0x29] sm:$0xff] }
 0x290   : > { %10271 = vrot.lane.b32.xlu1 %v10270_v46, %s11522_s18  ;;  %v10275_v19 = vpack.i.bf16 %v3164_v60, %v3163_v45  ;;  %v17577_v8 = vld [vmem:[#allocation47_spill] sm:$0xff] }
 0x291   : > { %10266 = vrot.lane.b32.xlu0 %v10265_v12, %s11523_s19 }
 0x292   : > { %v2344_v27 = vpop.permute.xlu1 %2343 }
 0x293   : > { %v2342_v30 = vpop.permute.xlu0 %2341  ;;  %v2477_v15 = vsel %vm2447_vm9, %v2444_v52, %v2344_v27  ;;  %v17581_v52 = vld [vmem:[#allocation50_spill] sm:$0xff] }
 0x294   : > { %v2476_v43 = vsel %vm2447_vm9, %v2443_v61, %v2342_v30  ;;  %10281 = vrot.lane.b32.xlu1 %v10270_v46, %s11521_s24  ;;  %v2510_v51 = vsel %vm2480_vm10, %v2477_v15, %v17578_v10 }
 0x295   : > { %10276 = vrot.lane.b32.xlu0 %v10275_v19, %s11524_s23  ;;  %v2509_v14 = vsel %vm2480_vm10, %v2476_v43, %v17577_v8 }
 0x296   : > { %9975 = vmatprep.mubr.msk.f32.mxu1 %vm594_vm0, %v2509_v14  ;;  %v2092_v38 = vpop.permute.xlu1 %2091 }
 0x297   : > { %9976 = vmatmul.mubr.msk.f32.gmra.mrb[10].mxu1 %vm594_vm0, %v2510_v51  ;;  %v2090_v22 = vpop.permute.xlu0 %2089  ;;  %v2413_v50 = vsel %vm2381_vm7, %v13122_v34, %v2092_v38 }
 0x298   : > { %v2412_v62 = vsel %vm2381_vm7, %v13124_v59, %v2090_v22  ;;  %v17580_v59 = vld [vmem:[#allocation49_spill] sm:$0xff] }
 0x299   : > { %10286 = vrot.lane.b32.xlu0 %v10275_v19, %s11520_s0 }
 0x29a   : > { %v2220_v2 = vpop.permute.xlu1 %2219 }
 0x29b   : > { %v2218_v4 = vpop.permute.xlu0 %2217  ;;  %v2446_v55 = vsel %vm2414_vm8, %v2413_v50, %v2220_v2 }
 0x29c   : > { %v2445_v35 = vsel %vm2414_vm8, %v2412_v62, %v2218_v4 }
 0x29e   : > { %v9941_v63 = vpop.f32.mrb[4].mxu0 }
 0x29f   : > { %v2710_v39 = vadd.f32 %v9941_v63, %v13285_v17  ;;  %v2704_v32 = vpop.f32.mrb[5].mxu0 }
 0x2a0   : > { %v2705_v23 = vadd.f32 %v13285_v17, %v2704_v32 }
 0x2a1   : > { %vm2848_vm6 = vcmp.ge.f32.partialorder %v2710_v39, 0.0  ;;  %v2880_v1 = vmul.f32 0.1, %v2710_v39 }
 0x2a2   : > { %vm2847_vm12 = vcmp.ge.f32.partialorder %v2705_v23, 0.0  ;;  %v2879_v25 = vmul.f32 0.1, %v2705_v23  ;;  %v2348_v0 = vpop.permute.xlu1 %2347 }
 0x2a3   : > { %v2912_v42 = vsel %vm2848_vm6, %v2710_v39, %v2880_v1  ;;  %v2346_v46 = vpop.permute.xlu0 %2345  ;;  %v2479_v60 = vsel %vm2447_vm9, %v2446_v55, %v2348_v0 }
 0x2a4   : > { %v13353_v12 = vadd.f32 %v2912_v42, %v17542_v54  ;;  %v2911_v45 = vsel %vm2847_vm12, %v2705_v23, %v2879_v25  ;;  %v2478_v34 = vsel %vm2447_vm9, %v2445_v35, %v2346_v46  ;;  %v2512_v61 = vsel %vm2480_vm10, %v2479_v60, %v17581_v52  ;;  %v13370_v54 = vld [vmem:[#allocation2 + $0x49] sm:$0xff] }
 0x2a5   : > { %v13358_v9 = vadd.f32 %v2911_v45, %v17541_v40  ;;  %v2511_v24 = vsel %vm2480_vm10, %v2478_v34, %v17580_v59 }
 0x2a6   : > { %17579 = vst [vmem:[#allocation63_spill] sm:$0xff] %v13353_v12  ;;  %2976 = vst.msk [vmem:[#allocation2 + $0x70] sm:$0xff] %vm594_vm0, %v13353_v12  ;;  %9978 = vmatprep.mubr.msk.f32.mxu1 %vm594_vm0, %v2511_v24 }
 0x2a7   : > { %2975 = vst.msk [vmem:[#allocation2 + $0x68] sm:$0xff] %vm594_vm0, %v13358_v9  ;;  %9979 = vmatmul.mubr.msk.f32.gmra.mrb[12].mxu1 %vm594_vm0, %v2512_v61 }
 0x2a8   : > { %9673 = vmatprep.mubr.msk.f32.mxu1 %vm594_vm0, %v13370_v54 }
 0x2b6   : > { %v9944_v40 = vpop.f32.mrb[6].mxu0 }
 0x2b7   : > { %v2720_v27 = vadd.f32 %v9944_v40, %v13285_v17  ;;  %v2714_v30 = vpop.f32.mrb[7].mxu0 }
 0x2b8   : > { %v2715_v19 = vadd.f32 %v13285_v17, %v2714_v30 }
 0x2b9   : > { %vm2850_vm13 = vcmp.ge.f32.partialorder %v2720_v27, 0.0  ;;  %v2882_v15 = vmul.f32 0.1, %v2720_v27 }
 0x2ba   : > { %vm2849_vm14 = vcmp.ge.f32.partialorder %v2715_v19, 0.0  ;;  %v2881_v43 = vmul.f32 0.1, %v2715_v19 }
 0x2bb   : > { %v2914_v14 = vsel %vm2850_vm13, %v2720_v27, %v2882_v15 }
 0x2bc   : > { %v13377_v51 = vadd.f32 %v2914_v14, %v17546_v53  ;;  %v2913_v38 = vsel %vm2849_vm14, %v2715_v19, %v2881_v43 }
 0x2bd   : > { %v13380_v22 = vadd.f32 %v2913_v38, %v17545_v29 }
 0x2be   : > { %17582 = vst [vmem:[#allocation21_spill] sm:$0xff] %v13377_v51  ;;  %2978 = vst.msk [vmem:[#allocation2 + $0x90] sm:$0xff] %vm594_vm0, %v13377_v51 }
 0x2bf   : > { %17583 = vst [vmem:[#allocation22_spill] sm:$0xff] %v13380_v22  ;;  %2977 = vst.msk [vmem:[#allocation2 + $0x88] sm:$0xff] %vm594_vm0, %v13380_v22 }
 0x2ce   : > { %v9947_v2 = vpop.f32.mrb[8].mxu0 }
 0x2cf   : > { %v2730_v63 = vadd.f32 %v9947_v2, %v13285_v17  ;;  %v2724_v4 = vpop.f32.mrb[9].mxu0 }
 0x2d0   : > { %v2725_v39 = vadd.f32 %v13285_v17, %v2724_v4 }
 0x2d1   : > { %vm2852_vm15 = vcmp.ge.f32.partialorder %v2730_v63, 0.0  ;;  %v2884_v32 = vmul.f32 0.1, %v2730_v63 }
 0x2d2   : > { %vm2851_vm1 = vcmp.ge.f32.partialorder %v2725_v39, 0.0  ;;  %v2883_v53 = vmul.f32 0.1, %v2725_v39 }
 0x2d3   : > { %v2916_v23 = vsel %vm2852_vm15, %v2730_v63, %v2884_v32  ;;  %v4417_v32 = vld [vmem:[%s17195_s4] sm:$0xff] }
 0x2d4   : > { %v13389_v29 = vadd.f32 %v2916_v23, %v17550_v58  ;;  %v2915_v1 = vsel %vm2851_vm1, %v2725_v39, %v2883_v53  ;;  %v4418_v53 = vld [vmem:[%s17195_s4 + $0x8] sm:$0xff]  ;;  %v17307_v23 = vmov 0.0|0.0  }
 0x2d5   : > { %v13392_v50 = vadd.f32 %v2915_v1, %v17549_v57  ;;  %10101 = vmatprep.subr.bf16.mxu1 %v17307_v23  ;;  %10128 = vmatprep.subr.bf16.mxu0 %v17307_v23 }
 0x2d6   : > { %17584 = vst [vmem:[#allocation65_spill] sm:$0xff] %v13389_v29  ;;  %2980 = vst.msk [vmem:[#allocation2 + $0xb0] sm:$0xff] %vm594_vm0, %v13389_v29 }
 0x2d7   : > { %17585 = vst [vmem:[#allocation64_spill] sm:$0xff] %v13392_v50  ;;  %2979 = vst.msk [vmem:[#allocation2 + $0xa8] sm:$0xff] %vm594_vm0, %v13392_v50 }
 0x2e6   : > { %v9950_v62 = vpop.f32.mrb[10].mxu0 }
 0x2e7   : > { %v2740_v25 = vadd.f32 %v9950_v62, %v13285_v17  ;;  %v2734_v55 = vpop.f32.mrb[11].mxu0 }
 0x2e8   : > { %v2735_v35 = vadd.f32 %v13285_v17, %v2734_v55 }
 0x2e9   : > { %vm2854_vm2 = vcmp.ge.f32.partialorder %v2740_v25, 0.0  ;;  %v2886_v42 = vmul.f32 0.1, %v2740_v25 }
 0x2ea   : > { %vm2853_vm3 = vcmp.ge.f32.partialorder %v2735_v35, 0.0  ;;  %v2885_v58 = vmul.f32 0.1, %v2735_v35 }
 0x2eb   : > { %v2918_v0 = vsel %vm2854_vm2, %v2740_v25, %v2886_v42  ;;  %v4420_v42 = vld [vmem:[%s17195_s4 + $0x18] sm:$0xff] }
 0x2ec   : > { %v13401_v57 = vadd.f32 %v2918_v0, %v17554_v20  ;;  %v2917_v46 = vsel %vm2853_vm3, %v2735_v35, %v2885_v58  ;;  %v4419_v35 = vld [vmem:[%s17195_s4 + $0x10] sm:$0xff] }
 0x2ed   : > { %v13404_v45 = vadd.f32 %v2917_v46, %v17553_v47  ;;  %v10105_v0 = vpack.c.bf16 %v4420_v42, %v4419_v35  ;;  %v4429_v42 = vld [vmem:[%s17195_s4 + $0x60] sm:$0xff] }
 0x2ee   : > { %17586 = vst [vmem:[#allocation59_spill] sm:$0xff] %v13401_v57  ;;  %2982 = vst.msk [vmem:[#allocation2 + $0xd0] sm:$0xff] %vm594_vm0, %v13401_v57 }
 0x2ef   : > { %17587 = vst [vmem:[#allocation60_spill] sm:$0xff] %v13404_v45  ;;  %2981 = vst.msk [vmem:[#allocation2 + $0xc8] sm:$0xff] %vm594_vm0, %v13404_v45 }
 0x2fa   : > { %v9953_v60 = vpop.f32.mrb[12].mxu0 }
 0x2fb   : > { %v2750_v34 = vadd.f32 %v9953_v60, %v13285_v17  ;;  %v2744_v24 = vpop.f32.mrb[13].mxu0 }
 0x2fc   : > { %v2745_v61 = vadd.f32 %v13285_v17, %v2744_v24 }
 0x2fd   : > { %vm2856_vm4 = vcmp.ge.f32.partialorder %v2750_v34, 0.0  ;;  %v2888_v40 = vmul.f32 0.1, %v2750_v34 }
 0x2fe   : > { %vm2855_vm5 = vcmp.ge.f32.partialorder %v2745_v61, 0.0  ;;  %v2887_v20 = vmul.f32 0.1, %v2745_v61 }
 0x2ff   : > { %v2920_v27 = vsel %vm2856_vm4, %v2750_v34, %v2888_v40  ;;  %v4422_v40 = vld [vmem:[%s17195_s4 + $0x28] sm:$0xff] }
 0x300   : > { %v13413_v47 = vadd.f32 %v2920_v27, %v17558_v31  ;;  %v2919_v30 = vsel %vm2855_vm5, %v2745_v61, %v2887_v20  ;;  %v4421_v61 = vld [vmem:[%s17195_s4 + $0x20] sm:$0xff]  ;;  %v4424_v20 = vld [vmem:[%s17195_s4 + $0x38] sm:$0xff] }
 0x301   : > { %v13416_v19 = vadd.f32 %v2919_v30, %v17557_v49 }
 0x302   : > { %17588 = vst [vmem:[#allocation68_spill] sm:$0xff] %v13413_v47  ;;  %2984 = vst.msk [vmem:[#allocation2 + $0xf0] sm:$0xff] %vm594_vm0, %v13413_v47 }
 0x303   : > { %17589 = vst [vmem:[#allocation69_spill] sm:$0xff] %v13416_v19  ;;  %2983 = vst.msk [vmem:[#allocation2 + $0xe8] sm:$0xff] %vm594_vm0, %v13416_v19 }
 0x30a   : > { %v9956_v15 = vpop.f32.mrb[14].mxu0 }
 0x30b   : > { %v2760_v43 = vadd.f32 %v9956_v15, %v13285_v17  ;;  %v2754_v14 = vpop.f32.mrb[15].mxu0 }
 0x30c   : > { %v2755_v38 = vadd.f32 %v13285_v17, %v2754_v14 }
 0x30d   : > { %vm2858_vm11 = vcmp.ge.f32.partialorder %v2760_v43, 0.0  ;;  %v2890_v2 = vmul.f32 0.1, %v2760_v43 }
 0x30e   : > { %vm2857_vm6 = vcmp.ge.f32.partialorder %v2755_v38, 0.0  ;;  %v2889_v31 = vmul.f32 0.1, %v2755_v38 }
 0x30f   : > { %v2922_v63 = vsel %vm2858_vm11, %v2760_v43, %v2890_v2 }
 0x310   : > { %v13425_v49 = vadd.f32 %v2922_v63, %v17562_v56  ;;  %v2921_v4 = vsel %vm2857_vm6, %v2755_v38, %v2889_v31  ;;  %v4425_v63 = vld [vmem:[%s17195_s4 + $0x40] sm:$0xff] }
 0x311   : > { %v13428_v39 = vadd.f32 %v2921_v4, %v17561_v28  ;;  %v10102_v28 = vpack.c.bf16 %v4418_v53, %v4417_v32  ;;  %v4426_v4 = vld [vmem:[%s17195_s4 + $0x48] sm:$0xff] }
 0x312   : > { %17590 = vst [vmem:[#allocation70_spill] sm:$0xff] %v13425_v49  ;;  %2986 = vst.msk [vmem:[#allocation2 + $0x110] sm:$0xff] %vm594_vm0, %v13425_v49 }
 0x313   : > { %17591 = vst [vmem:[#allocation71_spill] sm:$0xff] %v13428_v39  ;;  %2985 = vst.msk [vmem:[#allocation2 + $0x108] sm:$0xff] %vm594_vm0, %v13428_v39  ;;  %10103 = vmatpush1.bf16.msra.mxu1 %v10102_v28 }
 0x314   : > { %10104 = vmatprep.subr.bf16.mxu1 %v17307_v23 }
 0x316   : > { %v9959_v56 = vpop.f32.mrb[16].mxu0 }
 0x317   : > { %v2770_v1 = vadd.f32 %v9959_v56, %v13285_v17  ;;  %v2764_v62 = vpop.f32.mrb[17].mxu0  ;;  %10106 = vmatpush1.bf16.msra.mxu1 %v10105_v0  ;;  %v10114_v56 = vpack.c.bf16 %v4426_v4, %v4425_v63  ;;  %v4434_v4 = vld [vmem:[%s17195_s4 + $0x88] sm:$0xff] }
 0x318   : > { %v2765_v25 = vadd.f32 %v13285_v17, %v2764_v62  ;;  %10107 = vmatprep.subr.bf16.mxu1 %v17307_v23 }
 0x319   : > { %vm2860_vm12 = vcmp.ge.f32.partialorder %v2770_v1, 0.0  ;;  %v2892_v55 = vmul.f32 0.1, %v2770_v1 }
 0x31a   : > { %vm2859_vm13 = vcmp.ge.f32.partialorder %v2765_v25, 0.0  ;;  %v2891_v58 = vmul.f32 0.1, %v2765_v25 }
 0x31b   : > { %v2924_v46 = vsel %vm2860_vm12, %v2770_v1, %v2892_v55  ;;  %v4427_v1 = vld [vmem:[%s17195_s4 + $0x50] sm:$0xff] }
 0x31c   : > { %v13452_v60 = vadd.f32 %v2924_v46, %v17566_v37  ;;  %v2923_v34 = vsel %vm2859_vm13, %v2765_v25, %v2891_v58  ;;  %v10108_v37 = vpack.c.bf16 %v4422_v40, %v4421_v61  ;;  %v4430_v58 = vld [vmem:[%s17195_s4 + $0x68] sm:$0xff] }
 0x31d   : > { %v13455_v24 = vadd.f32 %v2923_v34, %v17565_v13  ;;  %v4423_v13 = vld [vmem:[%s17195_s4 + $0x30] sm:$0xff]  ;;  %v10120_v34 = vpack.c.bf16 %v4430_v58, %v4429_v42 }
 0x31e   : > { %17592 = vst [vmem:[#allocation51_spill] sm:$0xff] %v13452_v60  ;;  %2988 = vst.msk [vmem:[#allocation2 + $0x130] sm:$0xff] %vm594_vm0, %v13452_v60  ;;  %10109 = vmatpush1.bf16.msra.mxu1 %v10108_v37  ;;  %v10111_v30 = vpack.c.bf16 %v4424_v20, %v4423_v13 }
 0x31f   : > { %17593 = vst [vmem:[#allocation52_spill] sm:$0xff] %v13455_v24  ;;  %2987 = vst.msk [vmem:[#allocation2 + $0x128] sm:$0xff] %vm594_vm0, %v13455_v24  ;;  %10110 = vmatprep.subr.bf16.mxu1 %v17307_v23 }
 0x322   : > { %v9962_v27 = vpop.f32.mrb[0].mxu1  ;;  %10112 = vmatpush1.bf16.msra.mxu1 %v10111_v30 }
 0x323   : > { %v2780_v15 = vadd.f32 %v9962_v27, %v13285_v17  ;;  %v2774_v43 = vpop.f32.mrb[1].mxu1  ;;  %10113 = vmatprep.subr.bf16.mxu1 %v17307_v23 }
 0x324   : > { %v2775_v14 = vadd.f32 %v13285_v17, %v2774_v43 }
 0x325   : > { %vm2862_vm14 = vcmp.ge.f32.partialorder %v2780_v15, 0.0  ;;  %v2894_v38 = vmul.f32 0.1, %v2780_v15 }
 0x326   : > { %vm2861_vm15 = vcmp.ge.f32.partialorder %v2775_v14, 0.0  ;;  %v2893_v2 = vmul.f32 0.1, %v2775_v14  ;;  %10115 = vmatpush1.bf16.msra.mxu1 %v10114_v56 }
 0x327   : > { %v2926_v31 = vsel %vm2862_vm14, %v2780_v15, %v2894_v38  ;;  %10116 = vmatprep.subr.bf16.mxu1 %v17307_v23  ;;  %v4432_v38 = vld [vmem:[%s17195_s4 + $0x78] sm:$0xff] }
 0x328   : > { %v13485_v32 = vadd.f32 %v2926_v31, %v17568_v3  ;;  %v2925_v53 = vsel %vm2861_vm15, %v2775_v14, %v2893_v2  ;;  %v4428_v3 = vld [vmem:[%s17195_s4 + $0x58] sm:$0xff]  ;;  %v4431_v14 = vld [vmem:[%s17195_s4 + $0x70] sm:$0xff] }
 0x329   : > { %v13488_v28 = vadd.f32 %v2925_v53, %v17567_v11  ;;  %v10117_v62 = vpack.c.bf16 %v4428_v3, %v4427_v1 }
 0x32a   : > { %17594 = vst [vmem:[#allocation74_spill] sm:$0xff] %v13485_v32  ;;  %2990 = vst.msk [vmem:[#allocation2 + $0x150] sm:$0xff] %vm594_vm0, %v13485_v32 }
 0x32b   : > { %17595 = vst [vmem:[#allocation23_spill] sm:$0xff] %v13488_v28  ;;  %2989 = vst.msk [vmem:[#allocation2 + $0x148] sm:$0xff] %vm594_vm0, %v13488_v28  ;;  %10118 = vmatpush1.bf16.msra.mxu1 %v10117_v62 }
 0x32c   : > { %10119 = vmatprep.subr.bf16.mxu1 %v17307_v23 }
 0x32e   : > { %v9965_v11 = vpop.f32.mrb[2].mxu1 }
 0x32f   : > { %v2790_v25 = vadd.f32 %v9965_v11, %v13285_v17  ;;  %v2784_v55 = vpop.f32.mrb[3].mxu1  ;;  %10121 = vmatpush1.bf16.msra.mxu1 %v10120_v34 }
 0x330   : > { %v2785_v35 = vadd.f32 %v13285_v17, %v2784_v55  ;;  %10122 = vmatprep.subr.bf16.mxu1 %v17307_v23  ;;  %v3228_v55 = vld [vmem:[#allocation2 + $0x50] sm:$0xff] }
 0x331   : > { %vm2864_vm1 = vcmp.ge.f32.partialorder %v2790_v25, 0.0  ;;  %v2896_v0 = vmul.f32 0.1, %v2790_v25  ;;  %v3244_v46 = vld [vmem:[#allocation2 + $0x150] sm:$0xff] }
 0x332   : > { %vm2863_vm2 = vcmp.ge.f32.partialorder %v2785_v35, 0.0  ;;  %v2895_v61 = vmul.f32 0.1, %v2785_v35  ;;  %v3243_v40 = vld [vmem:[#allocation2 + $0x148] sm:$0xff]  ;;  %v3182_v31 = vld [vmem:[#allocation2 + $0x151] sm:$0xff] }
 0x333   : > { %v3211_v37 = vld [vmem:[#allocation2 + $0x147] sm:$0xff]  ;;  %v3212_v13 = vld [vmem:[#allocation2 + $0x14f] sm:$0xff]  ;;  %v2928_v20 = vsel %vm2864_vm1, %v2790_v25, %v2896_v0  ;;  %v10295_v27 = vpack.i.bf16 %v3244_v46, %v3243_v40 }
 0x334   : > { %v10290_v30 = vpack.i.bf16 %v3212_v13, %v3211_v37  ;;  %v13511_v15 = vadd.f32 %v2928_v20, %v17570_v6  ;;  %v2927_v43 = vsel %vm2863_vm2, %v2785_v35, %v2895_v61  ;;  %v10123_v6 = vpack.c.bf16 %v4432_v38, %v4431_v14  ;;  %v3181_v63 = vld [vmem:[#allocation2 + $0x149] sm:$0xff] }
 0x335   : > { %v13521_v2 = vadd.f32 %v2927_v43, %v17569_v41  ;;  %10296 = vrot.lane.b32.xlu0 %v10295_v27, %s11526_s30  ;;  %v4433_v41 = vld [vmem:[%s17195_s4 + $0x80] sm:$0xff]  ;;  %v10310_v62 = vpack.i.bf16 %v3182_v31, %v3181_v63  ;;  %v3227_v25 = vld [vmem:[#allocation2 + $0x48] sm:$0xff]  ;;  %v17598_v35 = vmov 0.0   ;;  %v13565_v43 = vld [vmem:[#allocation2 + $0x51] sm:$0xff]  ;;  %vm4219_vm2 = vcmask 261120  }
 0x336   : > { %17596 = vst [vmem:[#allocation24_spill] sm:$0xff] %v13511_v15  ;;  %10291 = vrot.lane.b32.xlu1 %v10290_v30, %s11527_s26  ;;  %2992 = vst.msk [vmem:[#allocation2 + $0x170] sm:$0xff] %vm594_vm0, %v13511_v15  ;;  %10124 = vmatpush1.bf16.msra.mxu1 %v10123_v6  ;;  %v10126_v53 = vpack.c.bf16 %v4434_v4, %v4433_v41  ;;  %v10330_v46 = vpack.i.bf16 %v3228_v55, %v3227_v25  ;;  %v13546_v40 = vld [vmem:[#allocation2 + $0x47] sm:$0xff]  ;;  %v13548_v37 = vld [vmem:[#allocation2 + $0x4f] sm:$0xff] }
 0x337   : > { %17597 = vst [vmem:[#allocation53_spill] sm:$0xff] %v13521_v2  ;;  %2991 = vst.msk [vmem:[#allocation2 + $0x168] sm:$0xff] %vm594_vm0, %v13521_v2  ;;  %10125 = vmatprep.subr.bf16.mxu1 %v17307_v23  ;;  %v10345_v41 = vpack.i.bf16 %v13565_v43, %v13370_v54  ;;  %v3230_v55 = vld [vmem:[#allocation2 + $0x70] sm:$0xff] }
 0x339   : > { %10306 = vrot.lane.b32.xlu0 %v10295_v27, %s11522_s18 }
 0x33a   : > { %10301 = vrot.lane.b32.xlu1 %v10290_v30, %s11523_s19  ;;  %v9968_v56 = vpop.f32.mrb[4].mxu1  ;;  %10127 = vmatpush1.bf16.msra.mxu1 %v10126_v53 }
 0x33b   : > { %v2800_v1 = vadd.f32 %v9968_v56, %v13285_v17  ;;  %v2794_v3 = vpop.f32.mrb[5].mxu1  ;;  %9988 = vmatprep.subr.mxu1 %v17598_v35 }
 0x33c   : > { %v2795_v11 = vadd.f32 %v13285_v17, %v2794_v3  ;;  %v13583_v3 = vld [vmem:[#allocation2 + $0x67] sm:$0xff] }
 0x33d   : > { %vm2866_vm3 = vcmp.ge.f32.partialorder %v2800_v1, 0.0  ;;  %v2898_v42 = vmul.f32 0.1, %v2800_v1  ;;  %10316 = vrot.lane.b32.xlu0 %v10295_v27, %s11521_s24 }
 0x33e   : > { %10311 = vrot.lane.b32.xlu1 %v10310_v62, %s11524_s23  ;;  %vm2865_vm4 = vcmp.ge.f32.partialorder %v2795_v11, 0.0  ;;  %v2897_v58 = vmul.f32 0.1, %v2795_v11  ;;  %v3213_v14 = vld [vmem:[#allocation2 + $0x167] sm:$0xff]  ;;  %v3214_v38 = vld [vmem:[#allocation2 + $0x16f] sm:$0xff] }
 0x33f   : > { %v2930_v0 = vsel %vm2866_vm3, %v2800_v1, %v2898_v42  ;;  %v10360_v4 = vpack.i.bf16 %v3214_v38, %v3213_v14  ;;  %v3245_v54 = vld [vmem:[#allocation2 + $0x168] sm:$0xff]  ;;  %vm4252_vm3 = vcmask 392192  }
 0x340   : > { %v13544_v34 = vadd.f32 %v2930_v0, %v17572_v26  ;;  %v2929_v61 = vsel %vm2865_vm4, %v2795_v11, %v2897_v58  ;;  %v10325_v26 = vpack.i.bf16 %v13548_v37, %v13546_v40  ;;  %v3229_v0 = vld [vmem:[#allocation2 + $0x68] sm:$0xff]  ;;  %vm4285_vm4 = vcmask 523264  }
 0x341   : > { %v13551_v13 = vadd.f32 %v2929_v61, %v17571_v48  ;;  %10331 = vrot.lane.b32.xlu0 %v10330_v46, %s11526_s30  ;;  %v13599_v61 = vld [vmem:[#allocation2 + $0x71] sm:$0xff] }
 0x342   : > { %17599 = vst [vmem:[#allocation54_spill] sm:$0xff] %v13544_v34  ;;  %10321 = vrot.lane.b32.xlu1 %v10310_v62, %s11520_s0  ;;  %2994 = vst.msk [vmem:[#allocation2 + $0x190] sm:$0xff] %vm594_vm0, %v13544_v34  ;;  %v3246_v62 = vld [vmem:[#allocation2 + $0x170] sm:$0xff] }
 0x343   : > { %17600 = vst [vmem:[#allocation25_spill] sm:$0xff] %v13551_v13  ;;  %2993 = vst.msk [vmem:[#allocation2 + $0x188] sm:$0xff] %vm594_vm0, %v13551_v13 }
 0x345   : > { %10341 = vrot.lane.b32.xlu0 %v10330_v46, %s11522_s18 }
 0x346   : > { %10326 = vrot.lane.b32.xlu1 %v10325_v26, %s11527_s26  ;;  %v9971_v20 = vpop.f32.mrb[6].mxu1 }
 0x347   : > { %v2810_v48 = vadd.f32 %v9971_v20, %v13285_v17  ;;  %v2804_v27 = vpop.f32.mrb[7].mxu1 }
 0x348   : > { %v2805_v30 = vadd.f32 %v13285_v17, %v2804_v27  ;;  %v10385_v27 = vpack.i.bf16 %v3230_v55, %v3229_v0  ;;  %v3202_v0 = vld [vmem:[#allocation2 + $0xaf] sm:$0xff] }
 0x349   : > { %vm2868_vm5 = vcmp.ge.f32.partialorder %v2810_v48, 0.0  ;;  %v2900_v6 = vmul.f32 0.1, %v2810_v48  ;;  %10351 = vrot.lane.b32.xlu0 %v10330_v46, %s11521_s24  ;;  %v13597_v46 = vld [vmem:[#allocation2 + $0x69] sm:$0xff] }
 0x34a   : > { %10336 = vrot.lane.b32.xlu1 %v10325_v26, %s11523_s19  ;;  %vm2867_vm11 = vcmp.ge.f32.partialorder %v2805_v30, 0.0  ;;  %v2899_v31 = vmul.f32 0.1, %v2805_v30  ;;  %v3215_v39 = vld [vmem:[#allocation2 + $0x187] sm:$0xff] }
 0x34b   : > { %v2932_v63 = vsel %vm2868_vm5, %v2810_v48, %v2900_v6  ;;  %vm4318_vm5 = vcmask 654336   ;;  %v3247_v47 = vld [vmem:[#allocation2 + $0x188] sm:$0xff] }
 0x34c   : > { %v13572_v53 = vadd.f32 %v2932_v63, %v17574_v33  ;;  %v2931_v56 = vsel %vm2867_vm11, %v2805_v30, %v2899_v31  ;;  %v13585_v33 = vld [vmem:[#allocation2 + $0x6f] sm:$0xff]  ;;  %v10400_v30 = vpack.i.bf16 %v13599_v61, %v13597_v46  ;;  %vm4351_vm11 = vcmask 785408  }
 0x34d   : > { %v13575_v1 = vadd.f32 %v2931_v56, %v17573_v44  ;;  %10361 = vrot.lane.b32.xlu0 %v10360_v4, %s11527_s26  ;;  %v13589_v44 = vpack.i.bf16 %v3246_v62, %v3245_v54  ;;  %v10380_v11 = vpack.i.bf16 %v13585_v33, %v13583_v3  ;;  %v3231_v63 = vld [vmem:[#allocation2 + $0x88] sm:$0xff] }
 0x34e   : > { %17601 = vst [vmem:[#allocation26_spill] sm:$0xff] %v13572_v53  ;;  %10346 = vrot.lane.b32.xlu1 %v10345_v41, %s11524_s23  ;;  %2996 = vst.msk [vmem:[#allocation2 + $0x1b0] sm:$0xff] %vm594_vm0, %v13572_v53  ;;  %v13623_v56 = vld [vmem:[#allocation2 + $0x8f] sm:$0xff] }
 0x34f   : > { %17602 = vst [vmem:[#allocation55_spill] sm:$0xff] %v13575_v1  ;;  %2995 = vst.msk [vmem:[#allocation2 + $0x1a8] sm:$0xff] %vm594_vm0, %v13575_v1  ;;  %v3180_v53 = vld [vmem:[#allocation2 + $0x131] sm:$0xff] }
 0x351   : > { %10371 = vrot.lane.b32.xlu0 %v10360_v4, %s11523_s19  ;;  %v13621_v4 = vld [vmem:[#allocation2 + $0x87] sm:$0xff] }
 0x352   : > { %10356 = vrot.lane.b32.xlu1 %v10345_v41, %s11520_s0  ;;  %v3232_v41 = vld [vmem:[#allocation2 + $0x90] sm:$0xff] }
 0x355   : > { %10381 = vrot.lane.b32.xlu0 %v10380_v11, %s11527_s26 }
 0x356   : > { %10366 = vrot.lane.b32.xlu1 %v13589_v44, %s11526_s30  ;;  %v9974_v25 = vpop.f32.mrb[8].mxu1  ;;  %v13819_v50 = vld [vmem:[#allocation2 + $0x1a9] sm:$0xff] }
 0x357   : > { %v2820_v42 = vadd.f32 %v9974_v25, %v13285_v17  ;;  %v2814_v58 = vpop.f32.mrb[9].mxu1  ;;  %v13632_v25 = vld [vmem:[#allocation2 + $0x91] sm:$0xff] }
 0x358   : > { %v2815_v26 = vadd.f32 %v13285_v17, %v2814_v58  ;;  %v3201_v58 = vld [vmem:[#allocation2 + $0xa7] sm:$0xff] }
 0x359   : > { %10391 = vrot.lane.b32.xlu0 %v10380_v11, %s11523_s19  ;;  %vm2870_vm6 = vcmp.ge.f32.partialorder %v2820_v42, 0.0  ;;  %v2902_v20 = vmul.f32 0.1, %v2820_v42 }
 0x35a   : > { %10376 = vrot.lane.b32.xlu1 %v13589_v44, %s11522_s18  ;;  %vm2869_vm12 = vcmp.ge.f32.partialorder %v2815_v26, 0.0  ;;  %v2901_v48 = vmul.f32 0.1, %v2815_v26 }
 0x35b   : > { %v2934_v14 = vsel %vm2870_vm6, %v2820_v42, %v2902_v20  ;;  %v13635_v42 = vld [vmem:[#allocation2 + $0x89] sm:$0xff]  ;;  %vm4384_vm6 = vcmask 916480  }
 0x35c   : > { %v13608_v38 = vadd.f32 %v2934_v14, %v17575_v36  ;;  %v2933_v6 = vsel %vm2869_vm12, %v2815_v26, %v2901_v48  ;;  %v10420_v36 = vpack.i.bf16 %v3232_v41, %v3231_v63  ;;  %v3234_v41 = vld [vmem:[#allocation2 + $0xb0] sm:$0xff]  ;;  %vm11528_vm12 = vmmov 0  }
 0x35d   : > { %10401 = vrot.lane.b32.xlu0 %v10400_v30, %s11524_s23  ;;  %v13613_v31 = vadd.f32 %v2933_v6, %v17576_v16  ;;  %v10415_v16 = vpack.i.bf16 %v13623_v56, %v13621_v4 }
 0x35e   : > { %17603 = vst [vmem:[#allocation56_spill] sm:$0xff] %v13608_v38  ;;  %10386 = vrot.lane.b32.xlu1 %v10385_v27, %s11526_s30  ;;  %2998 = vst.msk [vmem:[#allocation2 + $0x1d0] sm:$0xff] %vm594_vm0, %v13608_v38 }
 0x35f   : > { %17604 = vst [vmem:[#allocation27_spill] sm:$0xff] %v13613_v31  ;;  %2997 = vst.msk [vmem:[#allocation2 + $0x1c8] sm:$0xff] %vm594_vm0, %v13613_v31  ;;  %v3241_v31 = vld [vmem:[#allocation2 + $0x128] sm:$0xff] }
 0x361   : > { %10411 = vrot.lane.b32.xlu0 %v10400_v30, %s11520_s0  ;;  %v10450_v30 = vpack.i.bf16 %v3202_v0, %v3201_v58  ;;  %v3235_v0 = vld [vmem:[#allocation2 + $0xc8] sm:$0xff] }
 0x362   : > { %10396 = vrot.lane.b32.xlu1 %v10385_v27, %s11522_s18 }
 0x365   : > { %10421 = vrot.lane.b32.xlu0 %v10420_v36, %s11526_s30 }
 0x366   : > { %10406 = vrot.lane.b32.xlu1 %v10385_v27, %s11521_s24  ;;  %v10435_v27 = vpack.i.bf16 %v13632_v25, %v13635_v42 }
 0x369   : > { %10431 = vrot.lane.b32.xlu0 %v10420_v36, %s11522_s18 }
 0x36a   : > { %10416 = vrot.lane.b32.xlu1 %v10415_v16, %s11527_s26  ;;  %v9977_v54 = vpop.f32.mrb[10].mxu1 }
 0x36b   : > { %v2830_v62 = vadd.f32 %v9977_v54, %v13285_v17  ;;  %v2824_v11 = vpop.f32.mrb[11].mxu1 }
 0x36c   : > { %v2825_v55 = vadd.f32 %v13285_v17, %v2824_v11 }
 0x36d   : > { %vm2872_vm13 = vcmp.ge.f32.partialorder %v2830_v62, 0.0  ;;  %v2904_v26 = vmul.f32 0.1, %v2830_v62  ;;  %10441 = vrot.lane.b32.xlu0 %v10420_v36, %s11521_s24  ;;  %v3233_v36 = vld [vmem:[#allocation2 + $0xa8] sm:$0xff] }
 0x36e   : > { %10426 = vrot.lane.b32.xlu1 %v10415_v16, %s11523_s19  ;;  %vm2871_vm14 = vcmp.ge.f32.partialorder %v2825_v55, 0.0  ;;  %v2903_v20 = vmul.f32 0.1, %v2825_v55  ;;  %v13653_v16 = vld [vmem:[#allocation2 + $0xa9] sm:$0xff] }
 0x36f   : > { %v2936_v48 = vsel %vm2872_vm13, %v2830_v62, %v2904_v26  ;;  %v3236_v26 = vld [vmem:[#allocation2 + $0xd0] sm:$0xff]  ;;  %vm6734_vm13 = vcmask 1043456  }
 0x370   : > { %v13642_v14 = vadd.f32 %v2936_v48, %v17578_v10  ;;  %v2935_v6 = vsel %vm2871_vm14, %v2825_v55, %v2903_v20  ;;  %v13655_v10 = vld [vmem:[#allocation2 + $0xb1] sm:$0xff] }
 0x371   : > { %v13645_v63 = vadd.f32 %v2935_v6, %v17577_v8  ;;  %10451 = vrot.lane.b32.xlu0 %v10450_v30, %s11527_s26  ;;  %v10455_v8 = vpack.i.bf16 %v3234_v41, %v3233_v36  ;;  %v10470_v54 = vpack.i.bf16 %v13655_v10, %v13653_v16  ;;  %v3203_v36 = vld [vmem:[#allocation2 + $0xc7] sm:$0xff] }
 0x372   : > { %17605 = vst [vmem:[#allocation28_spill] sm:$0xff] %v13642_v14  ;;  %10436 = vrot.lane.b32.xlu1 %v10435_v27, %s11524_s23  ;;  %3000 = vst.msk [vmem:[#allocation2 + $0x1f0] sm:$0xff] %vm594_vm0, %v13642_v14  ;;  %v3003_v14 = vld [vmem:[#allocation2 + $0x7] sm:$0xff] }
 0x373   : > { %17606 = vst [vmem:[#allocation57_spill] sm:$0xff] %v13645_v63  ;;  %2999 = vst.msk [vmem:[#allocation2 + $0x1e8] sm:$0xff] %vm594_vm0, %v13645_v63 }
 0x375   : > { %10461 = vrot.lane.b32.xlu0 %v10450_v30, %s11523_s19  ;;  %v10490_v30 = vpack.i.bf16 %v3236_v26, %v3235_v0  ;;  %v3238_v0 = vld [vmem:[#allocation2 + $0xf0] sm:$0xff]  ;;  %v3237_v26 = vld [vmem:[#allocation2 + $0xe8] sm:$0xff] }
 0x376   : > { %10446 = vrot.lane.b32.xlu1 %v10435_v27, %s11520_s0 }
 0x379   : > { %10471 = vrot.lane.b32.xlu0 %v10470_v54, %s11524_s23 }
 0x37a   : > { %10456 = vrot.lane.b32.xlu1 %v10455_v8, %s11526_s30  ;;  %v9980_v62 = vpop.f32.mrb[12].mxu1 }
 0x37b   : > { %v2840_v11 = vadd.f32 %v9980_v62, %v13285_v17  ;;  %v2834_v55 = vpop.f32.mrb[13].mxu1  ;;  %v3204_v62 = vld [vmem:[#allocation2 + $0xcf] sm:$0xff] }
 0x37c   : > { %v2835_v58 = vadd.f32 %v13285_v17, %v2834_v55  ;;  %v3206_v55 = vld [vmem:[#allocation2 + $0xef] sm:$0xff] }
 0x37d   : > { %vm2874_vm15 = vcmp.ge.f32.partialorder %v2840_v11, 0.0  ;;  %v2906_v20 = vmul.f32 0.1, %v2840_v11  ;;  %10481 = vrot.lane.b32.xlu0 %v10470_v54, %s11520_s0  ;;  %v10485_v54 = vpack.i.bf16 %v3204_v62, %v3203_v36 }
 0x37e   : > { %10466 = vrot.lane.b32.xlu1 %v10455_v8, %s11522_s18  ;;  %vm2873_vm1 = vcmp.ge.f32.partialorder %v2835_v58, 0.0  ;;  %v2905_v48 = vmul.f32 0.1, %v2835_v58 }
 0x37f   : > { %v2938_v27 = vsel %vm2874_vm15, %v2840_v11, %v2906_v20  ;;  %v13681_v11 = vld [vmem:[#allocation2 + $0xc9] sm:$0xff] }
 0x380   : > { %v13668_v6 = vadd.f32 %v2938_v27, %v17581_v52  ;;  %v2937_v41 = vsel %vm2873_vm1, %v2835_v58, %v2905_v48  ;;  %v3174_v52 = vld [vmem:[#allocation2 + $0xd1] sm:$0xff]  ;;  %v3175_v20 = vld [vmem:[#allocation2 + $0xe9] sm:$0xff]  ;;  %v10257_v27 = vpop.permute.xlu0 %10256 }
 0x381   : > { %v13671_v17 = vadd.f32 %v2937_v41, %v17580_v59  ;;  %10491 = vrot.lane.b32.xlu0 %v10490_v30, %s11526_s30  ;;  %v3205_v59 = vld [vmem:[#allocation2 + $0xe7] sm:$0xff]  ;;  %v3176_v48 = vld [vmem:[#allocation2 + $0xf1] sm:$0xff]  ;;  %v10525_v41 = vpack.i.bf16 %v3238_v0, %v3237_v26  ;;  %v10259_v1 = vunpack.i.h.bf16 %v10257_v27 }
 0x382   : > { %17607 = vst [vmem:[#allocation58_spill] sm:$0xff] %v13668_v6  ;;  %10476 = vrot.lane.b32.xlu1 %v10455_v8, %s11521_s24  ;;  %3002 = vst.msk [vmem:[#allocation2 + $0x210] sm:$0xff] %vm594_vm0, %v13668_v6  ;;  %v10505_v8 = vpack.i.bf16 %v3174_v52, %v13681_v11  ;;  %v10520_v58 = vpack.i.bf16 %v3206_v55, %v3205_v59  ;;  %v10540_v36 = vpack.i.bf16 %v3176_v48, %v3175_v20  ;;  %v3240_v52 = vld [vmem:[#allocation2 + $0x110] sm:$0xff]  ;;  %v3207_v55 = vld [vmem:[#allocation2 + $0x107] sm:$0xff] }
 0x383   : > { %17608 = vst [vmem:[#allocation29_spill] sm:$0xff] %v13671_v17  ;;  %3001 = vst.msk [vmem:[#allocation2 + $0x208] sm:$0xff] %vm594_vm0, %v13671_v17  ;;  %v13708_v48 = vld [vmem:[#allocation2 + $0x109] sm:$0xff]  ;;  %v10258_v17 = vunpack.i.l.bf16 %v10257_v27 }
 0x384   : > { %v13692_v62 = vpop.permute.xlu0 %10266 }
 0x385   : > { %10501 = vrot.lane.b32.xlu0 %v10490_v30, %s11522_s18  ;;  %v10268_v27 = vunpack.i.l.bf16 %v13692_v62 }
 0x386   : > { %10486 = vrot.lane.b32.xlu1 %v10485_v54, %s11527_s26 }
 0x389   : > { %10511 = vrot.lane.b32.xlu0 %v10490_v30, %s11521_s24  ;;  %v10262_v30 = vpop.permute.xlu1 %10261 }
 0x38a   : > { %10496 = vrot.lane.b32.xlu1 %v10485_v54, %s11523_s19  ;;  %v3239_v54 = vld [vmem:[#allocation2 + $0x108] sm:$0xff]  ;;  %v10264_v32 = vunpack.i.h.bf16 %v10262_v30 }
 0x38b   : > { %v10560_v59 = vpack.i.bf16 %v3240_v52, %v3239_v54  ;;  %v3209_v54 = vld [vmem:[#allocation2 + $0x127] sm:$0xff]  ;;  %v3210_v52 = vld [vmem:[#allocation2 + $0x12f] sm:$0xff] }
 0x38c   : > { %v10590_v6 = vpack.i.bf16 %v3210_v52, %v3209_v54  ;;  %v3004_v54 = vld [vmem:[#allocation2 + $0xf] sm:$0xff]  ;;  %v4187_v52 = vsel %vm594_vm0, %v3003_v14, %v10258_v17 }
 0x38d   : > { %10521 = vrot.lane.b32.xlu0 %v10520_v58, %s11527_s26  ;;  %v13696_v23 = vpop.permute.xlu1 %10271  ;;  %v4188_v28 = vsel %vm594_vm0, %v3004_v54, %v10259_v1  ;;  %v3184_v1 = vld [vmem:[#allocation2 + $0x171] sm:$0xff] }
 0x38e   : > { %10506 = vrot.lane.b32.xlu1 %v10505_v8, %s11524_s23 }
 0x391   : > { %10531 = vrot.lane.b32.xlu0 %v10520_v58, %s11523_s19  ;;  %v13698_v58 = vpop.permute.xlu0 %10276  ;;  %v13704_v26 = vpop.permute.xlu1 %10281 }
 0x392   : > { %10516 = vrot.lane.b32.xlu1 %v10505_v8, %s11520_s0  ;;  %v3208_v8 = vld [vmem:[#allocation2 + $0x10f] sm:$0xff]  ;;  %v10278_v54 = vunpack.i.l.bf16 %v13698_v58 }
 0x393   : > { %v10555_v0 = vpack.i.bf16 %v3208_v8, %v3207_v55 }
 0x395   : > { %10541 = vrot.lane.b32.xlu0 %v10540_v36, %s11524_s23  ;;  %v13706_v20 = vpop.permute.xlu0 %10286 }
 0x396   : > { %10526 = vrot.lane.b32.xlu1 %v10525_v41, %s11526_s30 }
 0x399   : > { %10551 = vrot.lane.b32.xlu0 %v10540_v36, %s11520_s0  ;;  %v3178_v36 = vld [vmem:[#allocation2 + $0x111] sm:$0xff] }
 0x39a   : > { %10536 = vrot.lane.b32.xlu1 %v10525_v41, %s11522_s18  ;;  %v10575_v8 = vpack.i.bf16 %v3178_v36, %v13708_v48  ;;  %v10263_v36 = vunpack.i.l.bf16 %v10262_v30  ;;  %v3183_v30 = vld [vmem:[#allocation2 + $0x169] sm:$0xff] }
 0x39c   : > { %v4220_v14 = vsel %vm4219_vm2, %v4187_v52, %v10263_v36  ;;  %v10279_v52 = vunpack.i.h.bf16 %v13698_v58 }
 0x39d   : > { %10561 = vrot.lane.b32.xlu0 %v10560_v59, %s11526_s30 }
 0x39e   : > { %10546 = vrot.lane.b32.xlu1 %v10525_v41, %s11521_s24 }
 0x3a1   : > { %10571 = vrot.lane.b32.xlu0 %v10560_v59, %s11522_s18 }
 0x3a2   : > { %10556 = vrot.lane.b32.xlu1 %v10555_v0, %s11527_s26 }
 0x3a5   : > { %10581 = vrot.lane.b32.xlu0 %v10560_v59, %s11521_s24  ;;  %v13723_v59 = vld [vmem:[#allocation2 + $0x129] sm:$0xff] }
 0x3a6   : > { %10566 = vrot.lane.b32.xlu1 %v10555_v0, %s11523_s19  ;;  %v3242_v0 = vld [vmem:[#allocation2 + $0x130] sm:$0xff]  ;;  %v10610_v2 = vpack.i.bf16 %v3180_v53, %v13723_v59  ;;  %v4221_v53 = vsel %vm4219_vm2, %v4188_v28, %v10264_v32  ;;  %v10625_v28 = vpack.i.bf16 %v3184_v1, %v3183_v30 }
 0x3a7   : > { %v13714_v55 = vpop.permute.xlu0 %10296  ;;  %v10595_v15 = vpack.i.bf16 %v3242_v0, %v3241_v31  ;;  %v10273_v31 = vunpack.i.l.bf16 %v13696_v23  ;;  %v4253_v0 = vsel %vm4252_vm3, %v4220_v14, %v10268_v27  ;;  %v3248_v27 = vld [vmem:[#allocation2 + $0x190] sm:$0xff] }
 0x3a8   : > { %v13712_v41 = vpop.permute.xlu1 %10291  ;;  %v10635_v1 = vpack.i.bf16 %v3248_v27, %v3247_v47 }
 0x3a9   : > { %10591 = vrot.lane.b32.xlu0 %v10590_v6, %s11527_s26  ;;  %v4286_v14 = vsel %vm4285_vm4, %v4253_v0, %v10273_v31 }
 0x3aa   : > { %10576 = vrot.lane.b32.xlu1 %v10575_v8, %s11524_s23 }
 0x3ab   : > { %v13721_v38 = vpop.permute.xlu0 %10306 }
 0x3ac   : > { %v13719_v63 = vpop.permute.xlu1 %10301 }
 0x3ad   : > { %10601 = vrot.lane.b32.xlu0 %v10590_v6, %s11523_s19  ;;  %v10269_v6 = vunpack.i.h.bf16 %v13692_v62  ;;  %v10274_v62 = vunpack.i.h.bf16 %v13696_v23  ;;  %v4319_v23 = vsel %vm4318_vm5, %v4286_v14, %v10278_v54 }
 0x3ae   : > { %10586 = vrot.lane.b32.xlu1 %v10575_v8, %s11520_s0 }
 0x3af   : > { %v13730_v13 = vpop.permute.xlu0 %10316  ;;  %v4254_v36 = vsel %vm4252_vm3, %v4221_v53, %v10269_v6 }
 0x3b0   : > { %v13728_v34 = vpop.permute.xlu1 %10311  ;;  %v4287_v6 = vsel %vm4285_vm4, %v4254_v36, %v10274_v62  ;;  %v3218_v62 = vld [vmem:[#allocation2 + $0x1af] sm:$0xff]  ;;  %v10288_v36 = vunpack.i.l.bf16 %v13706_v20 }
 0x3b1   : > { %10611 = vrot.lane.b32.xlu0 %v10610_v2, %s11524_s23  ;;  %v4320_v0 = vsel %vm4318_vm5, %v4287_v6, %v10279_v52  ;;  %v10284_v6 = vunpack.i.h.bf16 %v13704_v26 }
 0x3b2   : > { %10596 = vrot.lane.b32.xlu1 %v10595_v15, %s11526_s30 }
 0x3b3   : > { %v10332_v8 = vpop.permute.xlu0 %10331 }
 0x3b4   : > { %v13739_v17 = vpop.permute.xlu1 %10321  ;;  %v10333_v19 = vunpack.i.l.bf16 %v10332_v8  ;;  %v10334_v14 = vunpack.i.h.bf16 %v10332_v8  ;;  %v3217_v8 = vld [vmem:[#allocation2 + $0x1a7] sm:$0xff] }
 0x3b5   : > { %10621 = vrot.lane.b32.xlu0 %v10610_v2, %s11520_s0  ;;  %v3216_v2 = vld [vmem:[#allocation2 + $0x18f] sm:$0xff]  ;;  %v10665_v27 = vpack.i.bf16 %v3218_v62, %v3217_v8 }
 0x3b6   : > { %10606 = vrot.lane.b32.xlu1 %v10595_v15, %s11522_s18  ;;  %v10630_v31 = vpack.i.bf16 %v3216_v2, %v3215_v39 }
 0x3b7   : > { %v13750_v32 = vpop.permute.xlu0 %10341 }
 0x3b8   : > { %v10327_v60 = vpop.permute.xlu1 %10326 }
 0x3b9   : > { %v10329_v24 = vunpack.i.h.bf16 %v10327_v60  ;;  %v10328_v49 = vunpack.i.l.bf16 %v10327_v60  ;;  %10626 = vrot.lane.b32.xlu0 %v10625_v28, %s11524_s23 }
 0x3ba   : > { %10616 = vrot.lane.b32.xlu1 %v10595_v15, %s11521_s24 }
 0x3bb   : > { %v4352_v58 = vsel %vm4351_vm11, %v4319_v23, %v10328_v49  ;;  %v13758_v30 = vpop.permute.xlu0 %10351  ;;  %v4353_v54 = vsel %vm4351_vm11, %v4320_v0, %v10329_v24  ;;  %v13781_v24 = vld [vmem:[#allocation2 + $0x191] sm:$0xff]  ;;  %v3249_v23 = vld [vmem:[#allocation2 + $0x1a8] sm:$0xff]  ;;  %v10289_v0 = vunpack.i.h.bf16 %v13706_v20 }
 0x3bc   : > { %v10337_v53 = vpop.permute.xlu1 %10336  ;;  %v4385_v60 = vsel %vm4384_vm6, %v4352_v58, %v10333_v19  ;;  %v4386_v19 = vsel %vm4384_vm6, %v4353_v54, %v10334_v14  ;;  %v3250_v58 = vld [vmem:[#allocation2 + $0x1b0] sm:$0xff] }
 0x3bd   : > { %4603 = vmatmul.mubr.f32.vlgmr.msra.gmra.mrb[14].mxu1 %v4385_v60  ;;  %10636 = vrot.lane.b32.xlu0 %v10635_v1, %s11526_s30  ;;  %v10338_v2 = vunpack.i.l.bf16 %v10337_v53  ;;  %v11364_v60 = vld [vmem:[#allocation2 + $0x27] sm:$0xff]  ;;  %v13803_v8 = vpack.i.bf16 %v3250_v58, %v3249_v23  ;;  %v10339_v62 = vunpack.i.h.bf16 %v10337_v53  ;;  %v11365_v20 = vld [vmem:[#allocation2 + $0x2f] sm:$0xff] }
 0x3be   : > { %10631 = vrot.lane.b32.xlu1 %v10630_v31, %s11527_s26  ;;  %9674 = vmatprep.mubr.msk.f32.mxu1 %vm594_vm0, %v13565_v43  ;;  %v13783_v43 = vld [vmem:[#allocation2 + $0x189] sm:$0xff] }
 0x3bf   : > { %v13769_v15 = vpop.permute.xlu0 %10361 }
 0x3c0   : > { %v13767_v49 = vpop.permute.xlu1 %10346 }
 0x3c1   : > { %4608 = vmatmul.mubr.f32.gmra.mrb[16].mxu1 %v4386_v19  ;;  %10646 = vrot.lane.b32.xlu0 %v10625_v28, %s11520_s0  ;;  %v10660_v28 = vpack.i.bf16 %v13781_v24, %v13783_v43  ;;  %v10348_v45 = vunpack.i.l.bf16 %v13767_v49 }
 0x3c2   : > { %10641 = vrot.lane.b32.xlu1 %v13589_v44, %s11521_s24  ;;  %9675 = vmatprep.mubr.msk.f32.mxu1 %vm594_vm0, %v13597_v46  ;;  %v10283_v44 = vunpack.i.l.bf16 %v13704_v26  ;;  %v10343_v26 = vunpack.i.l.bf16 %v13750_v32 }
 0x3c3   : > { %v13779_v39 = vpop.permute.xlu0 %10371 }
 0x3c4   : > { %v13777_v47 = vpop.permute.xlu1 %10356 }
 0x3c5   : > { %10656 = vrot.lane.b32.xlu0 %v10635_v1, %s11522_s18 }
 0x3c6   : > { %10651 = vrot.lane.b32.xlu1 %v10630_v31, %s11523_s19  ;;  %v4189_v31 = vsel %vm594_vm0, %v11364_v60, %v10283_v44  ;;  %v4190_v44 = vsel %vm594_vm0, %v11365_v20, %v10284_v6  ;;  %v10349_v60 = vunpack.i.h.bf16 %v13767_v49  ;;  %v10344_v6 = vunpack.i.h.bf16 %v13750_v32 }
 0x3c7   : > { %v10382_v46 = vpop.permute.xlu0 %10381  ;;  %v4222_v54 = vsel %vm4219_vm2, %v4189_v31, %v10288_v36  ;;  %v4223_v36 = vsel %vm4219_vm2, %v4190_v44, %v10289_v0  ;;  %v10353_v49 = vunpack.i.l.bf16 %v13758_v30 }
 0x3c8   : > { %v13789_v52 = vpop.permute.xlu1 %10366  ;;  %v4255_v57 = vsel %vm4252_vm3, %v4222_v54, %v10338_v2  ;;  %v10383_v29 = vunpack.i.l.bf16 %v10382_v46  ;;  %v4256_v2 = vsel %vm4252_vm3, %v4223_v36, %v10339_v62  ;;  %v10384_v20 = vunpack.i.h.bf16 %v10382_v46  ;;  %v3252_v46 = vld [vmem:[#allocation2 + $0x1d0] sm:$0xff] }
 0x3c9   : > { %10666 = vrot.lane.b32.xlu0 %v10665_v27, %s11527_s26  ;;  %v4288_v53 = vsel %vm4285_vm4, %v4255_v57, %v10343_v26  ;;  %v4289_v32 = vsel %vm4285_vm4, %v4256_v2, %v10344_v6  ;;  %v3220_v36 = vld [vmem:[#allocation2 + $0x1cf] sm:$0xff] }
 0x3ca   : > { %10661 = vrot.lane.b32.xlu1 %v10660_v28, %s11524_s23  ;;  %v4321_v54 = vsel %vm4318_vm5, %v4288_v53, %v10348_v45  ;;  %v10354_v53 = vunpack.i.h.bf16 %v13758_v30 }
 0x3cb   : > { %v13801_v19 = vpop.permute.xlu0 %10391  ;;  %v4354_v57 = vsel %vm4351_vm11, %v4321_v54, %v10383_v29  ;;  %v4322_v29 = vsel %vm4318_vm5, %v4289_v32, %v10349_v60  ;;  %v10359_v54 = vunpack.i.h.bf16 %v13777_v47  ;;  %v4191_v60 = vsel %vm594_vm0, %v13546_v40, %v10353_v49 }
 0x3cc   : > { %v13799_v14 = vpop.permute.xlu1 %10376  ;;  %v4355_v2 = vsel %vm4351_vm11, %v4322_v29, %v10384_v20 }
 0x3cd   : > { %10676 = vrot.lane.b32.xlu0 %v10635_v1, %s11521_s24  ;;  %v13821_v1 = vld [vmem:[#allocation2 + $0x1b1] sm:$0xff] }
 0x3ce   : > { %10671 = vrot.lane.b32.xlu1 %v13803_v8, %s11526_s30  ;;  %v10695_v44 = vpack.i.bf16 %v13821_v1, %v13819_v50 }
 0x3cf   : > { %v13813_v58 = vpop.permute.xlu0 %10401 }
 0x3d0   : > { %v10387_v23 = vpop.permute.xlu1 %10386  ;;  %v10403_v49 = vunpack.i.l.bf16 %v13813_v58 }
 0x3d1   : > { %v10388_v31 = vunpack.i.l.bf16 %v10387_v23  ;;  %10686 = vrot.lane.b32.xlu0 %v10665_v27, %s11523_s19  ;;  %v10389_v0 = vunpack.i.h.bf16 %v10387_v23  ;;  %v3219_v27 = vld [vmem:[#allocation2 + $0x1c7] sm:$0xff] }
 0x3d2   : > { %10681 = vrot.lane.b32.xlu1 %v10660_v28, %s11520_s0  ;;  %v10358_v28 = vunpack.i.l.bf16 %v13777_v47  ;;  %v3251_v23 = vld [vmem:[#allocation2 + $0x1c8] sm:$0xff]  ;;  %v10700_v32 = vpack.i.bf16 %v3220_v36, %v3219_v27  ;;  %v4192_v47 = vsel %vm594_vm0, %v13548_v37, %v10354_v53 }
 0x3d3   : > { %v4387_v62 = vsel %vm4384_vm6, %v4354_v57, %v10388_v31  ;;  %v13829_v45 = vpop.permute.xlu0 %10411  ;;  %v10393_v31 = vunpack.i.l.bf16 %v13801_v19  ;;  %v10394_v57 = vunpack.i.h.bf16 %v13801_v19  ;;  %v13849_v51 = vpack.i.bf16 %v3252_v46, %v3251_v23 }
 0x3d4   : > { %v10397_v26 = vpop.permute.xlu1 %10396  ;;  %4613 = vmatmul.mubr.f32.gmra.mrb[18].mxu1 %v4387_v62  ;;  %v4224_v22 = vsel %vm4219_vm2, %v4191_v60, %v10358_v28  ;;  %v4225_v40 = vsel %vm4219_vm2, %v4192_v47, %v10359_v54  ;;  %v10404_v28 = vunpack.i.h.bf16 %v13813_v58  ;;  %v13877_v54 = vld [vmem:[#allocation2 + $0x1d1] sm:$0xff] }
 0x3d5   : > { %9676 = vmatprep.mubr.msk.f32.mxu1 %vm594_vm0, %v13599_v61  ;;  %10696 = vrot.lane.b32.xlu0 %v10695_v44, %s11524_s23  ;;  %v10398_v6 = vunpack.i.l.bf16 %v10397_v26  ;;  %v4388_v61 = vsel %vm4384_vm6, %v4355_v2, %v10389_v0  ;;  %v10399_v12 = vunpack.i.h.bf16 %v10397_v26  ;;  %v4257_v20 = vsel %vm4252_vm3, %v4224_v22, %v10393_v31 }
 0x3d6   : > { %10691 = vrot.lane.b32.xlu1 %v13803_v8, %s11522_s18  ;;  %v4258_v0 = vsel %vm4252_vm3, %v4225_v40, %v10394_v57 }
 0x3d7   : > { %v10422_v62 = vpop.permute.xlu0 %10421  ;;  %v4290_v19 = vsel %vm4285_vm4, %v4257_v20, %v10398_v6  ;;  %v4291_v37 = vsel %vm4285_vm4, %v4258_v0, %v10399_v12  ;;  %v3222_v6 = vld [vmem:[#allocation2 + $0x1ef] sm:$0xff]  ;;  %v10413_v20 = vunpack.i.l.bf16 %v13829_v45 }
 0x3d8   : > { %v10407_v30 = vpop.permute.xlu1 %10406  ;;  %4618 = vmatmul.mubr.f32.gmra.mrb[20].mxu1 %v4388_v61  ;;  %v10423_v29 = vunpack.i.l.bf16 %v10422_v62  ;;  %v4323_v27 = vsel %vm4318_vm5, %v4290_v19, %v10403_v49  ;;  %v4324_v2 = vsel %vm4318_vm5, %v4291_v37, %v10404_v28  ;;  %v10424_v61 = vunpack.i.h.bf16 %v10422_v62  ;;  %v3253_v49 = vld [vmem:[#allocation2 + $0x1e8] sm:$0xff] }
 0x3d9   : > { %9677 = vmatprep.mubr.msk.f32.mxu1 %vm594_vm0, %v13635_v42  ;;  %10706 = vrot.lane.b32.xlu0 %v13849_v51, %s11526_s30  ;;  %v10408_v36 = vunpack.i.l.bf16 %v10407_v30  ;;  %v10409_v60 = vunpack.i.h.bf16 %v10407_v30  ;;  %v3254_v30 = vld [vmem:[#allocation2 + $0x1f0] sm:$0xff] }
 0x3da   : > { %10701 = vrot.lane.b32.xlu1 %v10700_v32, %s11527_s26 }
 0x3db   : > { %v13864_v42 = vpop.permute.xlu0 %10431  ;;  %v4193_v57 = vsel %vm594_vm0, %v13583_v3, %v10408_v36  ;;  %v4194_v3 = vsel %vm594_vm0, %v13585_v33, %v10409_v60  ;;  %v13903_v36 = vpack.i.bf16 %v3254_v30, %v3253_v49  ;;  %v13918_v60 = vld [vmem:[#allocation2 + $0x1f1] sm:$0xff] }
 0x3dc   : > { %v10417_v26 = vpop.permute.xlu1 %10416  ;;  %v10433_v28 = vunpack.i.l.bf16 %v13864_v42 }
 0x3dd   : > { %v10419_v46 = vunpack.i.h.bf16 %v10417_v26  ;;  %v10418_v22 = vunpack.i.l.bf16 %v10417_v26  ;;  %10716 = vrot.lane.b32.xlu0 %v10695_v44, %s11520_s0  ;;  %v3221_v44 = vld [vmem:[#allocation2 + $0x1e7] sm:$0xff]  ;;  %v4226_v26 = vsel %vm4219_vm2, %v4193_v57, %v10413_v20 }
 0x3de   : > { %10711 = vrot.lane.b32.xlu1 %v13803_v8, %s11521_s24  ;;  %v13880_v8 = vld [vmem:[#allocation2 + $0x1c9] sm:$0xff] }
 0x3df   : > { %v4356_v23 = vsel %vm4351_vm11, %v4323_v27, %v10418_v22  ;;  %v13873_v31 = vpop.permute.xlu0 %10441  ;;  %v4357_v58 = vsel %vm4351_vm11, %v4324_v2, %v10419_v46  ;;  %v10730_v62 = vpack.i.bf16 %v13877_v54, %v13880_v8  ;;  %v10414_v22 = vunpack.i.h.bf16 %v13829_v45 }
 0x3e0   : > { %v10427_v53 = vpop.permute.xlu1 %10426  ;;  %v4389_v12 = vsel %vm4384_vm6, %v4356_v23, %v10423_v29  ;;  %v4390_v0 = vsel %vm4384_vm6, %v4357_v58, %v10424_v61  ;;  %v10434_v2 = vunpack.i.h.bf16 %v13864_v42  ;;  %v13916_v61 = vld [vmem:[#allocation2 + $0x1e9] sm:$0xff]  ;;  %v10443_v57 = vunpack.i.l.bf16 %v13873_v31 }
 0x3e1   : > { %4623 = vmatmul.mubr.f32.gmra.mrb[22].mxu1 %v4389_v12  ;;  %10726 = vrot.lane.b32.xlu0 %v13849_v51, %s11522_s18  ;;  %v10428_v47 = vunpack.i.l.bf16 %v10427_v53  ;;  %v4227_v23 = vsel %vm4219_vm2, %v4194_v3, %v10414_v22  ;;  %v10444_v30 = vunpack.i.h.bf16 %v13873_v31 }
 0x3e2   : > { %10721 = vrot.lane.b32.xlu1 %v10700_v32, %s11523_s19  ;;  %9678 = vmatprep.mubr.msk.f32.mxu1 %vm594_vm0, %v13632_v25  ;;  %v10735_v32 = vpack.i.bf16 %v3222_v6, %v3221_v44  ;;  %v10429_v25 = vunpack.i.h.bf16 %v10427_v53  ;;  %v4195_v22 = vsel %vm594_vm0, %v13621_v4, %v10443_v57 }
 0x3e3   : > { %v10452_v19 = vpop.permute.xlu0 %10451  ;;  %v4259_v37 = vsel %vm4252_vm3, %v4226_v26, %v10428_v47 }
 0x3e4   : > { %v10437_v40 = vpop.permute.xlu1 %10436  ;;  %v10453_v12 = vunpack.i.l.bf16 %v10452_v19  ;;  %v4292_v33 = vsel %vm4285_vm4, %v4259_v37, %v10433_v28  ;;  %v3224_v37 = vld [vmem:[#allocation2 + $0x20f] sm:$0xff] }
 0x3e5   : > { %4628 = vmatmul.mubr.f32.gmra.mrb[24].mxu1 %v4390_v0  ;;  %10736 = vrot.lane.b32.xlu0 %v10735_v32, %s11527_s26  ;;  %v10438_v46 = vunpack.i.l.bf16 %v10437_v40  ;;  %v10439_v45 = vunpack.i.h.bf16 %v10437_v40 }
 0x3e6   : > { %10731 = vrot.lane.b32.xlu1 %v10730_v62, %s11524_s23  ;;  %9679 = vmatprep.mubr.msk.f32.mxu1 %vm594_vm0, %v13653_v16  ;;  %v4260_v16 = vsel %vm4252_vm3, %v4227_v23, %v10429_v25  ;;  %v3223_v25 = vld [vmem:[#allocation2 + $0x207] sm:$0xff] }
 0x3e7   : > { %v10462_v27 = vpop.permute.xlu0 %10461  ;;  %v4325_v53 = vsel %vm4318_vm5, %v4292_v33, %v10438_v46  ;;  %v4293_v20 = vsel %vm4285_vm4, %v4260_v16, %v10434_v2  ;;  %v3255_v46 = vld [vmem:[#allocation2 + $0x208] sm:$0xff]  ;;  %v10770_v4 = vpack.i.bf16 %v3224_v37, %v3223_v25 }
 0x3e8   : > { %v10447_v29 = vpop.permute.xlu1 %10446  ;;  %v4358_v47 = vsel %vm4351_vm11, %v4325_v53, %v10453_v12  ;;  %v4326_v49 = vsel %vm4318_vm5, %v4293_v20, %v10439_v45  ;;  %v10463_v28 = vunpack.i.l.bf16 %v10462_v27  ;;  %v10464_v33 = vunpack.i.h.bf16 %v10462_v27 }
 0x3e9   : > { %10746 = vrot.lane.b32.xlu0 %v13849_v51, %s11521_s24  ;;  %v10454_v51 = vunpack.i.h.bf16 %v10452_v19  ;;  %v10448_v42 = vunpack.i.l.bf16 %v10447_v29  ;;  %v10765_v19 = vpack.i.bf16 %v13918_v60, %v13916_v61 }
 0x3ea   : > { %10741 = vrot.lane.b32.xlu1 %v13903_v36, %s11526_s30 }
 0x3eb   : > { %v13914_v44 = vpop.permute.xlu0 %10471  ;;  %v4359_v31 = vsel %vm4351_vm11, %v4326_v49, %v10454_v51  ;;  %v4228_v23 = vsel %vm4219_vm2, %v4195_v22, %v10448_v42  ;;  %v13969_v22 = vld [vmem:[#allocation2 + $0x209] sm:$0xff] }
 0x3ec   : > { %v10457_v58 = vpop.permute.xlu1 %10456  ;;  %v10473_v57 = vunpack.i.l.bf16 %v13914_v44 }
 0x3ed   : > { %v10458_v6 = vunpack.i.l.bf16 %v10457_v58  ;;  %10756 = vrot.lane.b32.xlu0 %v10735_v32, %s11523_s19  ;;  %v10459_v40 = vunpack.i.h.bf16 %v10457_v58  ;;  %v10449_v32 = vunpack.i.h.bf16 %v10447_v29 }
 0x3ee   : > { %10751 = vrot.lane.b32.xlu1 %v10730_v62, %s11520_s0  ;;  %v3256_v62 = vld [vmem:[#allocation2 + $0x210] sm:$0xff] }
 0x3ef   : > { %v4391_v0 = vsel %vm4384_vm6, %v4358_v47, %v10458_v6  ;;  %v13928_v3 = vpop.permute.xlu0 %10481  ;;  %v4392_v12 = vsel %vm4384_vm6, %v4359_v31, %v10459_v40  ;;  %v10775_v53 = vpack.i.bf16 %v3256_v62, %v3255_v46  ;;  %v4261_v6 = vsel %vm4252_vm3, %v4228_v23, %v10463_v28  ;;  %v13966_v46 = vld [vmem:[#allocation2 + $0x227] sm:$0xff]  ;;  %v3268_v23 = vld [vmem:[#allocation2 + $0xd1] sm:$0xff] }
 0x3f0   : > { %v10467_v26 = vpop.permute.xlu1 %10466  ;;  %4633 = vmatmul.mubr.f32.gmra.mrb[26].mxu1 %v4391_v0  ;;  %v3013_v28 = vld [vmem:[#allocation2 + $0xa7] sm:$0xff] }
 0x3f1   : > { %9680 = vmatprep.mubr.msk.f32.mxu1 %vm594_vm0, %v13655_v10  ;;  %10766 = vrot.lane.b32.xlu0 %v10765_v19, %s11524_s23  ;;  %v10468_v29 = vunpack.i.l.bf16 %v10467_v26  ;;  %v4196_v10 = vsel %vm594_vm0, %v13623_v56, %v10444_v30  ;;  %v10469_v58 = vunpack.i.h.bf16 %v10467_v26 }
 0x3f2   : > { %10761 = vrot.lane.b32.xlu1 %v13903_v36, %s11522_s18  ;;  %v4229_v2 = vsel %vm4219_vm2, %v4196_v10, %v10449_v32 }
 0x3f3   : > { %v10492_v45 = vpop.permute.xlu0 %10491  ;;  %v4294_v56 = vsel %vm4285_vm4, %v4261_v6, %v10468_v29  ;;  %v4262_v27 = vsel %vm4252_vm3, %v4229_v2, %v10464_v33  ;;  %v3257_v2 = vld [vmem:[#allocation2 + $0x228] sm:$0xff]  ;;  %v10483_v6 = vunpack.i.l.bf16 %v13928_v3 }
 0x3f4   : > { %v10477_v16 = vpop.permute.xlu1 %10476  ;;  %4638 = vmatmul.mubr.f32.gmra.mrb[28].mxu1 %v4392_v12  ;;  %v4295_v20 = vsel %vm4285_vm4, %v4262_v27, %v10469_v58  ;;  %v10493_v0 = vunpack.i.l.bf16 %v10492_v45  ;;  %v4327_v49 = vsel %vm4318_vm5, %v4294_v56, %v10473_v57  ;;  %v10494_v31 = vunpack.i.h.bf16 %v10492_v45  ;;  %v3258_v58 = vld [vmem:[#allocation2 + $0x230] sm:$0xff] }
 0x3f5   : > { %9681 = vmatprep.mubr.msk.f32.mxu1 %vm594_vm0, %v13681_v11  ;;  %10776 = vrot.lane.b32.xlu0 %v10775_v53, %s11526_s30  ;;  %v10474_v11 = vunpack.i.h.bf16 %v13914_v44  ;;  %v10478_v30 = vunpack.i.l.bf16 %v10477_v16  ;;  %v3226_v44 = vld [vmem:[#allocation2 + $0x22f] sm:$0xff]  ;;  %v10479_v29 = vunpack.i.h.bf16 %v10477_v16 }
 0x3f6   : > { %10771 = vrot.lane.b32.xlu1 %v10770_v4, %s11527_s26  ;;  %v10805_v33 = vpack.i.bf16 %v3226_v44, %v13966_v46  ;;  %v3269_v16 = vld [vmem:[#allocation2 + $0xe9] sm:$0xff] }
 0x3f7   : > { %v13953_v47 = vpop.permute.xlu0 %10501  ;;  %v4328_v37 = vsel %vm4318_vm5, %v4295_v20, %v10474_v11  ;;  %v4197_v12 = vsel %vm594_vm0, %v3013_v28, %v10478_v30 }
 0x3f8   : > { %v10487_v51 = vpop.permute.xlu1 %10486  ;;  %v4230_v57 = vsel %vm4219_vm2, %v4197_v12, %v10483_v6 }
 0x3f9   : > { %v10489_v42 = vunpack.i.h.bf16 %v10487_v51  ;;  %v10488_v40 = vunpack.i.l.bf16 %v10487_v51  ;;  %10786 = vrot.lane.b32.xlu0 %v10765_v19, %s11520_s0  ;;  %v13971_v19 = vld [vmem:[#allocation2 + $0x211] sm:$0xff]  ;;  %v10810_v51 = vpack.i.bf16 %v3258_v58, %v3257_v2 }
 0x3fa   : > { %10781 = vrot.lane.b32.xlu1 %v13903_v36, %s11521_s24 }
 0x3fb   : > { %v4360_v26 = vsel %vm4351_vm11, %v4327_v49, %v10488_v40  ;;  %v13962_v32 = vpop.permute.xlu0 %10511  ;;  %v4361_v36 = vsel %vm4351_vm11, %v4328_v37, %v10489_v42  ;;  %v10503_v49 = vunpack.i.l.bf16 %v13953_v47 }
 0x3fc   : > { %v10497_v62 = vpop.permute.xlu1 %10496  ;;  %v4393_v25 = vsel %vm4384_vm6, %v4360_v26, %v10493_v0  ;;  %v4394_v45 = vsel %vm4384_vm6, %v4361_v36, %v10494_v31  ;;  %v10484_v0 = vunpack.i.h.bf16 %v13928_v3  ;;  %v10504_v31 = vunpack.i.h.bf16 %v13953_v47 }
 0x3fd   : > { %4643 = vmatmul.mubr.f32.gmra.mrb[30].mxu1 %v4393_v25  ;;  %10796 = vrot.lane.b32.xlu0 %v10775_v53, %s11522_s18  ;;  %v10498_v10 = vunpack.i.l.bf16 %v10497_v62  ;;  %v3014_v53 = vld [vmem:[#allocation2 + $0xaf] sm:$0xff]  ;;  %v10499_v42 = vunpack.i.h.bf16 %v10497_v62  ;;  %v10513_v12 = vunpack.i.l.bf16 %v13962_v32 }
 0x3fe   : > { %10791 = vrot.lane.b32.xlu1 %v10770_v4, %s11523_s19  ;;  %9682 = vmatprep.mubr.msk.f32.mxu1 %vm594_vm0, %v3268_v23  ;;  %v10800_v4 = vpack.i.bf16 %v13971_v19, %v13969_v22  ;;  %v4198_v20 = vsel %vm594_vm0, %v3014_v53, %v10479_v29  ;;  %v3270_v53 = vld [vmem:[#allocation2 + $0xf1] sm:$0xff] }
 0x3ff   : > { %v10522_v27 = vpop.permute.xlu0 %10521  ;;  %v4263_v40 = vsel %vm4252_vm3, %v4230_v57, %v10498_v10  ;;  %v4231_v25 = vsel %vm4219_vm2, %v4198_v20, %v10484_v0  ;;  %v3015_v57 = vld [vmem:[#allocation2 + $0xc7] sm:$0xff] }
 0x400   : > { %v10507_v56 = vpop.permute.xlu1 %10506  ;;  %v10523_v37 = vunpack.i.l.bf16 %v10522_v27  ;;  %v4296_v44 = vsel %vm4285_vm4, %v4263_v40, %v10503_v49  ;;  %v4264_v62 = vsel %vm4252_vm3, %v4231_v25, %v10499_v42  ;;  %v10524_v10 = vunpack.i.h.bf16 %v10522_v27  ;;  %v3016_v40 = vld [vmem:[#allocation2 + $0xcf] sm:$0xff] }
 0x401   : > { %4648 = vmatmul.mubr.f32.gmra.mrb[32].mxu1 %v4394_v45  ;;  %v10508_v11 = vunpack.i.l.bf16 %v10507_v56  ;;  %10806 = vrot.lane.b32.xlu0 %v10805_v33, %s11527_s26  ;;  %v10509_v36 = vunpack.i.h.bf16 %v10507_v56  ;;  %v4297_v2 = vsel %vm4285_vm4, %v4264_v62, %v10504_v31  ;;  %v4199_v27 = vsel %vm594_vm0, %v3015_v57, %v10513_v12 }
 0x402   : > { %10801 = vrot.lane.b32.xlu1 %v10800_v4, %s11524_s23  ;;  %9683 = vmatprep.mubr.msk.f32.mxu1 %vm594_vm0, %v3269_v16  ;;  %v10514_v4 = vunpack.i.h.bf16 %v13962_v32 }
 0x403   : > { %v10532_v26 = vpop.permute.xlu0 %10531  ;;  %v4329_v28 = vsel %vm4318_vm5, %v4296_v44, %v10508_v11  ;;  %v4330_v56 = vsel %vm4318_vm5, %v4297_v2, %v10509_v36 }
 0x404   : > { %v10517_v30 = vpop.permute.xlu1 %10516  ;;  %v4362_v33 = vsel %vm4351_vm11, %v4329_v28, %v10523_v37  ;;  %v10533_v20 = vunpack.i.l.bf16 %v10532_v26  ;;  %v4363_v42 = vsel %vm4351_vm11, %v4330_v56, %v10524_v10  ;;  %v4200_v49 = vsel %vm594_vm0, %v3016_v40, %v10514_v4 }
 0x405   : > { %v10518_v58 = vunpack.i.l.bf16 %v10517_v30  ;;  %v10534_v25 = vunpack.i.h.bf16 %v10532_v26 }
 0x406   : > { %10811 = vrot.lane.b32.xlu1 %v10810_v51, %s11526_s30  ;;  %v10519_v51 = vunpack.i.h.bf16 %v10517_v30 }
 0x407   : > { %v10542_v3 = vpop.permute.xlu0 %10541  ;;  %v4232_v11 = vsel %vm4219_vm2, %v4199_v27, %v10518_v58  ;;  %v4859_v27 = vld [vmem:[#allocation2 + $0x8] sm:$0xff] }
 0x408   : > { %v10527_v23 = vpop.permute.xlu1 %10526  ;;  %v4233_v30 = vsel %vm4219_vm2, %v4200_v49, %v10519_v51  ;;  %v4265_v36 = vsel %vm4252_vm3, %v4232_v11, %v10533_v20  ;;  %v10544_v2 = vunpack.i.h.bf16 %v10542_v3  ;;  %v4860_v20 = vld [vmem:[#allocation2 + $0x10] sm:$0xff] }
 0x409   : > { %v10528_v29 = vunpack.i.l.bf16 %v10527_v23  ;;  %v10529_v6 = vunpack.i.h.bf16 %v10527_v23  ;;  %v4266_v31 = vsel %vm4252_vm3, %v4233_v30, %v10534_v25  ;;  %v10543_v23 = vunpack.i.l.bf16 %v10542_v3  ;;  %v3017_v3 = vld [vmem:[#allocation2 + $0xe7] sm:$0xff] }
 0x40b   : > { %v4395_v45 = vsel %vm4384_vm6, %v4362_v33, %v10528_v29  ;;  %v14002_v47 = vpop.permute.xlu0 %10551  ;;  %v4396_v32 = vsel %vm4384_vm6, %v4363_v42, %v10529_v6  ;;  %v4891_v42 = vld [vmem:[#allocation2 + $0x9] sm:$0xff] }
 0x40c   : > { %v10537_v16 = vpop.permute.xlu1 %10536  ;;  %4653 = vmatmul.mubr.f32.gmra.mrb[34].mxu1 %v4395_v45  ;;  %v10553_v30 = vunpack.i.l.bf16 %v14002_v47 }
 0x40d   : > { %9684 = vmatprep.mubr.msk.f32.mxu1 %vm594_vm0, %v3270_v53  ;;  %v10538_v0 = vunpack.i.l.bf16 %v10537_v16  ;;  %v10539_v62 = vunpack.i.h.bf16 %v10537_v16  ;;  %v3272_v53 = vld [vmem:[#allocation2 + $0x111] sm:$0xff] }
 0x40f   : > { %v10562_v44 = vpop.permute.xlu0 %10561  ;;  %v4298_v28 = vsel %vm4285_vm4, %v4265_v36, %v10538_v0  ;;  %v4299_v26 = vsel %vm4285_vm4, %v4266_v31, %v10539_v62  ;;  %v10815_v0 = vpack.i.bf16 %v4860_v20, %v4859_v27 }
 0x410   : > { %v10547_v37 = vpop.permute.xlu1 %10546  ;;  %4658 = vmatmul.mubr.f32.gmra.mrb[36].mxu1 %v4396_v32  ;;  %v10563_v58 = vunpack.i.l.bf16 %v10562_v44  ;;  %v4331_v6 = vsel %vm4318_vm5, %v4298_v28, %v10543_v23  ;;  %v4332_v57 = vsel %vm4318_vm5, %v4299_v26, %v10544_v2  ;;  %v10564_v11 = vunpack.i.h.bf16 %v10562_v44  ;;  %v4892_v32 = vld [vmem:[#allocation2 + $0x11] sm:$0xff] }
 0x411   : > { %9685 = vmatprep.mubr.msk.f32.mxu1 %vm594_vm0, %v13708_v48  ;;  %v10548_v45 = vunpack.i.l.bf16 %v10547_v37  ;;  %v10549_v40 = vunpack.i.h.bf16 %v10547_v37  ;;  %10816 = vrot.lane.b32.xlu0 %v10815_v0, %s11521_s24  ;;  %v10820_v31 = vpack.i.bf16 %v4892_v32, %v4891_v42  ;;  %v3018_v23 = vld [vmem:[#allocation2 + $0xef] sm:$0xff]  ;;  %v10554_v26 = vunpack.i.h.bf16 %v14002_v47 }
 0x413   : > { %v14016_v12 = vpop.permute.xlu0 %10571  ;;  %v4201_v49 = vsel %vm594_vm0, %v3017_v3, %v10548_v45  ;;  %v4202_v37 = vsel %vm594_vm0, %v3018_v23, %v10549_v40  ;;  %10821 = vrot.lane.b32.xlu1 %v10820_v31, %s11520_s0  ;;  %v3019_v3 = vld [vmem:[#allocation2 + $0x107] sm:$0xff] }
 0x414   : > { %v10557_v29 = vpop.permute.xlu1 %10556  ;;  %v10573_v2 = vunpack.i.l.bf16 %v14016_v12 }
 0x415   : > { %v10559_v10 = vunpack.i.h.bf16 %v10557_v29  ;;  %v10558_v33 = vunpack.i.l.bf16 %v10557_v29  ;;  %v4234_v29 = vsel %vm4219_vm2, %v4201_v49, %v10553_v30  ;;  %5847 = vrot.lane.b32.xlu0 %v13966_v46, %s11527_s26 }
 0x417   : > { %v4364_v48 = vsel %vm4351_vm11, %v4331_v6, %v10558_v33  ;;  %v10582_v4 = vpop.permute.xlu0 %10581  ;;  %v4365_v51 = vsel %vm4351_vm11, %v4332_v57, %v10559_v10  ;;  %v10574_v57 = vunpack.i.h.bf16 %v14016_v12 }
 0x418   : > { %v10567_v56 = vpop.permute.xlu1 %10566  ;;  %v4397_v16 = vsel %vm4384_vm6, %v4364_v48, %v10563_v58  ;;  %v4398_v28 = vsel %vm4384_vm6, %v4365_v51, %v10564_v11  ;;  %v10584_v58 = vunpack.i.h.bf16 %v10582_v4  ;;  %v4235_v48 = vsel %vm4219_vm2, %v4202_v37, %v10554_v26  ;;  %v3020_v51 = vld [vmem:[#allocation2 + $0x10f] sm:$0xff] }
 0x419   : > { %4663 = vmatmul.mubr.f32.gmra.mrb[38].mxu1 %v4397_v16  ;;  %v10568_v25 = vunpack.i.l.bf16 %v10567_v56  ;;  %v10569_v44 = vunpack.i.h.bf16 %v10567_v56  ;;  %v10583_v56 = vunpack.i.l.bf16 %v10582_v4 }
 0x41a   : > { %9686 = vmatprep.mubr.msk.f32.mxu1 %vm594_vm0, %v3272_v53  ;;  %v4204_v40 = vsel %vm594_vm0, %v3020_v51, %v10584_v58  ;;  %v3275_v51 = vld [vmem:[#allocation2 + $0x149] sm:$0xff] }
 0x41b   : > { %v10592_v36 = vpop.permute.xlu0 %10591  ;;  %v4267_v10 = vsel %vm4252_vm3, %v4234_v29, %v10568_v25  ;;  %v4203_v4 = vsel %vm594_vm0, %v3019_v3, %v10583_v56 }
 0x41c   : > { %v10577_v62 = vpop.permute.xlu1 %10576  ;;  %v10593_v53 = vunpack.i.l.bf16 %v10592_v36  ;;  %v4300_v47 = vsel %vm4285_vm4, %v4267_v10, %v10573_v2  ;;  %v10594_v0 = vunpack.i.h.bf16 %v10592_v36  ;;  %v3274_v36 = vld [vmem:[#allocation2 + $0x131] sm:$0xff] }
 0x41d   : > { %4668 = vmatmul.mubr.f32.gmra.mrb[40].mxu1 %v4398_v28  ;;  %v10578_v33 = vunpack.i.l.bf16 %v10577_v62  ;;  %v10579_v16 = vunpack.i.h.bf16 %v10577_v62 }
 0x41e   : > { %9687 = vmatprep.mubr.msk.f32.mxu1 %vm594_vm0, %v13723_v59  ;;  %v4268_v59 = vsel %vm4252_vm3, %v4235_v48, %v10569_v44 }
 0x41f   : > { %v10602_v45 = vpop.permute.xlu0 %10601  ;;  %v4333_v42 = vsel %vm4318_vm5, %v4300_v47, %v10578_v33  ;;  %v4301_v49 = vsel %vm4285_vm4, %v4268_v59, %v10574_v57 }
 0x420   : > { %v10587_v6 = vpop.permute.xlu1 %10586  ;;  %v10604_v25 = vunpack.i.h.bf16 %v10602_v45  ;;  %v10603_v30 = vunpack.i.l.bf16 %v10602_v45  ;;  %v4366_v12 = vsel %vm4351_vm11, %v4333_v42, %v10593_v53  ;;  %v4334_v62 = vsel %vm4318_vm5, %v4301_v49, %v10579_v16 }
 0x421   : > { %v10589_v27 = vunpack.i.h.bf16 %v10587_v6  ;;  %v10588_v20 = vunpack.i.l.bf16 %v10587_v6  ;;  %v4367_v6 = vsel %vm4351_vm11, %v4334_v62, %v10594_v0  ;;  %v10294_v16 = vunpack.i.h.bf16 %v13712_v41  ;;  %v3022_v0 = vld [vmem:[#allocation2 + $0x12f] sm:$0xff] }
 0x422   : > { %v10293_v53 = vunpack.i.l.bf16 %v13712_v41  ;;  %v3021_v41 = vld [vmem:[#allocation2 + $0x127] sm:$0xff]  ;;  %v10303_v49 = vunpack.i.l.bf16 %v13719_v63  ;;  %v10318_v62 = vunpack.i.l.bf16 %v13730_v13 }
 0x423   : > { %v10612_v11 = vpop.permute.xlu0 %10611  ;;  %v4236_v28 = vsel %vm4219_vm2, %v4203_v4, %v10588_v20  ;;  %v4237_v31 = vsel %vm4219_vm2, %v4204_v40, %v10589_v27  ;;  %v10298_v20 = vunpack.i.l.bf16 %v13714_v55 }
 0x424   : > { %v10597_v46 = vpop.permute.xlu1 %10596  ;;  %v4269_v33 = vsel %vm4252_vm3, %v4236_v28, %v10603_v30  ;;  %v4270_v2 = vsel %vm4252_vm3, %v4237_v31, %v10604_v25  ;;  %v10613_v58 = vunpack.i.l.bf16 %v10612_v11  ;;  %v10614_v45 = vunpack.i.h.bf16 %v10612_v11 }
 0x425   : > { %v10598_v32 = vunpack.i.l.bf16 %v10597_v46  ;;  %v10599_v23 = vunpack.i.h.bf16 %v10597_v46  ;;  %v10304_v46 = vunpack.i.h.bf16 %v13719_v63 }
 0x427   : > { %v4399_v37 = vsel %vm4384_vm6, %v4366_v12, %v10598_v32  ;;  %v10622_v29 = vpop.permute.xlu0 %10621  ;;  %v4400_v59 = vsel %vm4384_vm6, %v4367_v6, %v10599_v23 }
 0x428   : > { %v10607_v44 = vpop.permute.xlu1 %10606  ;;  %4673 = vmatmul.mubr.f32.gmra.mrb[42].mxu1 %v4399_v37  ;;  %v10624_v11 = vunpack.i.h.bf16 %v10622_v29  ;;  %v10623_v4 = vunpack.i.l.bf16 %v10622_v29  ;;  %v10299_v29 = vunpack.i.h.bf16 %v13714_v55 }
 0x429   : > { %v10609_v26 = vunpack.i.h.bf16 %v10607_v44  ;;  %v10608_v10 = vunpack.i.l.bf16 %v10607_v44  ;;  %9688 = vmatprep.mubr.msk.f32.mxu1 %vm594_vm0, %v3274_v36  ;;  %v3276_v44 = vld [vmem:[#allocation2 + $0x151] sm:$0xff]  ;;  %v10309_v36 = vunpack.i.h.bf16 %v13721_v38 }
 0x42b   : > { %v4302_v48 = vsel %vm4285_vm4, %v4269_v33, %v10608_v10  ;;  %v4303_v56 = vsel %vm4285_vm4, %v4270_v2, %v10609_v26  ;;  %v14061_v57 = vpop.permute.xlu0 %10626  ;;  %v10308_v26 = vunpack.i.l.bf16 %v13721_v38  ;;  %v10314_v10 = vunpack.i.h.bf16 %v13728_v34 }
 0x42c   : > { %v10617_v47 = vpop.permute.xlu1 %10616  ;;  %4678 = vmatmul.mubr.f32.gmra.mrb[44].mxu1 %v4400_v59  ;;  %v4335_v27 = vsel %vm4318_vm5, %v4302_v48, %v10613_v58  ;;  %v4336_v40 = vsel %vm4318_vm5, %v4303_v56, %v10614_v45  ;;  %v10313_v33 = vunpack.i.l.bf16 %v13728_v34  ;;  %v10319_v2 = vunpack.i.h.bf16 %v13730_v13  ;;  %v11366_v56 = vld [vmem:[#allocation2 + $0x147] sm:$0xff] }
 0x42d   : > { %v10619_v42 = vunpack.i.h.bf16 %v10617_v47  ;;  %v10618_v3 = vunpack.i.l.bf16 %v10617_v47  ;;  %9689 = vmatprep.mubr.msk.f32.mxu1 %vm594_vm0, %v3275_v51  ;;  %v4368_v32 = vsel %vm4351_vm11, %v4335_v27, %v10293_v53  ;;  %v4369_v63 = vsel %vm4351_vm11, %v4336_v40, %v10294_v16  ;;  %v3277_v47 = vld [vmem:[#allocation2 + $0x169] sm:$0xff] }
 0x42e   : > { %v4401_v12 = vsel %vm4384_vm6, %v4368_v32, %v10298_v20  ;;  %v10323_v45 = vunpack.i.l.bf16 %v13739_v17  ;;  %v4402_v55 = vsel %vm4384_vm6, %v4369_v63, %v10299_v29  ;;  %v4207_v59 = vsel %vm594_vm0, %v11366_v56, %v10318_v62  ;;  %v3278_v62 = vld [vmem:[#allocation2 + $0x171] sm:$0xff] }
 0x42f   : > { %v4206_v25 = vsel %vm594_vm0, %v3022_v0, %v10619_v42  ;;  %v4205_v30 = vsel %vm594_vm0, %v3021_v41, %v10618_v3  ;;  %v14078_v37 = vpop.permute.xlu0 %10636  ;;  %v10363_v16 = vunpack.i.l.bf16 %v13769_v15  ;;  %v10373_v34 = vunpack.i.l.bf16 %v13779_v39  ;;  %v11367_v41 = vld [vmem:[#allocation2 + $0x14f] sm:$0xff] }
 0x430   : > { %v4238_v28 = vsel %vm4219_vm2, %v4205_v30, %v10623_v4  ;;  %v4239_v31 = vsel %vm4219_vm2, %v4206_v25, %v10624_v11  ;;  %v14076_v23 = vpop.permute.xlu1 %10631  ;;  %4683 = vmatmul.mubr.f32.gmra.mrb[46].mxu1 %v4401_v12  ;;  %v10324_v27 = vunpack.i.h.bf16 %v13739_v17  ;;  %v10368_v20 = vunpack.i.l.bf16 %v13789_v52  ;;  %v3026_v56 = vld [vmem:[#allocation2 + $0x16f] sm:$0xff] }
 0x431   : > { %9690 = vmatprep.mubr.msk.f32.mxu1 %vm594_vm0, %v3276_v44  ;;  %v4271_v58 = vsel %vm4252_vm3, %v4238_v28, %v10303_v49  ;;  %v4272_v6 = vsel %vm4252_vm3, %v4239_v31, %v10304_v46  ;;  %v10378_v42 = vunpack.i.l.bf16 %v13799_v14  ;;  %v10364_v40 = vunpack.i.h.bf16 %v13769_v15 }
 0x432   : > { %v4304_v48 = vsel %vm4285_vm4, %v4271_v58, %v10308_v26  ;;  %v4305_v38 = vsel %vm4285_vm4, %v4272_v6, %v10309_v36  ;;  %v10374_v46 = vunpack.i.h.bf16 %v13779_v39  ;;  %v10628_v11 = vunpack.i.l.bf16 %v14061_v57  ;;  %v3025_v36 = vld [vmem:[#allocation2 + $0x167] sm:$0xff] }
 0x433   : > { %v14097_v53 = vpop.permute.xlu0 %10646  ;;  %v4337_v51 = vsel %vm4318_vm5, %v4304_v48, %v10313_v33  ;;  %v4338_v3 = vsel %vm4318_vm5, %v4305_v38, %v10314_v10  ;;  %v4208_v0 = vsel %vm594_vm0, %v11367_v41, %v10319_v2  ;;  %v4240_v17 = vsel %vm4219_vm2, %v4207_v59, %v10323_v45 }
 0x434   : > { %v10642_v13 = vpop.permute.xlu1 %10641  ;;  %4688 = vmatmul.mubr.f32.gmra.mrb[48].mxu1 %v4402_v55  ;;  %v4370_v4 = vsel %vm4351_vm11, %v4337_v51, %v10363_v16  ;;  %v4273_v25 = vsel %vm4252_vm3, %v4240_v17, %v10373_v34  ;;  %v10379_v30 = vunpack.i.h.bf16 %v13799_v14  ;;  %v10633_v15 = vunpack.i.l.bf16 %v14076_v23 }
 0x435   : > { %9691 = vmatprep.mubr.msk.f32.mxu1 %vm594_vm0, %v3277_v47  ;;  %v10643_v32 = vunpack.i.l.bf16 %v10642_v13  ;;  %v4403_v49 = vsel %vm4384_vm6, %v4370_v4, %v10368_v20  ;;  %v4371_v28 = vsel %vm4351_vm11, %v4338_v3, %v10364_v40  ;;  %v4241_v31 = vsel %vm4219_vm2, %v4208_v0, %v10324_v27 }
 0x436   : > { %v10369_v44 = vunpack.i.h.bf16 %v13789_v52  ;;  %v4306_v63 = vsel %vm4285_vm4, %v4273_v25, %v10378_v42  ;;  %v10629_v29 = vunpack.i.h.bf16 %v14061_v57  ;;  %v4274_v14 = vsel %vm4252_vm3, %v4241_v31, %v10374_v46 }
 0x437   : > { %v10657_v39 = vpop.permute.xlu0 %10656  ;;  %v10644_v26 = vunpack.i.h.bf16 %v10642_v13  ;;  %v10648_v10 = vunpack.i.l.bf16 %v14097_v53  ;;  %v4339_v33 = vsel %vm4318_vm5, %v4306_v63, %v10628_v11  ;;  %v10638_v2 = vunpack.i.l.bf16 %v14078_v37 }
 0x438   : > { %v10652_v12 = vpop.permute.xlu1 %10651  ;;  %4693 = vmatmul.mubr.f32.gmra.mrb[50].mxu1 %v4403_v49  ;;  %v4209_v58 = vsel %vm594_vm0, %v3025_v36, %v10643_v32  ;;  %v4404_v52 = vsel %vm4384_vm6, %v4371_v28, %v10369_v44  ;;  %v4307_v45 = vsel %vm4285_vm4, %v4274_v14, %v10379_v30  ;;  %v10634_v57 = vunpack.i.h.bf16 %v14076_v23  ;;  %v3028_v14 = vld [vmem:[#allocation2 + $0x18f] sm:$0xff] }
 0x439   : > { %9692 = vmatprep.mubr.msk.f32.mxu1 %vm594_vm0, %v3278_v62  ;;  %v10653_v6 = vunpack.i.l.bf16 %v10652_v12  ;;  %v4372_v38 = vsel %vm4351_vm11, %v4339_v33, %v10633_v15  ;;  %v10649_v59 = vunpack.i.h.bf16 %v14097_v53  ;;  %v4340_v16 = vsel %vm4318_vm5, %v4307_v45, %v10629_v29 }
 0x43a   : > { %v4210_v34 = vsel %vm594_vm0, %v3026_v56, %v10644_v26  ;;  %v4242_v13 = vsel %vm4219_vm2, %v4209_v58, %v10648_v10  ;;  %v10654_v47 = vunpack.i.h.bf16 %v10652_v12  ;;  %v10658_v51 = vunpack.i.l.bf16 %v10657_v39 }
 0x43b   : > { %v10667_v48 = vpop.permute.xlu0 %10666  ;;  %v10639_v23 = vunpack.i.h.bf16 %v14078_v37  ;;  %v4275_v27 = vsel %vm4252_vm3, %v4242_v13, %v10653_v6  ;;  %v4405_v42 = vsel %vm4384_vm6, %v4372_v38, %v10638_v2  ;;  %v4243_v40 = vsel %vm4219_vm2, %v4210_v34, %v10649_v59 }
 0x43c   : > { %v10662_v55 = vpop.permute.xlu1 %10661  ;;  %4698 = vmatmul.mubr.f32.gmra.mrb[52].mxu1 %v4404_v52  ;;  %v10659_v46 = vunpack.i.h.bf16 %v10657_v39  ;;  %v4276_v11 = vsel %vm4252_vm3, %v4243_v40, %v10654_v47  ;;  %v4308_v37 = vsel %vm4285_vm4, %v4275_v27, %v10658_v51  ;;  %v10668_v4 = vunpack.i.l.bf16 %v10667_v48  ;;  %v3027_v39 = vld [vmem:[#allocation2 + $0x187] sm:$0xff] }
 0x43d   : > { %9693 = vmatprep.mubr.msk.f32.mxu1 %vm594_vm0, %v13783_v43  ;;  %v10663_v20 = vunpack.i.l.bf16 %v10662_v55  ;;  %v4373_v43 = vsel %vm4351_vm11, %v4340_v16, %v10634_v57  ;;  %v10664_v0 = vunpack.i.h.bf16 %v10662_v55  ;;  %v10669_v28 = vunpack.i.h.bf16 %v10667_v48 }
 0x43e   : > { %v4406_v32 = vsel %vm4384_vm6, %v4373_v43, %v10639_v23  ;;  %v4309_v12 = vsel %vm4285_vm4, %v4276_v11, %v10659_v46 }
 0x43f   : > { %v10677_v53 = vpop.permute.xlu0 %10676  ;;  %v4341_v49 = vsel %vm4318_vm5, %v4308_v37, %v10663_v20  ;;  %v4342_v10 = vsel %vm4318_vm5, %v4309_v12, %v10664_v0  ;;  %v3029_v37 = vld [vmem:[#allocation2 + $0x1a7] sm:$0xff] }
 0x440   : > { %v10672_v3 = vpop.permute.xlu1 %10671  ;;  %4703 = vmatmul.mubr.f32.gmra.mrb[54].mxu1 %v4405_v42  ;;  %v10678_v41 = vunpack.i.l.bf16 %v10677_v53  ;;  %v10679_v25 = vunpack.i.h.bf16 %v10677_v53  ;;  %v4374_v63 = vsel %vm4351_vm11, %v4341_v49, %v10668_v4  ;;  %v4375_v48 = vsel %vm4351_vm11, %v4342_v10, %v10669_v28 }
 0x441   : > { %9694 = vmatprep.mubr.msk.f32.mxu1 %vm594_vm0, %v13781_v24  ;;  %v10673_v17 = vunpack.i.l.bf16 %v10672_v3  ;;  %v10674_v29 = vunpack.i.h.bf16 %v10672_v3 }
 0x442   : > { %v4211_v31 = vsel %vm594_vm0, %v3027_v39, %v10678_v41  ;;  %v4212_v33 = vsel %vm594_vm0, %v3028_v14, %v10679_v25  ;;  %v3030_v25 = vld [vmem:[#allocation2 + $0x1af] sm:$0xff] }
 0x443   : > { %v10687_v15 = vpop.permute.xlu0 %10686  ;;  %v4407_v26 = vsel %vm4384_vm6, %v4374_v63, %v10673_v17  ;;  %v4408_v56 = vsel %vm4384_vm6, %v4375_v48, %v10674_v29 }
 0x444   : > { %v10682_v30 = vpop.permute.xlu1 %10681  ;;  %4708 = vmatmul.mubr.f32.gmra.mrb[56].mxu1 %v4406_v32  ;;  %v10688_v44 = vunpack.i.l.bf16 %v10687_v15  ;;  %v10689_v2 = vunpack.i.h.bf16 %v10687_v15 }
 0x445   : > { %v10684_v24 = vunpack.i.h.bf16 %v10682_v30  ;;  %v10683_v62 = vunpack.i.l.bf16 %v10682_v30  ;;  %9695 = vmatprep.mubr.msk.f32.mxu1 %vm594_vm0, %v13819_v50 }
 0x447   : > { %v4244_v36 = vsel %vm4219_vm2, %v4211_v31, %v10683_v62  ;;  %v10697_v6 = vpop.permute.xlu0 %10696  ;;  %v4245_v50 = vsel %vm4219_vm2, %v4212_v33, %v10684_v24 }
 0x448   : > { %v10692_v58 = vpop.permute.xlu1 %10691  ;;  %4713 = vmatmul.mubr.f32.gmra.mrb[58].mxu1 %v4407_v26  ;;  %v4277_v57 = vsel %vm4252_vm3, %v4244_v36, %v10688_v44  ;;  %v10698_v55 = vunpack.i.l.bf16 %v10697_v6  ;;  %v4278_v59 = vsel %vm4252_vm3, %v4245_v50, %v10689_v2  ;;  %v10699_v16 = vunpack.i.h.bf16 %v10697_v6 }
 0x449   : > { %v10694_v52 = vunpack.i.h.bf16 %v10692_v58  ;;  %v10693_v45 = vunpack.i.l.bf16 %v10692_v58  ;;  %9696 = vmatprep.mubr.msk.f32.mxu1 %vm594_vm0, %v13821_v1 }
 0x44b   : > { %v4310_v38 = vsel %vm4285_vm4, %v4277_v57, %v10693_v45  ;;  %v10707_v13 = vpop.permute.xlu0 %10706  ;;  %v4311_v47 = vsel %vm4285_vm4, %v4278_v59, %v10694_v52  ;;  %v3031_v59 = vld [vmem:[#allocation2 + $0x1c7] sm:$0xff] }
 0x44c   : > { %v10702_v34 = vpop.permute.xlu1 %10701  ;;  %4718 = vmatmul.mubr.f32.gmra.mrb[60].mxu1 %v4408_v56  ;;  %v10708_v1 = vunpack.i.l.bf16 %v10707_v13  ;;  %v4343_v27 = vsel %vm4318_vm5, %v4310_v38, %v10698_v55  ;;  %v10709_v42 = vunpack.i.h.bf16 %v10707_v13  ;;  %v4344_v40 = vsel %vm4318_vm5, %v4311_v47, %v10699_v16 }
 0x44d   : > { %v10704_v51 = vunpack.i.h.bf16 %v10702_v34  ;;  %v10703_v23 = vunpack.i.l.bf16 %v10702_v34  ;;  %9697 = vmatprep.mubr.msk.f32.mxu1 %vm594_vm0, %v13880_v8 }
 0x44f   : > { %v4376_v20 = vsel %vm4351_vm11, %v4343_v27, %v10703_v23  ;;  %v10717_v53 = vpop.permute.xlu0 %10716  ;;  %v4377_v11 = vsel %vm4351_vm11, %v4344_v40, %v10704_v51  ;;  %v3032_v23 = vld [vmem:[#allocation2 + $0x1cf] sm:$0xff] }
 0x450   : > { %v10712_v3 = vpop.permute.xlu1 %10711  ;;  %v4409_v43 = vsel %vm4384_vm6, %v4376_v20, %v10708_v1  ;;  %v10718_v4 = vunpack.i.l.bf16 %v10717_v53  ;;  %v4410_v32 = vsel %vm4384_vm6, %v4377_v11, %v10709_v42  ;;  %v10719_v30 = vunpack.i.h.bf16 %v10717_v53 }
 0x451   : > { %v10713_v46 = vunpack.i.l.bf16 %v10712_v3  ;;  %4723 = vmatmul.mubr.f32.gmra.mrb[62].mxu1 %v4409_v43  ;;  %v10714_v8 = vunpack.i.h.bf16 %v10712_v3 }
 0x452   : > { %9698 = vmatprep.mubr.msk.f32.mxu1 %vm594_vm0, %v13877_v54 }
 0x453   : > { %v4213_v41 = vsel %vm594_vm0, %v3029_v37, %v10713_v46  ;;  %v10727_v17 = vpop.permute.xlu0 %10726  ;;  %v4214_v39 = vsel %vm594_vm0, %v3030_v25, %v10714_v8 }
 0x454   : > { %v10722_v0 = vpop.permute.xlu1 %10721  ;;  %v4246_v15 = vsel %vm4219_vm2, %v4213_v41, %v10718_v4  ;;  %v10728_v12 = vunpack.i.l.bf16 %v10727_v17  ;;  %v4247_v44 = vsel %vm4219_vm2, %v4214_v39, %v10719_v30  ;;  %v10729_v63 = vunpack.i.h.bf16 %v10727_v17 }
 0x455   : > { %v10723_v49 = vunpack.i.l.bf16 %v10722_v0  ;;  %4728 = vmatmul.mubr.f32.gmra.mrb[64].mxu1 %v4410_v32  ;;  %v10724_v54 = vunpack.i.h.bf16 %v10722_v0 }
 0x456   : > { %9699 = vmatprep.mubr.msk.f32.mxu1 %vm594_vm0, %v13916_v61 }
 0x457   : > { %v4279_v24 = vsel %vm4252_vm3, %v4246_v15, %v10723_v49  ;;  %v10737_v28 = vpop.permute.xlu0 %10736  ;;  %v4280_v36 = vsel %vm4252_vm3, %v4247_v44, %v10724_v54 }
 0x458   : > { %v10732_v62 = vpop.permute.xlu1 %10731  ;;  %v4312_v29 = vsel %vm4285_vm4, %v4279_v24, %v10728_v12  ;;  %v10738_v14 = vunpack.i.l.bf16 %v10737_v28  ;;  %v4313_v58 = vsel %vm4285_vm4, %v4280_v36, %v10729_v63  ;;  %v10739_v6 = vunpack.i.h.bf16 %v10737_v28  ;;  %v11368_v63 = vld [vmem:[#allocation2 + $0x1e7] sm:$0xff] }
 0x459   : > { %v10733_v31 = vunpack.i.l.bf16 %v10732_v62  ;;  %v10734_v26 = vunpack.i.h.bf16 %v10732_v62 }
 0x45b   : > { %v4345_v10 = vsel %vm4318_vm5, %v4312_v29, %v10733_v31  ;;  %v10747_v33 = vpop.permute.xlu0 %10746  ;;  %v4346_v55 = vsel %vm4318_vm5, %v4313_v58, %v10734_v26 }
 0x45c   : > { %v10742_v61 = vpop.permute.xlu1 %10741  ;;  %v10748_v50 = vunpack.i.l.bf16 %v10747_v33  ;;  %v4378_v52 = vsel %vm4351_vm11, %v4345_v10, %v10738_v14  ;;  %v10749_v48 = vunpack.i.h.bf16 %v10747_v33  ;;  %v4379_v51 = vsel %vm4351_vm11, %v4346_v55, %v10739_v6  ;;  %v3289_v14 = vld [vmem:[#allocation2 + $0x229] sm:$0xff] }
 0x45d   : > { %v10743_v2 = vunpack.i.l.bf16 %v10742_v61  ;;  %v10744_v45 = vunpack.i.h.bf16 %v10742_v61  ;;  %v11369_v6 = vld [vmem:[#allocation2 + $0x1ef] sm:$0xff] }
 0x45e   : > { %v4215_v13 = vsel %vm594_vm0, %v3031_v59, %v10748_v50  ;;  %v4216_v20 = vsel %vm594_vm0, %v3032_v23, %v10749_v48 }
 0x45f   : > { %v4411_v57 = vsel %vm4384_vm6, %v4378_v52, %v10743_v2  ;;  %v10757_v56 = vpop.permute.xlu0 %10756  ;;  %v4412_v27 = vsel %vm4384_vm6, %v4379_v51, %v10744_v45 }
 0x460   : > { %v10752_v38 = vpop.permute.xlu1 %10751  ;;  %4733 = vmatmul.mubr.f32.gmra.mrb[66].mxu1 %v4411_v57  ;;  %v10758_v47 = vunpack.i.l.bf16 %v10757_v56  ;;  %v10759_v42 = vunpack.i.h.bf16 %v10757_v56 }
 0x461   : > { %v10754_v16 = vunpack.i.h.bf16 %v10752_v38  ;;  %v10753_v34 = vunpack.i.l.bf16 %v10752_v38  ;;  %9700 = vmatprep.mubr.msk.f32.mxu1 %vm594_vm0, %v13918_v60 }
 0x463   : > { %v4248_v1 = vsel %vm4219_vm2, %v4215_v13, %v10753_v34  ;;  %v10767_v53 = vpop.permute.xlu0 %10766  ;;  %v4249_v43 = vsel %vm4219_vm2, %v4216_v20, %v10754_v16  ;;  %v3290_v20 = vld [vmem:[#allocation2 + $0x231] sm:$0xff] }
 0x464   : > { %v10762_v3 = vpop.permute.xlu1 %10761  ;;  %4738 = vmatmul.mubr.f32.gmra.mrb[68].mxu1 %v4412_v27  ;;  %v4281_v46 = vsel %vm4252_vm3, %v4248_v1, %v10758_v47  ;;  %v10768_v11 = vunpack.i.l.bf16 %v10767_v53  ;;  %v4282_v4 = vsel %vm4252_vm3, %v4249_v43, %v10759_v42  ;;  %v10769_v8 = vunpack.i.h.bf16 %v10767_v53 }
 0x465   : > { %v10764_v40 = vunpack.i.h.bf16 %v10762_v3  ;;  %v10763_v60 = vunpack.i.l.bf16 %v10762_v3  ;;  %9701 = vmatprep.mubr.msk.f32.mxu1 %vm594_vm0, %v13969_v22 }
 0x467   : > { %v4314_v37 = vsel %vm4285_vm4, %v4281_v46, %v10763_v60  ;;  %v10777_v0 = vpop.permute.xlu0 %10776  ;;  %v4315_v17 = vsel %vm4285_vm4, %v4282_v4, %v10764_v40  ;;  %v14230_v60 = vld [vmem:[%s17196_s5] ss:$0 sm:$0xff] }
 0x468   : > { %v10772_v41 = vpop.permute.xlu1 %10771  ;;  %v10778_v25 = vunpack.i.l.bf16 %v10777_v0  ;;  %v4347_v30 = vsel %vm4318_vm5, %v4314_v37, %v10768_v11  ;;  %v10779_v22 = vunpack.i.h.bf16 %v10777_v0  ;;  %v4348_v24 = vsel %vm4318_vm5, %v4315_v17, %v10769_v8  ;;  %v6235_v46 = vld [vmem:[%s17197_s6] sm:$0xff]  ;;  %v6236_v11 = vld [vmem:[%s17197_s6 + $0x8] sm:$0xff]  ;;  %v6237_v17 = vld [vmem:[%s17197_s6 + $0x10] sm:$0xff] }
 0x469   : > { %v10774_v32 = vunpack.i.h.bf16 %v10772_v41  ;;  %v10773_v49 = vunpack.i.l.bf16 %v10772_v41  ;;  %v10129_v37 = vpack.c.bf16 %v6236_v11, %v6235_v46  ;;  %v17609_v0 = vmov 0.0|0.0  }
 0x46b   : > { %v4380_v15 = vsel %vm4351_vm11, %v4347_v30, %v10773_v49  ;;  %v10787_v39 = vpop.permute.xlu0 %10786  ;;  %v4381_v28 = vsel %vm4351_vm11, %v4348_v24, %v10774_v32  ;;  %10130 = vmatpush1.bf16.msra.mxu0 %v10129_v37  ;;  %v6238_v32 = vld [vmem:[%s17197_s6 + $0x18] sm:$0xff] }
 0x46c   : > { %v10782_v12 = vpop.permute.xlu1 %10781  ;;  %v4413_v54 = vsel %vm4384_vm6, %v4380_v15, %v10778_v25  ;;  %v10788_v31 = vunpack.i.l.bf16 %v10787_v39  ;;  %v4414_v10 = vsel %vm4384_vm6, %v4381_v28, %v10779_v22  ;;  %v10789_v33 = vunpack.i.h.bf16 %v10787_v39  ;;  %10131 = vmatprep.subr.bf16.mxu0 %v17609_v0  ;;  %v6240_v39 = vld [vmem:[%s17197_s6 + $0x28] sm:$0xff]  ;;  %v6242_v28 = vld [vmem:[%s17197_s6 + $0x38] sm:$0xff] }
 0x46d   : > { %v10783_v62 = vunpack.i.l.bf16 %v10782_v12  ;;  %4743 = vmatmul.mubr.f32.gmra.mrb[70].mxu1 %v4413_v54  ;;  %v10784_v44 = vunpack.i.h.bf16 %v10782_v12  ;;  %v10132_v25 = vpack.c.bf16 %v6238_v32, %v6237_v17  ;;  %v6239_v12 = vld [vmem:[%s17197_s6 + $0x20] sm:$0xff] }
 0x46e   : > { %9702 = vmatprep.mubr.msk.f32.mxu1 %vm594_vm0, %v13971_v19  ;;  %v10135_v24 = vpack.c.bf16 %v6240_v39, %v6239_v12 }
 0x46f   : > { %v4217_v29 = vsel %vm594_vm0, %v11368_v63, %v10783_v62  ;;  %v10797_v26 = vpop.permute.xlu0 %10796  ;;  %v4218_v19 = vsel %vm594_vm0, %v11369_v6, %v10784_v44  ;;  %10133 = vmatpush1.bf16.msra.mxu0 %v10132_v25  ;;  %v6241_v62 = vld [vmem:[%s17197_s6 + $0x30] sm:$0xff]  ;;  %v6243_v44 = vld [vmem:[%s17197_s6 + $0x40] sm:$0xff]  ;;  %v6244_v63 = vld [vmem:[%s17197_s6 + $0x48] sm:$0xff] }
 0x470   : > { %v10792_v36 = vpop.permute.xlu1 %10791  ;;  %v4250_v2 = vsel %vm4219_vm2, %v4217_v29, %v10788_v31  ;;  %v10798_v58 = vunpack.i.l.bf16 %v10797_v26  ;;  %v4251_v48 = vsel %vm4219_vm2, %v4218_v19, %v10789_v33  ;;  %v10799_v38 = vunpack.i.h.bf16 %v10797_v26  ;;  %10134 = vmatprep.subr.bf16.mxu0 %v17609_v0  ;;  %v6245_v6 = vld [vmem:[%s17197_s6 + $0x50] sm:$0xff]  ;;  %v6246_v19 = vld [vmem:[%s17197_s6 + $0x58] sm:$0xff] }
 0x471   : > { %v10793_v61 = vunpack.i.l.bf16 %v10792_v36  ;;  %4748 = vmatmul.mubr.f32.gmra.mrb[72].mxu1 %v4414_v10  ;;  %v10794_v50 = vunpack.i.h.bf16 %v10792_v36  ;;  %v10138_v31 = vpack.c.bf16 %v6242_v28, %v6241_v62 }
 0x472   : > { %9703 = vmatprep.mubr.msk.f32.mxu1 %vm594_vm0, %v3289_v14  ;;  %v10141_v14 = vpack.c.bf16 %v6244_v63, %v6243_v44 }
 0x473   : > { %v4283_v52 = vsel %vm4252_vm3, %v4250_v2, %v10793_v61  ;;  %v10807_v55 = vpop.permute.xlu0 %10806  ;;  %v4284_v16 = vsel %vm4252_vm3, %v4251_v48, %v10794_v50  ;;  %10136 = vmatpush1.bf16.msra.mxu0 %v10135_v24  ;;  %v10144_v50 = vpack.c.bf16 %v6246_v19, %v6245_v6 }
 0x474   : > { %v10802_v45 = vpop.permute.xlu1 %10801  ;;  %v4316_v56 = vsel %vm4285_vm4, %v4283_v52, %v10798_v58  ;;  %v10808_v59 = vunpack.i.l.bf16 %v10807_v55  ;;  %v4317_v23 = vsel %vm4285_vm4, %v4284_v16, %v10799_v38  ;;  %v10809_v1 = vunpack.i.h.bf16 %v10807_v55  ;;  %10137 = vmatprep.subr.bf16.mxu0 %v17609_v0  ;;  %v6249_v16 = vld [vmem:[%s17197_s6 + $0x70] sm:$0xff] }
 0x475   : > { %v10803_v57 = vunpack.i.l.bf16 %v10802_v45  ;;  %v10804_v34 = vunpack.i.h.bf16 %v10802_v45  ;;  %v6247_v45 = vld [vmem:[%s17197_s6 + $0x60] sm:$0xff] }
 0x477   : > { %v4349_v13 = vsel %vm4318_vm5, %v4316_v56, %v10803_v57  ;;  %v4350_v53 = vsel %vm4318_vm5, %v4317_v23, %v10804_v34  ;;  %10139 = vmatpush1.bf16.msra.mxu0 %v10138_v31  ;;  %v6248_v57 = vld [vmem:[%s17197_s6 + $0x68] sm:$0xff]  ;;  %v6250_v34 = vld [vmem:[%s17197_s6 + $0x78] sm:$0xff] }
 0x478   : > { %v10812_v47 = vpop.permute.xlu1 %10811  ;;  %v4382_v27 = vsel %vm4351_vm11, %v4349_v13, %v10808_v59  ;;  %v4383_v43 = vsel %vm4351_vm11, %v4350_v53, %v10809_v1  ;;  %10140 = vmatprep.subr.bf16.mxu0 %v17609_v0  ;;  %v10147_v48 = vpack.c.bf16 %v6248_v57, %v6247_v45  ;;  %v6251_v1 = vld [vmem:[%s17197_s6 + $0x80] sm:$0xff] }
 0x479   : > { %v10813_v51 = vunpack.i.l.bf16 %v10812_v47  ;;  %v10814_v42 = vunpack.i.h.bf16 %v10812_v47  ;;  %v10150_v47 = vpack.c.bf16 %v6250_v34, %v6249_v16 }
 0x47b   : > { %v4415_v3 = vsel %vm4384_vm6, %v4382_v27, %v10813_v51  ;;  %v4416_v40 = vsel %vm4384_vm6, %v4383_v43, %v10814_v42  ;;  %10142 = vmatpush1.bf16.msra.mxu0 %v10141_v14  ;;  %v6252_v27 = vld [vmem:[%s17197_s6 + $0x88] sm:$0xff] }
 0x47c   : > { %4753 = vmatmul.mubr.f32.gmra.mrb[74].mxu1 %v4415_v3  ;;  %10143 = vmatprep.subr.bf16.mxu0 %v17609_v0  ;;  %v10153_v42 = vpack.c.bf16 %v6252_v27, %v6251_v1 }
 0x47d   : > { %9704 = vmatprep.mubr.msk.f32.mxu1 %vm594_vm0, %v3290_v20 }
 0x47f   : > { %10145 = vmatpush1.bf16.msra.mxu0 %v10144_v50 }
 0x480   : > { %4758 = vmatmul.mubr.f32.gmra.mrb[76].mxu1 %v4416_v40  ;;  %10146 = vmatprep.subr.bf16.mxu0 %v17609_v0 }
 0x481   : > { %9990 = vmatprep.mubr.msk.f32.mxu1 %vm11528_vm12, %v17598_v35 }
 0x483   : > { %10148 = vmatpush1.bf16.msra.mxu0 %v10147_v48 }
 0x484   : > { %10149 = vmatprep.subr.bf16.mxu0 %v17609_v0 }
 0x487   : > { %10151 = vmatpush1.bf16.msra.mxu0 %v10150_v47 }
 0x488   : > { %10152 = vmatprep.subr.bf16.mxu0 %v17609_v0 }
 0x48b   : > { %10154 = vmatpush1.bf16.msra.mxu0 %v10153_v42 }
 0x48c   : > { %10155 = vmatprep.subr.bf16.mxu0 %v17609_v0 }
 0x490   : > { %v4604_v4 = vpop.f32.mrb[14].mxu1 }
 0x491   : > { %v4605_v8 = vadd.f32 %v14230_v60, %v4604_v4  ;;  %v4606_v41 = vpop.f32.mrb[15].mxu1 }
 0x493   : > { %v4763_v49 = vmax.f32 %v4605_v8, 0.0 }
 0x494   : > { %v4609_v30 = vpop.f32.mrb[16].mxu1 }
 0x495   : > { %4795 = vst.msk [vmem:[#allocation2 + $0x28] sm:$0xff] %vm594_vm0, %v4763_v49  ;;  %v4610_v15 = vadd.f32 %v14230_v60, %v4609_v30  ;;  %v4611_v22 = vpop.f32.mrb[17].mxu1 }
 0x497   : > { %v4764_v54 = vmax.f32 %v4610_v15, 0.0 }
 0x499   : > { %4796 = vst.msk [vmem:[#allocation2 + $0x30] sm:$0xff] %vm594_vm0, %v4764_v54 }
 0x49c   : > { %v4955_v29 = vld [vmem:[#allocation2 + $0x28] sm:$0xff] }
 0x49d   : > { %v14270_v26 = vld [vmem:[#allocation2 + $0x27] sm:$0xff] }
 0x4a0   : > { %v4956_v36 = vld [vmem:[#allocation2 + $0x30] sm:$0xff] }
 0x4a1   : > { %v14272_v10 = vld [vmem:[#allocation2 + $0x2f] sm:$0xff]  ;;  %v10830_v61 = vpack.i.bf16 %v4956_v36, %v4955_v29 }
 0x4a2   : > { %v10825_v33 = vpack.i.bf16 %v14272_v10, %v14270_v26  ;;  %v4987_v2 = vld [vmem:[#allocation2 + $0x29] sm:$0xff]  ;;  %v4988_v58 = vld [vmem:[#allocation2 + $0x31] sm:$0xff] }
 0x4a3   : > { %10831 = vrot.lane.b32.xlu1 %v10830_v61, %s11522_s18  ;;  %v10835_v52 = vpack.i.bf16 %v4988_v58, %v4987_v2 }
 0x4a4   : > { %10826 = vrot.lane.b32.xlu0 %v10825_v33, %s11523_s19 }
 0x4a7   : > { %v4614_v55 = vpop.f32.mrb[18].mxu1  ;;  %10841 = vrot.lane.b32.xlu1 %v10830_v61, %s11521_s24 }
 0x4a8   : > { %10836 = vrot.lane.b32.xlu0 %v10835_v52, %s11524_s23  ;;  %v4615_v38 = vadd.f32 %v14230_v60, %v4614_v55  ;;  %v4616_v56 = vpop.f32.mrb[19].mxu1 }
 0x4aa   : > { %v4765_v59 = vmax.f32 %v4615_v38, 0.0 }
 0x4ab   : > { %v4619_v13 = vpop.f32.mrb[20].mxu1 }
 0x4ac   : > { %10846 = vrot.lane.b32.xlu0 %v10835_v52, %s11520_s0  ;;  %4797 = vst.msk [vmem:[#allocation2 + $0x48] sm:$0xff] %vm594_vm0, %v4765_v59  ;;  %v4620_v51 = vadd.f32 %v14230_v60, %v4619_v13  ;;  %v4621_v23 = vpop.f32.mrb[21].mxu1 }
 0x4ae   : > { %v4766_v20 = vmax.f32 %v4620_v51, 0.0 }
 0x4b0   : > { %4798 = vst.msk [vmem:[#allocation2 + $0x50] sm:$0xff] %vm594_vm0, %v4766_v20 }
 0x4b3   : > { %v5051_v40 = vld [vmem:[#allocation2 + $0x48] sm:$0xff] }
 0x4b4   : > { %v4624_v3 = vpop.f32.mrb[22].mxu1  ;;  %v14315_v46 = vld [vmem:[#allocation2 + $0x47] sm:$0xff] }
 0x4b5   : > { %v4625_v53 = vadd.f32 %v14230_v60, %v4624_v3  ;;  %v4626_v43 = vpop.f32.mrb[23].mxu1 }
 0x4b7   : > { %v4767_v11 = vmax.f32 %v4625_v53, 0.0  ;;  %v5083_v37 = vld [vmem:[#allocation2 + $0x49] sm:$0xff]  ;;  %v14327_v30 = vld [vmem:[#allocation2 + $0x51] sm:$0xff] }
 0x4b8   : > { %v5052_v4 = vld [vmem:[#allocation2 + $0x50] sm:$0xff]  ;;  %v4629_v41 = vpop.f32.mrb[24].mxu1  ;;  %9706 = vmatprep.mubr.msk.f32.mxu0 %vm594_vm0, %v5083_v37  ;;  %v10870_v15 = vpack.i.bf16 %v14327_v30, %v5083_v37 }
 0x4b9   : > { %v14317_v8 = vld [vmem:[#allocation2 + $0x4f] sm:$0xff]  ;;  %v10855_v17 = vpack.i.bf16 %v5052_v4, %v5051_v40  ;;  %4799 = vst.msk [vmem:[#allocation2 + $0x68] sm:$0xff] %vm594_vm0, %v4767_v11  ;;  %v4630_v0 = vadd.f32 %v14230_v60, %v4629_v41  ;;  %v4631_v49 = vpop.f32.mrb[25].mxu1 }
 0x4ba   : > { %v10850_v32 = vpack.i.bf16 %v14317_v8, %v14315_v46 }
 0x4bb   : > { %10856 = vrot.lane.b32.xlu0 %v10855_v17, %s11526_s30  ;;  %v4768_v25 = vmax.f32 %v4630_v0, 0.0 }
 0x4bc   : > { %10851 = vrot.lane.b32.xlu1 %v10850_v32, %s11527_s26 }
 0x4bd   : > { %4800 = vst.msk [vmem:[#allocation2 + $0x70] sm:$0xff] %vm594_vm0, %v4768_v25 }
 0x4bf   : > { %10866 = vrot.lane.b32.xlu0 %v10855_v17, %s11522_s18 }
 0x4c0   : > { %10861 = vrot.lane.b32.xlu1 %v10850_v32, %s11523_s19  ;;  %v14335_v54 = vld [vmem:[#allocation2 + $0x67] sm:$0xff] }
 0x4c1   : > { %v5053_v63 = vld [vmem:[#allocation2 + $0x68] sm:$0xff] }
 0x4c3   : > { %10876 = vrot.lane.b32.xlu0 %v10855_v17, %s11521_s24  ;;  %v4634_v22 = vpop.f32.mrb[26].mxu1 }
 0x4c4   : > { %10871 = vrot.lane.b32.xlu1 %v10870_v15, %s11524_s23  ;;  %v4635_v12 = vadd.f32 %v14230_v60, %v4634_v22  ;;  %v4636_v39 = vpop.f32.mrb[27].mxu1  ;;  %v14337_v24 = vld [vmem:[#allocation2 + $0x6f] sm:$0xff] }
 0x4c5   : > { %v10885_v62 = vpack.i.bf16 %v14337_v24, %v14335_v54  ;;  %v5054_v28 = vld [vmem:[#allocation2 + $0x70] sm:$0xff] }
 0x4c6   : > { %v4769_v31 = vmax.f32 %v4635_v12, 0.0  ;;  %v10890_v36 = vpack.i.bf16 %v5054_v28, %v5053_v63  ;;  %v14346_v33 = vld [vmem:[#allocation2 + $0x69] sm:$0xff]  ;;  %v14348_v2 = vld [vmem:[#allocation2 + $0x71] sm:$0xff] }
 0x4c7   : > { %v4639_v44 = vpop.f32.mrb[28].mxu1  ;;  %10886 = vrot.lane.b32.xlu0 %v10885_v62, %s11527_s26  ;;  %v10905_v58 = vpack.i.bf16 %v14348_v2, %v14346_v33 }
 0x4c8   : > { %10881 = vrot.lane.b32.xlu1 %v10870_v15, %s11520_s0  ;;  %4801 = vst.msk [vmem:[#allocation2 + $0x88] sm:$0xff] %vm594_vm0, %v4769_v31  ;;  %v4640_v29 = vadd.f32 %v14230_v60, %v4639_v44  ;;  %v4641_v14 = vpop.f32.mrb[29].mxu1 }
 0x4ca   : > { %v4770_v61 = vmax.f32 %v4640_v29, 0.0 }
 0x4cb   : > { %10896 = vrot.lane.b32.xlu0 %v10885_v62, %s11523_s19 }
 0x4cc   : > { %10891 = vrot.lane.b32.xlu1 %v10890_v36, %s11526_s30  ;;  %4802 = vst.msk [vmem:[#allocation2 + $0x90] sm:$0xff] %vm594_vm0, %v4770_v61 }
 0x4cf   : > { %10906 = vrot.lane.b32.xlu0 %v10905_v58, %s11524_s23  ;;  %v5023_v52 = vld [vmem:[#allocation2 + $0x87] sm:$0xff] }
 0x4d0   : > { %10901 = vrot.lane.b32.xlu1 %v10890_v36, %s11522_s18  ;;  %v4644_v6 = vpop.f32.mrb[30].mxu1  ;;  %v5055_v55 = vld [vmem:[#allocation2 + $0x88] sm:$0xff] }
 0x4d1   : > { %v4645_v19 = vadd.f32 %v14230_v60, %v4644_v6  ;;  %v4646_v50 = vpop.f32.mrb[31].mxu1 }
 0x4d3   : > { %v4771_v45 = vmax.f32 %v4645_v19, 0.0  ;;  %10916 = vrot.lane.b32.xlu0 %v10905_v58, %s11520_s0  ;;  %v5024_v57 = vld [vmem:[#allocation2 + $0x8f] sm:$0xff] }
 0x4d4   : > { %10911 = vrot.lane.b32.xlu1 %v10890_v36, %s11521_s24  ;;  %v5056_v48 = vld [vmem:[#allocation2 + $0x90] sm:$0xff]  ;;  %v4649_v38 = vpop.f32.mrb[32].mxu1  ;;  %v10920_v56 = vpack.i.bf16 %v5024_v57, %v5023_v52 }
 0x4d5   : > { %v10925_v59 = vpack.i.bf16 %v5056_v48, %v5055_v55  ;;  %4803 = vst.msk [vmem:[#allocation2 + $0xa8] sm:$0xff] %vm594_vm0, %v4771_v45  ;;  %v4650_v16 = vadd.f32 %v14230_v60, %v4649_v38  ;;  %v4651_v34 = vpop.f32.mrb[33].mxu1  ;;  %v14364_v47 = vld [vmem:[#allocation2 + $0x89] sm:$0xff]  ;;  %v4994_v51 = vld [vmem:[#allocation2 + $0x91] sm:$0xff] }
 0x4d6   : > { %v10940_v23 = vpack.i.bf16 %v4994_v51, %v14364_v47 }
 0x4d7   : > { %v4772_v13 = vmax.f32 %v4650_v16, 0.0  ;;  %10926 = vrot.lane.b32.xlu0 %v10925_v59, %s11526_s30 }
 0x4d8   : > { %10921 = vrot.lane.b32.xlu1 %v10920_v56, %s11527_s26 }
 0x4d9   : > { %4804 = vst.msk [vmem:[#allocation2 + $0xb0] sm:$0xff] %vm594_vm0, %v4772_v13 }
 0x4db   : > { %10936 = vrot.lane.b32.xlu0 %v10925_v59, %s11522_s18 }
 0x4dc   : > { %10931 = vrot.lane.b32.xlu1 %v10920_v56, %s11523_s19  ;;  %v5025_v42 = vld [vmem:[#allocation2 + $0xa7] sm:$0xff] }
 0x4dd   : > { %v5057_v37 = vld [vmem:[#allocation2 + $0xa8] sm:$0xff] }
 0x4df   : > { %v4654_v1 = vpop.f32.mrb[34].mxu1  ;;  %10946 = vrot.lane.b32.xlu0 %v10925_v59, %s11521_s24 }
 0x4e0   : > { %10941 = vrot.lane.b32.xlu1 %v10940_v23, %s11524_s23  ;;  %v4655_v27 = vadd.f32 %v14230_v60, %v4654_v1  ;;  %v4656_v20 = vpop.f32.mrb[35].mxu1  ;;  %v5026_v3 = vld [vmem:[#allocation2 + $0xaf] sm:$0xff] }
 0x4e1   : > { %v10955_v53 = vpack.i.bf16 %v5026_v3, %v5025_v42  ;;  %v5058_v43 = vld [vmem:[#allocation2 + $0xb0] sm:$0xff] }
 0x4e2   : > { %v4773_v40 = vmax.f32 %v4655_v27, 0.0  ;;  %v10960_v17 = vpack.i.bf16 %v5058_v43, %v5057_v37  ;;  %v14377_v0 = vld [vmem:[#allocation2 + $0xa9] sm:$0xff]  ;;  %v4996_v49 = vld [vmem:[#allocation2 + $0xb1] sm:$0xff] }
 0x4e3   : > { %v4659_v11 = vpop.f32.mrb[36].mxu1  ;;  %10956 = vrot.lane.b32.xlu0 %v10955_v53, %s11527_s26  ;;  %v10975_v25 = vpack.i.bf16 %v4996_v49, %v14377_v0 }
 0x4e4   : > { %10951 = vrot.lane.b32.xlu1 %v10940_v23, %s11520_s0  ;;  %4805 = vst.msk [vmem:[#allocation2 + $0xc8] sm:$0xff] %vm594_vm0, %v4773_v40  ;;  %v4660_v4 = vadd.f32 %v14230_v60, %v4659_v11  ;;  %v4661_v41 = vpop.f32.mrb[37].mxu1 }
 0x4e6   : > { %v4774_v32 = vmax.f32 %v4660_v4, 0.0 }
 0x4e7   : > { %10966 = vrot.lane.b32.xlu0 %v10955_v53, %s11523_s19 }
 0x4e8   : > { %10961 = vrot.lane.b32.xlu1 %v10960_v17, %s11526_s30  ;;  %4806 = vst.msk [vmem:[#allocation2 + $0xd0] sm:$0xff] %vm594_vm0, %v4774_v32 }
 0x4eb   : > { %10976 = vrot.lane.b32.xlu0 %v10975_v25, %s11524_s23  ;;  %v5027_v39 = vld [vmem:[#allocation2 + $0xc7] sm:$0xff] }
 0x4ec   : > { %10971 = vrot.lane.b32.xlu1 %v10960_v17, %s11522_s18  ;;  %v4664_v15 = vpop.f32.mrb[38].mxu1  ;;  %v5059_v31 = vld [vmem:[#allocation2 + $0xc8] sm:$0xff] }
 0x4ed   : > { %v4665_v22 = vadd.f32 %v14230_v60, %v4664_v15  ;;  %v4666_v12 = vpop.f32.mrb[39].mxu1 }
 0x4ef   : > { %v4775_v62 = vmax.f32 %v4665_v22, 0.0  ;;  %10986 = vrot.lane.b32.xlu0 %v10975_v25, %s11520_s0  ;;  %v5028_v28 = vld [vmem:[#allocation2 + $0xcf] sm:$0xff] }
 0x4f0   : > { %10981 = vrot.lane.b32.xlu1 %v10960_v17, %s11521_s24  ;;  %v5060_v44 = vld [vmem:[#allocation2 + $0xd0] sm:$0xff]  ;;  %v4669_v63 = vpop.f32.mrb[40].mxu1  ;;  %v10990_v29 = vpack.i.bf16 %v5028_v28, %v5027_v39 }
 0x4f1   : > { %v10995_v14 = vpack.i.bf16 %v5060_v44, %v5059_v31  ;;  %4807 = vst.msk [vmem:[#allocation2 + $0xe8] sm:$0xff] %vm594_vm0, %v4775_v62  ;;  %v4670_v36 = vadd.f32 %v14230_v60, %v4669_v63  ;;  %v4671_v61 = vpop.f32.mrb[41].mxu1  ;;  %v4997_v6 = vld [vmem:[#allocation2 + $0xc9] sm:$0xff]  ;;  %v4998_v19 = vld [vmem:[#allocation2 + $0xd1] sm:$0xff]  ;;  %v14416_v44 = vpop.permute.xlu0 %10816 }
 0x4f2   : > { %v11010_v50 = vpack.i.bf16 %v4998_v19, %v4997_v6 }
 0x4f3   : > { %v4776_v58 = vmax.f32 %v4670_v36, 0.0  ;;  %10996 = vrot.lane.b32.xlu0 %v10995_v14, %s11526_s30 }
 0x4f4   : > { %10991 = vrot.lane.b32.xlu1 %v10990_v29, %s11527_s26 }
 0x4f5   : > { %4808 = vst.msk [vmem:[#allocation2 + $0xf0] sm:$0xff] %vm594_vm0, %v4776_v58 }
 0x4f7   : > { %11006 = vrot.lane.b32.xlu0 %v10995_v14, %s11522_s18 }
 0x4f8   : > { %11001 = vrot.lane.b32.xlu1 %v10990_v29, %s11523_s19  ;;  %v5029_v55 = vld [vmem:[#allocation2 + $0xe7] sm:$0xff] }
 0x4f9   : > { %v5061_v34 = vld [vmem:[#allocation2 + $0xe8] sm:$0xff] }
 0x4fb   : > { %v4674_v52 = vpop.f32.mrb[42].mxu1  ;;  %11016 = vrot.lane.b32.xlu0 %v10995_v14, %s11521_s24 }
 0x4fc   : > { %11011 = vrot.lane.b32.xlu1 %v11010_v50, %s11524_s23  ;;  %v4675_v45 = vadd.f32 %v14230_v60, %v4674_v52  ;;  %v4676_v57 = vpop.f32.mrb[43].mxu1  ;;  %v5030_v48 = vld [vmem:[#allocation2 + $0xef] sm:$0xff]  ;;  %v14423_v52 = vpop.permute.xlu0 %5847 }
 0x4fd   : > { %v11025_v38 = vpack.i.bf16 %v5030_v48, %v5029_v55  ;;  %v5062_v56 = vld [vmem:[#allocation2 + $0xf0] sm:$0xff] }
 0x4fe   : > { %v4777_v59 = vmax.f32 %v4675_v45, 0.0  ;;  %v11030_v23 = vpack.i.bf16 %v5062_v56, %v5061_v34  ;;  %v4999_v27 = vld [vmem:[#allocation2 + $0xe9] sm:$0xff]  ;;  %v5000_v20 = vld [vmem:[#allocation2 + $0xf1] sm:$0xff] }
 0x4ff   : > { %v4679_v16 = vpop.f32.mrb[44].mxu1  ;;  %11026 = vrot.lane.b32.xlu0 %v11025_v38, %s11527_s26  ;;  %v11045_v43 = vpack.i.bf16 %v5000_v20, %v4999_v27 }
 0x500   : > { %11021 = vrot.lane.b32.xlu1 %v11010_v50, %s11520_s0  ;;  %4809 = vst.msk [vmem:[#allocation2 + $0x108] sm:$0xff] %vm594_vm0, %v4777_v59  ;;  %v4680_v13 = vadd.f32 %v14230_v60, %v4679_v16  ;;  %v4681_v51 = vpop.f32.mrb[45].mxu1 }
 0x502   : > { %v4778_v1 = vmax.f32 %v4680_v13, 0.0  ;;  %v10822_v13 = vpop.permute.xlu1 %10821 }
 0x503   : > { %v4684_v42 = vpop.f32.mrb[46].mxu1  ;;  %11036 = vrot.lane.b32.xlu0 %v11025_v38, %s11523_s19 }
 0x504   : > { %11031 = vrot.lane.b32.xlu1 %v11030_v23, %s11526_s30  ;;  %4810 = vst.msk [vmem:[#allocation2 + $0x110] sm:$0xff] %vm594_vm0, %v4778_v1  ;;  %v4685_v3 = vadd.f32 %v14230_v60, %v4684_v42  ;;  %v4686_v53 = vpop.f32.mrb[47].mxu1 }
 0x506   : > { %v4779_v40 = vmax.f32 %v4685_v3, 0.0 }
 0x507   : > { %v4689_v11 = vpop.f32.mrb[48].mxu1  ;;  %11046 = vrot.lane.b32.xlu0 %v11045_v43, %s11524_s23  ;;  %v5031_v17 = vld [vmem:[#allocation2 + $0x107] sm:$0xff] }
 0x508   : > { %11041 = vrot.lane.b32.xlu1 %v11030_v23, %s11522_s18  ;;  %4811 = vst.msk [vmem:[#allocation2 + $0x128] sm:$0xff] %vm594_vm0, %v4779_v40  ;;  %v4690_v37 = vadd.f32 %v14230_v60, %v4689_v11  ;;  %v4691_v4 = vpop.f32.mrb[49].mxu1  ;;  %v5063_v25 = vld [vmem:[#allocation2 + $0x108] sm:$0xff]  ;;  %v10818_v11 = vunpack.i.l.bf16 %v14416_v44 }
 0x50a   : > { %v4780_v41 = vmax.f32 %v4690_v37, 0.0 }
 0x50b   : > { %v4694_v32 = vpop.f32.mrb[50].mxu1  ;;  %11056 = vrot.lane.b32.xlu0 %v11045_v43, %s11520_s0  ;;  %v5032_v49 = vld [vmem:[#allocation2 + $0x10f] sm:$0xff] }
 0x50c   : > { %11051 = vrot.lane.b32.xlu1 %v11030_v23, %s11521_s24  ;;  %v5064_v15 = vld [vmem:[#allocation2 + $0x110] sm:$0xff]  ;;  %4812 = vst.msk [vmem:[#allocation2 + $0x130] sm:$0xff] %vm594_vm0, %v4780_v41  ;;  %v4695_v22 = vadd.f32 %v14230_v60, %v4694_v32  ;;  %v4696_v12 = vpop.f32.mrb[51].mxu1  ;;  %v11060_v39 = vpack.i.bf16 %v5032_v49, %v5031_v17  ;;  %v4827_v41 = vld [vmem:[#allocation2 + $0x7] sm:$0xff]  ;;  %v10819_v49 = vunpack.i.h.bf16 %v14416_v44 }
 0x50d   : > { %v11065_v62 = vpack.i.bf16 %v5064_v15, %v5063_v25  ;;  %v5001_v14 = vld [vmem:[#allocation2 + $0x109] sm:$0xff]  ;;  %v5002_v36 = vld [vmem:[#allocation2 + $0x111] sm:$0xff]  ;;  %v10823_v12 = vunpack.i.l.bf16 %v10822_v13 }
 0x50e   : > { %v4781_v28 = vmax.f32 %v4695_v22, 0.0  ;;  %v11080_v50 = vpack.i.bf16 %v5002_v36, %v5001_v14  ;;  %v4828_v22 = vld [vmem:[#allocation2 + $0xf] sm:$0xff] }
 0x50f   : > { %v4699_v31 = vpop.f32.mrb[52].mxu1  ;;  %11066 = vrot.lane.b32.xlu0 %v11065_v62, %s11526_s30  ;;  %v5033_v56 = vld [vmem:[#allocation2 + $0x127] sm:$0xff]  ;;  %v6012_v44 = vsel %vm594_vm0, %v4828_v22, %v10819_v49 }
 0x510   : > { %11061 = vrot.lane.b32.xlu1 %v11060_v39, %s11527_s26  ;;  %4813 = vst.msk [vmem:[#allocation2 + $0x148] sm:$0xff] %vm594_vm0, %v4781_v28  ;;  %v4700_v63 = vadd.f32 %v14230_v60, %v4699_v31  ;;  %v4701_v29 = vpop.f32.mrb[53].mxu1  ;;  %v5065_v23 = vld [vmem:[#allocation2 + $0x128] sm:$0xff]  ;;  %v10824_v28 = vunpack.i.h.bf16 %v10822_v13 }
 0x512   : > { %v4782_v61 = vmax.f32 %v4700_v63, 0.0 }
 0x513   : > { %v4704_v58 = vpop.f32.mrb[54].mxu1  ;;  %11076 = vrot.lane.b32.xlu0 %v11065_v62, %s11522_s18  ;;  %v5034_v57 = vld [vmem:[#allocation2 + $0x12f] sm:$0xff] }
 0x514   : > { %11071 = vrot.lane.b32.xlu1 %v11060_v39, %s11523_s19  ;;  %4814 = vst.msk [vmem:[#allocation2 + $0x150] sm:$0xff] %vm594_vm0, %v4782_v61  ;;  %v4705_v6 = vadd.f32 %v14230_v60, %v4704_v58  ;;  %v4706_v19 = vpop.f32.mrb[55].mxu1  ;;  %v11095_v59 = vpack.i.bf16 %v5034_v57, %v5033_v56  ;;  %v5066_v16 = vld [vmem:[#allocation2 + $0x130] sm:$0xff]  ;;  %v6011_v39 = vsel %vm594_vm0, %v4827_v41, %v10818_v11 }
 0x515   : > { %v11100_v42 = vpack.i.bf16 %v5066_v16, %v5065_v23  ;;  %v5003_v53 = vld [vmem:[#allocation2 + $0x129] sm:$0xff]  ;;  %v5004_v43 = vld [vmem:[#allocation2 + $0x131] sm:$0xff]  ;;  %v10832_v17 = vpop.permute.xlu1 %10831  ;;  %v6043_v61 = vsel %vm4219_vm2, %v6011_v39, %v10823_v12 }
 0x516   : > { %v4783_v45 = vmax.f32 %v4705_v6, 0.0  ;;  %v10827_v1 = vpop.permute.xlu0 %10826  ;;  %v11115_v32 = vpack.i.bf16 %v5004_v43, %v5003_v53  ;;  %v10833_v56 = vunpack.i.l.bf16 %v10832_v17  ;;  %v10834_v23 = vunpack.i.h.bf16 %v10832_v17 }
 0x517   : > { %v4709_v55 = vpop.f32.mrb[56].mxu1  ;;  %11086 = vrot.lane.b32.xlu0 %v11065_v62, %s11521_s24  ;;  %v10828_v14 = vunpack.i.l.bf16 %v10827_v1  ;;  %v5035_v19 = vld [vmem:[#allocation2 + $0x147] sm:$0xff] }
 0x518   : > { %11081 = vrot.lane.b32.xlu1 %v11080_v50, %s11524_s23  ;;  %4815 = vst.msk [vmem:[#allocation2 + $0x168] sm:$0xff] %vm594_vm0, %v4783_v45  ;;  %v4710_v48 = vadd.f32 %v14230_v60, %v4709_v55  ;;  %v4711_v38 = vpop.f32.mrb[57].mxu1 }
 0x519   : > { %v14447_v58 = vpop.permute.xlu1 %10841  ;;  %v6044_v38 = vsel %vm4219_vm2, %v6012_v44, %v10824_v28  ;;  %v6075_v13 = vsel %vm4252_vm3, %v6043_v61, %v10828_v14 }
 0x51a   : > { %v4784_v34 = vmax.f32 %v4710_v48, 0.0  ;;  %v10837_v25 = vpop.permute.xlu0 %10836  ;;  %v5067_v48 = vld [vmem:[#allocation2 + $0x148] sm:$0xff]  ;;  %v6107_v53 = vsel %vm4285_vm4, %v6075_v13, %v10833_v56  ;;  %v10844_v56 = vunpack.i.h.bf16 %v14447_v58 }
 0x51b   : > { %v4714_v51 = vpop.f32.mrb[58].mxu1  ;;  %11096 = vrot.lane.b32.xlu0 %v11095_v59, %s11527_s26  ;;  %v5036_v29 = vld [vmem:[#allocation2 + $0x14f] sm:$0xff] }
 0x51c   : > { %11091 = vrot.lane.b32.xlu1 %v11080_v50, %s11520_s0  ;;  %4816 = vst.msk [vmem:[#allocation2 + $0x170] sm:$0xff] %vm594_vm0, %v4784_v34  ;;  %v4715_v27 = vadd.f32 %v14230_v60, %v4714_v51  ;;  %v4716_v20 = vpop.f32.mrb[59].mxu1  ;;  %v5068_v36 = vld [vmem:[#allocation2 + $0x150] sm:$0xff]  ;;  %v10829_v50 = vunpack.i.h.bf16 %v10827_v1  ;;  %v11130_v55 = vpack.i.bf16 %v5036_v29, %v5035_v19  ;;  %v10838_v51 = vunpack.i.l.bf16 %v10837_v25 }
 0x51d   : > { %v11135_v34 = vpack.i.bf16 %v5068_v36, %v5067_v48  ;;  %v10839_v20 = vunpack.i.h.bf16 %v10837_v25 }
 0x51e   : > { %v4785_v3 = vmax.f32 %v4715_v27, 0.0  ;;  %v14450_v45 = vpop.permute.xlu0 %10846  ;;  %v6076_v27 = vsel %vm4252_vm3, %v6044_v38, %v10829_v50  ;;  %v6139_v41 = vsel %vm4318_vm5, %v6107_v53, %v10838_v51 }
 0x51f   : > { %v4719_v40 = vpop.f32.mrb[60].mxu1  ;;  %11106 = vrot.lane.b32.xlu0 %v11095_v59, %s11523_s19  ;;  %v5037_v61 = vld [vmem:[#allocation2 + $0x167] sm:$0xff]  ;;  %v10849_v51 = vunpack.i.h.bf16 %v14450_v45 }
 0x520   : > { %11101 = vrot.lane.b32.xlu1 %v11100_v42, %s11526_s30  ;;  %4817 = vst.msk [vmem:[#allocation2 + $0x188] sm:$0xff] %vm594_vm0, %v4785_v3  ;;  %v4720_v37 = vadd.f32 %v14230_v60, %v4719_v40  ;;  %v4721_v4 = vpop.f32.mrb[61].mxu1  ;;  %v5069_v38 = vld [vmem:[#allocation2 + $0x168] sm:$0xff] }
 0x521   : > { %v5006_v4 = vld [vmem:[#allocation2 + $0x151] sm:$0xff] }
 0x522   : > { %v4786_v15 = vmax.f32 %v4720_v37, 0.0  ;;  %v5005_v37 = vld [vmem:[#allocation2 + $0x149] sm:$0xff] }
 0x523   : > { %11116 = vrot.lane.b32.xlu0 %v11115_v32, %s11524_s23  ;;  %v11150_v12 = vpack.i.bf16 %v5006_v4, %v5005_v37  ;;  %v5038_v28 = vld [vmem:[#allocation2 + $0x16f] sm:$0xff] }
 0x524   : > { %11111 = vrot.lane.b32.xlu1 %v11100_v42, %s11522_s18  ;;  %4818 = vst.msk [vmem:[#allocation2 + $0x190] sm:$0xff] %vm594_vm0, %v4786_v15  ;;  %v4724_v62 = vpop.f32.mrb[62].mxu1  ;;  %v5070_v50 = vld [vmem:[#allocation2 + $0x170] sm:$0xff] }
 0x525   : > { %v4725_v31 = vadd.f32 %v14230_v60, %v4724_v62  ;;  %v4726_v63 = vpop.f32.mrb[63].mxu1  ;;  %v11170_v13 = vpack.i.bf16 %v5070_v50, %v5069_v38  ;;  %v5008_v53 = vld [vmem:[#allocation2 + $0x171] sm:$0xff] }
 0x526   : > { %v10843_v63 = vunpack.i.l.bf16 %v14447_v58 }
 0x527   : > { %v4787_v6 = vmax.f32 %v4725_v31, 0.0  ;;  %11126 = vrot.lane.b32.xlu0 %v11115_v32, %s11520_s0  ;;  %v6108_v32 = vsel %vm4285_vm4, %v6076_v27, %v10834_v23  ;;  %v5039_v38 = vld [vmem:[#allocation2 + $0x187] sm:$0xff] }
 0x528   : > { %11121 = vrot.lane.b32.xlu1 %v11100_v42, %s11521_s24  ;;  %v4729_v57 = vpop.f32.mrb[64].mxu1  ;;  %v6140_v39 = vsel %vm4318_vm5, %v6108_v32, %v10839_v20 }
 0x529   : > { %4819 = vst.msk [vmem:[#allocation2 + $0x1a8] sm:$0xff] %vm594_vm0, %v4787_v6  ;;  %v4730_v59 = vadd.f32 %v14230_v60, %v4729_v57  ;;  %v4731_v16 = vpop.f32.mrb[65].mxu1  ;;  %v10848_v6 = vunpack.i.l.bf16 %v14450_v45  ;;  %v6014_v45 = vsel %vm594_vm0, %v14272_v10, %v10844_v56 }
 0x52b   : > { %v4788_v1 = vmax.f32 %v4730_v59, 0.0  ;;  %11136 = vrot.lane.b32.xlu0 %v11135_v34, %s11526_s30  ;;  %v6013_v59 = vsel %vm594_vm0, %v14270_v26, %v10843_v63 }
 0x52c   : > { %11131 = vrot.lane.b32.xlu1 %v11130_v55, %s11527_s26  ;;  %v6045_v23 = vsel %vm4219_vm2, %v6013_v59, %v10848_v6 }
 0x52d   : > { %v10857_v42 = vpop.permute.xlu0 %10856  ;;  %4820 = vst.msk [vmem:[#allocation2 + $0x1b0] sm:$0xff] %vm594_vm0, %v4788_v1 }
 0x52e   : > { %v10852_v3 = vpop.permute.xlu1 %10851  ;;  %v10858_v43 = vunpack.i.l.bf16 %v10857_v42  ;;  %v10859_v49 = vunpack.i.h.bf16 %v10857_v42 }
 0x52f   : > { %v10854_v40 = vunpack.i.h.bf16 %v10852_v3  ;;  %v10853_v11 = vunpack.i.l.bf16 %v10852_v3  ;;  %11146 = vrot.lane.b32.xlu0 %v11135_v34, %s11522_s18  ;;  %v14500_v3 = vld [vmem:[#allocation2 + $0x169] sm:$0xff] }
 0x530   : > { %11141 = vrot.lane.b32.xlu1 %v11130_v55, %s11523_s19 }
 0x531   : > { %v6171_v17 = vsel %vm4351_vm11, %v6139_v41, %v10853_v11  ;;  %v14466_v25 = vpop.permute.xlu0 %10866  ;;  %v6172_v62 = vsel %vm4351_vm11, %v6140_v39, %v10854_v40  ;;  %v6046_v40 = vsel %vm4219_vm2, %v6014_v45, %v10849_v51  ;;  %v11185_v41 = vpack.i.bf16 %v5008_v53, %v14500_v3 }
 0x532   : > { %v10862_v15 = vpop.permute.xlu1 %10861  ;;  %v6203_v22 = vsel %vm4384_vm6, %v6171_v17, %v10858_v43  ;;  %v6204_v36 = vsel %vm4384_vm6, %v6172_v62, %v10859_v49  ;;  %v10869_v11 = vunpack.i.h.bf16 %v14466_v25 }
 0x533   : > { %6421 = vmatmul.mubr.f32.vlgmr.msra.gmra.mrb[18].mxu0 %v6203_v22  ;;  %v4734_v31 = vpop.f32.mrb[66].mxu1  ;;  %11156 = vrot.lane.b32.xlu0 %v11135_v34, %s11521_s24  ;;  %v10863_v57 = vunpack.i.l.bf16 %v10862_v15  ;;  %v10864_v20 = vunpack.i.h.bf16 %v10862_v15 }
 0x534   : > { %11151 = vrot.lane.b32.xlu1 %v11150_v12, %s11524_s23  ;;  %9707 = vmatprep.mubr.msk.f32.mxu0 %vm594_vm0, %v14327_v30  ;;  %v4735_v29 = vadd.f32 %v14230_v60, %v4734_v31  ;;  %v4736_v44 = vpop.f32.mrb[67].mxu1  ;;  %v11165_v30 = vpack.i.bf16 %v5038_v28, %v5037_v61 }
 0x535   : > { %v14477_v14 = vpop.permute.xlu0 %10876  ;;  %v6077_v58 = vsel %vm4252_vm3, %v6045_v23, %v10863_v57  ;;  %v6078_v32 = vsel %vm4252_vm3, %v6046_v40, %v10864_v20 }
 0x536   : > { %v14481_v19 = vpop.permute.xlu1 %10871  ;;  %v4789_v55 = vmax.f32 %v4735_v29, 0.0  ;;  %v10878_v28 = vunpack.i.l.bf16 %v14477_v14  ;;  %v6110_v44 = vsel %vm4285_vm4, %v6078_v32, %v10869_v11  ;;  %v10879_v50 = vunpack.i.h.bf16 %v14477_v14 }
 0x537   : > { %6426 = vmatmul.mubr.f32.gmra.mrb[20].mxu0 %v6204_v36  ;;  %v4739_v48 = vpop.f32.mrb[68].mxu1  ;;  %11166 = vrot.lane.b32.xlu0 %v11165_v30, %s11527_s26  ;;  %v10873_v26 = vunpack.i.l.bf16 %v14481_v19  ;;  %v10874_v49 = vunpack.i.h.bf16 %v14481_v19  ;;  %v5040_v36 = vld [vmem:[#allocation2 + $0x18f] sm:$0xff] }
 0x538   : > { %11161 = vrot.lane.b32.xlu1 %v11150_v12, %s11520_s0  ;;  %9708 = vmatprep.mubr.msk.f32.mxu0 %vm594_vm0, %v14346_v33  ;;  %4821 = vst.msk [vmem:[#allocation2 + $0x1c8] sm:$0xff] %vm594_vm0, %v4789_v55  ;;  %v4740_v16 = vadd.f32 %v14230_v60, %v4739_v48  ;;  %v4741_v34 = vpop.f32.mrb[69].mxu1  ;;  %v10868_v33 = vunpack.i.l.bf16 %v14466_v25  ;;  %v6015_v51 = vsel %vm594_vm0, %v14315_v46, %v10878_v28 }
 0x539   : > { %v10887_v27 = vpop.permute.xlu0 %10886  ;;  %v6142_v19 = vsel %vm4318_vm5, %v6110_v44, %v10874_v49  ;;  %v11200_v34 = vpack.i.bf16 %v5040_v36, %v5039_v38  ;;  %v6016_v46 = vsel %vm594_vm0, %v14317_v8, %v10879_v50  ;;  %v5042_v36 = vld [vmem:[#allocation2 + $0x1af] sm:$0xff] }
 0x53a   : > { %v14495_v1 = vpop.permute.xlu1 %10881  ;;  %v4790_v42 = vmax.f32 %v4740_v16, 0.0  ;;  %v10888_v43 = vunpack.i.l.bf16 %v10887_v27  ;;  %v6109_v17 = vsel %vm4285_vm4, %v6077_v58, %v10868_v33  ;;  %v10889_v22 = vunpack.i.h.bf16 %v10887_v27 }
 0x53b   : > { %11176 = vrot.lane.b32.xlu0 %v11165_v30, %s11523_s19  ;;  %v6141_v10 = vsel %vm4318_vm5, %v6109_v17, %v10873_v26  ;;  %v10883_v61 = vunpack.i.l.bf16 %v14495_v1  ;;  %v5072_v30 = vld [vmem:[#allocation2 + $0x190] sm:$0xff]  ;;  %v10884_v56 = vunpack.i.h.bf16 %v14495_v1 }
 0x53c   : > { %11171 = vrot.lane.b32.xlu1 %v11170_v13, %s11526_s30  ;;  %4822 = vst.msk [vmem:[#allocation2 + $0x1d0] sm:$0xff] %vm594_vm0, %v4790_v42  ;;  %v6173_v25 = vsel %vm4351_vm11, %v6141_v10, %v10888_v43  ;;  %v6174_v48 = vsel %vm4351_vm11, %v6142_v19, %v10889_v22 }
 0x53d   : > { %v10897_v4 = vpop.permute.xlu0 %10896  ;;  %v6047_v1 = vsel %vm4219_vm2, %v6015_v51, %v10883_v61  ;;  %v6048_v45 = vsel %vm4219_vm2, %v6016_v46, %v10884_v56  ;;  %v5074_v56 = vld [vmem:[#allocation2 + $0x1b0] sm:$0xff] }
 0x53e   : > { %v10892_v37 = vpop.permute.xlu1 %10891  ;;  %v10898_v57 = vunpack.i.l.bf16 %v10897_v4  ;;  %v10899_v23 = vunpack.i.h.bf16 %v10897_v4  ;;  %v14550_v4 = vld [vmem:[#allocation2 + $0x189] sm:$0xff] }
 0x53f   : > { %v10893_v15 = vunpack.i.l.bf16 %v10892_v37  ;;  %11186 = vrot.lane.b32.xlu0 %v11185_v41, %s11524_s23  ;;  %v10894_v12 = vunpack.i.h.bf16 %v10892_v37 }
 0x540   : > { %11181 = vrot.lane.b32.xlu1 %v11170_v13, %s11522_s18  ;;  %v4744_v39 = vpop.f32.mrb[70].mxu1  ;;  %v6079_v42 = vsel %vm4252_vm3, %v6047_v1, %v10898_v57  ;;  %v6080_v11 = vsel %vm4252_vm3, %v6048_v45, %v10899_v23  ;;  %v14601_v45 = vld [vmem:[#allocation2 + $0x1a9] sm:$0xff] }
 0x541   : > { %v6205_v62 = vsel %vm4384_vm6, %v6173_v25, %v10893_v15  ;;  %v4745_v31 = vadd.f32 %v14230_v60, %v4744_v39  ;;  %v4746_v29 = vpop.f32.mrb[71].mxu1  ;;  %v10907_v6 = vpop.permute.xlu0 %10906 }
 0x542   : > { %v10902_v63 = vpop.permute.xlu1 %10901  ;;  %6431 = vmatmul.mubr.f32.gmra.mrb[22].mxu0 %v6205_v62  ;;  %v10908_v53 = vunpack.i.l.bf16 %v10907_v6  ;;  %v10909_v37 = vunpack.i.h.bf16 %v10907_v6  ;;  %v5088_v29 = vld [vmem:[#allocation2 + $0x91] sm:$0xff] }
 0x543   : > { %9709 = vmatprep.mubr.msk.f32.mxu0 %vm594_vm0, %v14348_v2  ;;  %v4791_v55 = vmax.f32 %v4745_v31, 0.0  ;;  %11196 = vrot.lane.b32.xlu0 %v11185_v41, %s11520_s0  ;;  %v10903_v59 = vunpack.i.l.bf16 %v10902_v63  ;;  %v6206_v2 = vsel %vm4384_vm6, %v6174_v48, %v10894_v12  ;;  %v10904_v58 = vunpack.i.h.bf16 %v10902_v63  ;;  %v14552_v41 = vld [vmem:[#allocation2 + $0x191] sm:$0xff] }
 0x544   : > { %11191 = vrot.lane.b32.xlu1 %v11170_v13, %s11521_s24  ;;  %v4749_v16 = vpop.f32.mrb[72].mxu1  ;;  %v5071_v13 = vld [vmem:[#allocation2 + $0x188] sm:$0xff]  ;;  %v11220_v25 = vpack.i.bf16 %v14552_v41, %v14550_v4 }
 0x545   : > { %4823 = vst.msk [vmem:[#allocation2 + $0x1e8] sm:$0xff] %vm594_vm0, %v4791_v55  ;;  %v4750_v14 = vadd.f32 %v14230_v60, %v4749_v16  ;;  %v4751_v27 = vpop.f32.mrb[73].mxu1  ;;  %v11205_v20 = vpack.i.bf16 %v5072_v30, %v5071_v13  ;;  %v14537_v26 = vpop.permute.xlu0 %10916  ;;  %v6111_v40 = vsel %vm4285_vm4, %v6079_v42, %v10903_v59  ;;  %v6112_v8 = vsel %vm4285_vm4, %v6080_v11, %v10904_v58  ;;  %v14571_v30 = vld [vmem:[#allocation2 + $0x1a7] sm:$0xff] }
 0x546   : > { %v14534_v33 = vpop.permute.xlu1 %10911  ;;  %6436 = vmatmul.mubr.f32.gmra.mrb[24].mxu0 %v6206_v2  ;;  %v6143_v10 = vsel %vm4318_vm5, %v6111_v40, %v10908_v53  ;;  %v6144_v28 = vsel %vm4318_vm5, %v6112_v8, %v10909_v37  ;;  %v10918_v57 = vunpack.i.l.bf16 %v14537_v26  ;;  %v11235_v38 = vpack.i.bf16 %v5042_v36, %v14571_v30  ;;  %v5073_v13 = vld [vmem:[#allocation2 + $0x1a8] sm:$0xff] }
 0x547   : > { %9710 = vmatprep.mubr.msk.f32.mxu0 %vm594_vm0, %v14364_v47  ;;  %v4792_v43 = vmax.f32 %v4750_v14, 0.0  ;;  %11206 = vrot.lane.b32.xlu0 %v11205_v20, %s11526_s30  ;;  %v10913_v31 = vunpack.i.l.bf16 %v14534_v33  ;;  %v10914_v50 = vunpack.i.h.bf16 %v14534_v33  ;;  %v11240_v14 = vpack.i.bf16 %v5074_v56, %v5073_v13 }
 0x548   : > { %11201 = vrot.lane.b32.xlu1 %v11200_v34, %s11527_s26  ;;  %v10919_v27 = vunpack.i.h.bf16 %v14537_v26 }
 0x549   : > { %4824 = vst.msk [vmem:[#allocation2 + $0x1f0] sm:$0xff] %vm594_vm0, %v4792_v43  ;;  %v10927_v49 = vpop.permute.xlu0 %10926  ;;  %v6017_v59 = vsel %vm594_vm0, %v14335_v54, %v10913_v31  ;;  %v11370_v54 = vld [vmem:[%s17196_s5] ss:$0 sm:$0xff]  ;;  %v6018_v33 = vsel %vm594_vm0, %v14337_v24, %v10914_v50  ;;  %v14603_v24 = vld [vmem:[#allocation2 + $0x1b1] sm:$0xff] }
 0x54a   : > { %v10922_v47 = vpop.permute.xlu1 %10921  ;;  %v10928_v15 = vunpack.i.l.bf16 %v10927_v49  ;;  %v10929_v12 = vunpack.i.h.bf16 %v10927_v49  ;;  %v6050_v40 = vsel %vm4219_vm2, %v6018_v33, %v10919_v27  ;;  %v11255_v8 = vpack.i.bf16 %v14603_v24, %v14601_v45 }
 0x54b   : > { %v10924_v17 = vunpack.i.h.bf16 %v10922_v47  ;;  %v10923_v32 = vunpack.i.l.bf16 %v10922_v47  ;;  %11216 = vrot.lane.b32.xlu0 %v11205_v20, %s11522_s18 }
 0x54c   : > { %11211 = vrot.lane.b32.xlu1 %v11200_v34, %s11523_s19 }
 0x54d   : > { %v6175_v22 = vsel %vm4351_vm11, %v6143_v10, %v10923_v32  ;;  %v14564_v63 = vpop.permute.xlu0 %10936  ;;  %v6176_v44 = vsel %vm4351_vm11, %v6144_v28, %v10924_v17 }
 0x54e   : > { %v10932_v39 = vpop.permute.xlu1 %10931  ;;  %v6207_v62 = vsel %vm4384_vm6, %v6175_v22, %v10928_v15  ;;  %v6208_v48 = vsel %vm4384_vm6, %v6176_v44, %v10929_v12  ;;  %v10939_v11 = vunpack.i.h.bf16 %v14564_v63 }
 0x54f   : > { %6441 = vmatmul.mubr.f32.gmra.mrb[26].mxu0 %v6207_v62  ;;  %v4754_v61 = vpop.f32.mrb[74].mxu1  ;;  %11226 = vrot.lane.b32.xlu0 %v11205_v20, %s11521_s24  ;;  %v10933_v16 = vunpack.i.l.bf16 %v10932_v39  ;;  %v10938_v20 = vunpack.i.l.bf16 %v14564_v63  ;;  %v10934_v58 = vunpack.i.h.bf16 %v10932_v39  ;;  %v5090_v63 = vld [vmem:[#allocation2 + $0xb1] sm:$0xff] }
 0x550   : > { %11221 = vrot.lane.b32.xlu1 %v11220_v25, %s11524_s23  ;;  %9711 = vmatprep.mubr.msk.f32.mxu0 %vm594_vm0, %v5088_v29  ;;  %v4755_v6 = vadd.f32 %v14230_v60, %v4754_v61  ;;  %v4756_v19 = vpop.f32.mrb[75].mxu1  ;;  %v14621_v29 = vld [vmem:[#allocation2 + $0x1cf] sm:$0xff] }
 0x551   : > { %v14581_v60 = vpop.permute.xlu0 %10946  ;;  %v6082_v17 = vsel %vm4252_vm3, %v6050_v40, %v10934_v58  ;;  %v14652_v40 = vld [vmem:[#allocation2 + $0x1d1] sm:$0xff] }
 0x552   : > { %v14575_v55 = vpop.permute.xlu1 %10941  ;;  %v4793_v2 = vmax.f32 %v4755_v6, 0.0  ;;  %v6114_v62 = vsel %vm4285_vm4, %v6082_v17, %v10939_v11  ;;  %v10948_v28 = vunpack.i.l.bf16 %v14581_v60  ;;  %v5076_v6 = vld [vmem:[#allocation2 + $0x1d0] sm:$0xff]  ;;  %v10949_v19 = vunpack.i.h.bf16 %v14581_v60 }
 0x553   : > { %6446 = vmatmul.mubr.f32.gmra.mrb[28].mxu0 %v6208_v48  ;;  %v4759_v34 = vpop.f32.mrb[76].mxu1  ;;  %11236 = vrot.lane.b32.xlu0 %v11235_v38, %s11527_s26  ;;  %v10943_v42 = vunpack.i.l.bf16 %v14575_v55  ;;  %v10944_v32 = vunpack.i.h.bf16 %v14575_v55  ;;  %v14630_v55 = vld [vmem:[#allocation2 + $0x1c7] sm:$0xff] }
 0x554   : > { %11231 = vrot.lane.b32.xlu1 %v11220_v25, %s11520_s0  ;;  %9712 = vmatprep.mubr.msk.f32.mxu0 %vm594_vm0, %v14377_v0  ;;  %4825 = vst.msk [vmem:[#allocation2 + $0x208] sm:$0xff] %vm594_vm0, %v4793_v2  ;;  %v4760_v51 = vadd.f32 %v11370_v54, %v4759_v34  ;;  %v4761_v23 = vpop.f32.mrb[77].mxu1  ;;  %v6049_v0 = vsel %vm4219_vm2, %v6017_v59, %v10918_v57  ;;  %v4835_v48 = vld [vmem:[#allocation2 + $0x87] sm:$0xff] }
 0x555   : > { %v6081_v46 = vsel %vm4252_vm3, %v6049_v0, %v10933_v16  ;;  %v10957_v43 = vpop.permute.xlu0 %10956  ;;  %v6146_v61 = vsel %vm4318_vm5, %v6114_v62, %v10944_v32  ;;  %v11270_v16 = vpack.i.bf16 %v14621_v29, %v14630_v55  ;;  %v5075_v2 = vld [vmem:[#allocation2 + $0x1c8] sm:$0xff]  ;;  %v6019_v34 = vsel %vm594_vm0, %v4835_v48, %v10948_v28  ;;  %v5092_v28 = vld [vmem:[#allocation2 + $0xd1] sm:$0xff] }
 0x556   : > { %v14596_v1 = vpop.permute.xlu1 %10951  ;;  %v4794_v53 = vmax.f32 %v4760_v51, 0.0  ;;  %v10958_v26 = vunpack.i.l.bf16 %v10957_v43  ;;  %v6113_v37 = vsel %vm4285_vm4, %v6081_v46, %v10938_v20  ;;  %v10959_v22 = vunpack.i.h.bf16 %v10957_v43  ;;  %v5091_v54 = vld [vmem:[#allocation2 + $0xc9] sm:$0xff] }
 0x557   : > { %11246 = vrot.lane.b32.xlu0 %v11235_v38, %s11523_s19  ;;  %v6145_v10 = vsel %vm4318_vm5, %v6113_v37, %v10943_v42  ;;  %v10953_v44 = vunpack.i.l.bf16 %v14596_v1  ;;  %v10954_v38 = vunpack.i.h.bf16 %v14596_v1  ;;  %v11275_v51 = vpack.i.bf16 %v5076_v6, %v5075_v2  ;;  %v4836_v23 = vld [vmem:[#allocation2 + $0x8f] sm:$0xff] }
 0x558   : > { %11241 = vrot.lane.b32.xlu1 %v11240_v14, %s11526_s30  ;;  %4826 = vst.msk [vmem:[#allocation2 + $0x210] sm:$0xff] %vm594_vm0, %v4794_v53  ;;  %v6177_v25 = vsel %vm4351_vm11, %v6145_v10, %v10958_v26  ;;  %v6178_v57 = vsel %vm4351_vm11, %v6146_v61, %v10959_v22  ;;  %v6020_v0 = vsel %vm594_vm0, %v4836_v23, %v10949_v19  ;;  %v14650_v26 = vld [vmem:[#allocation2 + $0x1c9] sm:$0xff] }
 0x559   : > { %v10967_v15 = vpop.permute.xlu0 %10966  ;;  %v6052_v58 = vsel %vm4219_vm2, %v6020_v0, %v10954_v38  ;;  %v5077_v2 = vld [vmem:[#allocation2 + $0x1e8] sm:$0xff] }
 0x55a   : > { %v10962_v47 = vpop.permute.xlu1 %10961  ;;  %v10968_v50 = vunpack.i.l.bf16 %v10967_v15  ;;  %v10969_v60 = vunpack.i.h.bf16 %v10967_v15  ;;  %v11290_v15 = vpack.i.bf16 %v14652_v40, %v14650_v26 }
 0x55b   : > { %v10963_v49 = vunpack.i.l.bf16 %v10962_v47  ;;  %11256 = vrot.lane.b32.xlu0 %v11255_v8, %s11524_s23  ;;  %v10964_v12 = vunpack.i.h.bf16 %v10962_v47 }
 0x55c   : > { %11251 = vrot.lane.b32.xlu1 %v11240_v14, %s11522_s18  ;;  %v6084_v42 = vsel %vm4252_vm3, %v6052_v58, %v10969_v60  ;;  %v4838_v60 = vld [vmem:[#allocation2 + $0xaf] sm:$0xff] }
 0x55d   : > { %v6209_v39 = vsel %vm4384_vm6, %v6177_v25, %v10963_v49  ;;  %v10977_v36 = vpop.permute.xlu0 %10976  ;;  %v6210_v59 = vsel %vm4384_vm6, %v6178_v57, %v10964_v12  ;;  %v5078_v57 = vld [vmem:[#allocation2 + $0x1f0] sm:$0xff] }
 0x55e   : > { %v10972_v31 = vpop.permute.xlu1 %10971  ;;  %6451 = vmatmul.mubr.f32.gmra.mrb[30].mxu0 %v6209_v39  ;;  %v10978_v1 = vunpack.i.l.bf16 %v10977_v36  ;;  %v10979_v53 = vunpack.i.h.bf16 %v10977_v36  ;;  %v4837_v36 = vld [vmem:[#allocation2 + $0xa7] sm:$0xff] }
 0x55f   : > { %9713 = vmatprep.mubr.msk.f32.mxu0 %vm594_vm0, %v5090_v63  ;;  %11266 = vrot.lane.b32.xlu0 %v11255_v8, %s11520_s0  ;;  %v10973_v56 = vunpack.i.l.bf16 %v10972_v31  ;;  %v10974_v33 = vunpack.i.h.bf16 %v10972_v31  ;;  %v14666_v63 = vld [vmem:[#allocation2 + $0x1ef] sm:$0xff] }
 0x560   : > { %11261 = vrot.lane.b32.xlu1 %v11240_v14, %s11521_s24  ;;  %v6051_v14 = vsel %vm4219_vm2, %v6019_v34, %v10953_v44  ;;  %v14670_v44 = vld [vmem:[#allocation2 + $0x1e7] sm:$0xff]  ;;  %v11310_v34 = vpack.i.bf16 %v5078_v57, %v5077_v2 }
 0x561   : > { %v14640_v27 = vpop.permute.xlu0 %10986  ;;  %v6083_v20 = vsel %vm4252_vm3, %v6051_v14, %v10968_v50  ;;  %v6116_v11 = vsel %vm4285_vm4, %v6084_v42, %v10974_v33  ;;  %v11305_v50 = vpack.i.bf16 %v14666_v63, %v14670_v44  ;;  %v14690_v58 = vld [vmem:[#allocation2 + $0x1e9] sm:$0xff] }
 0x562   : > { %v14637_v13 = vpop.permute.xlu1 %10981  ;;  %6456 = vmatmul.mubr.f32.gmra.mrb[32].mxu0 %v6210_v59  ;;  %v6115_v46 = vsel %vm4285_vm4, %v6083_v20, %v10973_v56  ;;  %v6148_v12 = vsel %vm4318_vm5, %v6116_v11, %v10979_v53  ;;  %v10988_v61 = vunpack.i.l.bf16 %v14640_v27 }
 0x563   : > { %9714 = vmatprep.mubr.msk.f32.mxu0 %vm594_vm0, %v5091_v54  ;;  %11276 = vrot.lane.b32.xlu0 %v11275_v51, %s11526_s30  ;;  %v6147_v32 = vsel %vm4318_vm5, %v6115_v46, %v10978_v1  ;;  %v10983_v39 = vunpack.i.l.bf16 %v14637_v13  ;;  %v10984_v48 = vunpack.i.h.bf16 %v14637_v13  ;;  %v10989_v54 = vunpack.i.h.bf16 %v14640_v27  ;;  %v14692_v46 = vld [vmem:[#allocation2 + $0x1f1] sm:$0xff] }
 0x564   : > { %11271 = vrot.lane.b32.xlu1 %v11270_v16, %s11527_s26 }
 0x565   : > { %v10997_v8 = vpop.permute.xlu0 %10996  ;;  %v6021_v38 = vsel %vm594_vm0, %v4837_v36, %v10983_v39  ;;  %v6022_v14 = vsel %vm594_vm0, %v4838_v60, %v10984_v48 }
 0x566   : > { %v10992_v43 = vpop.permute.xlu1 %10991  ;;  %v10998_v17 = vunpack.i.l.bf16 %v10997_v8  ;;  %v10999_v10 = vunpack.i.h.bf16 %v10997_v8  ;;  %v6053_v13 = vsel %vm4219_vm2, %v6021_v38, %v10988_v61  ;;  %v6054_v27 = vsel %vm4219_vm2, %v6022_v14, %v10989_v54  ;;  %v5047_v38 = vld [vmem:[#allocation2 + $0x207] sm:$0xff] }
 0x567   : > { %v10994_v37 = vunpack.i.h.bf16 %v10992_v43  ;;  %v10993_v47 = vunpack.i.l.bf16 %v10992_v43  ;;  %11286 = vrot.lane.b32.xlu0 %v11275_v51, %s11522_s18 }
 0x568   : > { %11281 = vrot.lane.b32.xlu1 %v11270_v16, %s11523_s19  ;;  %v5093_v16 = vld [vmem:[#allocation2 + $0xe9] sm:$0xff] }
 0x569   : > { %v6179_v49 = vsel %vm4351_vm11, %v6147_v32, %v10993_v47  ;;  %v11007_v62 = vpop.permute.xlu0 %11006  ;;  %v6180_v31 = vsel %vm4351_vm11, %v6148_v12, %v10994_v37  ;;  %v11325_v37 = vpack.i.bf16 %v14692_v46, %v14690_v58 }
 0x56a   : > { %v11002_v22 = vpop.permute.xlu1 %11001  ;;  %v6211_v25 = vsel %vm4384_vm6, %v6179_v49, %v10998_v17  ;;  %v6212_v19 = vsel %vm4384_vm6, %v6180_v31, %v10999_v10  ;;  %v11009_v53 = vunpack.i.h.bf16 %v11007_v62  ;;  %v5048_v31 = vld [vmem:[#allocation2 + $0x20f] sm:$0xff] }
 0x56b   : > { %6461 = vmatmul.mubr.f32.gmra.mrb[34].mxu0 %v6211_v25  ;;  %11296 = vrot.lane.b32.xlu0 %v11275_v51, %s11521_s24  ;;  %v11003_v56 = vunpack.i.l.bf16 %v11002_v22  ;;  %v11008_v51 = vunpack.i.l.bf16 %v11007_v62  ;;  %v11004_v33 = vunpack.i.h.bf16 %v11002_v22  ;;  %v11340_v54 = vpack.i.bf16 %v5048_v31, %v5047_v38  ;;  %v4841_v38 = vld [vmem:[#allocation2 + $0xe7] sm:$0xff] }
 0x56c   : > { %11291 = vrot.lane.b32.xlu1 %v11290_v15, %s11524_s23  ;;  %9715 = vmatprep.mubr.msk.f32.mxu0 %vm594_vm0, %v5092_v28  ;;  %v5094_v28 = vld [vmem:[#allocation2 + $0xf1] sm:$0xff] }
 0x56d   : > { %v14678_v59 = vpop.permute.xlu0 %11016  ;;  %v6085_v0 = vsel %vm4252_vm3, %v6053_v13, %v11003_v56  ;;  %v6086_v47 = vsel %vm4252_vm3, %v6054_v27, %v11004_v33  ;;  %v4839_v56 = vld [vmem:[#allocation2 + $0xc7] sm:$0xff] }
 0x56e   : > { %v11012_v6 = vpop.permute.xlu1 %11011  ;;  %v6117_v43 = vsel %vm4285_vm4, %v6085_v0, %v11008_v51  ;;  %v6118_v12 = vsel %vm4285_vm4, %v6086_v47, %v11009_v53  ;;  %v11018_v39 = vunpack.i.l.bf16 %v14678_v59  ;;  %v5079_v13 = vld [vmem:[#allocation2 + $0x208] sm:$0xff] }
 0x56f   : > { %6466 = vmatmul.mubr.f32.gmra.mrb[36].mxu0 %v6212_v19  ;;  %11306 = vrot.lane.b32.xlu0 %v11305_v50, %s11527_s26  ;;  %v11013_v20 = vunpack.i.l.bf16 %v11012_v6  ;;  %v11014_v8 = vunpack.i.h.bf16 %v11012_v6  ;;  %v5080_v19 = vld [vmem:[#allocation2 + $0x210] sm:$0xff] }
 0x570   : > { %11301 = vrot.lane.b32.xlu1 %v11290_v15, %s11520_s0  ;;  %9716 = vmatprep.mubr.msk.f32.mxu0 %vm594_vm0, %v5093_v16  ;;  %v11345_v33 = vpack.i.bf16 %v5080_v19, %v5079_v13  ;;  %v4840_v0 = vld [vmem:[#allocation2 + $0xcf] sm:$0xff] }
 0x571   : > { %v11027_v1 = vpop.permute.xlu0 %11026  ;;  %v6149_v49 = vsel %vm4318_vm5, %v6117_v43, %v11013_v20  ;;  %v6150_v6 = vsel %vm4318_vm5, %v6118_v12, %v11014_v8  ;;  %v14742_v19 = vld [vmem:[#allocation2 + $0x211] sm:$0xff] }
 0x572   : > { %v14685_v23 = vpop.permute.xlu1 %11021  ;;  %v11028_v42 = vunpack.i.l.bf16 %v11027_v1  ;;  %v11029_v15 = vunpack.i.h.bf16 %v11027_v1 }
 0x573   : > { %11316 = vrot.lane.b32.xlu0 %v11305_v50, %s11523_s19  ;;  %v11023_v36 = vunpack.i.l.bf16 %v14685_v23  ;;  %v11019_v50 = vunpack.i.h.bf16 %v14678_v59  ;;  %v11024_v16 = vunpack.i.h.bf16 %v14685_v23  ;;  %v5095_v59 = vld [vmem:[#allocation2 + $0x109] sm:$0xff] }
 0x574   : > { %11311 = vrot.lane.b32.xlu1 %v11310_v34, %s11526_s30  ;;  %v6181_v10 = vsel %vm4351_vm11, %v6149_v49, %v11028_v42  ;;  %v6182_v48 = vsel %vm4351_vm11, %v6150_v6, %v11029_v15  ;;  %v5096_v6 = vld [vmem:[#allocation2 + $0x111] sm:$0xff] }
 0x575   : > { %v11037_v32 = vpop.permute.xlu0 %11036  ;;  %v6024_v23 = vsel %vm594_vm0, %v4840_v0, %v11019_v50 }
 0x576   : > { %v11032_v11 = vpop.permute.xlu1 %11031  ;;  %v11038_v57 = vunpack.i.l.bf16 %v11037_v32  ;;  %v11039_v51 = vunpack.i.h.bf16 %v11037_v32  ;;  %v6056_v43 = vsel %vm4219_vm2, %v6024_v23, %v11024_v16 }
 0x577   : > { %v11033_v17 = vunpack.i.l.bf16 %v11032_v11  ;;  %11326 = vrot.lane.b32.xlu0 %v11325_v37, %s11524_s23  ;;  %v11034_v22 = vunpack.i.h.bf16 %v11032_v11 }
 0x578   : > { %11321 = vrot.lane.b32.xlu1 %v11310_v34, %s11522_s18 }
 0x579   : > { %v6213_v25 = vsel %vm4384_vm6, %v6181_v10, %v11033_v17  ;;  %v11047_v61 = vpop.permute.xlu0 %11046  ;;  %v6214_v60 = vsel %vm4384_vm6, %v6182_v48, %v11034_v22  ;;  %v5082_v48 = vld [vmem:[#allocation2 + $0x230] sm:$0xff] }
 0x57a   : > { %v11042_v62 = vpop.permute.xlu1 %11041  ;;  %6471 = vmatmul.mubr.f32.gmra.mrb[38].mxu0 %v6213_v25  ;;  %v11048_v53 = vunpack.i.l.bf16 %v11047_v61  ;;  %v11049_v47 = vunpack.i.h.bf16 %v11047_v61 }
 0x57b   : > { %9717 = vmatprep.mubr.msk.f32.mxu0 %vm594_vm0, %v5094_v28  ;;  %11336 = vrot.lane.b32.xlu0 %v11325_v37, %s11520_s0  ;;  %v11043_v2 = vunpack.i.l.bf16 %v11042_v62  ;;  %v11044_v1 = vunpack.i.h.bf16 %v11042_v62  ;;  %v6088_v37 = vsel %vm4252_vm3, %v6056_v43, %v11039_v51  ;;  %v14736_v28 = vld [vmem:[#allocation2 + $0x209] sm:$0xff]  ;;  %s7042_s0 = sld [smem:[#allocation8]] }
 0x57c   : > { %11331 = vrot.lane.b32.xlu1 %v11310_v34, %s11521_s24  ;;  %v6023_v34 = vsel %vm594_vm0, %v4839_v56, %v11018_v39  ;;  %v5097_v51 = vld [vmem:[#allocation2 + $0x129] sm:$0xff]  ;;  %s9742_s24 = sld [smem:[#allocation8 + $0x1]] }
 0x57d   : > { %v6055_v20 = vsel %vm4219_vm2, %v6023_v34, %v11023_v36  ;;  %v14720_v42 = vpop.permute.xlu0 %11056  ;;  %v6120_v17 = vsel %vm4285_vm4, %v6088_v37, %v11044_v1 }
 0x57e   : > { %v14717_v14 = vpop.permute.xlu1 %11051  ;;  %6476 = vmatmul.mubr.f32.gmra.mrb[40].mxu0 %v6214_v60  ;;  %v6087_v27 = vsel %vm4252_vm3, %v6055_v20, %v11038_v57  ;;  %v6152_v31 = vsel %vm4318_vm5, %v6120_v17, %v11049_v47  ;;  %v5081_v57 = vld [vmem:[#allocation2 + $0x228] sm:$0xff]  ;;  %v11058_v56 = vunpack.i.l.bf16 %v14720_v42  ;;  %v11059_v0 = vunpack.i.h.bf16 %v14720_v42 }
 0x57f   : > { %9718 = vmatprep.mubr.msk.f32.mxu0 %vm594_vm0, %v5095_v59  ;;  %11346 = vrot.lane.b32.xlu0 %v11345_v33, %s11526_s30  ;;  %v6119_v11 = vsel %vm4285_vm4, %v6087_v27, %v11043_v2  ;;  %v11053_v36 = vunpack.i.l.bf16 %v14717_v14  ;;  %v11054_v60 = vunpack.i.h.bf16 %v14717_v14  ;;  %v5050_v59 = vld [vmem:[#allocation2 + $0x22f] sm:$0xff] }
 0x580   : > { %11341 = vrot.lane.b32.xlu1 %v11340_v54, %s11527_s26  ;;  %v6151_v22 = vsel %vm4318_vm5, %v6119_v11, %v11048_v53 }
 0x581   : > { %v11067_v15 = vpop.permute.xlu0 %11066 }
 0x582   : > { %v11062_v8 = vpop.permute.xlu1 %11061  ;;  %v11068_v10 = vunpack.i.l.bf16 %v11067_v15  ;;  %v11069_v12 = vunpack.i.h.bf16 %v11067_v15 }
 0x583   : > { %v11064_v32 = vunpack.i.h.bf16 %v11062_v8  ;;  %v11063_v49 = vunpack.i.l.bf16 %v11062_v8  ;;  %11356 = vrot.lane.b32.xlu0 %v11345_v33, %s11522_s18  ;;  %v4842_v33 = vld [vmem:[#allocation2 + $0xef] sm:$0xff]  ;;  %s15571_s18 = sld [smem:[#allocation8 + $0x2]] }
 0x584   : > { %11351 = vrot.lane.b32.xlu1 %v11340_v54, %s11523_s19  ;;  %v6025_v54 = vsel %vm594_vm0, %v4841_v38, %v11053_v36  ;;  %v6026_v23 = vsel %vm594_vm0, %v4842_v33, %v11054_v60  ;;  %s15585_s19 = sld [smem:[#allocation8 + $0x3]] }
 0x585   : > { %v6183_v25 = vsel %vm4351_vm11, %v6151_v22, %v11063_v49  ;;  %v11077_v61 = vpop.permute.xlu0 %11076  ;;  %v6184_v50 = vsel %vm4351_vm11, %v6152_v31, %v11064_v32  ;;  %v6057_v20 = vsel %vm4219_vm2, %v6025_v54, %v11058_v56  ;;  %v6058_v47 = vsel %vm4219_vm2, %v6026_v23, %v11059_v0  ;;  %v5099_v0 = vld [vmem:[#allocation2 + $0x149] sm:$0xff] }
 0x586   : > { %v11072_v39 = vpop.permute.xlu1 %11071  ;;  %v6215_v62 = vsel %vm4384_vm6, %v6183_v25, %v11068_v10  ;;  %v6216_v2 = vsel %vm4384_vm6, %v6184_v50, %v11069_v12  ;;  %v11078_v1 = vunpack.i.l.bf16 %v11077_v61  ;;  %v11079_v8 = vunpack.i.h.bf16 %v11077_v61 }
 0x587   : > { %6481 = vmatmul.mubr.f32.gmra.mrb[42].mxu0 %v6215_v62  ;;  %5721 = vrot.lane.b32.xlu0 %v14742_v19, %s11524_s23  ;;  %v11073_v13 = vunpack.i.l.bf16 %v11072_v39  ;;  %v11074_v27 = vunpack.i.h.bf16 %v11072_v39 }
 0x588   : > { %5719 = vrot.lane.b32.xlu1 %v14736_v28, %s11524_s23  ;;  %9719 = vmatprep.mubr.msk.f32.mxu0 %vm594_vm0, %v5096_v6  ;;  %v5098_v6 = vld [vmem:[#allocation2 + $0x131] sm:$0xff]  ;;  %s17702_s23 = smov 1  }
 0x589   : > { %v11087_v34 = vpop.permute.xlu0 %11086  ;;  %v6089_v53 = vsel %vm4252_vm3, %v6057_v20, %v11073_v13  ;;  %v6090_v32 = vsel %vm4252_vm3, %v6058_v47, %v11074_v27  ;;  %v4844_v20 = vld [vmem:[#allocation2 + $0x10f] sm:$0xff] }
 0x58a   : > { %v11082_v16 = vpop.permute.xlu1 %11081  ;;  %v6121_v17 = vsel %vm4285_vm4, %v6089_v53, %v11078_v1  ;;  %v6122_v31 = vsel %vm4285_vm4, %v6090_v32, %v11079_v8  ;;  %v11088_v36 = vunpack.i.l.bf16 %v11087_v34  ;;  %v11089_v38 = vunpack.i.h.bf16 %v11087_v34 }
 0x58b   : > { %6486 = vmatmul.mubr.f32.gmra.mrb[44].mxu0 %v6216_v2  ;;  %5977 = vrot.lane.b32.xlu0 %v5082_v48, %s11526_s30  ;;  %v11083_v43 = vunpack.i.l.bf16 %v11082_v16  ;;  %v11084_v49 = vunpack.i.h.bf16 %v11082_v16  ;;  %v4843_v2 = vld [vmem:[#allocation2 + $0x107] sm:$0xff] }
 0x58c   : > { %5975 = vrot.lane.b32.xlu1 %v5081_v57, %s11526_s30  ;;  %9720 = vmatprep.mubr.msk.f32.mxu0 %vm594_vm0, %v5097_v51  ;;  %v6027_v51 = vsel %vm594_vm0, %v4843_v2, %v11088_v36  ;;  %v6028_v34 = vsel %vm594_vm0, %v4844_v20, %v11089_v38  ;;  %s9745_s30 = sld [smem:[#allocation8 + $0x4]] }
 0x58d   : > { %v11097_v11 = vpop.permute.xlu0 %11096  ;;  %v6153_v22 = vsel %vm4318_vm5, %v6121_v17, %v11083_v43  ;;  %v6154_v48 = vsel %vm4318_vm5, %v6122_v31, %v11084_v49 }
 0x58e   : > { %v11092_v14 = vpop.permute.xlu1 %11091  ;;  %v11098_v37 = vunpack.i.l.bf16 %v11097_v11  ;;  %v11099_v25 = vunpack.i.h.bf16 %v11097_v11 }
 0x58f   : > { %v11093_v50 = vunpack.i.l.bf16 %v11092_v14  ;;  %v11094_v60 = vunpack.i.h.bf16 %v11092_v14 }
 0x590   : > { %5849 = vrot.lane.b32.xlu1 %v5050_v59, %s11527_s26  ;;  %v6185_v12 = vsel %vm4351_vm11, %v6153_v22, %v11098_v37  ;;  %v6186_v16 = vsel %vm4351_vm11, %v6154_v48, %v11099_v25  ;;  %s9746_s26 = sld [smem:[#allocation8 + $0x5]] }
 0x591   : > { %v11107_v10 = vpop.permute.xlu0 %11106  ;;  %v6059_v1 = vsel %vm4219_vm2, %v6027_v51, %v11093_v50  ;;  %v6060_v43 = vsel %vm4219_vm2, %v6028_v34, %v11094_v60  ;;  %v4845_v50 = vld [vmem:[#allocation2 + $0x127] sm:$0xff] }
 0x592   : > { %v11102_v42 = vpop.permute.xlu1 %11101  ;;  %v11108_v56 = vunpack.i.l.bf16 %v11107_v10  ;;  %v11109_v59 = vunpack.i.h.bf16 %v11107_v10 }
 0x593   : > { %v11103_v15 = vunpack.i.l.bf16 %v11102_v42  ;;  %v11104_v39 = vunpack.i.h.bf16 %v11102_v42 }
 0x594   : > { %v6091_v14 = vsel %vm4252_vm3, %v6059_v1, %v11108_v56  ;;  %v6092_v37 = vsel %vm4252_vm3, %v6060_v43, %v11109_v59 }
 0x595   : > { %v6217_v62 = vsel %vm4384_vm6, %v6185_v12, %v11103_v15  ;;  %v11117_v57 = vpop.permute.xlu0 %11116  ;;  %v6218_v13 = vsel %vm4384_vm6, %v6186_v16, %v11104_v39 }
 0x596   : > { %v11112_v61 = vpop.permute.xlu1 %11111  ;;  %6491 = vmatmul.mubr.f32.gmra.mrb[46].mxu0 %v6217_v62  ;;  %v11118_v53 = vunpack.i.l.bf16 %v11117_v57  ;;  %v11119_v47 = vunpack.i.h.bf16 %v11117_v57 }
 0x597   : > { %9721 = vmatprep.mubr.msk.f32.mxu0 %vm594_vm0, %v5098_v6  ;;  %v11113_v54 = vunpack.i.l.bf16 %v11112_v61  ;;  %v11114_v23 = vunpack.i.h.bf16 %v11112_v61  ;;  %v5100_v61 = vld [vmem:[#allocation2 + $0x151] sm:$0xff] }
 0x599   : > { %v11127_v27 = vpop.permute.xlu0 %11126  ;;  %v6123_v11 = vsel %vm4285_vm4, %v6091_v14, %v11113_v54  ;;  %v6124_v17 = vsel %vm4285_vm4, %v6092_v37, %v11114_v23  ;;  %v4846_v54 = vld [vmem:[#allocation2 + $0x12f] sm:$0xff] }
 0x59a   : > { %v11122_v33 = vpop.permute.xlu1 %11121  ;;  %6496 = vmatmul.mubr.f32.gmra.mrb[48].mxu0 %v6218_v13  ;;  %v6155_v10 = vsel %vm4318_vm5, %v6123_v11, %v11118_v53  ;;  %v6156_v62 = vsel %vm4318_vm5, %v6124_v17, %v11119_v47  ;;  %v11128_v57 = vunpack.i.l.bf16 %v11127_v27  ;;  %v11129_v13 = vunpack.i.h.bf16 %v11127_v27 }
 0x59b   : > { %9722 = vmatprep.mubr.msk.f32.mxu0 %vm594_vm0, %v5099_v0  ;;  %v11123_v31 = vunpack.i.l.bf16 %v11122_v33  ;;  %v11124_v56 = vunpack.i.h.bf16 %v11122_v33 }
 0x59d   : > { %v11137_v49 = vpop.permute.xlu0 %11136  ;;  %v6029_v16 = vsel %vm594_vm0, %v4845_v50, %v11123_v31  ;;  %v6030_v20 = vsel %vm594_vm0, %v4846_v54, %v11124_v56  ;;  %v4847_v50 = vld [vmem:[#allocation2 + $0x147] sm:$0xff]  ;;  %v4848_v54 = vld [vmem:[#allocation2 + $0x14f] sm:$0xff] }
 0x59e   : > { %v11132_v8 = vpop.permute.xlu1 %11131  ;;  %v11138_v15 = vunpack.i.l.bf16 %v11137_v49  ;;  %v11139_v25 = vunpack.i.h.bf16 %v11137_v49  ;;  %v6061_v51 = vsel %vm4219_vm2, %v6029_v16, %v11128_v57  ;;  %v6062_v53 = vsel %vm4219_vm2, %v6030_v20, %v11129_v13 }
 0x59f   : > { %v11134_v42 = vunpack.i.h.bf16 %v11132_v8  ;;  %v11133_v32 = vunpack.i.l.bf16 %v11132_v8 }
 0x5a1   : > { %v6187_v22 = vsel %vm4351_vm11, %v6155_v10, %v11133_v32  ;;  %v11147_v36 = vpop.permute.xlu0 %11146  ;;  %v6188_v6 = vsel %vm4351_vm11, %v6156_v62, %v11134_v42 }
 0x5a2   : > { %v11142_v12 = vpop.permute.xlu1 %11141  ;;  %v6219_v39 = vsel %vm4384_vm6, %v6187_v22, %v11138_v15  ;;  %v6220_v38 = vsel %vm4384_vm6, %v6188_v6, %v11139_v25  ;;  %v11148_v59 = vunpack.i.l.bf16 %v11147_v36  ;;  %v11149_v43 = vunpack.i.h.bf16 %v11147_v36 }
 0x5a3   : > { %6501 = vmatmul.mubr.f32.gmra.mrb[50].mxu0 %v6219_v39  ;;  %v11143_v2 = vunpack.i.l.bf16 %v11142_v12  ;;  %v11144_v1 = vunpack.i.h.bf16 %v11142_v12  ;;  %v5102_v12 = vld [vmem:[#allocation2 + $0x171] sm:$0xff] }
 0x5a4   : > { %9723 = vmatprep.mubr.msk.f32.mxu0 %vm594_vm0, %v5100_v61 }
 0x5a5   : > { %v11157_v60 = vpop.permute.xlu0 %11156  ;;  %v6093_v23 = vsel %vm4252_vm3, %v6061_v51, %v11143_v2  ;;  %v6094_v27 = vsel %vm4252_vm3, %v6062_v53, %v11144_v1 }
 0x5a6   : > { %v11152_v48 = vpop.permute.xlu1 %11151  ;;  %v6125_v11 = vsel %vm4285_vm4, %v6093_v23, %v11148_v59  ;;  %v6126_v10 = vsel %vm4285_vm4, %v6094_v27, %v11149_v43  ;;  %v11158_v22 = vunpack.i.l.bf16 %v11157_v60  ;;  %v11159_v36 = vunpack.i.h.bf16 %v11157_v60 }
 0x5a7   : > { %6506 = vmatmul.mubr.f32.gmra.mrb[52].mxu0 %v6220_v38  ;;  %v11153_v33 = vunpack.i.l.bf16 %v11152_v48  ;;  %v11154_v37 = vunpack.i.h.bf16 %v11152_v48 }
 0x5a8   : > { %9724 = vmatprep.mubr.msk.f32.mxu0 %vm594_vm0, %v14500_v3  ;;  %v6031_v56 = vsel %vm594_vm0, %v4847_v50, %v11158_v22  ;;  %v6032_v60 = vsel %vm594_vm0, %v4848_v54, %v11159_v36 }
 0x5a9   : > { %v11167_v34 = vpop.permute.xlu0 %11166  ;;  %v6157_v17 = vsel %vm4318_vm5, %v6125_v11, %v11153_v33  ;;  %v6158_v31 = vsel %vm4318_vm5, %v6126_v10, %v11154_v37  ;;  %v4849_v10 = vld [vmem:[#allocation2 + $0x167] sm:$0xff] }
 0x5aa   : > { %v11162_v0 = vpop.permute.xlu1 %11161  ;;  %v11168_v14 = vunpack.i.l.bf16 %v11167_v34  ;;  %v11169_v42 = vunpack.i.h.bf16 %v11167_v34 }
 0x5ab   : > { %v11163_v39 = vunpack.i.l.bf16 %v11162_v0  ;;  %v11164_v57 = vunpack.i.h.bf16 %v11162_v0 }
 0x5ac   : > { %v6189_v32 = vsel %vm4351_vm11, %v6157_v17, %v11168_v14  ;;  %v6190_v6 = vsel %vm4351_vm11, %v6158_v31, %v11169_v42 }
 0x5ad   : > { %v11177_v8 = vpop.permute.xlu0 %11176  ;;  %v6063_v13 = vsel %vm4219_vm2, %v6031_v56, %v11163_v39  ;;  %v6064_v1 = vsel %vm4219_vm2, %v6032_v60, %v11164_v57 }
 0x5ae   : > { %v11172_v3 = vpop.permute.xlu1 %11171  ;;  %v11178_v61 = vunpack.i.l.bf16 %v11177_v8  ;;  %v11179_v16 = vunpack.i.h.bf16 %v11177_v8 }
 0x5af   : > { %v11173_v47 = vunpack.i.l.bf16 %v11172_v3  ;;  %v11174_v49 = vunpack.i.h.bf16 %v11172_v3 }
 0x5b0   : > { %v6095_v0 = vsel %vm4252_vm3, %v6063_v13, %v11178_v61  ;;  %v6096_v33 = vsel %vm4252_vm3, %v6064_v1, %v11179_v16  ;;  %v4850_v61 = vld [vmem:[#allocation2 + $0x16f] sm:$0xff] }
 0x5b1   : > { %v6221_v15 = vsel %vm4384_vm6, %v6189_v32, %v11173_v47  ;;  %v11187_v62 = vpop.permute.xlu0 %11186  ;;  %v6222_v38 = vsel %vm4384_vm6, %v6190_v6, %v11174_v49 }
 0x5b2   : > { %v11182_v25 = vpop.permute.xlu1 %11181  ;;  %6511 = vmatmul.mubr.f32.gmra.mrb[54].mxu0 %v6221_v15  ;;  %v11188_v20 = vunpack.i.l.bf16 %v11187_v62  ;;  %v11189_v34 = vunpack.i.h.bf16 %v11187_v62 }
 0x5b3   : > { %9725 = vmatprep.mubr.msk.f32.mxu0 %vm594_vm0, %v5102_v12  ;;  %v11183_v48 = vunpack.i.l.bf16 %v11182_v25  ;;  %v11184_v51 = vunpack.i.h.bf16 %v11182_v25 }
 0x5b5   : > { %v11197_v59 = vpop.permute.xlu0 %11196  ;;  %v6127_v23 = vsel %vm4285_vm4, %v6095_v0, %v11183_v48  ;;  %v6128_v53 = vsel %vm4285_vm4, %v6096_v33, %v11184_v51 }
 0x5b6   : > { %v11192_v2 = vpop.permute.xlu1 %11191  ;;  %6516 = vmatmul.mubr.f32.gmra.mrb[56].mxu0 %v6222_v38  ;;  %v6160_v42 = vsel %vm4318_vm5, %v6128_v53, %v11189_v34  ;;  %v11198_v22 = vunpack.i.l.bf16 %v11197_v59  ;;  %v11199_v6 = vunpack.i.h.bf16 %v11197_v59 }
 0x5b7   : > { %9726 = vmatprep.mubr.msk.f32.mxu0 %vm594_vm0, %v14550_v4  ;;  %v6159_v4 = vsel %vm4318_vm5, %v6127_v23, %v11188_v20  ;;  %v11193_v32 = vunpack.i.l.bf16 %v11192_v2  ;;  %v11194_v39 = vunpack.i.h.bf16 %v11192_v2 }
 0x5b9   : > { %v11207_v3 = vpop.permute.xlu0 %11206  ;;  %v6033_v62 = vsel %vm594_vm0, %v4849_v10, %v11193_v32  ;;  %v6034_v48 = vsel %vm594_vm0, %v4850_v61, %v11194_v39 }
 0x5ba   : > { %v11202_v14 = vpop.permute.xlu1 %11201  ;;  %v11208_v27 = vunpack.i.l.bf16 %v11207_v3  ;;  %v11209_v47 = vunpack.i.h.bf16 %v11207_v3  ;;  %v6065_v50 = vsel %vm4219_vm2, %v6033_v62, %v11198_v22  ;;  %v6066_v13 = vsel %vm4219_vm2, %v6034_v48, %v11199_v6 }
 0x5bb   : > { %v11204_v43 = vunpack.i.h.bf16 %v11202_v14  ;;  %v11203_v11 = vunpack.i.l.bf16 %v11202_v14 }
 0x5bd   : > { %v6191_v37 = vsel %vm4351_vm11, %v6159_v4, %v11203_v11  ;;  %v11217_v49 = vpop.permute.xlu0 %11216  ;;  %v6192_v15 = vsel %vm4351_vm11, %v6160_v42, %v11204_v43  ;;  %v4851_v42 = vld [vmem:[#allocation2 + $0x187] sm:$0xff] }
 0x5be   : > { %v11212_v8 = vpop.permute.xlu1 %11211  ;;  %v6223_v17 = vsel %vm4384_vm6, %v6191_v37, %v11208_v27  ;;  %v6224_v12 = vsel %vm4384_vm6, %v6192_v15, %v11209_v47  ;;  %v11218_v57 = vunpack.i.l.bf16 %v11217_v49  ;;  %v11219_v51 = vunpack.i.h.bf16 %v11217_v49 }
 0x5bf   : > { %6521 = vmatmul.mubr.f32.gmra.mrb[58].mxu0 %v6223_v17  ;;  %v11213_v31 = vunpack.i.l.bf16 %v11212_v8  ;;  %v11214_v38 = vunpack.i.h.bf16 %v11212_v8 }
 0x5c0   : > { %9727 = vmatprep.mubr.msk.f32.mxu0 %vm594_vm0, %v14552_v41 }
 0x5c1   : > { %v11227_v36 = vpop.permute.xlu0 %11226  ;;  %v6097_v56 = vsel %vm4252_vm3, %v6065_v50, %v11213_v31  ;;  %v6098_v59 = vsel %vm4252_vm3, %v6066_v13, %v11214_v38 }
 0x5c2   : > { %v11222_v25 = vpop.permute.xlu1 %11221  ;;  %v6129_v60 = vsel %vm4285_vm4, %v6097_v56, %v11218_v57  ;;  %v6130_v43 = vsel %vm4285_vm4, %v6098_v59, %v11219_v51  ;;  %v11228_v11 = vunpack.i.l.bf16 %v11227_v36  ;;  %v11229_v47 = vunpack.i.h.bf16 %v11227_v36 }
 0x5c3   : > { %6526 = vmatmul.mubr.f32.gmra.mrb[60].mxu0 %v6224_v12  ;;  %v11223_v16 = vunpack.i.l.bf16 %v11222_v25  ;;  %v11224_v0 = vunpack.i.h.bf16 %v11222_v25  ;;  %v4852_v12 = vld [vmem:[#allocation2 + $0x18f] sm:$0xff] }
 0x5c4   : > { %9728 = vmatprep.mubr.msk.f32.mxu0 %vm594_vm0, %v14601_v45  ;;  %v6035_v10 = vsel %vm594_vm0, %v4851_v42, %v11228_v11  ;;  %v6036_v31 = vsel %vm594_vm0, %v4852_v12, %v11229_v47 }
 0x5c5   : > { %v11237_v2 = vpop.permute.xlu0 %11236  ;;  %v6161_v23 = vsel %vm4318_vm5, %v6129_v60, %v11223_v16  ;;  %v6162_v37 = vsel %vm4318_vm5, %v6130_v43, %v11224_v0 }
 0x5c6   : > { %v11232_v41 = vpop.permute.xlu1 %11231  ;;  %v11238_v54 = vunpack.i.l.bf16 %v11237_v2  ;;  %v11239_v33 = vunpack.i.h.bf16 %v11237_v2 }
 0x5c7   : > { %v11233_v27 = vunpack.i.l.bf16 %v11232_v41  ;;  %v11234_v32 = vunpack.i.h.bf16 %v11232_v41 }
 0x5c8   : > { %v6193_v34 = vsel %vm4351_vm11, %v6161_v23, %v11238_v54  ;;  %v6194_v17 = vsel %vm4351_vm11, %v6162_v37, %v11239_v33 }
 0x5c9   : > { %v11247_v1 = vpop.permute.xlu0 %11246  ;;  %v6067_v39 = vsel %vm4219_vm2, %v6035_v10, %v11233_v27  ;;  %v6068_v6 = vsel %vm4219_vm2, %v6036_v31, %v11234_v32 }
 0x5ca   : > { %v11242_v45 = vpop.permute.xlu1 %11241  ;;  %v11248_v8 = vunpack.i.l.bf16 %v11247_v1  ;;  %v11249_v22 = vunpack.i.h.bf16 %v11247_v1 }
 0x5cb   : > { %v11243_v20 = vunpack.i.l.bf16 %v11242_v45  ;;  %v11244_v14 = vunpack.i.h.bf16 %v11242_v45 }
 0x5cc   : > { %v6099_v36 = vsel %vm4252_vm3, %v6067_v39, %v11248_v8  ;;  %v6100_v57 = vsel %vm4252_vm3, %v6068_v6, %v11249_v22 }
 0x5cd   : > { %v6225_v53 = vsel %vm4384_vm6, %v6193_v34, %v11243_v20  ;;  %v11257_v4 = vpop.permute.xlu0 %11256  ;;  %v6226_v15 = vsel %vm4384_vm6, %v6194_v17, %v11244_v14 }
 0x5ce   : > { %v11252_v3 = vpop.permute.xlu1 %11251  ;;  %6531 = vmatmul.mubr.f32.gmra.mrb[62].mxu0 %v6225_v53  ;;  %v11258_v61 = vunpack.i.l.bf16 %v11257_v4  ;;  %v11259_v41 = vunpack.i.h.bf16 %v11257_v4 }
 0x5cf   : > { %9729 = vmatprep.mubr.msk.f32.mxu0 %vm594_vm0, %v14603_v24  ;;  %v11253_v49 = vunpack.i.l.bf16 %v11252_v3  ;;  %v11254_v24 = vunpack.i.h.bf16 %v11252_v3 }
 0x5d1   : > { %v11267_v62 = vpop.permute.xlu0 %11266  ;;  %v6131_v50 = vsel %vm4285_vm4, %v6099_v36, %v11253_v49  ;;  %v6132_v38 = vsel %vm4285_vm4, %v6100_v57, %v11254_v24 }
 0x5d2   : > { %v11262_v25 = vpop.permute.xlu1 %11261  ;;  %6536 = vmatmul.mubr.f32.gmra.mrb[64].mxu0 %v6226_v15  ;;  %v6164_v59 = vsel %vm4318_vm5, %v6132_v38, %v11259_v41  ;;  %v11268_v23 = vunpack.i.l.bf16 %v11267_v62  ;;  %v11269_v3 = vunpack.i.h.bf16 %v11267_v62 }
 0x5d3   : > { %9730 = vmatprep.mubr.msk.f32.mxu0 %vm594_vm0, %v14650_v26  ;;  %v6163_v26 = vsel %vm4318_vm5, %v6131_v50, %v11258_v61  ;;  %v11263_v0 = vunpack.i.l.bf16 %v11262_v25  ;;  %v11264_v14 = vunpack.i.h.bf16 %v11262_v25 }
 0x5d5   : > { %v11277_v2 = vpop.permute.xlu0 %11276  ;;  %v6037_v53 = vsel %vm594_vm0, %v14571_v30, %v11263_v0 }
 0x5d6   : > { %v11272_v48 = vpop.permute.xlu1 %11271  ;;  %v11278_v54 = vunpack.i.l.bf16 %v11277_v2  ;;  %v11279_v51 = vunpack.i.h.bf16 %v11277_v2  ;;  %v6069_v27 = vsel %vm4219_vm2, %v6037_v53, %v11268_v23 }
 0x5d7   : > { %v11274_v56 = vunpack.i.h.bf16 %v11272_v48  ;;  %v11273_v16 = vunpack.i.l.bf16 %v11272_v48 }
 0x5d9   : > { %v6195_v13 = vsel %vm4351_vm11, %v6163_v26, %v11273_v16  ;;  %v11287_v20 = vpop.permute.xlu0 %11286  ;;  %v6196_v1 = vsel %vm4351_vm11, %v6164_v59, %v11274_v56 }
 0x5da   : > { %v11282_v60 = vpop.permute.xlu1 %11281  ;;  %v6227_v45 = vsel %vm4384_vm6, %v6195_v13, %v11278_v54  ;;  %v6228_v34 = vsel %vm4384_vm6, %v6196_v1, %v11279_v51  ;;  %v11288_v4 = vunpack.i.l.bf16 %v11287_v20  ;;  %v11289_v15 = vunpack.i.h.bf16 %v11287_v20  ;;  %v6652_v51 = vld [vmem:[%s17199_s8] sm:$0xff] }
 0x5db   : > { %6541 = vmatmul.mubr.f32.gmra.mrb[66].mxu0 %v6227_v45  ;;  %v11283_v43 = vunpack.i.l.bf16 %v11282_v60  ;;  %v11284_v8 = vunpack.i.h.bf16 %v11282_v60  ;;  %v6653_v60 = vld [vmem:[%s17199_s8 + $0x8] sm:$0xff] }
 0x5dc   : > { %9731 = vmatprep.mubr.msk.f32.mxu0 %vm594_vm0, %v14652_v40  ;;  %v11371_v40 = vld [vmem:[#allocation2 + $0x1af] sm:$0xff]  ;;  %v10156_v0 = vpack.c.bf16 %v6653_v60, %v6652_v51 }
 0x5dd   : > { %v11297_v11 = vpop.permute.xlu0 %11296  ;;  %v6038_v47 = vsel %vm594_vm0, %v11371_v40, %v11264_v14  ;;  %v6101_v17 = vsel %vm4252_vm3, %v6069_v27, %v11283_v43 }
 0x5de   : > { %v11292_v33 = vpop.permute.xlu1 %11291  ;;  %v6070_v49 = vsel %vm4219_vm2, %v6038_v47, %v11269_v3  ;;  %v6133_v10 = vsel %vm4285_vm4, %v6101_v17, %v11288_v4  ;;  %v11298_v50 = vunpack.i.l.bf16 %v11297_v11  ;;  %v11299_v56 = vunpack.i.h.bf16 %v11297_v11  ;;  %10157 = vmatpush3.bf16.msra.mxu0 %v10156_v0 }
 0x5df   : > { %6546 = vmatmul.mubr.f32.gmra.mrb[68].mxu0 %v6228_v34  ;;  %v11293_v42 = vunpack.i.l.bf16 %v11292_v33  ;;  %v6102_v22 = vsel %vm4252_vm3, %v6070_v49, %v11284_v8  ;;  %v11294_v25 = vunpack.i.h.bf16 %v11292_v33 }
 0x5e0   : > { %9732 = vmatprep.mubr.msk.f32.mxu0 %vm594_vm0, %v14690_v58  ;;  %v6134_v6 = vsel %vm4285_vm4, %v6102_v22, %v11289_v15  ;;  %v6040_v33 = vsel %vm594_vm0, %v14621_v29, %v11299_v56 }
 0x5e1   : > { %v11307_v32 = vpop.permute.xlu0 %11306  ;;  %v6165_v24 = vsel %vm4318_vm5, %v6133_v10, %v11293_v42  ;;  %v6166_v38 = vsel %vm4318_vm5, %v6134_v6, %v11294_v25 }
 0x5e2   : > { %v11302_v37 = vpop.permute.xlu1 %11301  ;;  %v11308_v30 = vunpack.i.l.bf16 %v11307_v32  ;;  %v11309_v62 = vunpack.i.h.bf16 %v11307_v32 }
 0x5e3   : > { %v11303_v41 = vunpack.i.l.bf16 %v11302_v37  ;;  %v11304_v54 = vunpack.i.h.bf16 %v11302_v37 }
 0x5e4   : > { %v6197_v31 = vsel %vm4351_vm11, %v6165_v24, %v11308_v30  ;;  %v6198_v2 = vsel %vm4351_vm11, %v6166_v38, %v11309_v62 }
 0x5e5   : > { %v11317_v39 = vpop.permute.xlu0 %11316 }
 0x5e6   : > { %v11312_v58 = vpop.permute.xlu1 %11311  ;;  %v11318_v16 = vunpack.i.l.bf16 %v11317_v39  ;;  %v11319_v45 = vunpack.i.h.bf16 %v11317_v39 }
 0x5e7   : > { %v11313_v12 = vunpack.i.l.bf16 %v11312_v58  ;;  %v11314_v36 = vunpack.i.h.bf16 %v11312_v58 }
 0x5e9   : > { %v6229_v61 = vsel %vm4384_vm6, %v6197_v31, %v11313_v12  ;;  %v11327_v48 = vpop.permute.xlu0 %11326  ;;  %v6230_v13 = vsel %vm4384_vm6, %v6198_v2, %v11314_v36  ;;  %v5113_v36 = vld [vmem:[#allocation2 + $0x229] sm:$0xff] }
 0x5ea   : > { %v11322_v57 = vpop.permute.xlu1 %11321  ;;  %6551 = vmatmul.mubr.f32.gmra.mrb[70].mxu0 %v6229_v61  ;;  %v11328_v14 = vunpack.i.l.bf16 %v11327_v48  ;;  %v11329_v3 = vunpack.i.h.bf16 %v11327_v48 }
 0x5eb   : > { %9733 = vmatprep.mubr.msk.f32.mxu0 %vm594_vm0, %v14692_v46  ;;  %v11323_v26 = vunpack.i.l.bf16 %v11322_v57  ;;  %v6039_v46 = vsel %vm594_vm0, %v14630_v55, %v11298_v50  ;;  %v11324_v1 = vunpack.i.h.bf16 %v11322_v57  ;;  %v6072_v55 = vsel %vm4219_vm2, %v6040_v33, %v11304_v54 }
 0x5ec   : > { %v6071_v20 = vsel %vm4219_vm2, %v6039_v46, %v11303_v41  ;;  %v6104_v11 = vsel %vm4252_vm3, %v6072_v55, %v11319_v45 }
 0x5ed   : > { %v11337_v23 = vpop.permute.xlu0 %11336  ;;  %v6103_v34 = vsel %vm4252_vm3, %v6071_v20, %v11318_v16  ;;  %v6136_v4 = vsel %vm4285_vm4, %v6104_v11, %v11324_v1  ;;  %v5114_v16 = vld [vmem:[#allocation2 + $0x231] sm:$0xff] }
 0x5ee   : > { %v11332_v59 = vpop.permute.xlu1 %11331  ;;  %6556 = vmatmul.mubr.f32.gmra.mrb[72].mxu0 %v6230_v13  ;;  %v6135_v53 = vsel %vm4285_vm4, %v6103_v34, %v11323_v26  ;;  %v11338_v29 = vunpack.i.l.bf16 %v11337_v23  ;;  %v6168_v10 = vsel %vm4318_vm5, %v6136_v4, %v11329_v3  ;;  %v11339_v58 = vunpack.i.h.bf16 %v11337_v23 }
 0x5ef   : > { %9734 = vmatprep.mubr.msk.f32.mxu0 %vm594_vm0, %v14736_v28  ;;  %v11333_v43 = vunpack.i.l.bf16 %v11332_v59  ;;  %v11334_v47 = vunpack.i.h.bf16 %v11332_v59  ;;  %v6167_v17 = vsel %vm4318_vm5, %v6135_v53, %v11328_v14 }
 0x5f1   : > { %v11347_v40 = vpop.permute.xlu0 %11346  ;;  %v6041_v42 = vsel %vm594_vm0, %v14670_v44, %v11333_v43  ;;  %v6042_v39 = vsel %vm594_vm0, %v14666_v63, %v11334_v47 }
 0x5f2   : > { %v11342_v27 = vpop.permute.xlu1 %11341  ;;  %v11348_v8 = vunpack.i.l.bf16 %v11347_v40  ;;  %v11349_v30 = vunpack.i.h.bf16 %v11347_v40  ;;  %v6073_v24 = vsel %vm4219_vm2, %v6041_v42, %v11338_v29  ;;  %v6074_v57 = vsel %vm4219_vm2, %v6042_v39, %v11339_v58  ;;  %v6729_v58 = vld [vmem:[%s17201_s10] sm:$0xf] }
 0x5f3   : > { %v11344_v37 = vunpack.i.h.bf16 %v11342_v27  ;;  %v11343_v28 = vunpack.i.l.bf16 %v11342_v27  ;;  %9989 = vmatpush3.msk.msra.mxu1 %vm6734_vm13, %v6729_v58 }
 0x5f5   : > { %v6199_v32 = vsel %vm4351_vm11, %v6167_v17, %v11343_v28  ;;  %v11357_v25 = vpop.permute.xlu0 %11356  ;;  %v6200_v12 = vsel %vm4351_vm11, %v6168_v10, %v11344_v37 }
 0x5f6   : > { %v11352_v49 = vpop.permute.xlu1 %11351  ;;  %v6231_v15 = vsel %vm4384_vm6, %v6199_v32, %v11348_v8  ;;  %v11358_v62 = vunpack.i.l.bf16 %v11357_v25  ;;  %v6232_v50 = vsel %vm4384_vm6, %v6200_v12, %v11349_v30  ;;  %v11359_v41 = vunpack.i.h.bf16 %v11357_v25 }
 0x5f7   : > { %v11353_v22 = vunpack.i.l.bf16 %v11352_v49  ;;  %6561 = vmatmul.mubr.f32.gmra.mrb[74].mxu0 %v6231_v15  ;;  %v11354_v44 = vunpack.i.h.bf16 %v11352_v49 }
 0x5f8   : > { %9735 = vmatprep.mubr.msk.f32.mxu0 %vm594_vm0, %v14742_v19 }
 0x5f9   : > { %v6105_v31 = vsel %vm4252_vm3, %v6073_v24, %v11353_v22  ;;  %v6106_v48 = vsel %vm4252_vm3, %v6074_v57, %v11354_v44  ;;  %v5722_v38 = vpop.permute.xlu0 %5721 }
 0x5fa   : > { %v5720_v61 = vpop.permute.xlu1 %5719  ;;  %v6137_v6 = vsel %vm4285_vm4, %v6105_v31, %v11358_v62  ;;  %v6138_v2 = vsel %vm4285_vm4, %v6106_v48, %v11359_v41  ;;  %v14950_v41 = vld [vmem:[%s17198_s7] ss:$0 sm:$0xff] }
 0x5fb   : > { %v6169_v63 = vsel %vm4318_vm5, %v6137_v6, %v5720_v61  ;;  %6566 = vmatmul.mubr.f32.gmra.mrb[76].mxu0 %v6232_v50  ;;  %v6170_v13 = vsel %vm4318_vm5, %v6138_v2, %v5722_v38 }
 0x5fc   : > { %9736 = vmatprep.mubr.msk.f32.mxu0 %vm594_vm0, %v5113_v36  ;;  %v6201_v56 = vsel %vm4351_vm11, %v6169_v63, %v14423_v52 }
 0x5fd   : > { %v5978_v26 = vpop.permute.xlu0 %5977 }
 0x5fe   : > { %v5976_v19 = vpop.permute.xlu1 %5975 }
 0x5ff   : > { %v6233_v54 = vsel %vm4384_vm6, %v6201_v56, %v5976_v19 }
 0x600   : > { %6571 = vmatmul.mubr.f32.gmra.mrb[78].mxu0 %v6233_v54 }
 0x601   : > { %9737 = vmatprep.mubr.msk.f32.mxu0 %vm594_vm0, %v5114_v16 }
 0x602   : > { %v5850_v51 = vpop.permute.xlu1 %5849 }
 0x603   : > { %v6202_v60 = vsel %vm4351_vm11, %v6170_v13, %v5850_v51 }
 0x604   : > { %v6234_v46 = vsel %vm4384_vm6, %v6202_v60, %v5978_v26 }
 0x605   : > { %6576 = vmatmul.mubr.f32.gmra.mrb[80].mxu0 %v6234_v46 }
 0x606   : > { %v6422_v45 = vpop.f32.mrb[18].mxu0  ;;  %9985 = vmatprep.mubr.msk.f32.mxu0 %vm11528_vm12, %v17598_v35 }
 0x607   : > { %v6424_v59 = vpop.f32.mrb[19].mxu0  ;;  %v14956_v48 = vadd.f32 %v14950_v41, %v6422_v45 }
 0x609   : > { %v6581_v16 = vsel %vm594_vm0, %v14956_v48, 0.0 }
 0x60a   : > { %v6427_v52 = vpop.f32.mrb[20].mxu0 }
 0x60b   : > { %v6429_v0 = vpop.f32.mrb[21].mxu0  ;;  %v14953_v63 = vadd.f32 %v14950_v41, %v6427_v52 }
 0x60d   : > { %v6582_v19 = vsel %vm594_vm0, %v14953_v63, 0.0 }
 0x60e   : > { %v6583_v26 = vadd.f32 %v6582_v19, %v6581_v16 }
 0x615   : > { %v6432_v20 = vpop.f32.mrb[22].mxu0 }
 0x616   : > { %v6434_v1 = vpop.f32.mrb[23].mxu0  ;;  %v14959_v38 = vadd.f32 %v14950_v41, %v6432_v20 }
 0x618   : > { %v6584_v2 = vsel %vm594_vm0, %v14959_v38, 0.0 }
 0x619   : > { %v6437_v23 = vpop.f32.mrb[24].mxu0  ;;  %v6585_v46 = vadd.f32 %v6584_v2, %v6583_v26 }
 0x61a   : > { %v6439_v33 = vpop.f32.mrb[25].mxu0  ;;  %v14964_v56 = vadd.f32 %v14950_v41, %v6437_v23 }
 0x61c   : > { %v6586_v13 = vsel %vm594_vm0, %v14964_v56, 0.0 }
 0x61d   : > { %v6587_v0 = vadd.f32 %v6586_v13, %v6585_v46 }
 0x622   : > { %v6442_v34 = vpop.f32.mrb[26].mxu0 }
 0x623   : > { %v6444_v14 = vpop.f32.mrb[27].mxu0  ;;  %v14971_v54 = vadd.f32 %v14950_v41, %v6442_v34 }
 0x625   : > { %v6588_v59 = vsel %vm594_vm0, %v14971_v54, 0.0 }
 0x626   : > { %v6447_v55 = vpop.f32.mrb[28].mxu0  ;;  %v6589_v33 = vadd.f32 %v6588_v59, %v6587_v0 }
 0x627   : > { %v6449_v53 = vpop.f32.mrb[29].mxu0  ;;  %v14976_v51 = vadd.f32 %v14950_v41, %v6447_v55 }
 0x629   : > { %v6590_v20 = vsel %vm594_vm0, %v14976_v51, 0.0 }
 0x62a   : > { %v6591_v53 = vadd.f32 %v6590_v20, %v6589_v33 }
 0x631   : > { %v6452_v43 = vpop.f32.mrb[30].mxu0 }
 0x632   : > { %v6454_v11 = vpop.f32.mrb[31].mxu0  ;;  %v14981_v52 = vadd.f32 %v14950_v41, %v6452_v43 }
 0x634   : > { %v6592_v14 = vsel %vm594_vm0, %v14981_v52, 0.0 }
 0x635   : > { %v6457_v3 = vpop.f32.mrb[32].mxu0 }
 0x636   : > { %v6459_v27 = vpop.f32.mrb[33].mxu0  ;;  %v14986_v1 = vadd.f32 %v14950_v41, %v6457_v3 }
 0x637   : > { %v6593_v27 = vadd.f32 %v6592_v14, %v6591_v53 }
 0x638   : > { %v6594_v43 = vsel %vm594_vm0, %v14986_v1, 0.0 }
 0x63e   : > { %v6462_v4 = vpop.f32.mrb[34].mxu0 }
 0x63f   : > { %v6464_v37 = vpop.f32.mrb[35].mxu0  ;;  %v14991_v55 = vadd.f32 %v14950_v41, %v6462_v4 }
 0x641   : > { %v6596_v3 = vsel %vm594_vm0, %v14991_v55, 0.0 }
 0x642   : > { %v6467_v28 = vpop.f32.mrb[36].mxu0 }
 0x643   : > { %v6469_v40 = vpop.f32.mrb[37].mxu0  ;;  %v14996_v11 = vadd.f32 %v14950_v41, %v6467_v28 }
 0x644   : > { %v6595_v40 = vadd.f32 %v6594_v43, %v6593_v27 }
 0x64d   : > { %v6472_v47 = vpop.f32.mrb[38].mxu0 }
 0x64e   : > { %v6474_v29 = vpop.f32.mrb[39].mxu0  ;;  %v15001_v37 = vadd.f32 %v14950_v41, %v6472_v47 }
 0x64f   : > { %v6598_v29 = vsel %vm594_vm0, %v14996_v11, 0.0 }
 0x650   : > { %v6600_v28 = vsel %vm594_vm0, %v15001_v37, 0.0 }
 0x651   : > { %v6477_v8 = vpop.f32.mrb[40].mxu0 }
 0x652   : > { %v6479_v17 = vpop.f32.mrb[41].mxu0  ;;  %v15006_v4 = vadd.f32 %v14950_v41, %v6477_v8 }
 0x653   : > { %v6597_v17 = vadd.f32 %v6596_v3, %v6595_v40 }
 0x654   : > { %v6602_v47 = vsel %vm594_vm0, %v15006_v4, 0.0 }
 0x655   : > { %v6599_v58 = vadd.f32 %v6598_v29, %v6597_v17 }
 0x657   : > { %v6601_v8 = vadd.f32 %v6600_v28, %v6599_v58 }
 0x65a   : > { %v14922_v42 = vpop.f32.mrb[42].mxu0 }
 0x65b   : > { %v6484_v32 = vpop.f32.mrb[43].mxu0 }
 0x65e   : > { %v14924_v30 = vpop.f32.mrb[44].mxu0 }
 0x65f   : > { %v6489_v49 = vpop.f32.mrb[45].mxu0 }
 0x660   : > { %v15012_v49 = vadd.f32 %v14950_v41, %v14922_v42 }
 0x669   : > { %v14926_v15 = vpop.f32.mrb[46].mxu0 }
 0x66a   : > { %v6494_v10 = vpop.f32.mrb[47].mxu0 }
 0x66d   : > { %v14933_v22 = vpop.f32.mrb[48].mxu0 }
 0x66e   : > { %v6499_v25 = vpop.f32.mrb[49].mxu0 }
 0x66f   : > { %v15018_v25 = vadd.f32 %v14950_v41, %v14924_v30 }
 0x676   : > { %v14935_v12 = vpop.f32.mrb[50].mxu0 }
 0x677   : > { %v6504_v39 = vpop.f32.mrb[51].mxu0  ;;  %v15036_v16 = vadd.f32 %v14950_v41, %v14935_v12 }
 0x67a   : > { %v14937_v24 = vpop.f32.mrb[52].mxu0 }
 0x67b   : > { %v6509_v44 = vpop.f32.mrb[53].mxu0  ;;  %v15042_v26 = vadd.f32 %v14950_v41, %v14937_v24 }
 0x67c   : > { %v6604_v44 = vsel %vm594_vm0, %v15012_v49, 0.0 }
 0x67d   : > { %v6614_v12 = vsel %vm594_vm0, %v15042_v26, 0.0 }
 0x685   : > { %v14939_v62 = vpop.f32.mrb[54].mxu0 }
 0x686   : > { %v6514_v31 = vpop.f32.mrb[55].mxu0  ;;  %v15048_v46 = vadd.f32 %v14950_v41, %v14939_v62 }
 0x687   : > { %v15024_v31 = vadd.f32 %v14950_v41, %v14926_v15 }
 0x688   : > { %v6616_v33 = vsel %vm594_vm0, %v15048_v46, 0.0 }
 0x689   : > { %v14941_v36 = vpop.f32.mrb[56].mxu0  ;;  %v6608_v19 = vsel %vm594_vm0, %v15024_v31, 0.0 }
 0x68a   : > { %v6519_v35 = vpop.f32.mrb[57].mxu0  ;;  %v15054_v59 = vadd.f32 %v14950_v41, %v14941_v36 }
 0x68b   : > { %v6603_v35 = vadd.f32 %v6602_v47, %v6601_v8 }
 0x68c   : > { %v6618_v14 = vsel %vm594_vm0, %v15054_v59, 0.0 }
 0x68d   : > { %v6605_v30 = vadd.f32 %v6604_v44, %v6603_v35 }
 0x692   : > { %v14943_v61 = vpop.f32.mrb[58].mxu0 }
 0x693   : > { %v6524_v6 = vpop.f32.mrb[59].mxu0 }
 0x694   : > { %v6606_v6 = vsel %vm594_vm0, %v15018_v25, 0.0 }
 0x695   : > { %v6607_v2 = vadd.f32 %v6606_v6, %v6605_v30 }
 0x696   : > { %v14945_v50 = vpop.f32.mrb[60].mxu0 }
 0x697   : > { %v6529_v57 = vpop.f32.mrb[61].mxu0  ;;  %v6609_v13 = vadd.f32 %v6608_v19, %v6607_v2  ;;  %v15066_v53 = vadd.f32 %v14950_v41, %v14945_v50 }
 0x698   : > { %v15030_v57 = vadd.f32 %v14950_v41, %v14933_v22  ;;  %v6612_v22 = vsel %vm594_vm0, %v15036_v16, 0.0 }
 0x69a   : > { %v6610_v15 = vsel %vm594_vm0, %v15030_v57, 0.0 }
 0x6a1   : > { %v6532_v60 = vpop.f32.mrb[62].mxu0 }
 0x6a2   : > { %v6534_v45 = vpop.f32.mrb[63].mxu0  ;;  %v15071_v40 = vadd.f32 %v14950_v41, %v6532_v60 }
 0x6a3   : > { %v6611_v45 = vadd.f32 %v6610_v15, %v6609_v13 }
 0x6a4   : > { %v6624_v50 = vsel %vm594_vm0, %v15071_v40, 0.0 }
 0x6a5   : > { %v6537_v23 = vpop.f32.mrb[64].mxu0  ;;  %v6613_v20 = vadd.f32 %v6612_v22, %v6611_v45 }
 0x6a6   : > { %v6539_v34 = vpop.f32.mrb[65].mxu0  ;;  %v15076_v17 = vadd.f32 %v14950_v41, %v6537_v23 }
 0x6a7   : > { %v15060_v34 = vadd.f32 %v14950_v41, %v14943_v61  ;;  %v6615_v62 = vadd.f32 %v6614_v12, %v6613_v20  ;;  %v6622_v61 = vsel %vm594_vm0, %v15066_v53, 0.0 }
 0x6a8   : > { %v6626_v47 = vsel %vm594_vm0, %v15076_v17, 0.0 }
 0x6a9   : > { %v6617_v43 = vadd.f32 %v6616_v33, %v6615_v62  ;;  %v6620_v3 = vsel %vm594_vm0, %v15060_v34, 0.0 }
 0x6ab   : > { %v6619_v29 = vadd.f32 %v6618_v14, %v6617_v43 }
 0x6ad   : > { %v6621_v28 = vadd.f32 %v6620_v3, %v6619_v29 }
 0x6ae   : > { %v6542_v32 = vpop.f32.mrb[66].mxu0 }
 0x6af   : > { %v6544_v10 = vpop.f32.mrb[67].mxu0  ;;  %v6623_v58 = vadd.f32 %v6622_v61, %v6621_v28 }
 0x6b0   : > { %v15081_v10 = vadd.f32 %v14950_v41, %v6542_v32 }
 0x6b1   : > { %v6625_v8 = vadd.f32 %v6624_v50, %v6623_v58 }
 0x6b2   : > { %v6547_v39 = vpop.f32.mrb[68].mxu0  ;;  %v6628_v23 = vsel %vm594_vm0, %v15081_v10, 0.0 }
 0x6b3   : > { %v6549_v42 = vpop.f32.mrb[69].mxu0  ;;  %v15086_v60 = vadd.f32 %v14950_v41, %v6547_v39  ;;  %v6627_v6 = vadd.f32 %v6626_v47, %v6625_v8 }
 0x6b5   : > { %v6630_v32 = vsel %vm594_vm0, %v15086_v60, 0.0  ;;  %v6629_v19 = vadd.f32 %v6628_v23, %v6627_v6 }
 0x6b7   : > { %v6631_v22 = vadd.f32 %v6630_v32, %v6629_v19 }
 0x6bd   : > { %v6552_v0 = vpop.f32.mrb[70].mxu0 }
 0x6be   : > { %v6554_v24 = vpop.f32.mrb[71].mxu0  ;;  %v15091_v42 = vadd.f32 %v14950_v41, %v6552_v0 }
 0x6c0   : > { %v6632_v39 = vsel %vm594_vm0, %v15091_v42, 0.0 }
 0x6c1   : > { %v6557_v36 = vpop.f32.mrb[72].mxu0  ;;  %v6633_v0 = vadd.f32 %v6632_v39, %v6631_v22 }
 0x6c2   : > { %v6559_v27 = vpop.f32.mrb[73].mxu0  ;;  %v15096_v30 = vadd.f32 %v14950_v41, %v6557_v36 }
 0x6c4   : > { %v6634_v45 = vsel %vm594_vm0, %v15096_v30, 0.0 }
 0x6c5   : > { %v6635_v33 = vadd.f32 %v6634_v45, %v6633_v0  ;;  %v7011_v45 = vld [vmem:[#allocation2 + $0x10] sm:$0xff]  ;;  %v7010_v0 = vld [vmem:[#allocation2 + $0x8] sm:$0xff] }
 0x6c6   : > { %7889 = vrot.lane.b32.xlu0 %v7011_v45, %s17610_s15  ;;  %7887 = vrot.lane.b32.xlu1 %v7010_v0, %s17610_s15 }
 0x6ca   : > { %v6562_v44 = vpop.f32.mrb[74].mxu0 }
 0x6cb   : > { %v6564_v35 = vpop.f32.mrb[75].mxu0  ;;  %v15101_v15 = vadd.f32 %v14950_v41, %v6562_v44 }
 0x6cd   : > { %v6636_v20 = vsel %vm594_vm0, %v15101_v15, 0.0 }
 0x6ce   : > { %v6567_v2 = vpop.f32.mrb[76].mxu0  ;;  %v6637_v43 = vadd.f32 %v6636_v20, %v6635_v33  ;;  %v7009_v20 = vld [vmem:[#allocation2 + $0x230] sm:$0xff]  ;;  %v6730_v33 = vld [vmem:[%s17202_s11] sm:$0x1] }
 0x6cf   : > { %v6569_v13 = vpop.f32.mrb[77].mxu0  ;;  %v15106_v12 = vadd.f32 %v14950_v41, %v6567_v2  ;;  %7625 = vrot.lane.b32.xlu0 %v7009_v20, %s17611_s16 }
 0x6d1   : > { %v6638_v36 = vsel %vm594_vm0, %v15106_v12, 0.0 }
 0x6d2   : > { %v6639_v3 = vadd.f32 %v6638_v36, %v6637_v43 }
 0x6d3   : > { %v6572_v24 = vpop.f32.mrb[78].mxu0 }
 0x6d4   : > { %v15111_v62 = vadd.f32 %v14950_v41, %v6572_v24  ;;  %v6574_v14 = vpop.f32.mrb[79].mxu0  ;;  %v7008_v24 = vld [vmem:[#allocation2 + $0x228] sm:$0xff] }
 0x6d5   : > { %7623 = vrot.lane.b32.xlu1 %v7008_v24, %s17611_s16  ;;  %v17631_v24 = vld [vmem:[#allocation69_spill] sm:$0xff] }
 0x6d6   : > { %v6640_v27 = vsel %vm594_vm0, %v15111_v62, 0.0 }
 0x6d7   : > { %v6641_v50 = vadd.f32 %v6640_v27, %v6639_v3 }
 0x6d8   : > { %v6577_v29 = vpop.f32.mrb[80].mxu0 }
 0x6d9   : > { %v15118_v61 = vadd.f32 %v14950_v41, %v6577_v29  ;;  %v6579_v28 = vpop.f32.mrb[81].mxu0  ;;  %v6654_v41 = vld [vmem:[%s17200_s9] sm:$0x1] }
 0x6da   : > { %v6814_v28 = vlaneseq }
 0x6db   : > { %v6642_v58 = vsel %vm594_vm0, %v15118_v61, 0.0 }
 0x6dc   : > { %v6643_v47 = vadd.f32 %v6642_v58, %v6641_v50  ;;  %v6815_v50 = vshrl.u32 %v6814_v28, 7  ;;  %v17639_v28 = vld [vmem:[#allocation52_spill] sm:$0xff] }
 0x6de   : > { %v6644_v8 = vrot.slane %v6643_v47, 4  ;;  %v6816_v58 = vsub.s32 0, %v6815_v50 }
 0x6e0   : > { %v6645_v44 = vadd.f32 %v6644_v8, %v6643_v47 }
 0x6e2   : > { %v6646_v23 = vrot.slane %v6645_v44, 2 }
 0x6e4   : > { %v6647_v35 = vadd.f32 %v6646_v23, %v6645_v44 }
 0x6e6   : > { %v6648_v6 = vrot.slane %v6647_v35, 1 }
 0x6e8   : > { %v6649_v32 = vadd.f32 %v6648_v6, %v6647_v35 }
 0x6ea   : > { %v6651_v19 = vmul.f32 0.00390625, %v6649_v32 }
 0x6ec   : > { %9986 = vmatmul.mubr.msk.f32.vlgmr.msra.gmra.mrb[82].mxu0 %vm594_vm0, %v6651_v19 }
 0x7bf   : > { %v6724_v2 = vpop.f32.mrb[82].mxu0 }
 0x7c0   : > { %v6725_v39 = vadd.f32 %v6724_v2, %v6654_v41  ;;  %v9987_v13 = vpop.f32.mrb[83].mxu0 }
 0x7c2   : > { %v6728_v22 = vmax.f32 %v6725_v39, 0.0 }
 0x7c4   : > { %9991 = vmatmul.mubr.msk.f32.vlgmr.msra.gmra.mrb[78].mxu1 %vm2480_vm10, %v6728_v22 }
 0x897   : > { %v6804_v14 = vpop.f32.mrb[78].mxu1 }
 0x898   : > { %v6805_v36 = vadd.f32 %v6804_v14, %v6730_v33  ;;  %v9992_v43 = vpop.f32.mrb[79].mxu1  ;;  %v17633_v14 = vld [vmem:[#allocation68_spill] sm:$0xff] }
 0x899   : > { %v17635_v43 = vld [vmem:[#allocation71_spill] sm:$0xff] }
 0x89a   : > { %v9741_v27 = vmul.f32 -1.442695, %v6805_v36 }
 0x89c   : > { %11360 = vpow2.f32 %v9741_v27 }
 0x8a6   : > { %v11361_v3 = vpop.eup %11360 }
 0x8a7   : > { %v6811_v29 = vadd.f32 1.0, %v11361_v3  ;;  %v17637_v3 = vld [vmem:[#allocation70_spill] sm:$0xff] }
 0x8a9   : > { %11362 = vrcp.f32 %v6811_v29 }
 0x8b3   : > { %v11363_v47 = vpop.eup %11362 }
 0x8b4   : > { %v6817_v8 = vrot.slane %v11363_v47, %v6816_v58  ;;  %v17641_v58 = vld [vmem:[#allocation51_spill] sm:$0xff] }
 0x8b6   : > { %v6818_v44 = vmul.f32 %v6817_v8, %v14956_v48  ;;  %v6819_v23 = vmul.f32 %v6817_v8, %v14953_v63  ;;  %v6820_v35 = vmul.f32 %v6817_v8, %v14959_v38  ;;  %v6821_v6 = vmul.f32 %v6817_v8, %v14964_v56 }
 0x8b7   : > { %v6822_v32 = vmul.f32 %v6817_v8, %v14971_v54  ;;  %v6823_v19 = vmul.f32 %v6817_v8, %v14976_v51  ;;  %v6824_v41 = vmul.f32 %v6817_v8, %v14981_v52  ;;  %v6825_v2 = vmul.f32 %v6817_v8, %v14986_v1 }
 0x8b8   : > { %v6826_v39 = vmul.f32 %v6817_v8, %v14991_v55  ;;  %v6827_v13 = vmul.f32 %v6817_v8, %v14996_v11  ;;  %v6828_v48 = vmul.f32 %v6817_v8, %v15001_v37  ;;  %v6829_v63 = vmul.f32 %v6817_v8, %v15006_v4 }
 0x8b9   : > { %v6830_v38 = vmul.f32 %v6817_v8, %v15012_v49  ;;  %v6831_v56 = vmul.f32 %v6817_v8, %v15018_v25  ;;  %v6832_v54 = vmul.f32 %v6817_v8, %v15024_v31  ;;  %v6833_v51 = vmul.f32 %v6817_v8, %v15030_v57 }
 0x8ba   : > { %v6834_v52 = vmul.f32 %v6817_v8, %v15036_v16  ;;  %v6835_v1 = vmul.f32 %v6817_v8, %v15042_v26  ;;  %v6836_v55 = vmul.f32 %v6817_v8, %v15048_v46  ;;  %v6837_v11 = vmul.f32 %v6817_v8, %v15054_v59 }
 0x8bb   : > { %v6838_v37 = vmul.f32 %v6817_v8, %v15060_v34  ;;  %v6839_v4 = vmul.f32 %v6817_v8, %v15066_v53  ;;  %v6840_v49 = vmul.f32 %v6817_v8, %v15071_v40  ;;  %v6841_v25 = vmul.f32 %v6817_v8, %v15076_v17 }
 0x8bc   : > { %v6842_v31 = vmul.f32 %v6817_v8, %v15081_v10  ;;  %v6843_v57 = vmul.f32 %v6817_v8, %v15086_v60  ;;  %v6844_v16 = vmul.f32 %v6817_v8, %v15091_v42  ;;  %v6845_v26 = vmul.f32 %v6817_v8, %v15096_v30  ;;  %v17617_v30 = vld [vmem:[#allocation63_spill] sm:$0xff] }
 0x8bd   : > { %v6846_v46 = vmul.f32 %v6817_v8, %v15101_v15  ;;  %v6847_v59 = vmul.f32 %v6817_v8, %v15106_v12  ;;  %v6848_v34 = vmul.f32 %v6817_v8, %v15111_v62  ;;  %v6849_v53 = vmul.f32 %v6817_v8, %v15118_v61  ;;  %v17619_v12 = vld [vmem:[#allocation22_spill] sm:$0xff]  ;;  %v17643_v8 = vld [vmem:[#allocation23_spill] sm:$0xff] }
 0x8be   : > { %v15167_v40 = vadd.f32 %v6818_v44, %v13307_v5  ;;  %v15170_v17 = vadd.f32 %v6819_v23, %v13303_v18  ;;  %v15173_v10 = vadd.f32 %v6820_v35, %v13319_v21  ;;  %v15176_v60 = vadd.f32 %v6821_v6, %v13316_v7  ;;  %v17621_v5 = vld [vmem:[#allocation21_spill] sm:$0xff]  ;;  %v17623_v18 = vld [vmem:[#allocation64_spill] sm:$0xff]  ;;  %v17645_v23 = vld [vmem:[#allocation74_spill] sm:$0xff] }
 0x8bf   : > { %v15179_v42 = vadd.f32 %v6822_v32, %v13358_v9  ;;  %v15182_v15 = vadd.f32 %v6823_v19, %v17617_v30  ;;  %v15185_v62 = vadd.f32 %v6824_v41, %v17619_v12  ;;  %v15188_v61 = vadd.f32 %v6825_v2, %v17621_v5  ;;  %v17625_v21 = vld [vmem:[#allocation65_spill] sm:$0xff]  ;;  %v17627_v7 = vld [vmem:[#allocation60_spill] sm:$0xff]  ;;  %v17629_v9 = vld [vmem:[#allocation59_spill] sm:$0xff] }
 0x8c0   : > { %17612 = vst [vmem:[#allocation30_spill] sm:$0xff] %v15167_v40  ;;  %17613 = vst [vmem:[#allocation62_spill] sm:$0xff] %v15170_v17  ;;  %v15191_v22 = vadd.f32 %v6826_v39, %v17623_v18  ;;  %v15194_v45 = vadd.f32 %v6827_v13, %v17625_v21  ;;  %v15197_v0 = vadd.f32 %v6828_v48, %v17627_v7  ;;  %v17647_v6 = vld [vmem:[#allocation53_spill] sm:$0xff]  ;;  %v17649_v19 = vld [vmem:[#allocation24_spill] sm:$0xff] }
 0x8c1   : > { %17614 = vst [vmem:[#allocation61_spill] sm:$0xff] %v15173_v10  ;;  %17615 = vst [vmem:[#allocation31_spill] sm:$0xff] %v15176_v60  ;;  %v15200_v20 = vadd.f32 %v6829_v63, %v17629_v9  ;;  %v15211_v33 = vadd.f32 %v6830_v38, %v17631_v24  ;;  %v15214_v36 = vadd.f32 %v6831_v56, %v17633_v14  ;;  %v17651_v2 = vld [vmem:[#allocation25_spill] sm:$0xff]  ;;  %v17653_v13 = vld [vmem:[#allocation54_spill] sm:$0xff] }
 0x8c2   : > { %17616 = vst [vmem:[#allocation32_spill] sm:$0xff] %v15179_v42  ;;  %17618 = vst [vmem:[#allocation66_spill] sm:$0xff] %v15182_v15  ;;  %v15217_v27 = vadd.f32 %v6832_v54, %v17635_v43  ;;  %v15220_v29 = vadd.f32 %v6833_v51, %v17637_v3  ;;  %v15231_v50 = vadd.f32 %v6834_v52, %v17639_v28  ;;  %v17655_v63 = vld [vmem:[#allocation55_spill] sm:$0xff]  ;;  %v17657_v56 = vld [vmem:[#allocation26_spill] sm:$0xff] }
 0x8c3   : > { %17620 = vst [vmem:[#allocation67_spill] sm:$0xff] %v15185_v62  ;;  %17622 = vst [vmem:[#allocation33_spill] sm:$0xff] %v15188_v61  ;;  %v15234_v47 = vadd.f32 %v6835_v1, %v17641_v58  ;;  %v15237_v44 = vadd.f32 %v6836_v55, %v17643_v8  ;;  %v15240_v35 = vadd.f32 %v6837_v11, %v17645_v23  ;;  %v17659_v51 = vld [vmem:[#allocation27_spill] sm:$0xff]  ;;  %v17661_v1 = vld [vmem:[#allocation56_spill] sm:$0xff] }
 0x8c4   : > { %17624 = vst [vmem:[#allocation34_spill] sm:$0xff] %v15191_v22  ;;  %17626 = vst [vmem:[#allocation72_spill] sm:$0xff] %v15194_v45  ;;  %v15251_v32 = vadd.f32 %v6838_v37, %v17647_v6  ;;  %v15254_v41 = vadd.f32 %v6839_v4, %v17649_v19  ;;  %v15257_v39 = vadd.f32 %v6840_v49, %v17651_v2  ;;  %v17663_v11 = vld [vmem:[#allocation57_spill] sm:$0xff]  ;;  %v17665_v4 = vld [vmem:[#allocation28_spill] sm:$0xff]  ;;  %v15366_v2 = vstv %s7042_s0 }
 0x8c5   : > { %17628 = vst [vmem:[#allocation73_spill] sm:$0xff] %v15197_v0  ;;  %17630 = vst [vmem:[#allocation35_spill] sm:$0xff] %v15200_v20  ;;  %v15260_v48 = vadd.f32 %v6841_v25, %v17653_v13  ;;  %v15271_v38 = vadd.f32 %v6842_v31, %v17655_v63  ;;  %v15274_v54 = vadd.f32 %v6843_v57, %v17657_v56  ;;  %v17667_v25 = vld [vmem:[#allocation29_spill] sm:$0xff]  ;;  %v17669_v57 = vld [vmem:[#allocation58_spill] sm:$0xff] }
 0x8c6   : > { %6882 = vst.msk [vmem:[#allocation2 + $0x28] sm:$0xff] %vm594_vm0, %v15167_v40  ;;  %6883 = vst.msk [vmem:[#allocation2 + $0x30] sm:$0xff] %vm594_vm0, %v15170_v17  ;;  %v15277_v52 = vadd.f32 %v6844_v16, %v17659_v51  ;;  %v15280_v55 = vadd.f32 %v6845_v26, %v17661_v1  ;;  %v15291_v37 = vadd.f32 %v6846_v46, %v17663_v11  ;;  %v15371_v1 = vstv %s9742_s24 }
 0x8c7   : > { %6884 = vst.msk [vmem:[#allocation2 + $0x48] sm:$0xff] %vm594_vm0, %v15173_v10  ;;  %6885 = vst.msk [vmem:[#allocation2 + $0x50] sm:$0xff] %vm594_vm0, %v15176_v60  ;;  %v15294_v49 = vadd.f32 %v6847_v59, %v17665_v4  ;;  %v15297_v31 = vadd.f32 %v6848_v34, %v17667_v25  ;;  %v15300_v16 = vadd.f32 %v6849_v53, %v17669_v57 }
 0x8c8   : > { %17632 = vst [vmem:[#allocation36_spill] sm:$0xff] %v15211_v33  ;;  %17634 = vst [vmem:[#allocation37_spill] sm:$0xff] %v15214_v36 }
 0x8c9   : > { %17636 = vst [vmem:[#allocation38_spill] sm:$0xff] %v15217_v27  ;;  %17638 = vst [vmem:[#allocation39_spill] sm:$0xff] %v15220_v29 }
 0x8ca   : > { %6886 = vst.msk [vmem:[#allocation2 + $0x68] sm:$0xff] %vm594_vm0, %v15179_v42  ;;  %6887 = vst.msk [vmem:[#allocation2 + $0x70] sm:$0xff] %vm594_vm0, %v15182_v15 }
 0x8cb   : > { %6888 = vst.msk [vmem:[#allocation2 + $0x88] sm:$0xff] %vm594_vm0, %v15185_v62  ;;  %6889 = vst.msk [vmem:[#allocation2 + $0x90] sm:$0xff] %vm594_vm0, %v15188_v61 }
 0x8cc   : > { %17640 = vst [vmem:[#allocation40_spill] sm:$0xff] %v15231_v50  ;;  %17642 = vst [vmem:[#allocation41_spill] sm:$0xff] %v15234_v47 }
 0x8cd   : > { %17644 = vst [vmem:[#allocation42_spill] sm:$0xff] %v15237_v44  ;;  %17646 = vst [vmem:[#allocation43_spill] sm:$0xff] %v15240_v35  ;;  %v6947_v26 = vld [vmem:[#allocation2 + $0x2f] sm:$0xff]  ;;  %v6946_v46 = vld [vmem:[#allocation2 + $0x27] sm:$0xff] }
 0x8ce   : > { %6890 = vst.msk [vmem:[#allocation2 + $0xa8] sm:$0xff] %vm594_vm0, %v15191_v22  ;;  %6891 = vst.msk [vmem:[#allocation2 + $0xb0] sm:$0xff] %vm594_vm0, %v15194_v45  ;;  %7241 = vrot.lane.b32.xlu0 %v6947_v26, %s17671_s12  ;;  %7239 = vrot.lane.b32.xlu1 %v6946_v46, %s17671_s12  ;;  %v6949_v59 = vld [vmem:[#allocation2 + $0x4f] sm:$0xff]  ;;  %v6948_v34 = vld [vmem:[#allocation2 + $0x47] sm:$0xff] }
 0x8cf   : > { %6892 = vst.msk [vmem:[#allocation2 + $0xc8] sm:$0xff] %vm594_vm0, %v15197_v0  ;;  %6893 = vst.msk [vmem:[#allocation2 + $0xd0] sm:$0xff] %vm594_vm0, %v15200_v20  ;;  %v6979_v12 = vld [vmem:[#allocation2 + $0x50] sm:$0xff]  ;;  %v6978_v5 = vld [vmem:[#allocation2 + $0x48] sm:$0xff] }
 0x8d0   : > { %17648 = vst [vmem:[#allocation44_spill] sm:$0xff] %v15251_v32  ;;  %17650 = vst [vmem:[#allocation46_spill] sm:$0xff] %v15254_v41  ;;  %v7013_v6 = vld [vmem:[#allocation2 + $0x30] sm:$0xff]  ;;  %v7012_v19 = vld [vmem:[#allocation2 + $0x28] sm:$0xff] }
 0x8d1   : > { %17652 = vst [vmem:[#allocation45_spill] sm:$0xff] %v15257_v39  ;;  %17654 = vst [vmem:[#allocation47_spill] sm:$0xff] %v15260_v48  ;;  %v6951_v53 = vld [vmem:[#allocation2 + $0x6f] sm:$0xff]  ;;  %v6950_v30 = vld [vmem:[#allocation2 + $0x67] sm:$0xff] }
 0x8d2   : > { %6894 = vst.msk [vmem:[#allocation2 + $0xe8] sm:$0xff] %vm594_vm0, %v15211_v33  ;;  %6895 = vst.msk [vmem:[#allocation2 + $0xf0] sm:$0xff] %vm594_vm0, %v15214_v36  ;;  %7245 = vrot.lane.b32.xlu0 %v6949_v59, %s17671_s12  ;;  %7243 = vrot.lane.b32.xlu1 %v6948_v34, %s17671_s12  ;;  %v6953_v18 = vld [vmem:[#allocation2 + $0x8f] sm:$0xff]  ;;  %v6952_v21 = vld [vmem:[#allocation2 + $0x87] sm:$0xff] }
 0x8d3   : > { %6896 = vst.msk [vmem:[#allocation2 + $0x108] sm:$0xff] %vm594_vm0, %v15217_v27  ;;  %6897 = vst.msk [vmem:[#allocation2 + $0x110] sm:$0xff] %vm594_vm0, %v15220_v29  ;;  %v15336_v7 = vld [vmem:[#allocation2 + $0x70] sm:$0xff]  ;;  %v15338_v9 = vld [vmem:[#allocation2 + $0x68] sm:$0xff] }
 0x8d4   : > { %17656 = vst [vmem:[#allocation48_spill] sm:$0xff] %v15271_v38  ;;  %17658 = vst [vmem:[#allocation49_spill] sm:$0xff] %v15274_v54  ;;  %v15346_v43 = vld [vmem:[#allocation2 + $0x90] sm:$0xff]  ;;  %v15348_v3 = vld [vmem:[#allocation2 + $0x88] sm:$0xff] }
 0x8d5   : > { %17660 = vst [vmem:[#allocation50_spill] sm:$0xff] %v15277_v52  ;;  %17662 = vst [vmem:[#allocation63_spill] sm:$0xff] %v15280_v55  ;;  %v6955_v24 = vld [vmem:[#allocation2 + $0xaf] sm:$0xff]  ;;  %v6954_v14 = vld [vmem:[#allocation2 + $0xa7] sm:$0xff] }
 0x8d6   : > { %6898 = vst.msk [vmem:[#allocation2 + $0x128] sm:$0xff] %vm594_vm0, %v15231_v50  ;;  %6899 = vst.msk [vmem:[#allocation2 + $0x130] sm:$0xff] %vm594_vm0, %v15234_v47  ;;  %7249 = vrot.lane.b32.xlu0 %v6951_v53, %s17671_s12  ;;  %7247 = vrot.lane.b32.xlu1 %v6950_v30, %s17671_s12  ;;  %v6957_v28 = vld [vmem:[#allocation2 + $0xcf] sm:$0xff]  ;;  %v6956_v58 = vld [vmem:[#allocation2 + $0xc7] sm:$0xff] }
 0x8d7   : > { %6900 = vst.msk [vmem:[#allocation2 + $0x148] sm:$0xff] %vm594_vm0, %v15237_v44  ;;  %6901 = vst.msk [vmem:[#allocation2 + $0x150] sm:$0xff] %vm594_vm0, %v15240_v35  ;;  %v15356_v8 = vld [vmem:[#allocation2 + $0xb0] sm:$0xff]  ;;  %v15358_v23 = vld [vmem:[#allocation2 + $0xa8] sm:$0xff] }
 0x8d8   : > { %17664 = vst [vmem:[#allocation22_spill] sm:$0xff] %v15291_v37  ;;  %17666 = vst [vmem:[#allocation21_spill] sm:$0xff] %v15294_v49  ;;  %v6987_v4 = vld [vmem:[#allocation2 + $0xd0] sm:$0xff]  ;;  %v6986_v25 = vld [vmem:[#allocation2 + $0xc8] sm:$0xff] }
 0x8d9   : > { %17668 = vst [vmem:[#allocation64_spill] sm:$0xff] %v15297_v31  ;;  %17670 = vst [vmem:[#allocation65_spill] sm:$0xff] %v15300_v16  ;;  %v6959_v63 = vld [vmem:[#allocation2 + $0xef] sm:$0xff]  ;;  %v6958_v56 = vld [vmem:[#allocation2 + $0xe7] sm:$0xff] }
 0x8da   : > { %6902 = vst.msk [vmem:[#allocation2 + $0x168] sm:$0xff] %vm594_vm0, %v15251_v32  ;;  %6903 = vst.msk [vmem:[#allocation2 + $0x170] sm:$0xff] %vm594_vm0, %v15254_v41  ;;  %7565 = vrot.lane.b32.xlu0 %v6979_v12, %s17611_s16  ;;  %7563 = vrot.lane.b32.xlu1 %v6978_v5, %s17611_s16  ;;  %v6917_v32 = vld [vmem:[#allocation2 + $0x51] sm:$0xff]  ;;  %v6916_v41 = vld [vmem:[#allocation2 + $0x49] sm:$0xff] }
 0x8db   : > { %6904 = vst.msk [vmem:[#allocation2 + $0x188] sm:$0xff] %vm594_vm0, %v15257_v39  ;;  %6905 = vst.msk [vmem:[#allocation2 + $0x190] sm:$0xff] %vm594_vm0, %v15260_v48  ;;  %v6919_v35 = vld [vmem:[#allocation2 + $0x71] sm:$0xff]  ;;  %v6918_v50 = vld [vmem:[#allocation2 + $0x69] sm:$0xff]  ;;  %v7047_v27 = vmul.f32 %v15366_v2, %v6917_v32  ;;  %v7046_v29 = vmul.f32 %v15366_v2, %v6916_v41 }
 0x8dc   : > { %6906 = vst.msk [vmem:[#allocation2 + $0x1a8] sm:$0xff] %vm594_vm0, %v15271_v38  ;;  %6907 = vst.msk [vmem:[#allocation2 + $0x1b0] sm:$0xff] %vm594_vm0, %v15274_v54  ;;  %v7048_v0 = vmul.f32 %v15366_v2, %v6918_v50  ;;  %v6921_v45 = vld [vmem:[#allocation2 + $0x91] sm:$0xff]  ;;  %v6924_v15 = vld [vmem:[#allocation2 + $0xc9] sm:$0xff] }
 0x8dd   : > { %6908 = vst.msk [vmem:[#allocation2 + $0x1c8] sm:$0xff] %vm594_vm0, %v15277_v52  ;;  %6909 = vst.msk [vmem:[#allocation2 + $0x1d0] sm:$0xff] %vm594_vm0, %v15280_v55  ;;  %v7081_v41 = vadd.f32 %v15371_v1, %v7047_v27  ;;  %v7080_v62 = vadd.f32 %v15371_v1, %v7046_v29  ;;  %v6925_v61 = vld [vmem:[#allocation2 + $0xd1] sm:$0xff]  ;;  %v7054_v17 = vmul.f32 %v15366_v2, %v6924_v15 }
 0x8de   : > { %6910 = vst.msk [vmem:[#allocation2 + $0x1e8] sm:$0xff] %vm594_vm0, %v15291_v37  ;;  %6911 = vst.msk [vmem:[#allocation2 + $0x1f0] sm:$0xff] %vm594_vm0, %v15294_v49  ;;  %7253 = vrot.lane.b32.xlu0 %v6953_v18, %s17671_s12  ;;  %7251 = vrot.lane.b32.xlu1 %v6952_v21, %s17671_s12  ;;  %v7055_v40 = vmul.f32 %v15366_v2, %v6925_v61 }
 0x8df   : > { %6912 = vst.msk [vmem:[#allocation2 + $0x208] sm:$0xff] %vm594_vm0, %v15297_v31  ;;  %6913 = vst.msk [vmem:[#allocation2 + $0x210] sm:$0xff] %vm594_vm0, %v15300_v16  ;;  %vm7113_vm1 = vcmp.ge.f32.partialorder %v7081_v41, 0.0  ;;  %vm7112_vm2 = vcmp.ge.f32.partialorder %v7080_v62, 0.0 }
 0x8e2   : > { %7569 = vrot.lane.b32.xlu0 %v15336_v7, %s17611_s16  ;;  %7567 = vrot.lane.b32.xlu1 %v15338_v9, %s17611_s16 }
 0x8e3   : > { %v15490_v37 = vld [vmem:[#allocation2 + $0x1b0] sm:$0xff]  ;;  %v15492_v49 = vld [vmem:[#allocation2 + $0x1a8] sm:$0xff] }
 0x8e4   : > { %v6941_v13 = vld [vmem:[#allocation2 + $0x1d1] sm:$0xff]  ;;  %v6940_v11 = vld [vmem:[#allocation2 + $0x1c9] sm:$0xff] }
 0x8e5   : > { %v7071_v51 = vmul.f32 %v15366_v2, %v6941_v13  ;;  %v6943_v57 = vld [vmem:[#allocation2 + $0x1f1] sm:$0xff]  ;;  %v6942_v26 = vld [vmem:[#allocation2 + $0x1e9] sm:$0xff]  ;;  %v7070_v59 = vmul.f32 %v15366_v2, %v6940_v11 }
 0x8e6   : > { %7257 = vrot.lane.b32.xlu0 %v6955_v24, %s17671_s12  ;;  %7255 = vrot.lane.b32.xlu1 %v6954_v14, %s17671_s12  ;;  %v6945_v34 = vld [vmem:[#allocation2 + $0x211] sm:$0xff]  ;;  %v7073_v53 = vmul.f32 %v15366_v2, %v6943_v57  ;;  %v7072_v18 = vmul.f32 %v15366_v2, %v6942_v26  ;;  %v6944_v21 = vld [vmem:[#allocation2 + $0x209] sm:$0xff] }
 0x8e7   : > { %v15376_v46 = vadd.f32 %v15371_v1, %v7071_v51  ;;  %v15381_v30 = vadd.f32 %v15371_v1, %v7070_v59  ;;  %v7075_v14 = vmul.f32 %v15366_v2, %v6945_v34  ;;  %v6960_v13 = vld [vmem:[#allocation2 + $0x107] sm:$0xff]  ;;  %v6991_v11 = vld [vmem:[#allocation2 + $0x110] sm:$0xff] }
 0x8e8   : > { %v15387_v24 = vadd.f32 %v15371_v1, %v7073_v53  ;;  %v6962_v51 = vld [vmem:[#allocation2 + $0x127] sm:$0xff]  ;;  %v6993_v26 = vld [vmem:[#allocation2 + $0x130] sm:$0xff] }
 0x8e9   : > { %v6990_v57 = vld [vmem:[#allocation2 + $0x108] sm:$0xff]  ;;  %v15426_v34 = vld [vmem:[#allocation2 + $0x150] sm:$0xff] }
 0x8ea   : > { %7573 = vrot.lane.b32.xlu0 %v15346_v43, %s17611_s16  ;;  %7571 = vrot.lane.b32.xlu1 %v15348_v3, %s17611_s16  ;;  %v6992_v59 = vld [vmem:[#allocation2 + $0x128] sm:$0xff]  ;;  %v15514_v39 = vld [vmem:[#allocation2 + $0x1d0] sm:$0xff] }
 0x8eb   : > { %v15428_v53 = vld [vmem:[#allocation2 + $0x148] sm:$0xff] }
 0x8ec   : > { %v6975_v52 = vld [vmem:[#allocation2 + $0x1ef] sm:$0xff]  ;;  %v6974_v55 = vld [vmem:[#allocation2 + $0x1e7] sm:$0xff] }
 0x8ed   : > { %v15516_v48 = vld [vmem:[#allocation2 + $0x1c8] sm:$0xff] }
 0x8ee   : > { %7261 = vrot.lane.b32.xlu0 %v6957_v28, %s17671_s12  ;;  %7259 = vrot.lane.b32.xlu1 %v6956_v58, %s17671_s12  ;;  %v15391_v28 = vadd.f32 %v15371_v1, %v7072_v18  ;;  %v15394_v58 = vadd.f32 %v15371_v1, %v7075_v14  ;;  %v6969_v18 = vld [vmem:[#allocation2 + $0x18f] sm:$0xff]  ;;  %v6976_v22 = vld [vmem:[#allocation2 + $0x207] sm:$0xff] }
 0x8ef   : > { %v15442_v14 = vld [vmem:[#allocation2 + $0x170] sm:$0xff]  ;;  %v15555_v27 = vld [vmem:[#allocation2 + $0x1e8] sm:$0xff] }
 0x8f0   : > { %v6977_v20 = vld [vmem:[#allocation2 + $0x20f] sm:$0xff] }
 0x8f2   : > { %7577 = vrot.lane.b32.xlu0 %v15356_v8, %s17611_s16  ;;  %7575 = vrot.lane.b32.xlu1 %v15358_v23, %s17611_s16 }
 0x8f6   : > { %7893 = vrot.lane.b32.xlu0 %v7013_v6, %s17610_s15  ;;  %7891 = vrot.lane.b32.xlu1 %v7012_v19, %s17610_s15  ;;  %v7074_v6 = vmul.f32 %v15366_v2, %v6944_v21  ;;  %v6961_v19 = vld [vmem:[#allocation2 + $0x10f] sm:$0xff]  ;;  %v6968_v21 = vld [vmem:[#allocation2 + $0x187] sm:$0xff] }
 0x8fa   : > { %7265 = vrot.lane.b32.xlu0 %v6959_v63, %s17671_s12  ;;  %7263 = vrot.lane.b32.xlu1 %v6958_v56, %s17671_s12  ;;  %v6988_v63 = vld [vmem:[#allocation2 + $0xe8] sm:$0xff] }
 0x8fb   : > { %v6963_v56 = vld [vmem:[#allocation2 + $0x12f] sm:$0xff] }
 0x8fe   : > { %7581 = vrot.lane.b32.xlu0 %v6987_v4, %s17611_s16  ;;  %7579 = vrot.lane.b32.xlu1 %v6986_v25, %s17611_s16 }
 0x902   : > { %7897 = vrot.lane.b32.xlu0 %v6979_v12, %s17610_s15  ;;  %7895 = vrot.lane.b32.xlu1 %v6978_v5, %s17610_s15  ;;  %v15400_v12 = vadd.f32 %v15371_v1, %v7074_v6  ;;  %v6989_v5 = vld [vmem:[#allocation2 + $0xf0] sm:$0xff]  ;;  %v15444_v6 = vld [vmem:[#allocation2 + $0x168] sm:$0xff] }
 0x906   : > { %7269 = vrot.lane.b32.xlu0 %v6961_v19, %s17671_s12  ;;  %7267 = vrot.lane.b32.xlu1 %v6960_v13, %s17671_s12 }
 0x90a   : > { %7585 = vrot.lane.b32.xlu0 %v6989_v5, %s17611_s16  ;;  %7583 = vrot.lane.b32.xlu1 %v6988_v63, %s17611_s16 }
 0x90e   : > { %7901 = vrot.lane.b32.xlu0 %v15336_v7, %s17610_s15  ;;  %7899 = vrot.lane.b32.xlu1 %v15338_v9, %s17610_s15  ;;  %v6965_v7 = vld [vmem:[#allocation2 + $0x14f] sm:$0xff]  ;;  %v6964_v9 = vld [vmem:[#allocation2 + $0x147] sm:$0xff] }
 0x912   : > { %7273 = vrot.lane.b32.xlu0 %v6963_v56, %s17671_s12  ;;  %7271 = vrot.lane.b32.xlu1 %v6962_v51, %s17671_s12  ;;  %v6971_v56 = vld [vmem:[#allocation2 + $0x1af] sm:$0xff]  ;;  %v6970_v51 = vld [vmem:[#allocation2 + $0x1a7] sm:$0xff] }
 0x916   : > { %7589 = vrot.lane.b32.xlu0 %v6991_v11, %s17611_s16  ;;  %7587 = vrot.lane.b32.xlu1 %v6990_v57, %s17611_s16 }
 0x91a   : > { %7905 = vrot.lane.b32.xlu0 %v15346_v43, %s17610_s15  ;;  %7903 = vrot.lane.b32.xlu1 %v15348_v3, %s17610_s15  ;;  %v6967_v43 = vld [vmem:[#allocation2 + $0x16f] sm:$0xff]  ;;  %v6966_v3 = vld [vmem:[#allocation2 + $0x167] sm:$0xff] }
 0x91e   : > { %7277 = vrot.lane.b32.xlu0 %v6965_v7, %s17671_s12  ;;  %7275 = vrot.lane.b32.xlu1 %v6964_v9, %s17671_s12 }
 0x922   : > { %7593 = vrot.lane.b32.xlu0 %v6993_v26, %s17611_s16  ;;  %7591 = vrot.lane.b32.xlu1 %v6992_v59, %s17611_s16 }
 0x926   : > { %7909 = vrot.lane.b32.xlu0 %v15356_v8, %s17610_s15  ;;  %7907 = vrot.lane.b32.xlu1 %v15358_v23, %s17610_s15  ;;  %v15436_v8 = vpop.permute.xlu0 %7889  ;;  %v15438_v23 = vpop.permute.xlu1 %7887 }
 0x927   : > { %17672 = vst [vmem:[#allocation60_spill] sm:$0xff] %v15436_v8  ;;  %17673 = vst [vmem:[#allocation59_spill] sm:$0xff] %v15438_v23  ;;  %v7144_v23 = vmul.f32 0.1, %v7080_v62 }
 0x92a   : > { %7281 = vrot.lane.b32.xlu0 %v6967_v43, %s17671_s12  ;;  %7279 = vrot.lane.b32.xlu1 %v6966_v3, %s17671_s12  ;;  %v15466_v43 = vld [vmem:[#allocation2 + $0x190] sm:$0xff]  ;;  %v15468_v3 = vld [vmem:[#allocation2 + $0x188] sm:$0xff] }
 0x92e   : > { %7597 = vrot.lane.b32.xlu0 %v15426_v34, %s17611_s16  ;;  %7595 = vrot.lane.b32.xlu1 %v15428_v53, %s17611_s16 }
 0x932   : > { %7913 = vrot.lane.b32.xlu0 %v6987_v4, %s17610_s15  ;;  %7911 = vrot.lane.b32.xlu1 %v6986_v25, %s17610_s15  ;;  %v15450_v4 = vpop.permute.xlu0 %7625  ;;  %v15452_v25 = vpop.permute.xlu1 %7623 }
 0x933   : > { %17674 = vst [vmem:[#allocation69_spill] sm:$0xff] %v15450_v4  ;;  %17675 = vst [vmem:[#allocation68_spill] sm:$0xff] %v15452_v25 }
 0x936   : > { %7285 = vrot.lane.b32.xlu0 %v6969_v18, %s17671_s12  ;;  %7283 = vrot.lane.b32.xlu1 %v6968_v21, %s17671_s12 }
 0x93a   : > { %7601 = vrot.lane.b32.xlu0 %v15442_v14, %s17611_s16  ;;  %7599 = vrot.lane.b32.xlu1 %v15444_v6, %s17611_s16 }
 0x93e   : > { %7917 = vrot.lane.b32.xlu0 %v6989_v5, %s17610_s15  ;;  %7915 = vrot.lane.b32.xlu1 %v6988_v63, %s17610_s15 }
 0x940   : > { %v15456_v19 = vpop.permute.xlu0 %7241  ;;  %v15458_v13 = vpop.permute.xlu1 %7239 }
 0x942   : > { %7289 = vrot.lane.b32.xlu0 %v6971_v56, %s17671_s12  ;;  %7287 = vrot.lane.b32.xlu1 %v6970_v51, %s17671_s12  ;;  %v6973_v56 = vld [vmem:[#allocation2 + $0x1cf] sm:$0xff]  ;;  %v6972_v51 = vld [vmem:[#allocation2 + $0x1c7] sm:$0xff] }
 0x944   : > { %v15462_v7 = vpop.permute.xlu0 %7245  ;;  %v15464_v9 = vpop.permute.xlu1 %7243 }
 0x946   : > { %7605 = vrot.lane.b32.xlu0 %v15466_v43, %s17611_s16  ;;  %7603 = vrot.lane.b32.xlu1 %v15468_v3, %s17611_s16 }
 0x948   : > { %v15474_v5 = vpop.permute.xlu0 %7249  ;;  %v15476_v63 = vpop.permute.xlu1 %7247 }
 0x94a   : > { %7921 = vrot.lane.b32.xlu0 %v6991_v11, %s17610_s15  ;;  %7919 = vrot.lane.b32.xlu1 %v6990_v57, %s17610_s15 }
 0x94c   : > { %v15480_v18 = vpop.permute.xlu0 %7565  ;;  %v15482_v21 = vpop.permute.xlu1 %7563 }
 0x94e   : > { %7293 = vrot.lane.b32.xlu0 %v6973_v56, %s17671_s12  ;;  %7291 = vrot.lane.b32.xlu1 %v6972_v51, %s17671_s12 }
 0x950   : > { %v15486_v31 = vpop.permute.xlu0 %7253  ;;  %v15488_v16 = vpop.permute.xlu1 %7251 }
 0x952   : > { %7609 = vrot.lane.b32.xlu0 %v15490_v37, %s17611_s16  ;;  %7607 = vrot.lane.b32.xlu1 %v15492_v49, %s17611_s16 }
 0x954   : > { %v15498_v11 = vpop.permute.xlu0 %7569  ;;  %v15500_v57 = vpop.permute.xlu1 %7567 }
 0x956   : > { %7925 = vrot.lane.b32.xlu0 %v6993_v26, %s17610_s15  ;;  %7923 = vrot.lane.b32.xlu1 %v6992_v59, %s17610_s15  ;;  %v6915_v26 = vld [vmem:[#allocation2 + $0x31] sm:$0xff]  ;;  %v6914_v59 = vld [vmem:[#allocation2 + $0x29] sm:$0xff] }
 0x957   : > { %v7045_v44 = vmul.f32 %v15366_v2, %v6915_v26  ;;  %v7044_v47 = vmul.f32 %v15366_v2, %v6914_v59  ;;  %v7049_v26 = vmul.f32 %v15366_v2, %v6919_v35  ;;  %v6923_v59 = vld [vmem:[#allocation2 + $0xb1] sm:$0xff]  ;;  %v6922_v35 = vld [vmem:[#allocation2 + $0xa9] sm:$0xff] }
 0x958   : > { %v15504_v56 = vpop.permute.xlu0 %7257  ;;  %v15506_v51 = vpop.permute.xlu1 %7255  ;;  %v7053_v60 = vmul.f32 %v15366_v2, %v6923_v59  ;;  %v6926_v59 = vld [vmem:[#allocation2 + $0xe9] sm:$0xff] }
 0x959   : > { %v7078_v32 = vadd.f32 %v15371_v1, %v7044_v47  ;;  %v15553_v47 = vld [vmem:[#allocation2 + $0x1f0] sm:$0xff] }
 0x95a   : > { %7297 = vrot.lane.b32.xlu0 %v6975_v52, %s17671_s12  ;;  %7295 = vrot.lane.b32.xlu1 %v6974_v55, %s17671_s12  ;;  %v7087_v61 = vadd.f32 %v15371_v1, %v7053_v60 }
 0x95b   : > { %vm7110_vm15 = vcmp.ge.f32.partialorder %v7078_v32, 0.0 }
 0x95c   : > { %v15510_v38 = vpop.permute.xlu0 %7573  ;;  %v15512_v54 = vpop.permute.xlu1 %7571  ;;  %vm7119_vm6 = vcmp.ge.f32.partialorder %v7087_v61, 0.0 }
 0x95d   : > { %17676 = vst [vmem:[#allocation71_spill] sm:$0xff] %v15512_v54 }
 0x95e   : > { %7613 = vrot.lane.b32.xlu0 %v15514_v39, %s17611_s16  ;;  %7611 = vrot.lane.b32.xlu1 %v15516_v48, %s17611_s16 }
 0x960   : > { %v15522_v52 = vpop.permute.xlu0 %7261  ;;  %v15524_v55 = vpop.permute.xlu1 %7259 }
 0x962   : > { %7929 = vrot.lane.b32.xlu0 %v15426_v34, %s17610_s15  ;;  %7927 = vrot.lane.b32.xlu1 %v15428_v53, %s17610_s15  ;;  %v7079_v34 = vadd.f32 %v15371_v1, %v7045_v44  ;;  %v6920_v53 = vld [vmem:[#allocation2 + $0x89] sm:$0xff]  ;;  %v7083_v44 = vadd.f32 %v15371_v1, %v7049_v26  ;;  %v7145_v26 = vmul.f32 0.1, %v7081_v41 }
 0x963   : > { %v7050_v29 = vmul.f32 %v15366_v2, %v6920_v53  ;;  %v6927_v53 = vld [vmem:[#allocation2 + $0xf1] sm:$0xff] }
 0x964   : > { %v15534_v33 = vpop.permute.xlu0 %7577  ;;  %v15536_v36 = vpop.permute.xlu1 %7575  ;;  %vm7111_vm14 = vcmp.ge.f32.partialorder %v7079_v34, 0.0  ;;  %v7143_v10 = vmul.f32 0.1, %v7079_v34  ;;  %v7147_v8 = vmul.f32 0.1, %v7083_v44  ;;  %vm7115_vm3 = vcmp.ge.f32.partialorder %v7083_v44, 0.0 }
 0x965   : > { %17677 = vst [vmem:[#allocation70_spill] sm:$0xff] %v15534_v33  ;;  %17678 = vst [vmem:[#allocation52_spill] sm:$0xff] %v15536_v36  ;;  %v7056_v33 = vmul.f32 %v15366_v2, %v6926_v59  ;;  %v15591_v60 = vsel %vm7113_vm1, %v7081_v41, %v7145_v26  ;;  %v7007_v41 = vld [vmem:[#allocation2 + $0x210] sm:$0xff]  ;;  %v7006_v26 = vld [vmem:[#allocation2 + $0x208] sm:$0xff] }
 0x966   : > { %7301 = vrot.lane.b32.xlu0 %v6977_v20, %s17671_s12  ;;  %7299 = vrot.lane.b32.xlu1 %v6976_v22, %s17671_s12  ;;  %v7082_v20 = vadd.f32 %v15371_v1, %v7048_v0  ;;  %v7051_v22 = vmul.f32 %v15366_v2, %v6921_v45  ;;  %v7142_v0 = vmul.f32 0.1, %v7078_v32  ;;  %v7052_v45 = vmul.f32 %v15366_v2, %v6922_v35  ;;  %v6929_v59 = vld [vmem:[#allocation2 + $0x111] sm:$0xff]  ;;  %s17763_s12 = smov 3  }
 0x967   : > { %v7084_v35 = vadd.f32 %v15371_v1, %v7050_v29  ;;  %v15580_v15 = vsel %vm7111_vm14, %v7079_v34, %v7143_v10  ;;  %17683 = vst [vmem:[#allocation24_spill] sm:$0xff] %v15591_v60 }
 0x968   : > { %v15546_v50 = vpop.permute.xlu0 %7893  ;;  %v15548_v42 = vpop.permute.xlu1 %7891  ;;  %v7146_v25 = vmul.f32 0.1, %v7082_v20  ;;  %v7085_v4 = vadd.f32 %v15371_v1, %v7051_v22  ;;  %vm7114_vm4 = vcmp.ge.f32.partialorder %v7082_v20, 0.0  ;;  %17681 = vst [vmem:[#allocation74_spill] sm:$0xff] %v15580_v15  ;;  %v7086_v36 = vadd.f32 %v15371_v1, %v7052_v45 }
 0x969   : > { %17679 = vst [vmem:[#allocation51_spill] sm:$0xff] %v15546_v50  ;;  %17680 = vst [vmem:[#allocation23_spill] sm:$0xff] %v15548_v42  ;;  %v7057_v22 = vmul.f32 %v15366_v2, %v6927_v53  ;;  %v15588_v29 = vsel %vm7110_vm15, %v7078_v32, %v7142_v0  ;;  %v15600_v45 = vsel %vm7112_vm2, %v7080_v62, %v7144_v23  ;;  %vm7116_vm11 = vcmp.ge.f32.partialorder %v7084_v35, 0.0 }
 0x96a   : > { %7617 = vrot.lane.b32.xlu0 %v15553_v47, %s17611_s16  ;;  %7615 = vrot.lane.b32.xlu1 %v15555_v27, %s17611_s16  ;;  %17682 = vst [vmem:[#allocation53_spill] sm:$0xff] %v15588_v29  ;;  %17686 = vst [vmem:[#allocation55_spill] sm:$0xff] %v15600_v45  ;;  %v15603_v53 = vsel %vm7115_vm3, %v7083_v44, %v7147_v8  ;;  %v15606_v32 = vsel %vm7114_vm4, %v7082_v20, %v7146_v25  ;;  %v7149_v0 = vmul.f32 0.1, %v7085_v4 }
 0x96b   : > { %17687 = vst [vmem:[#allocation26_spill] sm:$0xff] %v15603_v53  ;;  %17688 = vst [vmem:[#allocation27_spill] sm:$0xff] %v15606_v32  ;;  %vm7117_vm5 = vcmp.ge.f32.partialorder %v7085_v4, 0.0  ;;  %v7150_v62 = vmul.f32 0.1, %v7086_v36  ;;  %v7091_v8 = vadd.f32 %v15371_v1, %v7057_v22  ;;  %v7090_v23 = vadd.f32 %v15371_v1, %v7056_v33 }
 0x96c   : > { %v15566_v42 = vpop.permute.xlu0 %7265  ;;  %v15568_v50 = vpop.permute.xlu1 %7263  ;;  %vm7118_vm12 = vcmp.ge.f32.partialorder %v7086_v36, 0.0  ;;  %v15622_v22 = vstv %s15571_s18  ;;  %v15625_v33 = vsel %vm7117_vm5, %v7085_v4, %v7149_v0  ;;  %s17861_s18 = sld [smem:[#allocation120_spill]] }
 0x96d   : > { %17691 = vst [vmem:[#allocation28_spill] sm:$0xff] %v15625_v33  ;;  %vm7123_vm15 = vcmp.ge.f32.partialorder %v7091_v8, 0.0  ;;  %v7155_v4 = vmul.f32 0.1, %v7091_v8  ;;  %v7154_v0 = vmul.f32 0.1, %v7090_v23 }
 0x96e   : > { %7933 = vrot.lane.b32.xlu0 %v15442_v14, %s17610_s15  ;;  %7931 = vrot.lane.b32.xlu1 %v15444_v6, %s17610_s15  ;;  %v7089_v14 = vadd.f32 %v15371_v1, %v7055_v40  ;;  %v7088_v6 = vadd.f32 %v15371_v1, %v7054_v17  ;;  %v7148_v40 = vmul.f32 0.1, %v7084_v35  ;;  %v7151_v17 = vmul.f32 0.1, %v7087_v61 }
 0x96f   : > { %vm7122_vm1 = vcmp.ge.f32.partialorder %v7090_v23, 0.0 }
 0x970   : > { %v15595_v10 = vpop.permute.xlu0 %7581  ;;  %v15597_v34 = vpop.permute.xlu1 %7579  ;;  %v7153_v25 = vmul.f32 0.1, %v7089_v14  ;;  %v7152_v44 = vmul.f32 0.1, %v7088_v6  ;;  %vm7121_vm13 = vcmp.ge.f32.partialorder %v7089_v14, 0.0  ;;  %vm7120_vm14 = vcmp.ge.f32.partialorder %v7088_v6, 0.0 }
 0x971   : > { %17684 = vst [vmem:[#allocation25_spill] sm:$0xff] %v15595_v10  ;;  %17685 = vst [vmem:[#allocation54_spill] sm:$0xff] %v15597_v34  ;;  %v7059_v10 = vmul.f32 %v15366_v2, %v6929_v59  ;;  %v15628_v54 = vsel %vm7116_vm11, %v7084_v35, %v7148_v40  ;;  %v15638_v59 = vsel %vm7118_vm12, %v7086_v36, %v7150_v62  ;;  %v6930_v35 = vld [vmem:[#allocation2 + $0x129] sm:$0xff] }
 0x972   : > { %7621 = vrot.lane.b32.xlu0 %v7007_v41, %s17611_s16  ;;  %7619 = vrot.lane.b32.xlu1 %v7006_v26, %s17611_s16  ;;  %v7336_v41 = vmul.f32 %v15456_v19, %v15580_v15  ;;  %v7335_v26 = vmul.f32 %v15458_v13, %v15588_v29  ;;  %17692 = vst [vmem:[#allocation29_spill] sm:$0xff] %v15628_v54  ;;  %v6928_v19 = vld [vmem:[#allocation2 + $0x109] sm:$0xff]  ;;  %v6931_v13 = vld [vmem:[#allocation2 + $0x131] sm:$0xff]  ;;  %17694 = vst [vmem:[#allocation75_spill] sm:$0xff] %v15638_v59  ;;  %s17864_s16 = sshll.u32 %s11760_s17, 8 }
 0x973   : > { %v15640_v40 = vsel %vm7121_vm13, %v7089_v14, %v7153_v25  ;;  %v7338_v62 = vmul.f32 %v15462_v7, %v15591_v60  ;;  %v7337_v14 = vmul.f32 %v15464_v9, %v15600_v45  ;;  %v6933_v25 = vld [vmem:[#allocation2 + $0x151] sm:$0xff]  ;;  %v7340_v7 = vmul.f32 %v15474_v5, %v15603_v53  ;;  %s17076_s22 = scalar_lea.vmem [#allocation10], %s17864_s16 }
 0x974   : > { %v15612_v20 = vpop.permute.xlu0 %7897  ;;  %v15614_v34 = vpop.permute.xlu1 %7895  ;;  %17695 = vst [vmem:[#allocation76_spill] sm:$0xff] %v15640_v40  ;;  %v7369_v29 = vmul.f32 %v15622_v22, %v7336_v41  ;;  %v7368_v36 = vmul.f32 %v15622_v22, %v7335_v26  ;;  %v7061_v41 = vmul.f32 %v15366_v2, %v6931_v13  ;;  %v7060_v26 = vmul.f32 %v15366_v2, %v6930_v35  ;;  %s9524_s0 = sshll.u32 %s17076_s22, 4  ;;  %s17144_s0 = int_to_ptr.vmem [resolvable:$true] %s9524_s0 }
 0x975   : > { %17689 = vst [vmem:[#allocation56_spill] sm:$0xff] %v15612_v20  ;;  %17690 = vst [vmem:[#allocation57_spill] sm:$0xff] %v15614_v34  ;;  %v15631_v34 = vsel %vm7119_vm6, %v7087_v61, %v7151_v17  ;;  %v15642_v61 = vsel %vm7120_vm14, %v7088_v6, %v7152_v44  ;;  %v6932_v6 = vld [vmem:[#allocation2 + $0x149] sm:$0xff]  ;;  %v15656_v44 = vstv %s15585_s19  ;;  %v7339_v9 = vmul.f32 %v15476_v63, %v15606_v32 }
 0x976   : > { %17693 = vst [vmem:[#allocation58_spill] sm:$0xff] %v15631_v34  ;;  %7937 = vrot.lane.b32.xlu0 %v15466_v43, %s17610_s15  ;;  %7935 = vrot.lane.b32.xlu1 %v15468_v3, %s17610_s15  ;;  %17696 = vst [vmem:[#allocation77_spill] sm:$0xff] %v15642_v61  ;;  %v7093_v43 = vadd.f32 %v15371_v1, %v7059_v10  ;;  %v7058_v10 = vmul.f32 %v15366_v2, %v6928_v19 }
 0x977   : > { %v15670_v45 = vsel %vm7123_vm15, %v7091_v8, %v7155_v4  ;;  %v15673_v19 = vsel %vm7122_vm1, %v7090_v23, %v7154_v0  ;;  %v7063_v13 = vmul.f32 %v15366_v2, %v6933_v25  ;;  %v7062_v35 = vmul.f32 %v15366_v2, %v6932_v6  ;;  %v6935_v23 = vld [vmem:[#allocation2 + $0x171] sm:$0xff] }
 0x978   : > { %v15645_v17 = vpop.permute.xlu0 %7269  ;;  %v15647_v3 = vpop.permute.xlu1 %7267  ;;  %17697 = vst [vmem:[#allocation78_spill] sm:$0xff] %v15670_v45  ;;  %17698 = vst [vmem:[#allocation79_spill] sm:$0xff] %v15673_v19  ;;  %vm7125_vm2 = vcmp.ge.f32.partialorder %v7093_v43, 0.0  ;;  %v7403_v5 = vadd.f32 %v15656_v44, %v7369_v29  ;;  %v7402_v63 = vadd.f32 %v15656_v44, %v7368_v36  ;;  %v7371_v8 = vmul.f32 %v15622_v22, %v7338_v62 }
 0x979   : > { %v7370_v4 = vmul.f32 %v15622_v22, %v7337_v14  ;;  %v7092_v0 = vadd.f32 %v15371_v1, %v7058_v10  ;;  %v7095_v25 = vadd.f32 %v15371_v1, %v7061_v41  ;;  %v15692_v6 = vadd.f32 %v15371_v1, %v7060_v26 }
 0x97a   : > { %7941 = vrot.lane.b32.xlu0 %v15490_v37, %s17610_s15  ;;  %7939 = vrot.lane.b32.xlu1 %v15492_v49, %s17610_s15  ;;  %v7157_v37 = vmul.f32 0.1, %v7093_v43  ;;  %v7373_v29 = vmul.f32 %v15622_v22, %v7340_v7  ;;  %v7372_v36 = vmul.f32 %v15622_v22, %v7339_v9  ;;  %v7342_v62 = vmul.f32 %v15486_v31, %v15625_v33 }
 0x97b   : > { %v7341_v14 = vmul.f32 %v15488_v16, %v15628_v54  ;;  %v15708_v41 = vadd.f32 %v15371_v1, %v7063_v13  ;;  %v15711_v26 = vadd.f32 %v15371_v1, %v7062_v35  ;;  %v15714_v7 = vmul.f32 %v15366_v2, %v6935_v23 }
 0x97c   : > { %v15675_v60 = vpop.permute.xlu0 %7585  ;;  %v15677_v49 = vpop.permute.xlu1 %7583  ;;  %v7405_v31 = vadd.f32 %v15656_v44, %v7371_v8  ;;  %v7404_v16 = vadd.f32 %v15656_v44, %v7370_v4  ;;  %v7467_v9 = vmul.f32 0.1, %v7403_v5  ;;  %vm7435_vm3 = vcmp.ge.f32.partialorder %v7403_v5, 0.0 }
 0x97d   : > { %vm7434_vm4 = vcmp.ge.f32.partialorder %v7402_v63, 0.0  ;;  %vm7124_vm5 = vcmp.ge.f32.partialorder %v7092_v0, 0.0  ;;  %v7407_v13 = vadd.f32 %v15656_v44, %v7373_v29  ;;  %v7406_v35 = vadd.f32 %v15656_v44, %v7372_v36 }
 0x97e   : > { %7945 = vrot.lane.b32.xlu0 %v15514_v39, %s17610_s15  ;;  %7943 = vrot.lane.b32.xlu1 %v15516_v48, %s17610_s15  ;;  %v15701_v39 = vsel %vm7125_vm2, %v7093_v43, %v7157_v37  ;;  %v7466_v43 = vmul.f32 0.1, %v7402_v63  ;;  %v7156_v37 = vmul.f32 0.1, %v7092_v0  ;;  %v7375_v8 = vmul.f32 %v15622_v22, %v7342_v62 }
 0x97f   : > { %17699 = vst [vmem:[#allocation80_spill] sm:$0xff] %v15701_v39  ;;  %v7374_v4 = vmul.f32 %v15622_v22, %v7341_v14  ;;  %v7344_v23 = vmul.f32 %v15504_v56, %v15631_v34  ;;  %v7343_v54 = vmul.f32 %v15506_v51, %v15638_v59  ;;  %vm7127_vm11 = vcmp.ge.f32.partialorder %v7095_v25, 0.0 }
 0x980   : > { %v15703_v10 = vpop.permute.xlu0 %7901  ;;  %v15705_v48 = vpop.permute.xlu1 %7899  ;;  %v7159_v33 = vmul.f32 0.1, %v7095_v25  ;;  %v15738_v29 = vsel %vm7434_vm4, %v7402_v63, %v7466_v43  ;;  %v7469_v36 = vmul.f32 0.1, %v7405_v31  ;;  %v7468_v62 = vmul.f32 0.1, %v7404_v16 }
 0x981   : > { %17700 = vst [vmem:[#allocation81_spill] sm:$0xff] %v15703_v10  ;;  %17701 = vst [vmem:[#allocation82_spill] sm:$0xff] %v15705_v48  ;;  %vm7437_vm6 = vcmp.ge.f32.partialorder %v7405_v31, 0.0  ;;  %vm7436_vm12 = vcmp.ge.f32.partialorder %v7404_v16, 0.0  ;;  %vm7126_vm13 = vcmp.ge.f32.partialorder %v15692_v6, 0.0  ;;  %v7409_v51 = vadd.f32 %v15656_v44, %v7375_v8 }
 0x982   : > { %7949 = vrot.lane.b32.xlu0 %v15553_v47, %s17610_s15  ;;  %7947 = vrot.lane.b32.xlu1 %v15555_v27, %s17610_s15  ;;  %v15735_v27 = vsel %vm7435_vm3, %v7403_v5, %v7467_v9  ;;  %v7158_v56 = vmul.f32 0.1, %v15692_v6  ;;  %v7408_v5 = vadd.f32 %v15656_v44, %v7374_v4  ;;  %v7471_v63 = vmul.f32 0.1, %v7407_v13  ;;  %s17863_s15 = sld [smem:[#allocation121_spill]] }
 0x983   : > { %v7470_v14 = vmul.f32 0.1, %v7406_v35  ;;  %vm7129_vm14 = vcmp.ge.f32.partialorder %v15708_v41, 0.0  ;;  %v7377_v9 = vmul.f32 %v15622_v22, %v7344_v23  ;;  %v7376_v43 = vmul.f32 %v15622_v22, %v7343_v54 }
 0x984   : > { %v15730_v47 = vpop.permute.xlu0 %7273  ;;  %v15732_v32 = vpop.permute.xlu1 %7271  ;;  %vm7439_vm15 = vcmp.ge.f32.partialorder %v7407_v13, 0.0  ;;  %vm7438_vm1 = vcmp.ge.f32.partialorder %v7406_v35, 0.0  ;;  %v15756_v53 = vsel %vm7437_vm6, %v7405_v31, %v7469_v36  ;;  %v15759_v8 = vsel %vm7436_vm12, %v7404_v16, %v7468_v62 }
 0x985   : > { %v7346_v4 = vmul.f32 %v15522_v52, %v15640_v40  ;;  %v7345_v23 = vmul.f32 %v15524_v55, %v15642_v61  ;;  %v15766_v54 = vsel %vm7124_vm5, %v7092_v0, %v7156_v37  ;;  %v15769_v15 = vsel %vm7127_vm11, %v7095_v25, %v7159_v33  ;;  %v6934_v37 = vld [vmem:[#allocation2 + $0x169] sm:$0xff] }
 0x986   : > { %8212 = vrot.lane.b32.xlu0 %v15735_v27, %s17702_s23  ;;  %8210 = vrot.lane.b32.xlu1 %v15738_v29, %s17702_s23  ;;  %17703 = vst [vmem:[#allocation83_spill] sm:$0xff] %v15766_v54  ;;  %17704 = vst [vmem:[#allocation84_spill] sm:$0xff] %v15769_v15  ;;  %v7161_v31 = vmul.f32 0.1, %v15708_v41  ;;  %vm7128_vm2 = vcmp.ge.f32.partialorder %v15711_v26, 0.0  ;;  %v15777_v52 = vsel %vm7439_vm15, %v7407_v13, %v7471_v63  ;;  %vm7441_vm3 = vcmp.ge.f32.partialorder %v7409_v51, 0.0 }
 0x987   : > { %v15779_v16 = vsel %vm7438_vm1, %v7406_v35, %v7470_v14  ;;  %v7473_v55 = vmul.f32 0.1, %v7409_v51  ;;  %v7472_v0 = vmul.f32 0.1, %v7408_v5  ;;  %v7411_v33 = vadd.f32 %v15656_v44, %v7377_v9 }
 0x988   : > { %v15751_v59 = vpop.permute.xlu0 %7589  ;;  %v15753_v34 = vpop.permute.xlu1 %7587  ;;  %v7410_v25 = vadd.f32 %v15656_v44, %v7376_v43  ;;  %vm7440_vm4 = vcmp.ge.f32.partialorder %v7408_v5, 0.0  ;;  %v7379_v61 = vmul.f32 %v15622_v22, %v7346_v4  ;;  %v7378_v13 = vmul.f32 %v15622_v22, %v7345_v23  ;;  %v6937_v23 = vld [vmem:[#allocation2 + $0x191] sm:$0xff] }
 0x989   : > { %v7348_v35 = vmul.f32 %v15566_v42, %v15670_v45  ;;  %v7347_v63 = vmul.f32 %v15568_v50, %v15673_v19  ;;  %v15796_v14 = vsel %vm7126_vm13, %v15692_v6, %v7158_v56  ;;  %v7160_v9 = vmul.f32 0.1, %v15711_v26  ;;  %v6936_v19 = vld [vmem:[#allocation2 + $0x189] sm:$0xff] }
 0x98a   : > { %8216 = vrot.lane.b32.xlu0 %v15756_v53, %s17702_s23  ;;  %8214 = vrot.lane.b32.xlu1 %v15759_v8, %s17702_s23  ;;  %17707 = vst [vmem:[#allocation87_spill] sm:$0xff] %v15796_v14  ;;  %v7099_v43 = vadd.f32 %v15371_v1, %v15714_v7  ;;  %v7064_v42 = vmul.f32 %v15366_v2, %v6934_v37  ;;  %vm7443_vm5 = vcmp.ge.f32.partialorder %v7411_v33, 0.0  ;;  %v7475_v45 = vmul.f32 0.1, %v7411_v33 }
 0x98b   : > { %v15806_v4 = vsel %vm7441_vm3, %v7409_v51, %v7473_v55  ;;  %v15808_v50 = vsel %vm7440_vm4, %v7408_v5, %v7472_v0  ;;  %v7350_v6 = vmul.f32 %v15645_v17, %v15701_v39  ;;  %v7349_v56 = vmul.f32 %v15647_v3, %v15766_v54 }
 0x98c   : > { %v15783_v36 = vpop.permute.xlu0 %7905  ;;  %v15785_v62 = vpop.permute.xlu1 %7903  ;;  %vm7442_vm11 = vcmp.ge.f32.partialorder %v7410_v25, 0.0  ;;  %v7474_v40 = vmul.f32 0.1, %v7410_v25  ;;  %v7413_v37 = vadd.f32 %v15656_v44, %v7379_v61  ;;  %v7412_v51 = vadd.f32 %v15656_v44, %v7378_v13 }
 0x98d   : > { %17705 = vst [vmem:[#allocation85_spill] sm:$0xff] %v15783_v36  ;;  %17706 = vst [vmem:[#allocation86_spill] sm:$0xff] %v15785_v62  ;;  %v7381_v5 = vmul.f32 %v15622_v22, %v7348_v35  ;;  %v7380_v55 = vmul.f32 %v15622_v22, %v7347_v63  ;;  %v15821_v17 = vsel %vm7129_vm14, %v15708_v41, %v7161_v31  ;;  %vm7131_vm13 = vcmp.ge.f32.partialorder %v7099_v43, 0.0 }
 0x98e   : > { %8220 = vrot.lane.b32.xlu0 %v15777_v52, %s17702_s23  ;;  %8218 = vrot.lane.b32.xlu1 %v15779_v16, %s17702_s23  ;;  %17708 = vst [vmem:[#allocation88_spill] sm:$0xff] %v15821_v17  ;;  %v15826_v3 = vsel %vm7128_vm2, %v15711_v26, %v7160_v9  ;;  %v7098_v61 = vadd.f32 %v15371_v1, %v7064_v42  ;;  %vm7445_vm6 = vcmp.ge.f32.partialorder %v7413_v37, 0.0  ;;  %vm7444_vm12 = vcmp.ge.f32.partialorder %v7412_v51, 0.0 }
 0x98f   : > { %17709 = vst [vmem:[#allocation89_spill] sm:$0xff] %v15826_v3  ;;  %v7383_v0 = vmul.f32 %v15622_v22, %v7350_v6  ;;  %v7382_v13 = vmul.f32 %v15622_v22, %v7349_v56  ;;  %v7067_v41 = vmul.f32 %v15366_v2, %v6937_v23  ;;  %v7066_v31 = vmul.f32 %v15366_v2, %v6936_v19 }
 0x990   : > { %v7278_v62 = vpop.permute.xlu0 %7277  ;;  %v7276_v7 = vpop.permute.xlu1 %7275  ;;  %v15838_v35 = vsel %vm7443_vm5, %v7411_v33, %v7475_v45  ;;  %v15841_v26 = vsel %vm7442_vm11, %v7410_v25, %v7474_v40  ;;  %v7352_v63 = vmul.f32 %v15730_v47, %v15769_v15  ;;  %v7351_v9 = vmul.f32 %v15732_v32, %v15796_v14 }
 0x991   : > { %v7415_v56 = vadd.f32 %v15656_v44, %v7381_v5  ;;  %v7414_v19 = vadd.f32 %v15656_v44, %v7380_v55  ;;  %v7477_v23 = vmul.f32 0.1, %v7413_v37  ;;  %v7476_v45 = vmul.f32 0.1, %v7412_v51 }
 0x992   : > { %8224 = vrot.lane.b32.xlu0 %v15806_v4, %s17702_s23  ;;  %8222 = vrot.lane.b32.xlu1 %v15808_v50, %s17702_s23  ;;  %v7163_v40 = vmul.f32 0.1, %v7099_v43  ;;  %v7162_v32 = vmul.f32 0.1, %v7098_v61  ;;  %v7417_v47 = vadd.f32 %v15656_v44, %v7383_v0  ;;  %v7416_v33 = vadd.f32 %v15656_v44, %v7382_v13 }
 0x993   : > { %vm7130_vm14 = vcmp.ge.f32.partialorder %v7098_v61, 0.0  ;;  %v7385_v25 = vmul.f32 %v15622_v22, %v7352_v63  ;;  %v7384_v5 = vmul.f32 %v15622_v22, %v7351_v9  ;;  %v7354_v55 = vmul.f32 %v7278_v62, %v15821_v17 }
 0x994   : > { %v15847_v42 = vpop.permute.xlu0 %7593  ;;  %v15849_v6 = vpop.permute.xlu1 %7591  ;;  %v7353_v14 = vmul.f32 %v7276_v7, %v15826_v3  ;;  %v15868_v39 = vsel %vm7445_vm6, %v7413_v37, %v7477_v23  ;;  %v15871_v0 = vsel %vm7444_vm12, %v7412_v51, %v7476_v45  ;;  %v7479_v13 = vmul.f32 0.1, %v7415_v56 }
 0x995   : > { %v7478_v36 = vmul.f32 0.1, %v7414_v19  ;;  %vm7447_vm15 = vcmp.ge.f32.partialorder %v7415_v56, 0.0  ;;  %vm7446_vm1 = vcmp.ge.f32.partialorder %v7414_v19, 0.0  ;;  %v15878_v62 = vsel %vm7131_vm13, %v7099_v43, %v7163_v40 }
 0x996   : > { %8228 = vrot.lane.b32.xlu0 %v15838_v35, %s17702_s23  ;;  %8226 = vrot.lane.b32.xlu1 %v15841_v26, %s17702_s23  ;;  %17712 = vst [vmem:[#allocation92_spill] sm:$0xff] %v15878_v62  ;;  %v15881_v7 = vsel %vm7130_vm14, %v7098_v61, %v7162_v32  ;;  %vm7449_vm2 = vcmp.ge.f32.partialorder %v7417_v47, 0.0  ;;  %v7481_v37 = vmul.f32 0.1, %v7417_v47  ;;  %vm7448_vm3 = vcmp.ge.f32.partialorder %v7416_v33, 0.0 }
 0x997   : > { %17713 = vst [vmem:[#allocation93_spill] sm:$0xff] %v15881_v7  ;;  %v7480_v51 = vmul.f32 0.1, %v7416_v33  ;;  %v7419_v63 = vadd.f32 %v15656_v44, %v7385_v25  ;;  %v7418_v9 = vadd.f32 %v15656_v44, %v7384_v5  ;;  %v7387_v23 = vmul.f32 %v15622_v22, %v7354_v55 }
 0x998   : > { %v15863_v15 = vpop.permute.xlu0 %7909  ;;  %v15865_v54 = vpop.permute.xlu1 %7907  ;;  %v7386_v45 = vmul.f32 %v15622_v22, %v7353_v14  ;;  %v15888_v43 = vsel %vm7447_vm15, %v7415_v56, %v7479_v13  ;;  %v15891_v61 = vsel %vm7446_vm1, %v7414_v19, %v7478_v36  ;;  %v15900_v14 = vsel %vm7449_vm2, %v7417_v47, %v7481_v37 }
 0x999   : > { %17710 = vst [vmem:[#allocation90_spill] sm:$0xff] %v15863_v15  ;;  %17711 = vst [vmem:[#allocation91_spill] sm:$0xff] %v15865_v54  ;;  %v15902_v25 = vsel %vm7448_vm3, %v7416_v33, %v7480_v51  ;;  %v7101_v56 = vadd.f32 %v15371_v1, %v7067_v41  ;;  %v7100_v36 = vadd.f32 %v15371_v1, %v7066_v31  ;;  %v7482_v55 = vmul.f32 0.1, %v7418_v9 }
 0x99a   : > { %8232 = vrot.lane.b32.xlu0 %v15868_v39, %s17702_s23  ;;  %8230 = vrot.lane.b32.xlu1 %v15871_v0, %s17702_s23  ;;  %v7421_v19 = vadd.f32 %v15656_v44, %v7387_v23  ;;  %vm7451_vm4 = vcmp.ge.f32.partialorder %v7419_v63, 0.0  ;;  %vm7450_vm5 = vcmp.ge.f32.partialorder %v7418_v9, 0.0 }
 0x99b   : > { %vm7133_vm11 = vcmp.ge.f32.partialorder %v7101_v56, 0.0  ;;  %v7165_v41 = vmul.f32 0.1, %v7101_v56  ;;  %vm7132_vm6 = vcmp.ge.f32.partialorder %v7100_v36, 0.0  ;;  %v7164_v31 = vmul.f32 0.1, %v7100_v36 }
 0x99c   : > { %v7282_v3 = vpop.permute.xlu0 %7281  ;;  %v7280_v17 = vpop.permute.xlu1 %7279  ;;  %v15920_v37 = vsel %vm7450_vm5, %v7418_v9, %v7482_v55  ;;  %vm7453_vm12 = vcmp.ge.f32.partialorder %v7421_v19, 0.0 }
 0x99d   : > { %v7356_v40 = vmul.f32 %v7282_v3, %v15878_v62  ;;  %v7355_v32 = vmul.f32 %v7280_v17, %v15881_v7  ;;  %v7420_v3 = vadd.f32 %v15656_v44, %v7386_v45  ;;  %v7483_v17 = vmul.f32 0.1, %v7419_v63  ;;  %v6938_v62 = vld [vmem:[#allocation2 + $0x1a9] sm:$0xff] }
 0x99e   : > { %8236 = vrot.lane.b32.xlu0 %v15888_v43, %s17702_s23  ;;  %8234 = vrot.lane.b32.xlu1 %v15891_v61, %s17702_s23  ;;  %v7485_v45 = vmul.f32 0.1, %v7421_v19  ;;  %v7068_v9 = vmul.f32 %v15366_v2, %v6938_v62 }
 0x99f   : > { %v7389_v7 = vmul.f32 %v15622_v22, %v7356_v40  ;;  %v7388_v47 = vmul.f32 %v15622_v22, %v7355_v32  ;;  %v15918_v33 = vsel %vm7451_vm4, %v7419_v63, %v7483_v17  ;;  %v7484_v40 = vmul.f32 0.1, %v7420_v3  ;;  %v6939_v32 = vld [vmem:[#allocation2 + $0x1b1] sm:$0xff] }
 0x9a0   : > { %v15908_v5 = vpop.permute.xlu0 %7597  ;;  %v15910_v13 = vpop.permute.xlu1 %7595  ;;  %vm7452_vm13 = vcmp.ge.f32.partialorder %v7420_v3, 0.0  ;;  %v7069_v63 = vmul.f32 %v15366_v2, %v6939_v32  ;;  %v15935_v17 = vsel %vm7133_vm11, %v7101_v56, %v7165_v41 }
 0x9a1   : > { %v7423_v54 = vadd.f32 %v15656_v44, %v7389_v7  ;;  %v7422_v15 = vadd.f32 %v15656_v44, %v7388_v47  ;;  %17716 = vst [vmem:[#allocation96_spill] sm:$0xff] %v15935_v17  ;;  %v15938_v7 = vsel %vm7132_vm6, %v7100_v36, %v7164_v31  ;;  %vm7137_vm6 = vcmp.ge.f32.partialorder %v15376_v46, 0.0 }
 0x9a2   : > { %8240 = vrot.lane.b32.xlu0 %v15900_v14, %s17702_s23  ;;  %8238 = vrot.lane.b32.xlu1 %v15902_v25, %s17702_s23  ;;  %17717 = vst [vmem:[#allocation97_spill] sm:$0xff] %v15938_v7  ;;  %v7103_v56 = vadd.f32 %v15371_v1, %v7069_v63 }
 0x9a3   : > { %v7487_v20 = vmul.f32 0.1, %v7423_v54  ;;  %v7486_v32 = vmul.f32 0.1, %v7422_v15  ;;  %vm7455_vm14 = vcmp.ge.f32.partialorder %v7423_v54, 0.0  ;;  %vm7454_vm15 = vcmp.ge.f32.partialorder %v7422_v15, 0.0 }
 0x9a4   : > { %v15922_v51 = vpop.permute.xlu0 %7913  ;;  %v15924_v23 = vpop.permute.xlu1 %7911  ;;  %vm7135_vm3 = vcmp.ge.f32.partialorder %v7103_v56, 0.0 }
 0x9a5   : > { %17714 = vst [vmem:[#allocation94_spill] sm:$0xff] %v15922_v51  ;;  %17715 = vst [vmem:[#allocation95_spill] sm:$0xff] %v15924_v23  ;;  %v15940_v23 = vsel %vm7453_vm12, %v7421_v19, %v7485_v45  ;;  %v15942_v51 = vsel %vm7452_vm13, %v7420_v3, %v7484_v40  ;;  %v7102_v3 = vadd.f32 %v15371_v1, %v7068_v9  ;;  %vm7136_vm12 = vcmp.ge.f32.partialorder %v15381_v30, 0.0 }
 0x9a6   : > { %8244 = vrot.lane.b32.xlu0 %v15918_v33, %s17702_s23  ;;  %8242 = vrot.lane.b32.xlu1 %v15920_v37, %s17702_s23  ;;  %v15960_v45 = vsel %vm7455_vm14, %v7423_v54, %v7487_v20  ;;  %v15962_v40 = vsel %vm7454_vm15, %v7422_v15, %v7486_v32  ;;  %vm7139_vm15 = vcmp.ge.f32.partialorder %v15387_v24, 0.0 }
 0x9a7   : > { %vm7134_vm4 = vcmp.ge.f32.partialorder %v7102_v3, 0.0 }
 0x9a8   : > { %v7286_v55 = vpop.permute.xlu0 %7285  ;;  %v7284_v47 = vpop.permute.xlu1 %7283 }
 0x9a9   : > { %v7358_v48 = vmul.f32 %v7286_v55, %v15935_v17  ;;  %v7357_v10 = vmul.f32 %v7284_v47, %v15938_v7  ;;  %v7166_v55 = vmul.f32 0.1, %v7102_v3 }
 0x9aa   : > { %8248 = vrot.lane.b32.xlu0 %v15940_v23, %s17702_s23  ;;  %8246 = vrot.lane.b32.xlu1 %v15942_v51, %s17702_s23 }
 0x9ab   : > { %v7391_v2 = vmul.f32 %v15622_v22, %v7358_v48  ;;  %v7390_v62 = vmul.f32 %v15622_v22, %v7357_v10  ;;  %v7167_v48 = vmul.f32 0.1, %v7103_v56  ;;  %v15982_v32 = vsel %vm7134_vm4, %v7102_v3, %v7166_v55 }
 0x9ac   : > { %v15953_v36 = vpop.permute.xlu0 %7601  ;;  %v15955_v19 = vpop.permute.xlu1 %7599  ;;  %17721 = vst [vmem:[#allocation101_spill] sm:$0xff] %v15982_v32  ;;  %vm7141_vm4 = vcmp.ge.f32.partialorder %v15394_v58, 0.0 }
 0x9ad   : > { %v7425_v41 = vadd.f32 %v15656_v44, %v7391_v2  ;;  %v7424_v31 = vadd.f32 %v15656_v44, %v7390_v62  ;;  %v15980_v54 = vsel %vm7135_vm3, %v7103_v56, %v7167_v48  ;;  %v7169_v48 = vmul.f32 0.1, %v15376_v46 }
 0x9ae   : > { %8252 = vrot.lane.b32.xlu0 %v15960_v45, %s17702_s23  ;;  %8250 = vrot.lane.b32.xlu1 %v15962_v40, %s17702_s23  ;;  %17720 = vst [vmem:[#allocation100_spill] sm:$0xff] %v15980_v54 }
 0x9af   : > { %vm7457_vm1 = vcmp.ge.f32.partialorder %v7425_v41, 0.0  ;;  %v7489_v10 = vmul.f32 0.1, %v7425_v41  ;;  %vm7456_vm2 = vcmp.ge.f32.partialorder %v7424_v31, 0.0  ;;  %v7488_v9 = vmul.f32 0.1, %v7424_v31 }
 0x9b0   : > { %v15968_v63 = vpop.permute.xlu0 %7917  ;;  %v15970_v1 = vpop.permute.xlu1 %7915 }
 0x9b1   : > { %17718 = vst [vmem:[#allocation98_spill] sm:$0xff] %v15968_v63  ;;  %17719 = vst [vmem:[#allocation99_spill] sm:$0xff] %v15970_v1  ;;  %v15972_v15 = vsel %vm7457_vm1, %v7425_v41, %v7489_v10  ;;  %v15974_v20 = vsel %vm7456_vm2, %v7424_v31, %v7488_v9  ;;  %vm7138_vm1 = vcmp.ge.f32.partialorder %v15391_v28, 0.0 }
 0x9b2   : > { %8256 = vrot.lane.b32.xlu0 %v15972_v15, %s17702_s23  ;;  %8254 = vrot.lane.b32.xlu1 %v15974_v20, %s17702_s23 }
 0x9b4   : > { %v7290_v47 = vpop.permute.xlu0 %7289  ;;  %v7288_v2 = vpop.permute.xlu1 %7287 }
 0x9b5   : > { %v7360_v62 = vmul.f32 %v7290_v47, %v15980_v54  ;;  %v7359_v7 = vmul.f32 %v7288_v2, %v15982_v32 }
 0x9b7   : > { %v7393_v41 = vmul.f32 %v15622_v22, %v7360_v62  ;;  %v7392_v31 = vmul.f32 %v15622_v22, %v7359_v7  ;;  %v7168_v7 = vmul.f32 0.1, %v15381_v30 }
 0x9b8   : > { %v15988_v10 = vpop.permute.xlu0 %7605  ;;  %v15990_v9 = vpop.permute.xlu1 %7603 }
 0x9b9   : > { %v7427_v17 = vadd.f32 %v15656_v44, %v7393_v41  ;;  %v7426_v56 = vadd.f32 %v15656_v44, %v7392_v31  ;;  %v16011_v31 = vsel %vm7137_vm6, %v15376_v46, %v7169_v48  ;;  %v16014_v54 = vsel %vm7136_vm12, %v15381_v30, %v7168_v7 }
 0x9ba   : > { %17724 = vst [vmem:[#allocation104_spill] sm:$0xff] %v16011_v31  ;;  %17725 = vst [vmem:[#allocation105_spill] sm:$0xff] %v16014_v54  ;;  %v7171_v7 = vmul.f32 0.1, %v15387_v24 }
 0x9bb   : > { %vm7459_vm5 = vcmp.ge.f32.partialorder %v7427_v17, 0.0  ;;  %v7491_v3 = vmul.f32 0.1, %v7427_v17  ;;  %vm7458_vm11 = vcmp.ge.f32.partialorder %v7426_v56, 0.0  ;;  %v7490_v2 = vmul.f32 0.1, %v7426_v56 }
 0x9bc   : > { %v15995_v55 = vpop.permute.xlu0 %7921  ;;  %v15997_v47 = vpop.permute.xlu1 %7919 }
 0x9bd   : > { %17722 = vst [vmem:[#allocation102_spill] sm:$0xff] %v15995_v55  ;;  %17723 = vst [vmem:[#allocation103_spill] sm:$0xff] %v15997_v47  ;;  %v16002_v62 = vsel %vm7459_vm5, %v7427_v17, %v7491_v3  ;;  %v16004_v41 = vsel %vm7458_vm11, %v7426_v56, %v7490_v2  ;;  %vm7140_vm5 = vcmp.ge.f32.partialorder %v15400_v12, 0.0 }
 0x9be   : > { %8260 = vrot.lane.b32.xlu0 %v16002_v62, %s17702_s23  ;;  %8258 = vrot.lane.b32.xlu1 %v16004_v41, %s17702_s23 }
 0x9c0   : > { %v7294_v32 = vpop.permute.xlu0 %7293  ;;  %v7292_v47 = vpop.permute.xlu1 %7291 }
 0x9c1   : > { %v7362_v55 = vmul.f32 %v7294_v32, %v16011_v31  ;;  %v7361_v17 = vmul.f32 %v7292_v47, %v16014_v54  ;;  %v7170_v47 = vmul.f32 0.1, %v15391_v28 }
 0x9c3   : > { %v7395_v56 = vmul.f32 %v15622_v22, %v7362_v55  ;;  %v7394_v3 = vmul.f32 %v15622_v22, %v7361_v17  ;;  %v16046_v31 = vsel %vm7138_vm1, %v15391_v28, %v7170_v47  ;;  %v7173_v47 = vmul.f32 0.1, %v15394_v58 }
 0x9c4   : > { %v16020_v2 = vpop.permute.xlu0 %7609  ;;  %v16022_v1 = vpop.permute.xlu1 %7607  ;;  %17730 = vst [vmem:[#allocation110_spill] sm:$0xff] %v16046_v31 }
 0x9c5   : > { %v7429_v46 = vadd.f32 %v15656_v44, %v7395_v56  ;;  %v7428_v48 = vadd.f32 %v15656_v44, %v7394_v3  ;;  %v16043_v3 = vsel %vm7139_vm15, %v15387_v24, %v7171_v7 }
 0x9c6   : > { %17729 = vst [vmem:[#allocation109_spill] sm:$0xff] %v16043_v3 }
 0x9c7   : > { %vm7461_vm13 = vcmp.ge.f32.partialorder %v7429_v46, 0.0  ;;  %v7493_v30 = vmul.f32 0.1, %v7429_v46  ;;  %vm7460_vm14 = vcmp.ge.f32.partialorder %v7428_v48, 0.0  ;;  %v7492_v55 = vmul.f32 0.1, %v7428_v48 }
 0x9c8   : > { %v16027_v63 = vpop.permute.xlu0 %7925  ;;  %v16029_v32 = vpop.permute.xlu1 %7923 }
 0x9c9   : > { %17726 = vst [vmem:[#allocation106_spill] sm:$0xff] %v16027_v63  ;;  %17727 = vst [vmem:[#allocation107_spill] sm:$0xff] %v16029_v32  ;;  %v16034_v17 = vsel %vm7461_vm13, %v7429_v46, %v7493_v30  ;;  %v16036_v56 = vsel %vm7460_vm14, %v7428_v48, %v7492_v55 }
 0x9ca   : > { %17728 = vst [vmem:[#allocation108_spill] sm:$0xff] %v16036_v56  ;;  %8264 = vrot.lane.b32.xlu0 %v16034_v17, %s17702_s23  ;;  %8262 = vrot.lane.b32.xlu1 %v16036_v56, %s17702_s23 }
 0x9cc   : > { %v7298_v54 = vpop.permute.xlu0 %7297  ;;  %v7296_v32 = vpop.permute.xlu1 %7295 }
 0x9cd   : > { %v7364_v46 = vmul.f32 %v7298_v54, %v16043_v3  ;;  %v7363_v48 = vmul.f32 %v7296_v32, %v16046_v31  ;;  %v7660_v54 = vmul.f32 %v15480_v18, %v15735_v27  ;;  %v7172_v31 = vmul.f32 0.1, %v15400_v12 }
 0x9ce   : > { %v16066_v3 = vstv %s9745_s30  ;;  %v7659_v18 = vmul.f32 %v15482_v21, %v15738_v29  ;;  %v16089_v21 = vstv %s9746_s26  ;;  %v7661_v29 = vmul.f32 %v15500_v57, %v15759_v8  ;;  %s11432_s26 = scalar_lea.vmem %s17144_s0, 4096 }
 0x9cf   : > { %v7397_v30 = vmul.f32 %v15622_v22, %v7364_v46  ;;  %v7396_v55 = vmul.f32 %v15622_v22, %v7363_v48  ;;  %v7693_v27 = vmul.f32 %v16066_v3, %v7660_v54  ;;  %v7664_v8 = vmul.f32 %v15510_v38, %v15777_v52  ;;  %p11433_p5 = scmp.ne.s32.totalorder %s17144_s0, %s11432_s26 }
 0x9d0   : > { %v16052_v63 = vpop.permute.xlu0 %7613  ;;  %v16054_v56 = vpop.permute.xlu1 %7611  ;;  %v7694_v57 = vmul.f32 %v16066_v3, %v7661_v29 }
 0x9d1   : > { %v7431_v24 = vadd.f32 %v15656_v44, %v7397_v30  ;;  %v7430_v28 = vadd.f32 %v15656_v44, %v7396_v55  ;;  %p11434_p8 = pnand %p11433_p5, %p17867_p2 }
 0x9d2   : > { %v7728_v52 = vadd.f32 %v16089_v21, %v7694_v57 }
 0x9d3   : > { %vm7463_vm2 = vcmp.ge.f32.partialorder %v7431_v24, 0.0  ;;  %v7495_v7 = vmul.f32 0.1, %v7431_v24  ;;  %vm7462_vm3 = vcmp.ge.f32.partialorder %v7430_v28, 0.0  ;;  %v7494_v48 = vmul.f32 0.1, %v7430_v28  ;;  %p11435_p10 = pneg %p11434_p8 }
 0x9d4   : > { %v16061_v32 = vpop.permute.xlu0 %7929  ;;  %v16063_v46 = vpop.permute.xlu1 %7927  ;;  %vm7760_vm15 = vcmp.ge.f32.partialorder %v7728_v52, 0.0 }
 0x9d5   : > { %17731 = vst [vmem:[#allocation111_spill] sm:$0xff] %v16061_v32  ;;  %17732 = vst [vmem:[#allocation112_spill] sm:$0xff] %v16063_v46  ;;  %v16070_v30 = vsel %vm7463_vm2, %v7431_v24, %v7495_v7  ;;  %v16072_v55 = vsel %vm7462_vm3, %v7430_v28, %v7494_v48  ;;  %v7662_v46 = vmul.f32 %v15498_v11, %v15756_v53 }
 0x9d6   : > { %17733 = vst [vmem:[#allocation113_spill] sm:$0xff] %v16072_v55  ;;  %8268 = vrot.lane.b32.xlu0 %v16070_v30, %s17702_s23  ;;  %8266 = vrot.lane.b32.xlu1 %v16072_v55, %s17702_s23  ;;  %v16084_v32 = vsel %vm7141_vm4, %v15394_v58, %v7173_v47  ;;  %v16087_v28 = vsel %vm7140_vm5, %v15400_v12, %v7172_v31 }
 0x9d7   : > { %17734 = vst [vmem:[#allocation114_spill] sm:$0xff] %v16084_v32  ;;  %17735 = vst [vmem:[#allocation115_spill] sm:$0xff] %v16087_v28  ;;  %v7692_v55 = vmul.f32 %v16066_v3, %v7659_v18  ;;  %v7727_v53 = vadd.f32 %v16089_v21, %v7693_v27  ;;  %v7695_v12 = vmul.f32 %v16066_v3, %v7662_v46 }
 0x9d8   : > { %v7302_v24 = vpop.permute.xlu0 %7301  ;;  %v7300_v7 = vpop.permute.xlu1 %7299 }
 0x9d9   : > { %v7366_v48 = vmul.f32 %v7302_v24, %v16084_v32  ;;  %v7365_v54 = vmul.f32 %v7300_v7, %v16087_v28  ;;  %v17736_v7 = vld [vmem:[#allocation71_spill] sm:$0xff]  ;;  %v7726_v27 = vadd.f32 %v16089_v21, %v7692_v55  ;;  %v7791_v28 = vmul.f32 0.1, %v7727_v53  ;;  %v17738_v55 = vld [vmem:[#allocation70_spill] sm:$0xff]  ;;  %v17739_v32 = vld [vmem:[#allocation52_spill] sm:$0xff] }
 0x9da   : > { %v7729_v38 = vadd.f32 %v16089_v21, %v7695_v12  ;;  %vm7759_vm12 = vcmp.ge.f32.partialorder %v7727_v53, 0.0 }
 0x9db   : > { %v7399_v11 = vmul.f32 %v15622_v22, %v7366_v48  ;;  %v7398_v58 = vmul.f32 %v15622_v22, %v7365_v54  ;;  %v7663_v22 = vmul.f32 %v17736_v7, %v15779_v16  ;;  %v7790_v12 = vmul.f32 0.1, %v7726_v27 }
 0x9dc   : > { %v16100_v31 = vpop.permute.xlu0 %7617  ;;  %v16102_v47 = vpop.permute.xlu1 %7615  ;;  %v16132_v57 = vsel %vm7759_vm12, %v7727_v53, %v7791_v28  ;;  %vm7758_vm13 = vcmp.ge.f32.partialorder %v7726_v27, 0.0  ;;  %vm7761_vm14 = vcmp.ge.f32.partialorder %v7729_v38, 0.0  ;;  %v17741_v53 = vld [vmem:[#allocation54_spill] sm:$0xff] }
 0x9dd   : > { %v7433_v24 = vadd.f32 %v15656_v44, %v7399_v11  ;;  %v7432_v18 = vadd.f32 %v15656_v44, %v7398_v58  ;;  %v7697_v44 = vmul.f32 %v16066_v3, %v7664_v8  ;;  %v7696_v16 = vmul.f32 %v16066_v3, %v7663_v22 }
 0x9de   : > { %v7666_v11 = vmul.f32 %v17738_v55, %v15806_v4  ;;  %v7793_v4 = vmul.f32 0.1, %v7729_v38  ;;  %v16148_v55 = vsel %vm7758_vm13, %v7726_v27, %v7790_v12 }
 0x9df   : > { %vm7465_vm11 = vcmp.ge.f32.partialorder %v7433_v24, 0.0  ;;  %v7497_v46 = vmul.f32 0.1, %v7433_v24  ;;  %vm7464_vm6 = vcmp.ge.f32.partialorder %v7432_v18, 0.0  ;;  %v7496_v29 = vmul.f32 0.1, %v7432_v18 }
 0x9e0   : > { %v16112_v48 = vpop.permute.xlu0 %7933  ;;  %v16114_v54 = vpop.permute.xlu1 %7931  ;;  %v7731_v8 = vadd.f32 %v16089_v21, %v7697_v44  ;;  %v7730_v22 = vadd.f32 %v16089_v21, %v7696_v16  ;;  %v7667_v44 = vmul.f32 %v17741_v53, %v15841_v26  ;;  %v7670_v16 = vmul.f32 %v15675_v60, %v15868_v39 }
 0x9e1   : > { %17737 = vst [vmem:[#allocation71_spill] sm:$0xff] %v16114_v54  ;;  %v16122_v58 = vsel %vm7465_vm11, %v7433_v24, %v7497_v46  ;;  %v16124_v7 = vsel %vm7464_vm6, %v7432_v18, %v7496_v29  ;;  %v7665_v54 = vmul.f32 %v17739_v32, %v15808_v50  ;;  %v7792_v24 = vmul.f32 0.1, %v7728_v52  ;;  %v17740_v32 = vld [vmem:[#allocation25_spill] sm:$0xff] }
 0x9e2   : > { %8272 = vrot.lane.b32.xlu0 %v16122_v58, %s17702_s23  ;;  %8270 = vrot.lane.b32.xlu1 %v16124_v7, %s17702_s23  ;;  %v7699_v50 = vmul.f32 %v16066_v3, %v7666_v11  ;;  %v7668_v46 = vmul.f32 %v17740_v32, %v15838_v35  ;;  %v16154_v11 = vsel %vm7761_vm14, %v7729_v38, %v7793_v4  ;;  %vm7763_vm1 = vcmp.ge.f32.partialorder %v7731_v8, 0.0  ;;  %s17866_s23 = sld [smem:[#allocation122_spill]] }
 0x9e3   : > { %v7698_v28 = vmul.f32 %v16066_v3, %v7665_v54  ;;  %v16156_v35 = vsel %vm7760_vm15, %v7728_v52, %v7792_v24  ;;  %v7795_v32 = vmul.f32 0.1, %v7731_v8  ;;  %v7794_v53 = vmul.f32 0.1, %v7730_v22 }
 0x9e4   : > { %v16135_v18 = vpop.permute.xlu0 %7621  ;;  %v16141_v29 = vpop.permute.xlu1 %7619  ;;  %v7733_v54 = vadd.f32 %v16089_v21, %v7699_v50  ;;  %v7701_v26 = vmul.f32 %v16066_v3, %v7668_v46  ;;  %v7700_v12 = vmul.f32 %v16066_v3, %v7667_v44  ;;  %vm7762_vm2 = vcmp.ge.f32.partialorder %v7730_v22, 0.0 }
 0x9e5   : > { %v7732_v27 = vadd.f32 %v16089_v21, %v7698_v28  ;;  %v7669_v60 = vmul.f32 %v15677_v49, %v15871_v0  ;;  %v7703_v38 = vmul.f32 %v16066_v3, %v7670_v16  ;;  %v7672_v4 = vmul.f32 %v15751_v59, %v15888_v43 }
 0x9e6   : > { %8340 = vrot.lane.b32.xlu0 %v16132_v57, %s17742_s29  ;;  %8338 = vrot.lane.b32.xlu1 %v16148_v55, %s17742_s29  ;;  %v7671_v24 = vmul.f32 %v15753_v34, %v15891_v61  ;;  %v7735_v49 = vadd.f32 %v16089_v21, %v7701_v26  ;;  %v16179_v0 = vsel %vm7763_vm1, %v7731_v8, %v7795_v32  ;;  %v7797_v46 = vmul.f32 0.1, %v7733_v54 }
 0x9e7   : > { %v16181_v50 = vsel %vm7762_vm2, %v7730_v22, %v7794_v53  ;;  %v7734_v28 = vadd.f32 %v16089_v21, %v7700_v12  ;;  %v7702_v44 = vmul.f32 %v16066_v3, %v7669_v60  ;;  %vm7765_vm3 = vcmp.ge.f32.partialorder %v7733_v54, 0.0 }
 0x9e8   : > { %v16164_v39 = vpop.permute.xlu0 %7937  ;;  %v16169_v52 = vpop.permute.xlu1 %7935  ;;  %v7796_v16 = vmul.f32 0.1, %v7732_v27  ;;  %v7737_v59 = vadd.f32 %v16089_v21, %v7703_v38  ;;  %vm7764_vm4 = vcmp.ge.f32.partialorder %v7732_v27, 0.0  ;;  %v7705_v34 = vmul.f32 %v16066_v3, %v7672_v4 }
 0x9e9   : > { %v7704_v43 = vmul.f32 %v16066_v3, %v7671_v24  ;;  %v7674_v61 = vmul.f32 %v15847_v42, %v15900_v14  ;;  %v16196_v22 = vsel %vm7765_vm3, %v7733_v54, %v7797_v46  ;;  %v7799_v26 = vmul.f32 0.1, %v7735_v49 }
 0x9ea   : > { %8344 = vrot.lane.b32.xlu0 %v16154_v11, %s17742_s29  ;;  %8342 = vrot.lane.b32.xlu1 %v16156_v35, %s17742_s29  ;;  %v7673_v32 = vmul.f32 %v15849_v6, %v15902_v25  ;;  %v7736_v12 = vadd.f32 %v16089_v21, %v7702_v44  ;;  %v16203_v60 = vsel %vm7764_vm4, %v7732_v27, %v7796_v16  ;;  %vm7767_vm5 = vcmp.ge.f32.partialorder %v7735_v49, 0.0 }
 0x9eb   : > { %v7798_v38 = vmul.f32 0.1, %v7734_v28  ;;  %vm7766_vm11 = vcmp.ge.f32.partialorder %v7734_v28, 0.0  ;;  %v7801_v42 = vmul.f32 0.1, %v7737_v59  ;;  %v7739_v14 = vadd.f32 %v16089_v21, %v7705_v34 }
 0x9ec   : > { %v16194_v8 = vpop.permute.xlu0 %7941  ;;  %v16200_v53 = vpop.permute.xlu1 %7939  ;;  %v7738_v6 = vadd.f32 %v16089_v21, %v7704_v43  ;;  %v7707_v25 = vmul.f32 %v16066_v3, %v7674_v61  ;;  %vm7769_vm6 = vcmp.ge.f32.partialorder %v7737_v59, 0.0  ;;  %v16212_v54 = vsel %vm7767_vm5, %v7735_v49, %v7799_v26 }
 0x9ed   : > { %v7706_v27 = vmul.f32 %v16066_v3, %v7673_v32  ;;  %v7676_v4 = vmul.f32 %v15908_v5, %v15918_v33  ;;  %v16217_v24 = vsel %vm7766_vm11, %v7734_v28, %v7798_v38  ;;  %v7800_v46 = vmul.f32 0.1, %v7736_v12 }
 0x9ee   : > { %8348 = vrot.lane.b32.xlu0 %v16179_v0, %s17742_s29  ;;  %8346 = vrot.lane.b32.xlu1 %v16181_v50, %s17742_s29  ;;  %v7675_v44 = vmul.f32 %v15910_v13, %v15920_v37  ;;  %v16225_v34 = vsel %vm7769_vm6, %v7737_v59, %v7801_v42  ;;  %vm7768_vm12 = vcmp.ge.f32.partialorder %v7736_v12, 0.0  ;;  %v7741_v5 = vadd.f32 %v16089_v21, %v7707_v25 }
 0x9ef   : > { %vm7771_vm13 = vcmp.ge.f32.partialorder %v7739_v14, 0.0  ;;  %v7803_v33 = vmul.f32 0.1, %v7739_v14  ;;  %v7802_v28 = vmul.f32 0.1, %v7738_v6  ;;  %v7740_v13 = vadd.f32 %v16089_v21, %v7706_v27 }
 0x9f0   : > { %v16221_v16 = vpop.permute.xlu0 %7945  ;;  %v16227_v49 = vpop.permute.xlu1 %7943  ;;  %v7709_v37 = vmul.f32 %v16066_v3, %v7676_v4  ;;  %vm7770_vm14 = vcmp.ge.f32.partialorder %v7738_v6, 0.0  ;;  %v7678_v59 = vmul.f32 %v15953_v36, %v15940_v23  ;;  %v16236_v43 = vsel %vm7768_vm12, %v7736_v12, %v7800_v46 }
 0x9f1   : > { %v7708_v61 = vmul.f32 %v16066_v3, %v7675_v44  ;;  %v7677_v26 = vmul.f32 %v15955_v19, %v15942_v51  ;;  %v7680_v32 = vmul.f32 %v15988_v10, %v15960_v45  ;;  %v16247_v38 = vsel %vm7771_vm13, %v7739_v14, %v7803_v33 }
 0x9f2   : > { %8352 = vrot.lane.b32.xlu0 %v16196_v22, %s17742_s29  ;;  %8350 = vrot.lane.b32.xlu1 %v16203_v60, %s17742_s29  ;;  %v16249_v42 = vsel %vm7770_vm14, %v7738_v6, %v7802_v28  ;;  %vm7773_vm15 = vcmp.ge.f32.partialorder %v7741_v5, 0.0  ;;  %v7743_v36 = vadd.f32 %v16089_v21, %v7709_v37  ;;  %v7711_v51 = vmul.f32 %v16066_v3, %v7678_v59 }
 0x9f3   : > { %v7805_v19 = vmul.f32 0.1, %v7741_v5  ;;  %v7804_v12 = vmul.f32 0.1, %v7740_v13  ;;  %v7742_v45 = vadd.f32 %v16089_v21, %v7708_v61  ;;  %v7710_v10 = vmul.f32 %v16066_v3, %v7677_v26 }
 0x9f4   : > { %v16251_v23 = vpop.permute.xlu0 %7949  ;;  %v16255_v25 = vpop.permute.xlu1 %7947  ;;  %vm7772_vm1 = vcmp.ge.f32.partialorder %v7740_v13, 0.0  ;;  %v7679_v14 = vmul.f32 %v15990_v9, %v15962_v40  ;;  %v7713_v6 = vmul.f32 %v16066_v3, %v7680_v32  ;;  %v7682_v27 = vmul.f32 %v16020_v2, %v15972_v15 }
 0x9f5   : > { %v7681_v4 = vmul.f32 %v16022_v1, %v15974_v20  ;;  %v7745_v46 = vadd.f32 %v16089_v21, %v7711_v51  ;;  %v16272_v44 = vsel %vm7773_vm15, %v7741_v5, %v7805_v19  ;;  %v16274_v40 = vsel %vm7772_vm1, %v7740_v13, %v7804_v12 }
 0x9f6   : > { %8356 = vrot.lane.b32.xlu0 %v16212_v54, %s17742_s29  ;;  %8354 = vrot.lane.b32.xlu1 %v16217_v24, %s17742_s29  ;;  %v7807_v9 = vmul.f32 0.1, %v7743_v36  ;;  %v7744_v33 = vadd.f32 %v16089_v21, %v7710_v10  ;;  %v7712_v28 = vmul.f32 %v16066_v3, %v7679_v14  ;;  %vm7775_vm2 = vcmp.ge.f32.partialorder %v7743_v36, 0.0 }
 0x9f7   : > { %v7806_v37 = vmul.f32 0.1, %v7742_v45  ;;  %v7747_v1 = vadd.f32 %v16089_v21, %v7713_v6  ;;  %vm7774_vm3 = vcmp.ge.f32.partialorder %v7742_v45, 0.0  ;;  %v7715_v20 = vmul.f32 %v16066_v3, %v7682_v27 }
 0x9f8   : > { %v16278_v59 = vpop.permute.xlu0 %8212  ;;  %v16283_v15 = vpop.permute.xlu1 %8210  ;;  %v7714_v2 = vmul.f32 %v16066_v3, %v7681_v4  ;;  %v7684_v5 = vmul.f32 %v16052_v63, %v16002_v62  ;;  %v16291_v13 = vsel %vm7775_vm2, %v7743_v36, %v7807_v9  ;;  %v7809_v61 = vmul.f32 0.1, %v7745_v46  ;;  %v17743_v4 = vld [vmem:[#allocation108_spill] sm:$0xff] }
 0x9f9   : > { %v7683_v26 = vmul.f32 %v16054_v56, %v16004_v41  ;;  %v7746_v32 = vadd.f32 %v16089_v21, %v7712_v28  ;;  %v16296_v51 = vsel %vm7774_vm3, %v7742_v45, %v7806_v37  ;;  %vm7777_vm4 = vcmp.ge.f32.partialorder %v7745_v46, 0.0 }
 0x9fa   : > { %8360 = vrot.lane.b32.xlu0 %v16225_v34, %s17742_s29  ;;  %8358 = vrot.lane.b32.xlu1 %v16236_v43, %s17742_s29  ;;  %v7808_v19 = vmul.f32 0.1, %v7744_v33  ;;  %vm7776_vm5 = vcmp.ge.f32.partialorder %v7744_v33, 0.0  ;;  %v7811_v12 = vmul.f32 0.1, %v7747_v1  ;;  %v7749_v63 = vadd.f32 %v16089_v21, %v7715_v20 }
 0x9fb   : > { %v7748_v62 = vadd.f32 %v16089_v21, %v7714_v2  ;;  %v7717_v41 = vmul.f32 %v16066_v3, %v7684_v5  ;;  %vm7779_vm11 = vcmp.ge.f32.partialorder %v7747_v1, 0.0  ;;  %v16307_v36 = vsel %vm7777_vm4, %v7745_v46, %v7809_v61  ;;  %v17744_v2 = vld [vmem:[#allocation113_spill] sm:$0xff] }
 0x9fc   : > { %v16305_v56 = vpop.permute.xlu0 %8216  ;;  %v7716_v45 = vmul.f32 %v16066_v3, %v7683_v26  ;;  %v7686_v10 = vmul.f32 %v16100_v31, %v16034_v17  ;;  %v16312_v14 = vpop.permute.xlu1 %8214  ;;  %v16314_v6 = vsel %vm7776_vm5, %v7744_v33, %v7808_v19  ;;  %v7810_v27 = vmul.f32 0.1, %v7746_v32  ;;  %v17746_v19 = vld [vmem:[#allocation69_spill] sm:$0xff] }
 0x9fd   : > { %v7685_v9 = vmul.f32 %v16102_v47, %v17743_v4  ;;  %v16322_v46 = vsel %vm7779_vm11, %v7747_v1, %v7811_v12  ;;  %vm7778_vm6 = vcmp.ge.f32.partialorder %v7746_v32, 0.0  ;;  %v7751_v17 = vadd.f32 %v16089_v21, %v7717_v41 }
 0x9fe   : > { %8364 = vrot.lane.b32.xlu0 %v16247_v38, %s17742_s29  ;;  %8362 = vrot.lane.b32.xlu1 %v16249_v42, %s17742_s29  ;;  %vm7781_vm12 = vcmp.ge.f32.partialorder %v7749_v63, 0.0  ;;  %v7813_v31 = vmul.f32 0.1, %v7749_v63  ;;  %v7812_v33 = vmul.f32 0.1, %v7748_v62  ;;  %v7750_v28 = vadd.f32 %v16089_v21, %v7716_v45 }
 0x9ff   : > { %v7719_v47 = vmul.f32 %v16066_v3, %v7686_v10  ;;  %vm7780_vm13 = vcmp.ge.f32.partialorder %v7748_v62, 0.0  ;;  %v7688_v37 = vmul.f32 %v16135_v18, %v16070_v30  ;;  %v16331_v20 = vsel %vm7778_vm6, %v7746_v32, %v7810_v27  ;;  %v17747_v27 = vld [vmem:[#allocation68_spill] sm:$0xff] }
 0xa00   : > { %v7718_v1 = vmul.f32 %v16066_v3, %v7685_v9  ;;  %v7687_v5 = vmul.f32 %v16141_v29, %v17744_v2  ;;  %v16336_v61 = vpop.permute.xlu0 %8220  ;;  %v16340_v26 = vpop.permute.xlu1 %8218  ;;  %v16346_v30 = vsel %vm7781_vm12, %v7749_v63, %v7813_v31  ;;  %v16348_v18 = vsel %vm7780_vm13, %v7748_v62, %v7812_v33  ;;  %v17748_v62 = vld [vmem:[#allocation60_spill] sm:$0xff]  ;;  %v17749_v31 = vld [vmem:[#allocation59_spill] sm:$0xff] }
 0xa01   : > { %17745 = vst [vmem:[#allocation70_spill] sm:$0xff] %v16340_v26  ;;  %vm7783_vm14 = vcmp.ge.f32.partialorder %v7751_v17, 0.0  ;;  %v7815_v32 = vmul.f32 0.1, %v7751_v17  ;;  %v7753_v29 = vadd.f32 %v16089_v21, %v7719_v47  ;;  %v7690_v12 = vmul.f32 %v17746_v19, %v16122_v58 }
 0xa02   : > { %8368 = vrot.lane.b32.xlu0 %v16272_v44, %s17742_s29  ;;  %8366 = vrot.lane.b32.xlu1 %v16274_v40, %s17742_s29  ;;  %v7721_v41 = vmul.f32 %v16066_v3, %v7688_v37  ;;  %v7814_v45 = vmul.f32 0.1, %v7750_v28  ;;  %v7752_v10 = vadd.f32 %v16089_v21, %v7718_v1  ;;  %v7689_v4 = vmul.f32 %v17747_v27, %v16124_v7 }
 0xa03   : > { %v7720_v63 = vmul.f32 %v16066_v3, %v7687_v5  ;;  %vm7782_vm15 = vcmp.ge.f32.partialorder %v7750_v28, 0.0  ;;  %v7984_v9 = vmul.f32 %v17748_v62, %v16132_v57  ;;  %v16365_v58 = vstv %s16320_s1 }
 0xa04   : > { %v7983_v33 = vmul.f32 %v17749_v31, %v16148_v55  ;;  %v16369_v47 = vsel %vm7783_vm14, %v7751_v17, %v7815_v32  ;;  %v16371_v7 = vpop.permute.xlu0 %8224  ;;  %v7723_v37 = vmul.f32 %v16066_v3, %v7690_v12  ;;  %v7755_v1 = vadd.f32 %v16089_v21, %v7721_v41  ;;  %v16377_v5 = vpop.permute.xlu1 %8222  ;;  %v8690_v17 = vld [vmem:[%s17204_s13] sm:$0xff]  ;;  %v17752_v41 = vld [vmem:[#allocation51_spill] sm:$0xff] }
 0xa05   : > { %17750 = vst [vmem:[#allocation52_spill] sm:$0xff] %v16371_v7  ;;  %v16375_v2 = vsel %vm7782_vm15, %v7750_v28, %v7814_v45  ;;  %v7817_v57 = vmul.f32 0.1, %v7753_v29  ;;  %17751 = vst [vmem:[#allocation25_spill] sm:$0xff] %v16377_v5  ;;  %v7722_v19 = vmul.f32 %v16066_v3, %v7689_v4  ;;  %v7754_v27 = vadd.f32 %v16089_v21, %v7720_v63  ;;  %v8691_v28 = vld [vmem:[%s17204_s13 + $0x8] sm:$0xff]  ;;  %v17753_v4 = vld [vmem:[#allocation23_spill] sm:$0xff] }
 0xa06   : > { %8372 = vrot.lane.b32.xlu0 %v16291_v13, %s17742_s29  ;;  %8370 = vrot.lane.b32.xlu1 %v16296_v51, %s17742_s29  ;;  %vm7785_vm1 = vcmp.ge.f32.partialorder %v7753_v29, 0.0  ;;  %v7816_v55 = vmul.f32 0.1, %v7752_v10  ;;  %v8017_v32 = vmul.f32 %v16365_v58, %v7984_v9  ;;  %vm7784_vm2 = vcmp.ge.f32.partialorder %v7752_v10, 0.0 }
 0xa07   : > { %v10158_v3 = vpack.c.bf16 %v8691_v28, %v8690_v17  ;;  %v16393_v12 = vstv %s16344_s14  ;;  %v7986_v45 = vmul.f32 %v17752_v41, %v16154_v11  ;;  %v7985_v63 = vmul.f32 %v17753_v4, %v16156_v35  ;;  %v17757_v4 = vld [vmem:[#allocation81_spill] sm:$0xff] }
 0xa08   : > { %v8016_v62 = vmul.f32 %v16365_v58, %v7983_v33  ;;  %v16400_v31 = vsel %vm7785_vm1, %v7753_v29, %v7817_v57  ;;  %v7819_v5 = vmul.f32 0.1, %v7755_v1  ;;  %v7757_v9 = vadd.f32 %v16089_v21, %v7723_v37  ;;  %v16406_v26 = vpop.permute.xlu0 %8228  ;;  %v16410_v11 = vpop.permute.xlu1 %8226  ;;  %v17755_v37 = vld [vmem:[#allocation57_spill] sm:$0xff] }
 0xa09   : > { %10159 = vmatprep.subr.bf16.mxu1 %v10158_v3  ;;  %v16403_v7 = vsel %vm7784_vm2, %v7752_v10, %v7816_v55  ;;  %vm7787_vm3 = vcmp.ge.f32.partialorder %v7755_v1, 0.0  ;;  %v7818_v17 = vmul.f32 0.1, %v7754_v27  ;;  %v7756_v28 = vadd.f32 %v16089_v21, %v7722_v19  ;;  %v17754_v21 = vld [vmem:[#allocation56_spill] sm:$0xff] }
 0xa0a   : > { %8376 = vrot.lane.b32.xlu0 %v16307_v36, %s17742_s29  ;;  %8374 = vrot.lane.b32.xlu1 %v16314_v6, %s17742_s29  ;;  %vm7786_vm4 = vcmp.ge.f32.partialorder %v7754_v27, 0.0  ;;  %v8051_v35 = vadd.f32 %v16393_v12, %v8017_v32  ;;  %v8019_v29 = vmul.f32 %v16365_v58, %v7986_v45  ;;  %v8018_v10 = vmul.f32 %v16365_v58, %v7985_v63 }
 0xa0b   : > { %10161 = vmatpush3.bf16.msra.mxu1 %v10158_v3  ;;  %v7988_v33 = vmul.f32 %v17754_v21, %v16179_v0  ;;  %v7987_v57 = vmul.f32 %v17755_v37, %v16181_v50  ;;  %v16421_v19 = vsel %vm7787_vm3, %v7755_v1, %v7819_v5  ;;  %v7821_v55 = vmul.f32 0.1, %v7757_v9  ;;  %v17759_v21 = vld [vmem:[#allocation82_spill] sm:$0xff] }
 0xa0c   : > { %v16423_v3 = vsel %vm7786_vm4, %v7754_v27, %v7818_v17  ;;  %vm7789_vm5 = vcmp.ge.f32.partialorder %v7757_v9, 0.0  ;;  %v7820_v41 = vmul.f32 0.1, %v7756_v28  ;;  %v8050_v32 = vadd.f32 %v16393_v12, %v8016_v62  ;;  %v16433_v5 = vpop.permute.xlu0 %8232  ;;  %v16440_v17 = vpop.permute.xlu1 %8230 }
 0xa0d   : > { %vm7788_vm11 = vcmp.ge.f32.partialorder %v7756_v28, 0.0  ;;  %v8115_v0 = vmul.f32 0.1, %v8051_v35  ;;  %v8053_v45 = vadd.f32 %v16393_v12, %v8019_v29  ;;  %v8052_v50 = vadd.f32 %v16393_v12, %v8018_v10  ;;  %17756 = vst [vmem:[#allocation54_spill] sm:$0xff] %v16433_v5  ;;  %17758 = vst [vmem:[#allocation108_spill] sm:$0xff] %v16440_v17 }
 0xa0e   : > { %8380 = vrot.lane.b32.xlu0 %v16322_v46, %s17742_s29  ;;  %8378 = vrot.lane.b32.xlu1 %v16331_v20, %s17742_s29  ;;  %v8021_v1 = vmul.f32 %v16365_v58, %v7988_v33  ;;  %vm8083_vm6 = vcmp.ge.f32.partialorder %v8051_v35, 0.0  ;;  %v8020_v27 = vmul.f32 %v16365_v58, %v7987_v57  ;;  %v7990_v63 = vmul.f32 %v17757_v4, %v16196_v22 }
 0xa0f   : > { %v16438_v62 = vsel %vm7789_vm5, %v7757_v9, %v7821_v55  ;;  %v7989_v37 = vmul.f32 %v17759_v21, %v16203_v60  ;;  %v16444_v29 = vsel %vm7788_vm11, %v7756_v28, %v7820_v41  ;;  %v8114_v10 = vmul.f32 0.1, %v8050_v32  ;;  %v17760_v28 = vld [vmem:[#allocation85_spill] sm:$0xff]  ;;  %v17761_v21 = vld [vmem:[#allocation86_spill] sm:$0xff] }
 0xa10   : > { %v8147_v33 = vsel %vm8083_vm6, %v8051_v35, %v8115_v0  ;;  %vm8082_vm12 = vcmp.ge.f32.partialorder %v8050_v32, 0.0  ;;  %v8055_v22 = vadd.f32 %v16393_v12, %v8021_v1  ;;  %vm8085_vm13 = vcmp.ge.f32.partialorder %v8053_v45, 0.0  ;;  %v16458_v35 = vpop.permute.xlu0 %8236  ;;  %v17764_v1 = vld [vmem:[#allocation90_spill] sm:$0xff] }
 0xa11   : > { %v8117_v9 = vmul.f32 0.1, %v8053_v45  ;;  %v8116_v57 = vmul.f32 0.1, %v8052_v50  ;;  %v8054_v55 = vadd.f32 %v16393_v12, %v8020_v27  ;;  %v8023_v60 = vmul.f32 %v16365_v58, %v7990_v63  ;;  %17762 = vst [vmem:[#allocation113_spill] sm:$0xff] %v16458_v35  ;;  %v16463_v27 = vpop.permute.xlu1 %8234 }
 0xa12   : > { %8384 = vrot.lane.b32.xlu0 %v16346_v30, %s17742_s29  ;;  %8382 = vrot.lane.b32.xlu1 %v16348_v18, %s17742_s29  ;;  %v7992_v41 = vmul.f32 %v17760_v28, %v16212_v54  ;;  %vm8084_vm14 = vcmp.ge.f32.partialorder %v8052_v50, 0.0  ;;  %v8022_v4 = vmul.f32 %v16365_v58, %v7989_v37  ;;  %v7991_v17 = vmul.f32 %v17761_v21, %v16217_v24 }
 0xa13   : > { %v8146_v0 = vsel %vm8082_vm12, %v8050_v32, %v8114_v10  ;;  %v7994_v5 = vmul.f32 %v17764_v1, %v16225_v34  ;;  %v8149_v63 = vsel %vm8085_vm13, %v8053_v45, %v8117_v9  ;;  %v8148_v54 = vsel %vm8084_vm14, %v8052_v50, %v8116_v57  ;;  %v17765_v10 = vld [vmem:[#allocation91_spill] sm:$0xff]  ;;  %v17766_v50 = vld [vmem:[#allocation94_spill] sm:$0xff] }
 0xa14   : > { %vm8087_vm15 = vcmp.ge.f32.partialorder %v8055_v22, 0.0  ;;  %v8057_v37 = vadd.f32 %v16393_v12, %v8023_v60  ;;  %v8025_v28 = vmul.f32 %v16365_v58, %v7992_v41  ;;  %v8119_v24 = vmul.f32 0.1, %v8055_v22  ;;  %v17767_v9 = vld [vmem:[#allocation95_spill] sm:$0xff]  ;;  %v16479_v60 = vpop.permute.xlu0 %8240 }
 0xa15   : > { %v8118_v21 = vmul.f32 0.1, %v8054_v55  ;;  %v8056_v35 = vadd.f32 %v16393_v12, %v8022_v4  ;;  %v8024_v32 = vmul.f32 %v16365_v58, %v7991_v17  ;;  %v7993_v34 = vmul.f32 %v17765_v10, %v16236_v43  ;;  %v16482_v41 = vpop.permute.xlu1 %8238 }
 0xa16   : > { %8388 = vrot.lane.b32.xlu0 %v16369_v47, %s17742_s29  ;;  %8386 = vrot.lane.b32.xlu1 %v16375_v2, %s17742_s29  ;;  %vm8086_vm1 = vcmp.ge.f32.partialorder %v8054_v55, 0.0  ;;  %v8027_v45 = vmul.f32 %v16365_v58, %v7994_v5  ;;  %v7995_v57 = vmul.f32 %v17767_v9, %v16249_v42  ;;  %v8059_v17 = vadd.f32 %v16393_v12, %v8025_v28  ;;  %v17769_v28 = vld [vmem:[#allocation99_spill] sm:$0xff] }
 0xa17   : > { %v8151_v43 = vsel %vm8087_vm15, %v8055_v22, %v8119_v24  ;;  %v8150_v4 = vsel %vm8086_vm1, %v8054_v55, %v8118_v21  ;;  %v8058_v5 = vadd.f32 %v16393_v12, %v8024_v32  ;;  %v8026_v1 = vmul.f32 %v16365_v58, %v7993_v34  ;;  %v17768_v22 = vld [vmem:[#allocation98_spill] sm:$0xff] }
 0xa18   : > { %vm8089_vm2 = vcmp.ge.f32.partialorder %v8057_v37, 0.0  ;;  %v8061_v42 = vadd.f32 %v16393_v12, %v8027_v45  ;;  %vm8088_vm3 = vcmp.ge.f32.partialorder %v8056_v35, 0.0  ;;  %v7998_v55 = vmul.f32 %v17768_v22, %v16272_v44  ;;  %v16497_v34 = vpop.permute.xlu0 %8244 }
 0xa19   : > { %v7997_v24 = vmul.f32 %v17769_v28, %v16274_v40  ;;  %v8123_v32 = vmul.f32 0.1, %v8059_v17  ;;  %v8060_v10 = vadd.f32 %v16393_v12, %v8026_v1  ;;  %vm8091_vm4 = vcmp.ge.f32.partialorder %v8059_v17, 0.0 }
 0xa1a   : > { %8392 = vrot.lane.b32.xlu0 %v16400_v31, %s17742_s29  ;;  %8390 = vrot.lane.b32.xlu1 %v16403_v7, %s17742_s29  ;;  %vm8090_vm5 = vcmp.ge.f32.partialorder %v8058_v5, 0.0  ;;  %v8125_v44 = vmul.f32 0.1, %v8061_v42  ;;  %vm8093_vm11 = vcmp.ge.f32.partialorder %v8061_v42, 0.0 }
 0xa1b   : > { %v8124_v22 = vmul.f32 0.1, %v8060_v10  ;;  %vm8092_vm6 = vcmp.ge.f32.partialorder %v8060_v10, 0.0 }
 0xa1e   : > { %8396 = vrot.lane.b32.xlu0 %v16421_v19, %s17742_s29  ;;  %8394 = vrot.lane.b32.xlu1 %v16423_v3, %s17742_s29 }
 0xa22   : > { %8400 = vrot.lane.b32.xlu0 %v16438_v62, %s17742_s29  ;;  %8398 = vrot.lane.b32.xlu1 %v16444_v29, %s17742_s29  ;;  %s17862_s29 = sld [smem:[#allocation119_spill]] }
 0xa26   : > { %8468 = vrot.lane.b32.xlu0 %v8147_v33, %s17763_s12  ;;  %8466 = vrot.lane.b32.xlu1 %v8146_v0, %s17763_s12  ;;  %v7996_v33 = vmul.f32 %v17766_v50, %v16247_v38  ;;  %v8121_v0 = vmul.f32 0.1, %v8057_v37  ;;  %v8120_v38 = vmul.f32 0.1, %v8056_v35  ;;  %v8122_v50 = vmul.f32 0.1, %v8058_v5 }
 0xa28   : > { %v8153_v21 = vsel %vm8089_vm2, %v8057_v37, %v8121_v0  ;;  %v8152_v45 = vsel %vm8088_vm3, %v8056_v35, %v8120_v38  ;;  %v8031_v37 = vmul.f32 %v16365_v58, %v7998_v55  ;;  %v17771_v0 = vld [vmem:[#allocation103_spill] sm:$0xff]  ;;  %v8154_v38 = vsel %vm8090_vm5, %v8058_v5, %v8122_v50  ;;  %v16514_v55 = vpop.permute.xlu0 %8248 }
 0xa29   : > { %v7999_v1 = vmul.f32 %v17771_v0, %v16296_v51  ;;  %v17772_v51 = vld [vmem:[#allocation106_spill] sm:$0xff]  ;;  %v8156_v50 = vsel %vm8092_vm6, %v8060_v10, %v8124_v22  ;;  %v17775_v10 = vld [vmem:[#allocation112_spill] sm:$0xff] }
 0xa2a   : > { %8472 = vrot.lane.b32.xlu0 %v8149_v63, %s17763_s12  ;;  %8470 = vrot.lane.b32.xlu1 %v8148_v54, %s17763_s12  ;;  %v8029_v63 = vmul.f32 %v16365_v58, %v7996_v33  ;;  %v8028_v54 = vmul.f32 %v16365_v58, %v7995_v57  ;;  %v16500_v33 = vpop.permute.xlu1 %8242  ;;  %v8030_v57 = vmul.f32 %v16365_v58, %v7997_v24 }
 0xa2c   : > { %v8063_v9 = vadd.f32 %v16393_v12, %v8029_v63  ;;  %v8062_v40 = vadd.f32 %v16393_v12, %v8028_v54  ;;  %v8157_v63 = vsel %vm8093_vm11, %v8061_v42, %v8125_v44  ;;  %v8065_v54 = vadd.f32 %v16393_v12, %v8031_v37  ;;  %v17774_v44 = vld [vmem:[#allocation111_spill] sm:$0xff]  ;;  %v16535_v22 = vpop.permute.xlu0 %8252 }
 0xa2d   : > { %v8032_v42 = vmul.f32 %v16365_v58, %v7999_v1  ;;  %v8004_v37 = vmul.f32 %v17774_v44, %v16322_v46 }
 0xa2e   : > { %8476 = vrot.lane.b32.xlu0 %v8151_v43, %s17763_s12  ;;  %8474 = vrot.lane.b32.xlu1 %v8150_v4, %s17763_s12  ;;  %v17770_v43 = vld [vmem:[#allocation102_spill] sm:$0xff]  ;;  %v8155_v4 = vsel %vm8091_vm4, %v8059_v17, %v8123_v32  ;;  %vm8095_vm12 = vcmp.ge.f32.partialorder %v8063_v9, 0.0  ;;  %v8127_v28 = vmul.f32 0.1, %v8063_v9  ;;  %v8126_v24 = vmul.f32 0.1, %v8062_v40  ;;  %v16520_v5 = vpop.permute.xlu1 %8246 }
 0xa2f   : > { %v8000_v35 = vmul.f32 %v17770_v43, %v16291_v13  ;;  %v8064_v13 = vadd.f32 %v16393_v12, %v8030_v57  ;;  %vm8094_vm13 = vcmp.ge.f32.partialorder %v8062_v40, 0.0  ;;  %v17773_v32 = vld [vmem:[#allocation107_spill] sm:$0xff]  ;;  %vm8097_vm14 = vcmp.ge.f32.partialorder %v8065_v54, 0.0 }
 0xa30   : > { %v8159_v57 = vsel %vm8095_vm12, %v8063_v9, %v8127_v28  ;;  %v8158_v43 = vsel %vm8094_vm13, %v8062_v40, %v8126_v24  ;;  %v8066_v1 = vadd.f32 %v16393_v12, %v8032_v42  ;;  %v8037_v46 = vmul.f32 %v16365_v58, %v8004_v37 }
 0xa31   : > { %v8033_v17 = vmul.f32 %v16365_v58, %v8000_v35  ;;  %v8128_v0 = vmul.f32 0.1, %v8064_v13  ;;  %vm8096_vm15 = vcmp.ge.f32.partialorder %v8064_v13, 0.0  ;;  %v8006_v40 = vmul.f32 %v16112_v48, %v16346_v30 }
 0xa32   : > { %8480 = vrot.lane.b32.xlu0 %v8153_v21, %s17763_s12  ;;  %8478 = vrot.lane.b32.xlu1 %v8152_v45, %s17763_s12  ;;  %v8002_v21 = vmul.f32 %v17772_v51, %v16307_v36  ;;  %v8001_v45 = vmul.f32 %v17773_v32, %v16314_v6  ;;  %v16539_v9 = vpop.permute.xlu1 %8250  ;;  %v8130_v32 = vmul.f32 0.1, %v8066_v1  ;;  %vm8098_vm2 = vcmp.ge.f32.partialorder %v8066_v1, 0.0 }
 0xa33   : > { %v8067_v36 = vadd.f32 %v16393_v12, %v8033_v17  ;;  %v8160_v17 = vsel %vm8096_vm15, %v8064_v13, %v8128_v0  ;;  %v8039_v48 = vmul.f32 %v16365_v58, %v8006_v40  ;;  %v8007_v13 = vmul.f32 %v16169_v52, %v16375_v2 }
 0xa34   : > { %v8035_v35 = vmul.f32 %v16365_v58, %v8002_v21  ;;  %v8034_v6 = vmul.f32 %v16365_v58, %v8001_v45  ;;  %v8071_v45 = vadd.f32 %v16393_v12, %v8037_v46  ;;  %v8010_v0 = vmul.f32 %v16194_v8, %v16400_v31 }
 0xa35   : > { %v8131_v51 = vmul.f32 0.1, %v8067_v36  ;;  %vm8099_vm1 = vcmp.ge.f32.partialorder %v8067_v36, 0.0 }
 0xa36   : > { %8484 = vrot.lane.b32.xlu0 %v8155_v4, %s17763_s12  ;;  %8482 = vrot.lane.b32.xlu1 %v8154_v38, %s17763_s12  ;;  %v8129_v4 = vmul.f32 0.1, %v8065_v54  ;;  %v8003_v38 = vmul.f32 %v17775_v10, %v16331_v20  ;;  %v8069_v24 = vadd.f32 %v16393_v12, %v8035_v35  ;;  %v8068_v21 = vadd.f32 %v16393_v12, %v8034_v6 }
 0xa37   : > { %v8163_v44 = vsel %vm8099_vm1, %v8067_v36, %v8131_v51  ;;  %vm8103_vm5 = vcmp.ge.f32.partialorder %v8071_v45, 0.0  ;;  %v8040_v36 = vmul.f32 %v16365_v58, %v8007_v13  ;;  %v8009_v10 = vmul.f32 %v16200_v53, %v16403_v7 }
 0xa38   : > { %v8161_v20 = vsel %vm8097_vm14, %v8065_v54, %v8129_v4  ;;  %v8036_v42 = vmul.f32 %v16365_v58, %v8003_v38  ;;  %v16557_v54 = vpop.permute.xlu0 %8256  ;;  %v8133_v37 = vmul.f32 0.1, %v8069_v24  ;;  %vm8101_vm3 = vcmp.ge.f32.partialorder %v8069_v24, 0.0 }
 0xa39   : > { %v8132_v35 = vmul.f32 0.1, %v8068_v21  ;;  %vm8100_vm4 = vcmp.ge.f32.partialorder %v8068_v21, 0.0  ;;  %v8012_v53 = vmul.f32 %v16221_v16, %v16421_v19  ;;  %v8011_v51 = vmul.f32 %v16227_v49, %v16423_v3 }
 0xa3a   : > { %8488 = vrot.lane.b32.xlu0 %v8157_v63, %s17763_s12  ;;  %8486 = vrot.lane.b32.xlu1 %v8156_v50, %s17763_s12  ;;  %v17776_v63 = vld [vmem:[#allocation71_spill] sm:$0xff]  ;;  %v16561_v50 = vpop.permute.xlu1 %8254  ;;  %v8165_v6 = vsel %vm8101_vm3, %v8069_v24, %v8133_v37  ;;  %v8074_v24 = vadd.f32 %v16393_v12, %v8040_v36 }
 0xa3b   : > { %v8005_v28 = vmul.f32 %v17776_v63, %v16348_v18  ;;  %v8008_v18 = vmul.f32 %v16164_v39, %v16369_v47  ;;  %v8135_v39 = vmul.f32 0.1, %v8071_v45  ;;  %v8073_v47 = vadd.f32 %v16393_v12, %v8039_v48 }
 0xa3c   : > { %v16569_v2 = vpop.permute.xlu0 %8260  ;;  %v8164_v38 = vsel %vm8100_vm4, %v8068_v21, %v8132_v35  ;;  %v8045_v19 = vmul.f32 %v16365_v58, %v8012_v53  ;;  %v8138_v49 = vmul.f32 0.1, %v8074_v24  ;;  %v8044_v13 = vmul.f32 %v16365_v58, %v8011_v51 }
 0xa3d   : > { %v8038_v30 = vmul.f32 %v16365_v58, %v8005_v28  ;;  %v8041_v52 = vmul.f32 %v16365_v58, %v8008_v18  ;;  %v8167_v40 = vsel %vm8103_vm5, %v8071_v45, %v8135_v39  ;;  %vm8105_vm6 = vcmp.ge.f32.partialorder %v8073_v47, 0.0 }
 0xa3e   : > { %8492 = vrot.lane.b32.xlu0 %v8159_v57, %s17763_s12  ;;  %8490 = vrot.lane.b32.xlu1 %v8158_v43, %s17763_s12  ;;  %v8070_v57 = vadd.f32 %v16393_v12, %v8036_v42  ;;  %v8162_v43 = vsel %vm8098_vm2, %v8066_v1, %v8130_v32  ;;  %v16574_v1 = vpop.permute.xlu1 %8258  ;;  %v8137_v8 = vmul.f32 0.1, %v8073_v47  ;;  %vm8106_vm14 = vcmp.ge.f32.partialorder %v8074_v24, 0.0 }
 0xa3f   : > { %v8072_v4 = vadd.f32 %v16393_v12, %v8038_v30  ;;  %v8075_v63 = vadd.f32 %v16393_v12, %v8041_v52  ;;  %v8014_v30 = vmul.f32 %v16251_v23, %v16438_v62  ;;  %v8079_v23 = vadd.f32 %v16393_v12, %v8045_v19 }
 0xa40   : > { %v8134_v46 = vmul.f32 0.1, %v8070_v57  ;;  %vm8102_vm11 = vcmp.ge.f32.partialorder %v8070_v57, 0.0  ;;  %v16581_v28 = vpop.permute.xlu0 %8264  ;;  %v8169_v32 = vsel %vm8105_vm6, %v8073_v47, %v8137_v8  ;;  %v8170_v35 = vsel %vm8106_vm14, %v8074_v24, %v8138_v49 }
 0xa41   : > { %v8136_v31 = vmul.f32 0.1, %v8072_v4  ;;  %vm8104_vm12 = vcmp.ge.f32.partialorder %v8072_v4, 0.0  ;;  %vm8107_vm13 = vcmp.ge.f32.partialorder %v8075_v63, 0.0  ;;  %v8139_v48 = vmul.f32 0.1, %v8075_v63 }
 0xa42   : > { %8496 = vrot.lane.b32.xlu0 %v8161_v20, %s17763_s12  ;;  %8494 = vrot.lane.b32.xlu1 %v8160_v17, %s17763_s12  ;;  %v8043_v20 = vmul.f32 %v16365_v58, %v8010_v0  ;;  %v16587_v7 = vpop.permute.xlu1 %8262  ;;  %v8042_v17 = vmul.f32 %v16365_v58, %v8009_v10  ;;  %v8166_v21 = vsel %vm8102_vm11, %v8070_v57, %v8134_v46  ;;  %vm8111_vm2 = vcmp.ge.f32.partialorder %v8079_v23, 0.0 }
 0xa43   : > { %v8168_v45 = vsel %vm8104_vm12, %v8072_v4, %v8136_v31  ;;  %v8171_v57 = vsel %vm8107_vm13, %v8075_v63, %v8139_v48  ;;  %v8047_v62 = vmul.f32 %v16365_v58, %v8014_v30  ;;  %v8078_v47 = vadd.f32 %v16393_v12, %v8044_v13 }
 0xa44   : > { %v8077_v16 = vadd.f32 %v16393_v12, %v8043_v20  ;;  %v8076_v3 = vadd.f32 %v16393_v12, %v8042_v17 }
 0xa45   : > { %v8081_v52 = vadd.f32 %v16393_v12, %v8047_v62  ;;  %vm8110_vm3 = vcmp.ge.f32.partialorder %v8078_v47, 0.0 }
 0xa46   : > { %8500 = vrot.lane.b32.xlu0 %v8163_v44, %s17763_s12  ;;  %8498 = vrot.lane.b32.xlu1 %v8162_v43, %s17763_s12  ;;  %v8013_v44 = vmul.f32 %v16255_v25, %v16444_v29  ;;  %v8141_v39 = vmul.f32 0.1, %v8077_v16  ;;  %vm8109_vm15 = vcmp.ge.f32.partialorder %v8077_v16, 0.0  ;;  %v8140_v29 = vmul.f32 0.1, %v8076_v3 }
 0xa47   : > { %vm8108_vm1 = vcmp.ge.f32.partialorder %v8076_v3, 0.0  ;;  %v8145_v8 = vmul.f32 0.1, %v8081_v52  ;;  %vm8113_vm4 = vcmp.ge.f32.partialorder %v8081_v52, 0.0 }
 0xa48   : > { %v16594_v42 = vpop.permute.xlu0 %8268  ;;  %v16600_v18 = vpop.permute.xlu1 %8266  ;;  %v8046_v25 = vmul.f32 %v16365_v58, %v8013_v44  ;;  %v8173_v0 = vsel %vm8109_vm15, %v8077_v16, %v8141_v39  ;;  %v8142_v58 = vmul.f32 0.1, %v8078_v47 }
 0xa49   : > { %17777 = vst [vmem:[#allocation69_spill] sm:$0xff] %v16600_v18  ;;  %v8177_v53 = vsel %vm8113_vm4, %v8081_v52, %v8145_v8  ;;  %v17787_v18 = vld [vmem:[#allocation24_spill] sm:$0xff] }
 0xa4a   : > { %8504 = vrot.lane.b32.xlu0 %v8165_v6, %s17763_s12  ;;  %8502 = vrot.lane.b32.xlu1 %v8164_v38, %s17763_s12  ;;  %v8143_v6 = vmul.f32 0.1, %v8079_v23  ;;  %v8080_v10 = vadd.f32 %v16393_v12, %v8046_v25  ;;  %v8172_v38 = vsel %vm8108_vm1, %v8076_v3, %v8140_v29  ;;  %v8174_v31 = vsel %vm8110_vm3, %v8078_v47, %v8142_v58 }
 0xa4c   : > { %v8175_v63 = vsel %vm8111_vm2, %v8079_v23, %v8143_v6  ;;  %v8144_v24 = vmul.f32 0.1, %v8080_v10  ;;  %vm8112_vm5 = vcmp.ge.f32.partialorder %v8080_v10, 0.0 }
 0xa4e   : > { %8508 = vrot.lane.b32.xlu0 %v8167_v40, %s17763_s12  ;;  %8506 = vrot.lane.b32.xlu1 %v8166_v21, %s17763_s12  ;;  %v8176_v17 = vsel %vm8112_vm5, %v8080_v10, %v8144_v24 }
 0xa52   : > { %8512 = vrot.lane.b32.xlu0 %v8169_v32, %s17763_s12  ;;  %8510 = vrot.lane.b32.xlu1 %v8168_v45, %s17763_s12 }
 0xa54   : > { %v16608_v37 = vpop.permute.xlu0 %8272  ;;  %v16612_v43 = vpop.permute.xlu1 %8270 }
 0xa55   : > { %17778 = vst [vmem:[#allocation68_spill] sm:$0xff] %v16608_v37  ;;  %17779 = vst [vmem:[#allocation60_spill] sm:$0xff] %v16612_v43 }
 0xa56   : > { %8516 = vrot.lane.b32.xlu0 %v8171_v57, %s17763_s12  ;;  %8514 = vrot.lane.b32.xlu1 %v8170_v35, %s17763_s12 }
 0xa58   : > { %v8341_v4 = vpop.permute.xlu0 %8340  ;;  %v8339_v36 = vpop.permute.xlu1 %8338 }
 0xa5a   : > { %8520 = vrot.lane.b32.xlu0 %v8173_v0, %s17763_s12  ;;  %8518 = vrot.lane.b32.xlu1 %v8172_v38, %s17763_s12 }
 0xa5c   : > { %v8345_v46 = vpop.permute.xlu0 %8344  ;;  %v8343_v40 = vpop.permute.xlu1 %8342 }
 0xa5e   : > { %8524 = vrot.lane.b32.xlu0 %v8175_v63, %s17763_s12  ;;  %8522 = vrot.lane.b32.xlu1 %v8174_v31, %s17763_s12  ;;  %v17784_v63 = vld [vmem:[#allocation74_spill] sm:$0xff]  ;;  %v17785_v31 = vld [vmem:[#allocation53_spill] sm:$0xff] }
 0xa5f   : > { %v8563_v8 = vsel %vm2381_vm7, %v17784_v63, %v16278_v59  ;;  %v8562_v24 = vsel %vm2381_vm7, %v17785_v31, %v16283_v15  ;;  %v8565_v59 = vsel %vm2381_vm7, %v17787_v18, %v16305_v56  ;;  %v17788_v63 = vld [vmem:[#allocation30_spill] sm:$0xff]  ;;  %v17790_v18 = vld [vmem:[#allocation31_spill] sm:$0xff] }
 0xa60   : > { %v8349_v12 = vpop.permute.xlu0 %8348  ;;  %v8347_v20 = vpop.permute.xlu1 %8346  ;;  %v8594_v43 = vsel %vm2414_vm8, %v8562_v24, %v8339_v36  ;;  %v8597_v36 = vsel %vm2414_vm8, %v8565_v59, %v8345_v46  ;;  %v17791_v24 = vld [vmem:[#allocation26_spill] sm:$0xff]  ;;  %v17792_v46 = vld [vmem:[#allocation61_spill] sm:$0xff]  ;;  %v17794_v59 = vld [vmem:[#allocation27_spill] sm:$0xff] }
 0xa62   : > { %8528 = vrot.lane.b32.xlu0 %v8177_v53, %s17763_s12  ;;  %8526 = vrot.lane.b32.xlu1 %v8176_v17, %s17763_s12  ;;  %v8595_v53 = vsel %vm2414_vm8, %v8563_v8, %v8341_v4  ;;  %v17789_v4 = vld [vmem:[#allocation55_spill] sm:$0xff]  ;;  %s9821_s12 = sshll.u32 %s11643_s28, 12  ;;  %s9511_s28 = scalar_lea.sflag [#allocation5], %s11760_s17 }
 0xa63   : > { %v8564_v8 = vsel %vm2381_vm7, %v17789_v4, %v16312_v14  ;;  %v8567_v14 = vsel %vm2381_vm7, %v17791_v24, %v16336_v61  ;;  %s17142_s30 = scalar_lea.hbm %s17866_s23, %s9821_s12 }
 0xa64   : > { %v16626_v51 = vpop.permute.xlu0 %8352  ;;  %v16628_v21 = vpop.permute.xlu1 %8350 }
 0xa68   : > { %v16630_v32 = vpop.permute.xlu0 %8356  ;;  %v16632_v45 = vpop.permute.xlu1 %8354 }
 0xa6c   : > { %v16634_v48 = vpop.permute.xlu0 %8360  ;;  %v16636_v16 = vpop.permute.xlu1 %8358 }
 0xa70   : > { %v16638_v19 = vpop.permute.xlu0 %8364  ;;  %v16640_v30 = vpop.permute.xlu1 %8362 }
 0xa74   : > { %v16642_v49 = vpop.permute.xlu0 %8368  ;;  %v16644_v3 = vpop.permute.xlu1 %8366 }
 0xa78   : > { %v16646_v13 = vpop.permute.xlu0 %8372  ;;  %v16648_v44 = vpop.permute.xlu1 %8370 }
 0xa7c   : > { %v16650_v57 = vpop.permute.xlu0 %8376  ;;  %v16652_v23 = vpop.permute.xlu1 %8374 }
 0xa80   : > { %v16654_v62 = vpop.permute.xlu0 %8380  ;;  %v16656_v35 = vpop.permute.xlu1 %8378 }
 0xa84   : > { %v16658_v39 = vpop.permute.xlu0 %8384  ;;  %v16660_v47 = vpop.permute.xlu1 %8382 }
 0xa88   : > { %v16662_v25 = vpop.permute.xlu0 %8388  ;;  %v16664_v29 = vpop.permute.xlu1 %8386 }
 0xa8c   : > { %v16666_v52 = vpop.permute.xlu0 %8392  ;;  %v16668_v0 = vpop.permute.xlu1 %8390 }
 0xa90   : > { %v16670_v6 = vpop.permute.xlu0 %8396  ;;  %v16672_v10 = vpop.permute.xlu1 %8394 }
 0xa91   : > { %17780 = vst [vmem:[#allocation59_spill] sm:$0xff] %v16670_v6  ;;  %17781 = vst [vmem:[#allocation51_spill] sm:$0xff] %v16672_v10  ;;  %v17786_v6 = vld [vmem:[#allocation62_spill] sm:$0xff] }
 0xa94   : > { %v16674_v38 = vpop.permute.xlu0 %8400  ;;  %v16676_v58 = vpop.permute.xlu1 %8398 }
 0xa95   : > { %17782 = vst [vmem:[#allocation23_spill] sm:$0xff] %v16674_v38  ;;  %17783 = vst [vmem:[#allocation56_spill] sm:$0xff] %v16676_v58 }
 0xa98   : > { %v8469_v17 = vpop.permute.xlu0 %8468  ;;  %v8467_v10 = vpop.permute.xlu1 %8466 }
 0xa99   : > { %v8627_v37 = vsel %vm2447_vm9, %v8595_v53, %v8469_v17  ;;  %v8626_v58 = vsel %vm2447_vm9, %v8594_v43, %v8467_v10  ;;  %v17793_v17 = vld [vmem:[#allocation70_spill] sm:$0xff] }
 0xa9a   : > { %v8659_v38 = vsel %vm2480_vm10, %v8627_v37, %v17786_v6  ;;  %v8658_v15 = vsel %vm2480_vm10, %v8626_v58, %v17788_v63  ;;  %v8596_v37 = vsel %vm2414_vm8, %v8564_v8, %v8343_v40  ;;  %v8566_v40 = vsel %vm2381_vm7, %v17794_v59, %v17793_v17 }
 0xa9b   : > { %9997 = vmatprep.mubr.msk.f32.mxu1 %vm594_vm0, %v8658_v15  ;;  %v8599_v15 = vsel %vm2414_vm8, %v8567_v14, %v8349_v12  ;;  %v8598_v4 = vsel %vm2414_vm8, %v8566_v40, %v8347_v20  ;;  %v17798_v12 = vld [vmem:[#allocation32_spill] sm:$0xff]  ;;  %v17799_v14 = vld [vmem:[#allocation25_spill] sm:$0xff] }
 0xa9c   : > { %v8473_v31 = vpop.permute.xlu0 %8472  ;;  %9998 = vmatmul.mubr.msk.f32.vlgmr.msra.gmra.mrb[80].mxu1 %vm594_vm0, %v8659_v38  ;;  %v8471_v10 = vpop.permute.xlu1 %8470 }
 0xa9d   : > { %v8629_v43 = vsel %vm2447_vm9, %v8597_v36, %v8473_v31  ;;  %v8628_v56 = vsel %vm2447_vm9, %v8596_v37, %v8471_v10  ;;  %v17795_v31 = vld [vmem:[#allocation66_spill] sm:$0xff]  ;;  %v17797_v10 = vld [vmem:[#allocation28_spill] sm:$0xff] }
 0xa9e   : > { %v8661_v58 = vsel %vm2480_vm10, %v8629_v43, %v17790_v18  ;;  %v8660_v53 = vsel %vm2480_vm10, %v8628_v56, %v17792_v46  ;;  %v17796_v43 = vld [vmem:[#allocation52_spill] sm:$0xff] }
 0xa9f   : > { %10000 = vmatprep.mubr.msk.f32.mxu1 %vm594_vm0, %v8660_v53  ;;  %v8569_v56 = vsel %vm2381_vm7, %v17797_v10, %v17796_v43  ;;  %v17800_v53 = vld [vmem:[#allocation29_spill] sm:$0xff]  ;;  %v17804_v10 = vld [vmem:[#allocation75_spill] sm:$0xff] }
 0xaa0   : > { %v8477_v38 = vpop.permute.xlu0 %8476  ;;  %10001 = vmatmul.mubr.msk.f32.gmra.mrb[82].mxu1 %vm594_vm0, %v8661_v58  ;;  %v8475_v36 = vpop.permute.xlu1 %8474  ;;  %v8568_v20 = vsel %vm2381_vm7, %v17800_v53, %v17799_v14  ;;  %v8601_v58 = vsel %vm2414_vm8, %v8569_v56, %v16626_v51 }
 0xaa1   : > { %v8631_v8 = vsel %vm2447_vm9, %v8599_v15, %v8477_v38  ;;  %v8630_v61 = vsel %vm2447_vm9, %v8598_v4, %v8475_v36  ;;  %v8600_v59 = vsel %vm2414_vm8, %v8568_v20, %v16628_v21  ;;  %v17801_v4 = vld [vmem:[#allocation33_spill] sm:$0xff]  ;;  %v17802_v36 = vld [vmem:[#allocation58_spill] sm:$0xff]  ;;  %v8570_v21 = vsel %vm2381_vm7, %v17804_v10, %v16410_v11  ;;  %v17805_v20 = vld [vmem:[#allocation72_spill] sm:$0xff] }
 0xaa2   : > { %v8663_v37 = vsel %vm2480_vm10, %v8631_v8, %v17795_v31  ;;  %v8662_v24 = vsel %vm2480_vm10, %v8630_v61, %v17798_v12  ;;  %v8571_v51 = vsel %vm2381_vm7, %v17802_v36, %v16406_v26  ;;  %v17803_v61 = vld [vmem:[#allocation67_spill] sm:$0xff]  ;;  %v17806_v11 = vld [vmem:[#allocation54_spill] sm:$0xff] }
 0xaa3   : > { %10003 = vmatprep.mubr.msk.f32.mxu1 %vm594_vm0, %v8662_v24  ;;  %v8602_v24 = vsel %vm2414_vm8, %v8570_v21, %v16632_v45 }
 0xaa4   : > { %v8481_v17 = vpop.permute.xlu0 %8480  ;;  %10004 = vmatmul.mubr.msk.f32.gmra.mrb[84].mxu1 %vm594_vm0, %v8663_v37  ;;  %v8479_v15 = vpop.permute.xlu1 %8478  ;;  %v8603_v37 = vsel %vm2414_vm8, %v8571_v51, %v16630_v32 }
 0xaa5   : > { %v8633_v40 = vsel %vm2447_vm9, %v8601_v58, %v8481_v17  ;;  %v8632_v38 = vsel %vm2447_vm9, %v8600_v59, %v8479_v15  ;;  %v17807_v17 = vld [vmem:[#allocation76_spill] sm:$0xff]  ;;  %v17808_v59 = vld [vmem:[#allocation34_spill] sm:$0xff] }
 0xaa6   : > { %v8665_v8 = vsel %vm2480_vm10, %v8633_v40, %v17801_v4  ;;  %v8664_v43 = vsel %vm2480_vm10, %v8632_v38, %v17803_v61  ;;  %v8573_v32 = vsel %vm2381_vm7, %v17807_v17, %v17806_v11  ;;  %v17809_v15 = vld [vmem:[#allocation108_spill] sm:$0xff]  ;;  %v17810_v38 = vld [vmem:[#allocation77_spill] sm:$0xff]  ;;  %v17815_v11 = vld [vmem:[#allocation79_spill] sm:$0xff] }
 0xaa7   : > { %10006 = vmatprep.mubr.msk.f32.mxu1 %vm594_vm0, %v8664_v43  ;;  %v8572_v45 = vsel %vm2381_vm7, %v17810_v38, %v17809_v15 }
 0xaa8   : > { %v8485_v56 = vpop.permute.xlu0 %8484  ;;  %10007 = vmatmul.mubr.msk.f32.gmra.mrb[86].mxu1 %vm594_vm0, %v8665_v8  ;;  %v8483_v26 = vpop.permute.xlu1 %8482  ;;  %v8605_v8 = vsel %vm2414_vm8, %v8573_v32, %v16634_v48  ;;  %v8604_v51 = vsel %vm2414_vm8, %v8572_v45, %v16636_v16  ;;  %v8574_v16 = vsel %vm2381_vm7, %v17815_v11, %v16463_v27  ;;  %v17816_v45 = vld [vmem:[#allocation37_spill] sm:$0xff]  ;;  %v17817_v27 = vld [vmem:[#allocation80_spill] sm:$0xff]  ;;  %v17822_v11 = vld [vmem:[#allocation38_spill] sm:$0xff] }
 0xaa9   : > { %v8635_v14 = vsel %vm2447_vm9, %v8603_v37, %v8485_v56  ;;  %v8634_v53 = vsel %vm2447_vm9, %v8602_v24, %v8483_v26  ;;  %v17811_v37 = vld [vmem:[#allocation35_spill] sm:$0xff]  ;;  %v17812_v24 = vld [vmem:[#allocation113_spill] sm:$0xff]  ;;  %v8606_v32 = vsel %vm2414_vm8, %v8574_v16, %v16640_v30 }
 0xaaa   : > { %v8667_v58 = vsel %vm2480_vm10, %v8635_v14, %v17805_v20  ;;  %v8666_v40 = vsel %vm2480_vm10, %v8634_v53, %v17808_v59  ;;  %v17813_v14 = vld [vmem:[#allocation78_spill] sm:$0xff]  ;;  %v17814_v26 = vld [vmem:[#allocation73_spill] sm:$0xff] }
 0xaab   : > { %10009 = vmatprep.mubr.msk.f32.mxu1 %vm594_vm0, %v8666_v40  ;;  %v8575_v48 = vsel %vm2381_vm7, %v17813_v14, %v17812_v24 }
 0xaac   : > { %v8489_v36 = vpop.permute.xlu0 %8488  ;;  %10010 = vmatmul.mubr.msk.f32.gmra.mrb[88].mxu1 %vm594_vm0, %v8667_v58  ;;  %v8487_v10 = vpop.permute.xlu1 %8486  ;;  %v8607_v58 = vsel %vm2414_vm8, %v8575_v48, %v16638_v19  ;;  %v8577_v19 = vsel %vm2381_vm7, %v17817_v27, %v16479_v60  ;;  %v17820_v48 = vld [vmem:[#allocation39_spill] sm:$0xff] }
 0xaad   : > { %v8637_v43 = vsel %vm2447_vm9, %v8605_v8, %v8489_v36  ;;  %v8636_v21 = vsel %vm2447_vm9, %v8604_v51, %v8487_v10  ;;  %v17818_v36 = vld [vmem:[#allocation36_spill] sm:$0xff]  ;;  %v8609_v10 = vsel %vm2414_vm8, %v8577_v19, %v16642_v49 }
 0xaae   : > { %v8669_v56 = vsel %vm2480_vm10, %v8637_v43, %v17811_v37  ;;  %v8668_v53 = vsel %vm2480_vm10, %v8636_v21, %v17814_v26  ;;  %v17819_v43 = vld [vmem:[#allocation83_spill] sm:$0xff]  ;;  %v17826_v19 = vld [vmem:[#allocation40_spill] sm:$0xff] }
 0xaaf   : > { %10012 = vmatprep.mubr.msk.f32.mxu1 %vm594_vm0, %v8668_v53  ;;  %v8576_v30 = vsel %vm2381_vm7, %v17819_v43, %v16482_v41  ;;  %v17821_v41 = vld [vmem:[#allocation84_spill] sm:$0xff]  ;;  %v17827_v43 = vld [vmem:[#allocation89_spill] sm:$0xff] }
 0xab0   : > { %v8493_v17 = vpop.permute.xlu0 %8492  ;;  %10013 = vmatmul.mubr.msk.f32.gmra.mrb[90].mxu1 %vm594_vm0, %v8669_v56  ;;  %v8491_v15 = vpop.permute.xlu1 %8490  ;;  %v8608_v56 = vsel %vm2414_vm8, %v8576_v30, %v16644_v3  ;;  %v8579_v49 = vsel %vm2381_vm7, %v17821_v41, %v16497_v34 }
 0xab1   : > { %v8639_v40 = vsel %vm2447_vm9, %v8607_v58, %v8493_v17  ;;  %v8638_v38 = vsel %vm2447_vm9, %v8606_v32, %v8491_v15  ;;  %v17823_v58 = vld [vmem:[#allocation87_spill] sm:$0xff]  ;;  %v8611_v17 = vsel %vm2414_vm8, %v8579_v49, %v16646_v13  ;;  %v17831_v49 = vld [vmem:[#allocation93_spill] sm:$0xff] }
 0xab2   : > { %v8671_v8 = vsel %vm2480_vm10, %v8639_v40, %v17816_v45  ;;  %v8670_v51 = vsel %vm2480_vm10, %v8638_v38, %v17818_v36  ;;  %v8578_v3 = vsel %vm2381_vm7, %v17823_v58, %v16500_v33  ;;  %v17825_v33 = vld [vmem:[#allocation88_spill] sm:$0xff] }
 0xab3   : > { %10015 = vmatprep.mubr.msk.f32.mxu1 %vm594_vm0, %v8670_v51  ;;  %v8610_v40 = vsel %vm2414_vm8, %v8578_v3, %v16648_v44  ;;  %v8581_v13 = vsel %vm2381_vm7, %v17825_v33, %v16514_v55  ;;  %v8580_v44 = vsel %vm2381_vm7, %v17827_v43, %v16520_v5  ;;  %v17829_v5 = vld [vmem:[#allocation92_spill] sm:$0xff] }
 0xab4   : > { %v8497_v21 = vpop.permute.xlu0 %8496  ;;  %10016 = vmatmul.mubr.msk.f32.gmra.mrb[92].mxu1 %vm594_vm0, %v8671_v8  ;;  %v8495_v60 = vpop.permute.xlu1 %8494  ;;  %v17824_v8 = vld [vmem:[#allocation41_spill] sm:$0xff]  ;;  %v8613_v30 = vsel %vm2414_vm8, %v8581_v13, %v16650_v57  ;;  %v8583_v57 = vsel %vm2381_vm7, %v17829_v5, %v16535_v22 }
 0xab5   : > { %v8641_v24 = vsel %vm2447_vm9, %v8609_v10, %v8497_v21  ;;  %v8640_v14 = vsel %vm2447_vm9, %v8608_v56, %v8495_v60  ;;  %v8612_v21 = vsel %vm2414_vm8, %v8580_v44, %v16652_v23  ;;  %v17828_v60 = vld [vmem:[#allocation43_spill] sm:$0xff]  ;;  %v8582_v23 = vsel %vm2381_vm7, %v17831_v49, %v16539_v9  ;;  %v17833_v9 = vld [vmem:[#allocation96_spill] sm:$0xff]  ;;  %v17840_v49 = vld [vmem:[#allocation49_spill] sm:$0xff] }
 0xab6   : > { %v8673_v53 = vsel %vm2480_vm10, %v8641_v24, %v17820_v48  ;;  %v8672_v16 = vsel %vm2480_vm10, %v8640_v14, %v17822_v11  ;;  %v8614_v3 = vsel %vm2414_vm8, %v8582_v23, %v16656_v35 }
 0xab7   : > { %10018 = vmatprep.mubr.msk.f32.mxu1 %vm594_vm0, %v8672_v16  ;;  %v8615_v16 = vsel %vm2414_vm8, %v8583_v57, %v16654_v62  ;;  %v8585_v62 = vsel %vm2381_vm7, %v17833_v9, %v16557_v54 }
 0xab8   : > { %v8501_v32 = vpop.permute.xlu0 %8500  ;;  %10019 = vmatmul.mubr.msk.f32.gmra.mrb[94].mxu1 %vm594_vm0, %v8673_v53  ;;  %v8499_v34 = vpop.permute.xlu1 %8498  ;;  %v17830_v53 = vld [vmem:[#allocation42_spill] sm:$0xff]  ;;  %v8617_v33 = vsel %vm2414_vm8, %v8585_v62, %v16658_v39  ;;  %v17844_v62 = vld [vmem:[#allocation63_spill] sm:$0xff] }
 0xab9   : > { %v8643_v15 = vsel %vm2447_vm9, %v8611_v17, %v8501_v32  ;;  %v8642_v38 = vsel %vm2447_vm9, %v8610_v40, %v8499_v34  ;;  %v17832_v40 = vld [vmem:[#allocation46_spill] sm:$0xff]  ;;  %v17834_v34 = vld [vmem:[#allocation44_spill] sm:$0xff] }
 0xaba   : > { %v8675_v27 = vsel %vm2480_vm10, %v8643_v15, %v17824_v8  ;;  %v8674_v51 = vsel %vm2480_vm10, %v8642_v38, %v17826_v19 }
 0xabb   : > { %10021 = vmatprep.mubr.msk.f32.mxu1 %vm594_vm0, %v8674_v51 }
 0xabc   : > { %v8505_v10 = vpop.permute.xlu0 %8504  ;;  %10022 = vmatmul.mubr.msk.f32.gmra.mrb[96].mxu1 %vm594_vm0, %v8675_v27  ;;  %v8503_v55 = vpop.permute.xlu1 %8502  ;;  %v17835_v27 = vld [vmem:[#allocation97_spill] sm:$0xff] }
 0xabd   : > { %v8645_v56 = vsel %vm2447_vm9, %v8613_v30, %v8505_v10  ;;  %v8644_v24 = vsel %vm2447_vm9, %v8612_v21, %v8503_v55  ;;  %v8584_v35 = vsel %vm2381_vm7, %v17835_v27, %v16561_v50  ;;  %v17836_v30 = vld [vmem:[#allocation47_spill] sm:$0xff]  ;;  %v17837_v50 = vld [vmem:[#allocation100_spill] sm:$0xff]  ;;  %v17838_v21 = vld [vmem:[#allocation45_spill] sm:$0xff] }
 0xabe   : > { %v8677_v14 = vsel %vm2480_vm10, %v8645_v56, %v17828_v60  ;;  %v8676_v41 = vsel %vm2480_vm10, %v8644_v24, %v17830_v53  ;;  %v8616_v51 = vsel %vm2414_vm8, %v8584_v35, %v16660_v47  ;;  %v8587_v39 = vsel %vm2381_vm7, %v17837_v50, %v16569_v2  ;;  %v17839_v55 = vld [vmem:[#allocation101_spill] sm:$0xff]  ;;  %v17846_v27 = vld [vmem:[#allocation50_spill] sm:$0xff] }
 0xabf   : > { %10024 = vmatprep.mubr.msk.f32.mxu1 %vm594_vm0, %v8676_v41  ;;  %v8586_v47 = vsel %vm2381_vm7, %v17839_v55, %v16574_v1  ;;  %v8619_v24 = vsel %vm2414_vm8, %v8587_v39, %v16662_v25  ;;  %v17841_v1 = vld [vmem:[#allocation104_spill] sm:$0xff] }
 0xac0   : > { %v8509_v58 = vpop.permute.xlu0 %8508  ;;  %10025 = vmatmul.mubr.msk.f32.gmra.mrb[98].mxu1 %vm594_vm0, %v8677_v14  ;;  %v8507_v22 = vpop.permute.xlu1 %8506  ;;  %v8618_v5 = vsel %vm2414_vm8, %v8586_v47, %v16664_v29  ;;  %v8589_v25 = vsel %vm2381_vm7, %v17841_v1, %v16581_v28  ;;  %v17852_v47 = vld [vmem:[#allocation68_spill] sm:$0xff]  ;;  %v17857_v1 = vld [vmem:[#allocation23_spill] sm:$0xff] }
 0xac1   : > { %v8647_v17 = vsel %vm2447_vm9, %v8615_v16, %v8509_v58  ;;  %v8646_v32 = vsel %vm2447_vm9, %v8614_v3, %v8507_v22  ;;  %v17842_v16 = vld [vmem:[#allocation48_spill] sm:$0xff]  ;;  %v17843_v3 = vld [vmem:[#allocation105_spill] sm:$0xff] }
 0xac2   : > { %v8679_v15 = vsel %vm2480_vm10, %v8647_v17, %v17832_v40  ;;  %v8678_v38 = vsel %vm2480_vm10, %v8646_v32, %v17834_v34  ;;  %v8588_v29 = vsel %vm2381_vm7, %v17843_v3, %v16587_v7  ;;  %v8621_v17 = vsel %vm2414_vm8, %v8589_v25, %v16666_v52  ;;  %v17845_v7 = vld [vmem:[#allocation109_spill] sm:$0xff]  ;;  %v17858_v3 = vld [vmem:[#allocation56_spill] sm:$0xff] }
 0xac3   : > { %10027 = vmatprep.mubr.msk.f32.mxu1 %vm594_vm0, %v8678_v38  ;;  %v8620_v32 = vsel %vm2414_vm8, %v8588_v29, %v16668_v0  ;;  %v8591_v52 = vsel %vm2381_vm7, %v17845_v7, %v16594_v42  ;;  %v9148_v7 = vld [vmem:[%s17861_s18] sm:$0xff] }
 0xac4   : > { %v8513_v13 = vpop.permute.xlu0 %8512  ;;  %10028 = vmatmul.mubr.msk.f32.gmra.mrb[100].mxu1 %vm594_vm0, %v8679_v15  ;;  %v8511_v54 = vpop.permute.xlu1 %8510 }
 0xac5   : > { %v8649_v43 = vsel %vm2447_vm9, %v8617_v33, %v8513_v13  ;;  %v8648_v44 = vsel %vm2447_vm9, %v8616_v51, %v8511_v54  ;;  %v17847_v33 = vld [vmem:[#allocation69_spill] sm:$0xff]  ;;  %v17848_v13 = vld [vmem:[#allocation110_spill] sm:$0xff]  ;;  %v17849_v51 = vld [vmem:[#allocation59_spill] sm:$0xff] }
 0xac6   : > { %v8681_v10 = vsel %vm2480_vm10, %v8649_v43, %v17836_v30  ;;  %v8680_v56 = vsel %vm2480_vm10, %v8648_v44, %v17838_v21  ;;  %v8590_v0 = vsel %vm2381_vm7, %v17848_v13, %v17847_v33  ;;  %v8623_v43 = vsel %vm2414_vm8, %v8591_v52, %v17849_v51  ;;  %v17850_v44 = vld [vmem:[#allocation51_spill] sm:$0xff]  ;;  %v9149_v52 = vld [vmem:[%s17861_s18 + $0x8] sm:$0xff]  ;;  %v16969_v33 = vld [vmem:[%s17862_s29] ss:$0 sm:$0xff]  ;;  %s11529_s29 = smov [#allocation10]  }
 0xac7   : > { %10030 = vmatprep.mubr.msk.f32.mxu1 %vm594_vm0, %v8680_v56  ;;  %v17851_v56 = vld [vmem:[#allocation21_spill] sm:$0xff]  ;;  %s11436_s1 = sshll.u32 %s11529_s29, 4  ;;  %s11437_s1 = int_to_ptr.vmem [resolvable:$false] %s11436_s1 }
 0xac8   : > { %v8517_v14 = vpop.permute.xlu0 %8516  ;;  %10031 = vmatmul.mubr.msk.f32.gmra.mrb[102].mxu1 %vm594_vm0, %v8681_v10  ;;  %v8515_v2 = vpop.permute.xlu1 %8514  ;;  %v8622_v10 = vsel %vm2414_vm8, %v8590_v0, %v17850_v44  ;;  %s11438_s14 = scalar_lea.vmem %s11437_s1, 8192  ;;  %p11439_p4 = scmp.lt.s32.totalorder %s17144_s0, %s11437_s1 }
 0xac9   : > { %v8651_v57 = vsel %vm2447_vm9, %v8619_v24, %v8517_v14  ;;  %v8650_v41 = vsel %vm2447_vm9, %v8618_v5, %v8515_v2  ;;  %v17853_v24 = vld [vmem:[#allocation114_spill] sm:$0xff]  ;;  %v17855_v2 = vld [vmem:[#allocation60_spill] sm:$0xff]  ;;  %p11440_p12 = scmp.lt.s32.totalorder %s11438_s14, %s11432_s26 }
 0xaca   : > { %v8683_v23 = vsel %vm2480_vm10, %v8651_v57, %v17840_v49  ;;  %v8682_v58 = vsel %vm2480_vm10, %v8650_v41, %v17842_v16  ;;  %v8593_v14 = vsel %vm2381_vm7, %v17853_v24, %v17852_v47  ;;  %v17854_v5 = vld [vmem:[#allocation22_spill] sm:$0xff]  ;;  %v17856_v41 = vld [vmem:[#allocation115_spill] sm:$0xff] }
 0xacb   : > { %10033 = vmatprep.mubr.msk.f32.mxu1 %vm594_vm0, %v8682_v58  ;;  %v8625_v25 = vsel %vm2414_vm8, %v8593_v14, %v17857_v1  ;;  %p11441_p0 = por %p11440_p12, %p11439_p4 }
 0xacc   : > { %v8521_v22 = vpop.permute.xlu0 %8520  ;;  %10034 = vmatmul.mubr.msk.f32.gmra.mrb[104].mxu1 %vm594_vm0, %v8683_v23  ;;  %v8519_v28 = vpop.permute.xlu1 %8518  ;;  %v8592_v23 = vsel %vm2381_vm7, %v17856_v41, %v17855_v2 }
 0xacd   : > { %v8653_v15 = vsel %vm2447_vm9, %v8621_v17, %v8521_v22  ;;  %v8652_v9 = vsel %vm2447_vm9, %v8620_v32, %v8519_v28  ;;  %v8624_v29 = vsel %vm2414_vm8, %v8592_v23, %v17858_v3  ;;  %p11442_p7 = pnand %p11441_p0, %p11435_p10 }
 0xace   : > { %v8685_v38 = vsel %vm2480_vm10, %v8653_v15, %v17844_v62  ;;  %v8684_v35 = vsel %vm2480_vm10, %v8652_v9, %v17846_v27  ;;  %v17859_v15 = vld [vmem:[#allocation65_spill] sm:$0xff]  ;;  %v17860_v9 = vld [vmem:[#allocation64_spill] sm:$0xff] }
 0xacf   : > { %10036 = vmatprep.mubr.msk.f32.mxu1 %vm594_vm0, %v8684_v35  ;;  %v10162_v35 = vpack.c.bf16 %v9149_v52, %v9148_v7 }
 0xad0   : > { %v8525_v54 = vpop.permute.xlu0 %8524  ;;  %10037 = vmatmul.mubr.msk.f32.gmra.mrb[106].mxu1 %vm594_vm0, %v8685_v38  ;;  %v8523_v42 = vpop.permute.xlu1 %8522 }
 0xad1   : > { %v8655_v50 = vsel %vm2447_vm9, %v8623_v43, %v8525_v54  ;;  %v8654_v39 = vsel %vm2447_vm9, %v8622_v10, %v8523_v42  ;;  %10163 = vmatprep.subr.bf16.mxu0 %v10162_v35 }
 0xad2   : > { %v8687_v55 = vsel %vm2480_vm10, %v8655_v50, %v17851_v56  ;;  %v8686_v57 = vsel %vm2480_vm10, %v8654_v39, %v17854_v5  ;;  %10165 = vmatpush3.bf16.msra.mxu0 %v10162_v35 }
 0xad3   : > { %10039 = vmatprep.mubr.msk.f32.mxu1 %vm594_vm0, %v8686_v57 }
 0xad4   : > { %v8529_v58 = vpop.permute.xlu0 %8528  ;;  %10040 = vmatmul.mubr.msk.f32.gmra.mrb[108].mxu1 %vm594_vm0, %v8687_v55  ;;  %v8527_v22 = vpop.permute.xlu1 %8526 }
 0xad5   : > { %v8657_v17 = vsel %vm2447_vm9, %v8625_v25, %v8529_v58  ;;  %v8656_v32 = vsel %vm2447_vm9, %v8624_v29, %v8527_v22 }
 0xad6   : > { %v8689_v28 = vsel %vm2480_vm10, %v8657_v17, %v17859_v15  ;;  %v8688_v38 = vsel %vm2480_vm10, %v8656_v32, %v17860_v9 }
 0xad7   : > { %10042 = vmatprep.mubr.msk.f32.mxu1 %vm594_vm0, %v8688_v38 }
 0xad8   : > { %10043 = vmatmul.mubr.msk.f32.gmra.mrb[110].mxu1 %vm594_vm0, %v8689_v28 }
 0xb6f   : > { %v9999_v13 = vpop.f32.mrb[80].mxu1 }
 0xb70   : > { %v8867_v0 = vadd.f32 %v9999_v13, %v16969_v33  ;;  %v8861_v51 = vpop.f32.mrb[81].mxu1 }
 0xb71   : > { %v8862_v43 = vadd.f32 %v16969_v33, %v8861_v51 }
 0xb72   : > { %vm9021_vm7 = vcmp.ge.f32.partialorder %v8867_v0, 0.0  ;;  %v9053_v54 = vmul.f32 0.1, %v8867_v0 }
 0xb73   : > { %vm9020_vm8 = vcmp.ge.f32.partialorder %v8862_v43, 0.0  ;;  %v9052_v44 = vmul.f32 0.1, %v8862_v43  ;;  %v10002_v10 = vpop.f32.mrb[82].mxu1 }
 0xb74   : > { %v9085_v50 = vsel %vm9021_vm7, %v8867_v0, %v9053_v54  ;;  %v8877_v42 = vadd.f32 %v10002_v10, %v16969_v33  ;;  %v8871_v39 = vpop.f32.mrb[83].mxu1 }
 0xb75   : > { %v9084_v55 = vsel %vm9020_vm8, %v8862_v43, %v9052_v44  ;;  %v8872_v47 = vadd.f32 %v16969_v33, %v8871_v39  ;;  %v9117_v57 = vadd.f32 %v9085_v50, %v17786_v6 }
 0xb76   : > { %v9116_v24 = vadd.f32 %v9084_v55, %v17788_v63  ;;  %vm9023_vm9 = vcmp.ge.f32.partialorder %v8877_v42, 0.0  ;;  %v9055_v14 = vmul.f32 0.1, %v8877_v42 }
 0xb77   : > { %vm9022_vm10 = vcmp.ge.f32.partialorder %v8872_v47, 0.0  ;;  %v9054_v2 = vmul.f32 0.1, %v8872_v47  ;;  %v10005_v41 = vpop.f32.mrb[84].mxu1 }
 0xb78   : > { %v9087_v23 = vsel %vm9023_vm9, %v8877_v42, %v9055_v14  ;;  %v8887_v1 = vadd.f32 %v10005_v41, %v16969_v33  ;;  %v8881_v25 = vpop.f32.mrb[85].mxu1  ;;  %10049 = vmatprep.mubr.msk.f32.mxu0 %vm594_vm0, %v9116_v24 }
 0xb79   : > { %v9086_v58 = vsel %vm9022_vm10, %v8872_v47, %v9054_v2  ;;  %v8882_v3 = vadd.f32 %v16969_v33, %v8881_v25  ;;  %10050 = vmatmul.mubr.msk.f32.vlgmr.msra.gmra.mrb[84].mxu0 %vm594_vm0, %v9117_v57  ;;  %v9119_v6 = vadd.f32 %v9087_v23, %v17790_v18 }
 0xb7a   : > { %v9118_v63 = vadd.f32 %v9086_v58, %v17792_v46  ;;  %vm9025_vm11 = vcmp.ge.f32.partialorder %v8887_v1, 0.0  ;;  %v9057_v29 = vmul.f32 0.1, %v8887_v1 }
 0xb7b   : > { %vm9024_vm6 = vcmp.ge.f32.partialorder %v8882_v3, 0.0  ;;  %v9056_v17 = vmul.f32 0.1, %v8882_v3  ;;  %v10008_v22 = vpop.f32.mrb[86].mxu1 }
 0xb7c   : > { %v9089_v32 = vsel %vm9025_vm11, %v8887_v1, %v9057_v29  ;;  %v8897_v28 = vadd.f32 %v10008_v22, %v16969_v33  ;;  %v8891_v38 = vpop.f32.mrb[87].mxu1  ;;  %10052 = vmatprep.mubr.msk.f32.mxu0 %vm594_vm0, %v9118_v63 }
 0xb7d   : > { %v9088_v7 = vsel %vm9024_vm6, %v8882_v3, %v9056_v17  ;;  %v8892_v52 = vadd.f32 %v16969_v33, %v8891_v38  ;;  %10053 = vmatmul.mubr.msk.f32.gmra.mrb[86].mxu0 %vm594_vm0, %v9119_v6  ;;  %v9121_v18 = vadd.f32 %v9089_v32, %v17795_v31 }
 0xb7e   : > { %v9120_v46 = vadd.f32 %v9088_v7, %v17798_v12  ;;  %vm9027_vm12 = vcmp.ge.f32.partialorder %v8897_v28, 0.0  ;;  %v9059_v35 = vmul.f32 0.1, %v8897_v28 }
 0xb7f   : > { %vm9026_vm13 = vcmp.ge.f32.partialorder %v8892_v52, 0.0  ;;  %v9058_v13 = vmul.f32 0.1, %v8892_v52  ;;  %v10011_v0 = vpop.f32.mrb[88].mxu1 }
 0xb80   : > { %v9091_v51 = vsel %vm9027_vm12, %v8897_v28, %v9059_v35  ;;  %v8907_v43 = vadd.f32 %v10011_v0, %v16969_v33  ;;  %v8901_v54 = vpop.f32.mrb[89].mxu1  ;;  %10055 = vmatprep.mubr.msk.f32.mxu0 %vm594_vm0, %v9120_v46 }
 0xb81   : > { %v9090_v44 = vsel %vm9026_vm13, %v8892_v52, %v9058_v13  ;;  %v8902_v10 = vadd.f32 %v16969_v33, %v8901_v54  ;;  %10056 = vmatmul.mubr.msk.f32.gmra.mrb[88].mxu0 %vm594_vm0, %v9121_v18  ;;  %v9123_v31 = vadd.f32 %v9091_v51, %v17801_v4 }
 0xb82   : > { %v9122_v12 = vadd.f32 %v9090_v44, %v17803_v61  ;;  %vm9029_vm14 = vcmp.ge.f32.partialorder %v8907_v43, 0.0  ;;  %v9061_v50 = vmul.f32 0.1, %v8907_v43 }
 0xb83   : > { %vm9028_vm15 = vcmp.ge.f32.partialorder %v8902_v10, 0.0  ;;  %v9060_v42 = vmul.f32 0.1, %v8902_v10  ;;  %v10014_v39 = vpop.f32.mrb[90].mxu1 }
 0xb84   : > { %v9093_v55 = vsel %vm9029_vm14, %v8907_v43, %v9061_v50  ;;  %v8917_v47 = vadd.f32 %v10014_v39, %v16969_v33  ;;  %v8911_v24 = vpop.f32.mrb[91].mxu1  ;;  %10058 = vmatprep.mubr.msk.f32.mxu0 %vm594_vm0, %v9122_v12 }
 0xb85   : > { %v9092_v14 = vsel %vm9028_vm15, %v8902_v10, %v9060_v42  ;;  %v8912_v57 = vadd.f32 %v16969_v33, %v8911_v24  ;;  %10059 = vmatmul.mubr.msk.f32.gmra.mrb[90].mxu0 %vm594_vm0, %v9123_v31  ;;  %v9125_v4 = vadd.f32 %v9093_v55, %v17805_v20 }
 0xb86   : > { %v9124_v61 = vadd.f32 %v9092_v14, %v17808_v59  ;;  %vm9031_vm1 = vcmp.ge.f32.partialorder %v8917_v47, 0.0  ;;  %v9063_v2 = vmul.f32 0.1, %v8917_v47 }
 0xb87   : > { %vm9030_vm2 = vcmp.ge.f32.partialorder %v8912_v57, 0.0  ;;  %v9062_v41 = vmul.f32 0.1, %v8912_v57  ;;  %v10017_v23 = vpop.f32.mrb[92].mxu1 }
 0xb88   : > { %v9095_v1 = vsel %vm9031_vm1, %v8917_v47, %v9063_v2  ;;  %v8927_v25 = vadd.f32 %v10017_v23, %v16969_v33  ;;  %v8921_v58 = vpop.f32.mrb[93].mxu1  ;;  %10061 = vmatprep.mubr.msk.f32.mxu0 %vm594_vm0, %v9124_v61 }
 0xb89   : > { %v9094_v3 = vsel %vm9030_vm2, %v8912_v57, %v9062_v41  ;;  %v8922_v63 = vadd.f32 %v16969_v33, %v8921_v58  ;;  %10062 = vmatmul.mubr.msk.f32.gmra.mrb[92].mxu0 %vm594_vm0, %v9125_v4  ;;  %v9127_v20 = vadd.f32 %v9095_v1, %v17811_v37 }
 0xb8a   : > { %v9126_v59 = vadd.f32 %v9094_v3, %v17814_v26  ;;  %vm9033_vm3 = vcmp.ge.f32.partialorder %v8927_v25, 0.0  ;;  %v9065_v29 = vmul.f32 0.1, %v8927_v25 }
 0xb8b   : > { %vm9032_vm4 = vcmp.ge.f32.partialorder %v8922_v63, 0.0  ;;  %v9064_v6 = vmul.f32 0.1, %v8922_v63  ;;  %v10020_v17 = vpop.f32.mrb[94].mxu1 }
 0xb8c   : > { %v9097_v22 = vsel %vm9033_vm3, %v8927_v25, %v9065_v29  ;;  %v8937_v32 = vadd.f32 %v10020_v17, %v16969_v33  ;;  %v8931_v28 = vpop.f32.mrb[95].mxu1  ;;  %10064 = vmatprep.mubr.msk.f32.mxu0 %vm594_vm0, %v9126_v59 }
 0xb8d   : > { %v9096_v38 = vsel %vm9032_vm4, %v8922_v63, %v9064_v6  ;;  %v8932_v7 = vadd.f32 %v16969_v33, %v8931_v28  ;;  %10065 = vmatmul.mubr.msk.f32.gmra.mrb[94].mxu0 %vm594_vm0, %v9127_v20  ;;  %v9129_v37 = vadd.f32 %v9097_v22, %v17816_v45 }
 0xb8e   : > { %v9128_v26 = vadd.f32 %v9096_v38, %v17818_v36  ;;  %vm9035_vm5 = vcmp.ge.f32.partialorder %v8937_v32, 0.0  ;;  %v9067_v52 = vmul.f32 0.1, %v8937_v32 }
 0xb8f   : > { %vm9034_vm7 = vcmp.ge.f32.partialorder %v8932_v7, 0.0  ;;  %v9066_v46 = vmul.f32 0.1, %v8932_v7  ;;  %v10023_v35 = vpop.f32.mrb[96].mxu1 }
 0xb90   : > { %v9099_v18 = vsel %vm9035_vm5, %v8937_v32, %v9067_v52  ;;  %v8947_v13 = vadd.f32 %v10023_v35, %v16969_v33  ;;  %v8941_v0 = vpop.f32.mrb[97].mxu1  ;;  %10067 = vmatprep.mubr.msk.f32.mxu0 %vm594_vm0, %v9128_v26 }
 0xb91   : > { %v9098_v51 = vsel %vm9034_vm7, %v8932_v7, %v9066_v46  ;;  %v8942_v43 = vadd.f32 %v16969_v33, %v8941_v0  ;;  %10068 = vmatmul.mubr.msk.f32.gmra.mrb[96].mxu0 %vm594_vm0, %v9129_v37  ;;  %v9131_v45 = vadd.f32 %v9099_v18, %v17820_v48 }
 0xb92   : > { %v9130_v36 = vadd.f32 %v9098_v51, %v17822_v11  ;;  %vm9037_vm8 = vcmp.ge.f32.partialorder %v8947_v13, 0.0  ;;  %v9069_v54 = vmul.f32 0.1, %v8947_v13 }
 0xb93   : > { %vm9036_vm9 = vcmp.ge.f32.partialorder %v8942_v43, 0.0  ;;  %v9068_v44 = vmul.f32 0.1, %v8942_v43  ;;  %v10026_v10 = vpop.f32.mrb[98].mxu1 }
 0xb94   : > { %v9101_v12 = vsel %vm9037_vm8, %v8947_v13, %v9069_v54  ;;  %v8957_v50 = vadd.f32 %v10026_v10, %v16969_v33  ;;  %v8951_v31 = vpop.f32.mrb[99].mxu1  ;;  %10070 = vmatprep.mubr.msk.f32.mxu0 %vm594_vm0, %v9130_v36 }
 0xb95   : > { %v9100_v42 = vsel %vm9036_vm9, %v8942_v43, %v9068_v44  ;;  %v8952_v39 = vadd.f32 %v16969_v33, %v8951_v31  ;;  %10071 = vmatmul.mubr.msk.f32.gmra.mrb[98].mxu0 %vm594_vm0, %v9131_v45  ;;  %v9133_v48 = vadd.f32 %v9101_v12, %v17824_v8 }
 0xb96   : > { %v9132_v11 = vadd.f32 %v9100_v42, %v17826_v19  ;;  %vm9039_vm10 = vcmp.ge.f32.partialorder %v8957_v50, 0.0  ;;  %v9071_v55 = vmul.f32 0.1, %v8957_v50 }
 0xb97   : > { %vm9038_vm11 = vcmp.ge.f32.partialorder %v8952_v39, 0.0  ;;  %v9070_v47 = vmul.f32 0.1, %v8952_v39  ;;  %v10029_v24 = vpop.f32.mrb[100].mxu1 }
 0xb98   : > { %v9103_v14 = vsel %vm9039_vm10, %v8957_v50, %v9071_v55  ;;  %v8967_v57 = vadd.f32 %v10029_v24, %v16969_v33  ;;  %v8961_v61 = vpop.f32.mrb[101].mxu1  ;;  %10073 = vmatprep.mubr.msk.f32.mxu0 %vm594_vm0, %v9132_v11 }
 0xb99   : > { %v9102_v2 = vsel %vm9038_vm11, %v8952_v39, %v9070_v47  ;;  %v8962_v4 = vadd.f32 %v16969_v33, %v8961_v61  ;;  %10074 = vmatmul.mubr.msk.f32.gmra.mrb[100].mxu0 %vm594_vm0, %v9133_v48  ;;  %v9135_v8 = vadd.f32 %v9103_v14, %v17828_v60 }
 0xb9a   : > { %v9134_v19 = vadd.f32 %v9102_v2, %v17830_v53  ;;  %vm9041_vm6 = vcmp.ge.f32.partialorder %v8967_v57, 0.0  ;;  %v9073_v41 = vmul.f32 0.1, %v8967_v57 }
 0xb9b   : > { %vm9040_vm12 = vcmp.ge.f32.partialorder %v8962_v4, 0.0  ;;  %v9072_v23 = vmul.f32 0.1, %v8962_v4  ;;  %v10032_v1 = vpop.f32.mrb[102].mxu1 }
 0xb9c   : > { %v9105_v25 = vsel %vm9041_vm6, %v8967_v57, %v9073_v41  ;;  %v8977_v58 = vadd.f32 %v10032_v1, %v16969_v33  ;;  %v8971_v3 = vpop.f32.mrb[103].mxu1  ;;  %10076 = vmatprep.mubr.msk.f32.mxu0 %vm594_vm0, %v9134_v19 }
 0xb9d   : > { %v9104_v63 = vsel %vm9040_vm12, %v8962_v4, %v9072_v23  ;;  %v8972_v59 = vadd.f32 %v16969_v33, %v8971_v3  ;;  %10077 = vmatmul.mubr.msk.f32.gmra.mrb[102].mxu0 %vm594_vm0, %v9135_v8  ;;  %v9137_v60 = vadd.f32 %v9105_v25, %v17832_v40 }
 0xb9e   : > { %v9136_v53 = vadd.f32 %v9104_v63, %v17834_v34  ;;  %vm9043_vm13 = vcmp.ge.f32.partialorder %v8977_v58, 0.0  ;;  %v9075_v29 = vmul.f32 0.1, %v8977_v58 }
 0xb9f   : > { %vm9042_vm14 = vcmp.ge.f32.partialorder %v8972_v59, 0.0  ;;  %v9074_v20 = vmul.f32 0.1, %v8972_v59  ;;  %v10035_v6 = vpop.f32.mrb[104].mxu1 }
 0xba0   : > { %v9107_v17 = vsel %vm9043_vm13, %v8977_v58, %v9075_v29  ;;  %v8987_v22 = vadd.f32 %v10035_v6, %v16969_v33  ;;  %v8981_v32 = vpop.f32.mrb[105].mxu1  ;;  %10079 = vmatprep.mubr.msk.f32.mxu0 %vm594_vm0, %v9136_v53 }
 0xba1   : > { %v9106_v28 = vsel %vm9042_vm14, %v8972_v59, %v9074_v20  ;;  %v8982_v38 = vadd.f32 %v16969_v33, %v8981_v32  ;;  %10080 = vmatmul.mubr.msk.f32.gmra.mrb[104].mxu0 %vm594_vm0, %v9137_v60  ;;  %v9139_v40 = vadd.f32 %v9107_v17, %v17836_v30 }
 0xba2   : > { %v9138_v34 = vadd.f32 %v9106_v28, %v17838_v21  ;;  %vm9045_vm15 = vcmp.ge.f32.partialorder %v8987_v22, 0.0  ;;  %v9077_v7 = vmul.f32 0.1, %v8987_v22 }
 0xba3   : > { %vm9044_vm1 = vcmp.ge.f32.partialorder %v8982_v38, 0.0  ;;  %v9076_v26 = vmul.f32 0.1, %v8982_v38  ;;  %v10038_v52 = vpop.f32.mrb[106].mxu1 }
 0xba4   : > { %v9109_v37 = vsel %vm9045_vm15, %v8987_v22, %v9077_v7  ;;  %v8997_v46 = vadd.f32 %v10038_v52, %v16969_v33  ;;  %v8991_v35 = vpop.f32.mrb[107].mxu1  ;;  %10082 = vmatprep.mubr.msk.f32.mxu0 %vm594_vm0, %v9138_v34 }
 0xba5   : > { %v9108_v18 = vsel %vm9044_vm1, %v8982_v38, %v9076_v26  ;;  %v8992_v13 = vadd.f32 %v16969_v33, %v8991_v35  ;;  %10083 = vmatmul.mubr.msk.f32.gmra.mrb[106].mxu0 %vm594_vm0, %v9139_v40  ;;  %v9141_v30 = vadd.f32 %v9109_v37, %v17840_v49 }
 0xba6   : > { %v9140_v21 = vadd.f32 %v9108_v18, %v17842_v16  ;;  %vm9047_vm2 = vcmp.ge.f32.partialorder %v8997_v46, 0.0  ;;  %v9079_v0 = vmul.f32 0.1, %v8997_v46 }
 0xba7   : > { %vm9046_vm3 = vcmp.ge.f32.partialorder %v8992_v13, 0.0  ;;  %v9078_v51 = vmul.f32 0.1, %v8992_v13  ;;  %v10041_v43 = vpop.f32.mrb[108].mxu1 }
 0xba8   : > { %v9111_v36 = vsel %vm9047_vm2, %v8997_v46, %v9079_v0  ;;  %v9007_v54 = vadd.f32 %v10041_v43, %v16969_v33  ;;  %v9001_v45 = vpop.f32.mrb[109].mxu1  ;;  %10085 = vmatprep.mubr.msk.f32.mxu0 %vm594_vm0, %v9140_v21 }
 0xba9   : > { %v9110_v44 = vsel %vm9046_vm3, %v8992_v13, %v9078_v51  ;;  %v9002_v10 = vadd.f32 %v16969_v33, %v9001_v45  ;;  %10086 = vmatmul.mubr.msk.f32.gmra.mrb[108].mxu0 %vm594_vm0, %v9141_v30  ;;  %v9143_v49 = vadd.f32 %v9111_v36, %v17844_v62 }
 0xbaa   : > { %v9142_v16 = vadd.f32 %v9110_v44, %v17846_v27  ;;  %vm9049_vm4 = vcmp.ge.f32.partialorder %v9007_v54, 0.0  ;;  %v9081_v12 = vmul.f32 0.1, %v9007_v54 }
 0xbab   : > { %vm9048_vm5 = vcmp.ge.f32.partialorder %v9002_v10, 0.0  ;;  %v9080_v50 = vmul.f32 0.1, %v9002_v10  ;;  %v10044_v31 = vpop.f32.mrb[110].mxu1 }
 0xbac   : > { %v9113_v42 = vsel %vm9049_vm4, %v9007_v54, %v9081_v12  ;;  %v9017_v39 = vadd.f32 %v10044_v31, %v16969_v33  ;;  %v9011_v11 = vpop.f32.mrb[111].mxu1  ;;  %10088 = vmatprep.mubr.msk.f32.mxu0 %vm594_vm0, %v9142_v16 }
 0xbad   : > { %v9112_v55 = vsel %vm9048_vm5, %v9002_v10, %v9080_v50  ;;  %v9012_v48 = vadd.f32 %v16969_v33, %v9011_v11  ;;  %10089 = vmatmul.mubr.msk.f32.gmra.mrb[110].mxu0 %vm594_vm0, %v9143_v49  ;;  %v9145_v62 = vadd.f32 %v9113_v42, %v17851_v56  ;;  %v17070_v56 = vld [vmem:[%s17863_s15] ss:$0 sm:$0xff] }
 0xbae   : > { %v9144_v27 = vadd.f32 %v9112_v55, %v17854_v5  ;;  %vm9051_vm7 = vcmp.ge.f32.partialorder %v9017_v39, 0.0  ;;  %v9083_v47 = vmul.f32 0.1, %v9017_v39 }
 0xbaf   : > { %vm9050_vm8 = vcmp.ge.f32.partialorder %v9012_v48, 0.0  ;;  %v9082_v24 = vmul.f32 0.1, %v9012_v48 }
 0xbb0   : > { %v9115_v14 = vsel %vm9051_vm7, %v9017_v39, %v9083_v47  ;;  %10091 = vmatprep.mubr.msk.f32.mxu0 %vm594_vm0, %v9144_v27 }
 0xbb1   : > { %v9114_v57 = vsel %vm9050_vm8, %v9012_v48, %v9082_v24  ;;  %10092 = vmatmul.mubr.msk.f32.gmra.mrb[112].mxu0 %vm594_vm0, %v9145_v62  ;;  %v9147_v33 = vadd.f32 %v9115_v14, %v17859_v15 }
 0xbb2   : > { %v9146_v61 = vadd.f32 %v9114_v57, %v17860_v9 }
 0xbb4   : > { %10094 = vmatprep.mubr.msk.f32.mxu0 %vm594_vm0, %v9146_v61 }
 0xbb5   : > { %10095 = vmatmul.mubr.msk.f32.gmra.mrb[114].mxu0 %vm594_vm0, %v9147_v33 }
 0xc4c   : > { %v10051_v5 = vpop.f32.mrb[84].mxu0 }
 0xc4d   : > { %v9325_v2 = vadd.f32 %v10051_v5, %v17070_v56  ;;  %v9319_v4 = vpop.f32.mrb[85].mxu0 }
 0xc4e   : > { %v9320_v19 = vadd.f32 %v17070_v56, %v9319_v4 }
 0xc4f   : > { %9479 = vst [vmem:[%s17076_s22 + $0x8] sm:$0xff] %v9325_v2 }
 0xc50   : > { %9478 = vst [vmem:[%s17076_s22] sm:$0xff] %v9320_v19  ;;  %v10054_v15 = vpop.f32.mrb[86].mxu0 }
 0xc51   : > { %v9335_v9 = vadd.f32 %v10054_v15, %v17070_v56  ;;  %v9329_v41 = vpop.f32.mrb[87].mxu0 }
 0xc52   : > { %v9330_v8 = vadd.f32 %v17070_v56, %v9329_v41 }
 0xc53   : > { %9481 = vst [vmem:[%s17076_s22 + $0x18] sm:$0xff] %v9335_v9 }
 0xc54   : > { %9480 = vst [vmem:[%s17076_s22 + $0x10] sm:$0xff] %v9330_v8  ;;  %v10057_v23 = vpop.f32.mrb[88].mxu0 }
 0xc55   : > { %v9345_v1 = vadd.f32 %v10057_v23, %v17070_v56  ;;  %v9339_v25 = vpop.f32.mrb[89].mxu0 }
 0xc56   : > { %v9340_v58 = vadd.f32 %v17070_v56, %v9339_v25 }
 0xc57   : > { %9483 = vst [vmem:[%s17076_s22 + $0x28] sm:$0xff] %v9345_v1 }
 0xc58   : > { %9482 = vst [vmem:[%s17076_s22 + $0x20] sm:$0xff] %v9340_v58  ;;  %v10060_v3 = vpop.f32.mrb[90].mxu0 }
 0xc59   : > { %v9355_v63 = vadd.f32 %v10060_v3, %v17070_v56  ;;  %v9349_v59 = vpop.f32.mrb[91].mxu0 }
 0xc5a   : > { %v9350_v53 = vadd.f32 %v17070_v56, %v9349_v59 }
 0xc5b   : > { %9485 = vst [vmem:[%s17076_s22 + $0x38] sm:$0xff] %v9355_v63 }
 0xc5c   : > { %9484 = vst [vmem:[%s17076_s22 + $0x30] sm:$0xff] %v9350_v53  ;;  %v10063_v29 = vpop.f32.mrb[92].mxu0 }
 0xc5d   : > { %v9365_v60 = vadd.f32 %v10063_v29, %v17070_v56  ;;  %v9359_v20 = vpop.f32.mrb[93].mxu0 }
 0xc5e   : > { %v9360_v6 = vadd.f32 %v17070_v56, %v9359_v20 }
 0xc5f   : > { %9487 = vst [vmem:[%s17076_s22 + $0x48] sm:$0xff] %v9365_v60 }
 0xc60   : > { %9486 = vst [vmem:[%s17076_s22 + $0x40] sm:$0xff] %v9360_v6  ;;  %v10066_v17 = vpop.f32.mrb[94].mxu0 }
 0xc61   : > { %v9375_v22 = vadd.f32 %v10066_v17, %v17070_v56  ;;  %v9369_v32 = vpop.f32.mrb[95].mxu0 }
 0xc62   : > { %v9370_v28 = vadd.f32 %v17070_v56, %v9369_v32 }
 0xc63   : > { %9489 = vst [vmem:[%s17076_s22 + $0x58] sm:$0xff] %v9375_v22 }
 0xc64   : > { %9488 = vst [vmem:[%s17076_s22 + $0x50] sm:$0xff] %v9370_v28  ;;  %v10069_v38 = vpop.f32.mrb[96].mxu0 }
 0xc65   : > { %v9385_v34 = vadd.f32 %v10069_v38, %v17070_v56  ;;  %v9379_v7 = vpop.f32.mrb[97].mxu0 }
 0xc66   : > { %v9380_v40 = vadd.f32 %v17070_v56, %v9379_v7 }
 0xc67   : > { %9491 = vst [vmem:[%s17076_s22 + $0x68] sm:$0xff] %v9385_v34 }
 0xc68   : > { %9490 = vst [vmem:[%s17076_s22 + $0x60] sm:$0xff] %v9380_v40  ;;  %v10072_v26 = vpop.f32.mrb[98].mxu0 }
 0xc69   : > { %v9395_v52 = vadd.f32 %v10072_v26, %v17070_v56  ;;  %v9389_v37 = vpop.f32.mrb[99].mxu0 }
 0xc6a   : > { %v9390_v46 = vadd.f32 %v17070_v56, %v9389_v37 }
 0xc6b   : > { %9493 = vst [vmem:[%s17076_s22 + $0x78] sm:$0xff] %v9395_v52 }
 0xc6c   : > { %9492 = vst [vmem:[%s17076_s22 + $0x70] sm:$0xff] %v9390_v46  ;;  %v10075_v35 = vpop.f32.mrb[100].mxu0 }
 0xc6d   : > { %v9405_v18 = vadd.f32 %v10075_v35, %v17070_v56  ;;  %v9399_v13 = vpop.f32.mrb[101].mxu0 }
 0xc6e   : > { %v9400_v21 = vadd.f32 %v17070_v56, %v9399_v13 }
 0xc6f   : > { %9495 = vst [vmem:[%s17076_s22 + $0x88] sm:$0xff] %v9405_v18 }
 0xc70   : > { %9494 = vst [vmem:[%s17076_s22 + $0x80] sm:$0xff] %v9400_v21  ;;  %v10078_v0 = vpop.f32.mrb[102].mxu0 }
 0xc71   : > { %v9415_v30 = vadd.f32 %v10078_v0, %v17070_v56  ;;  %v9409_v51 = vpop.f32.mrb[103].mxu0 }
 0xc72   : > { %v9410_v43 = vadd.f32 %v17070_v56, %v9409_v51 }
 0xc73   : > { %9497 = vst [vmem:[%s17076_s22 + $0x98] sm:$0xff] %v9415_v30 }
 0xc74   : > { %9496 = vst [vmem:[%s17076_s22 + $0x90] sm:$0xff] %v9410_v43  ;;  %v10081_v36 = vpop.f32.mrb[104].mxu0 }
 0xc75   : > { %v9425_v54 = vadd.f32 %v10081_v36, %v17070_v56  ;;  %v9419_v45 = vpop.f32.mrb[105].mxu0 }
 0xc76   : > { %v9420_v44 = vadd.f32 %v17070_v56, %v9419_v45 }
 0xc77   : > { %9499 = vst [vmem:[%s17076_s22 + $0xa8] sm:$0xff] %v9425_v54 }
 0xc78   : > { %9498 = vst [vmem:[%s17076_s22 + $0xa0] sm:$0xff] %v9420_v44  ;;  %v10084_v10 = vpop.f32.mrb[106].mxu0 }
 0xc79   : > { %v9435_v16 = vadd.f32 %v10084_v10, %v17070_v56  ;;  %v9429_v12 = vpop.f32.mrb[107].mxu0 }
 0xc7a   : > { %v9430_v49 = vadd.f32 %v17070_v56, %v9429_v12 }
 0xc7b   : > { %9501 = vst [vmem:[%s17076_s22 + $0xb8] sm:$0xff] %v9435_v16 }
 0xc7c   : > { %9500 = vst [vmem:[%s17076_s22 + $0xb0] sm:$0xff] %v9430_v49  ;;  %v10087_v50 = vpop.f32.mrb[108].mxu0 }
 0xc7d   : > { %v9445_v31 = vadd.f32 %v10087_v50, %v17070_v56  ;;  %v9439_v42 = vpop.f32.mrb[109].mxu0 }
 0xc7e   : > { %v9440_v39 = vadd.f32 %v17070_v56, %v9439_v42 }
 0xc7f   : > { %9503 = vst [vmem:[%s17076_s22 + $0xc8] sm:$0xff] %v9445_v31 }
 0xc80   : > { %9502 = vst [vmem:[%s17076_s22 + $0xc0] sm:$0xff] %v9440_v39  ;;  %v10090_v11 = vpop.f32.mrb[110].mxu0 }
 0xc81   : > { %v9455_v55 = vadd.f32 %v10090_v11, %v17070_v56  ;;  %v9449_v48 = vpop.f32.mrb[111].mxu0 }
 0xc82   : > { %v9450_v27 = vadd.f32 %v17070_v56, %v9449_v48 }
 0xc83   : > { %9505 = vst [vmem:[%s17076_s22 + $0xd8] sm:$0xff] %v9455_v55 }
 0xc84   : > { %9504 = vst [vmem:[%s17076_s22 + $0xd0] sm:$0xff] %v9450_v27  ;;  %v10093_v47 = vpop.f32.mrb[112].mxu0 }
 0xc85   : > { %v9465_v62 = vadd.f32 %v10093_v47, %v17070_v56  ;;  %v9459_v24 = vpop.f32.mrb[113].mxu0 }
 0xc86   : > { %v9460_v14 = vadd.f32 %v17070_v56, %v9459_v24 }
 0xc87   : > { %9507 = vst [vmem:[%s17076_s22 + $0xe8] sm:$0xff] %v9465_v62 }
 0xc88   : > { %9506 = vst [vmem:[%s17076_s22 + $0xe0] sm:$0xff] %v9460_v14  ;;  %v10096_v57 = vpop.f32.mrb[114].mxu0 }
 0xc89   : > { %v9475_v61 = vadd.f32 %v10096_v57, %v17070_v56  ;;  %v9469_v33 = vpop.f32.mrb[115].mxu0 }
 0xc8a   : > { %v9470_v5 = vadd.f32 %v17070_v56, %v9469_v33 }
 0xc8b   : > { %9509 = vst [vmem:[%s17076_s22 + $0xf8] sm:$0xff] %v9475_v61 }
 0xc8c   : > { %9508 = vst [vmem:[%s17076_s22 + $0xf0] sm:$0xff] %v9470_v5 }
 0xc8d   : > { %11445 = shalt.err (!%p11442_p7)
}
 0xc8e   : > { %s11446_s15 = scalar_lea.hbm %s17142_s30, 4096  ;;  %s11450_s12 = scalar_lea.hbm %s17866_s23, 8192 }
 0xc8f   : > { %p11447_p11 = scmp.ne.s32.totalorder %s17142_s30, %s11446_s15  ;;  %p11451_p3 = scmp.lt.u32.totalorder %s17142_s30, %s17866_s23 }
 0xc90   : > { %p11452_p9 = scmp.lt.u32.totalorder %s11450_s12, %s11446_s15  ;;  %p11454_p5 = scmp.lt.u32.totalorder %s11446_s15, %s17142_s30 }
 0xc91   : > { %p11448_p13 = pnand %p11447_p11, %p17867_p2 }
 0xc92   : > { %p11453_p1 = por %p11452_p9, %p11451_p3 }
 0xc93   : > { %p11449_p6 = pneg %p11448_p13 }
 0xc94   : > { %p11455_p8 = por %p11454_p5, %p11453_p1 }
 0xc96   : > { %p11456_p10 = pnand %p11455_p8, %p11449_p6 }
 0xc98   : > { %11459 = shalt.err (!%p11456_p10)
}
 0xc99   : > { %s11530_s26 = smov 128   ;;  %s11531_s29 = smov 8  }
 0xc9a   : > { %10178 = dma.vmem_to_hbm [thread:$0]  (%p17867_p2), %s17144_s0, 4096, %s17142_s30, %s9511_s28, %s11530_s26, %s11530_s26, %s11531_s29  }
 0xc9b PF: > { %s17868_s1 = sld [smem:[#allocation15_spill]]  ;;  %s17869_s14 = sld [smem:[#allocation20_spill]] }
 0xc9c   : > { %p17871_p12 = scmp.ge.s32.totalorder %s11506_s27, 2 }
 0xca1   : > { %s9539_s16 = sand.u32 1, %s17868_s1   ;;  %p17870_p4 = scmp.ne.s32.totalorder %s17869_s14, 0 }
 0xca2   : > { %s9540_s15 = scalar_lea.sflag [#allocation5], %s9539_s16 }
 0xca3   : > { %p10192_p0 = pnand %p17871_p12, %p17870_p4 }
 0xca5   : > { %11489 = dma.done.wait (!%p10192_p0), %s9540_s15, 4096  }
 0xca6   : > { %11491 = vsyncadd (!%p10192_p0), %s9540_s15, 4294963200  ;;  %s17872_s27 = sld [smem:[#allocation17_spill]]  ;;  %s17873_s22 = sld [smem:[#allocation16_spill]] }
 0xca7   : > { %s17874_s26 = sld [smem:[#allocation18_spill]]  ;;  %s17875_s24 = smov %s11498_s25 }
 0xcac   : > { %p32_p7 = scmp.ge.s32.totalorder %s17872_s27, 4   ;;  %s17876_s25 = smov %s17873_s22 }
 0xcae   :  { %34 = sbr.rel (!%p32_p7) target bundleno = 15 (0xf), region = 144 }
 0xcb5   :  { %9545 = vsyncpa [#allocation4], 1 }
 0xcb6   :  { %9547 = vsyncpa [#allocation4 + $0x1], 1 }
 0xcb7   :  { %9548 = vsyncpa [#allocation5], 1 }
 0xcb8   :  { %9550 = vsyncpa [#allocation5 + $0x1], 1 }
 0xcb9   :  { %9551 = vsyncpa [#allocation6], 1 }
 0xcba   :  { %9553 = vsyncpa [#allocation6 + $0x1], 1 }
 0xcbb   :  { %9554 = vsyncpa [#allocation9], 1 }

</bundles_post_ra>
